<compile_context>
chip_gen: v7x
topology: tpu7x:2x2x1
jax: 0.10.0
libtpu: 0.0.40
codegen_flags: <defaults>
</compile_context>

<pallas_src>
import functools

import jax
import jax.numpy as jnp
from jax.experimental import pallas as pl
from jax.experimental.pallas import tpu as pltpu

CUTOFF = 0.32178
EPS = 1e-15
INV_SCALE = 1.0 / (2.0 * 28.0 * CUTOFF)

# v6e/v7x: bf16 VALUs -> accumulate the K-mixture sum in bf16.
# v5e: set to jnp.float32 (no bf16 VPU; bf16 only adds pack/unpack work).
MIX_ACCUM_DTYPE = jnp.bfloat16


def _step_spec(shape):
    """Per-grid-step array: blocked along the leading (step) axis."""
    nd = len(shape)
    blk = (1,) + tuple(shape[1:])
    return pl.BlockSpec(blk, lambda s, _nd=nd: (s,) + (0,) * (_nd - 1))


def _shared_spec(shape):
    """Shared weight array: same (full) block for every grid step.

    Constant index_map -> Pallas skips the DMA on every step after the first,
    so weights are fetched once (their VMEM footprint here is ~150 KiB total).
    """
    nd = len(shape)
    return pl.BlockSpec(tuple(shape), lambda s, _nd=nd: (0,) * _nd)


def _elu(x):
    # Single clamped exp: one EUP op per element (jnp.where evaluates both
    # branches, so the clamp also avoids exp overflow on the positive side).
    return jnp.where(x > 0.0, x, jnp.exp(jnp.minimum(x, 0.0)) - 1.0)


def _gmm_layer_t(x_in, edge_attr, gatT_bf, dst_oh_bf, inv_deg_row,
                 gT_ref, mu_ref, nhis_ref, bias_ref, *, K, cin_is_one=False):
    """One GMMConv + ELU layer, channel-major, G graphs packed on the lane axis.

    x_in       : [Cin, Gn] bf16 (or [1, Gn] f32 when cin_is_one)
    edge_attr  : [2, Ge]   f32   pseudo-coordinates
    gatT_bf    : [Gn, Ge]  bf16  block-diagonal src one-hot (gather, transposed)
    dst_oh_bf  : [Ge, Gn]  bf16  block-diagonal dst one-hot (unnormalized scatter)
    inv_deg_row: [1, Gn]   f32   1/deg (mean aggregation, applied in f32)
    gT_ref     : [(K+1)*cout, Cin] bf16 (f32 [.,1] when cin_is_one); root = last cout rows
    mu_ref     : [K, 2]    f32
    nhis_ref   : [K, 2]    f32   -0.5 / (EPS + sigma^2)
    bias_ref   : [cout, 1] f32
    returns    : [cout, Gn] f32
    """
    cout = gT_ref.shape[0] // (K + 1)

    # Gaussian mixture weights, lane-dense [K, Ge], f32 on the VPU/EUP path.
    mu = mu_ref[...]
    nhis = nhis_ref[...]
    d0 = edge_attr[0:1, :] - mu[:, 0:1]                 # [K, Ge]
    d1 = edge_attr[1:2, :] - mu[:, 1:2]                 # [K, Ge]
    w = jnp.exp(nhis[:, 0:1] * d0 * d0 + nhis[:, 1:2] * d1 * d1)   # [K, Ge] f32
    w_acc = w.astype(MIX_ACCUM_DTYPE)

    # Per-node transform; root weight folded into gT (one op instead of two).
    if cin_is_one:
        # conv1 specialization: Cin == 1 -> VPU outer product, no MXU / no padding.
        xtT = gT_ref[...] * x_in                        # [(K+1)*cout, Gn] f32
    else:
        xtT = jnp.dot(gT_ref[...], x_in,
                      preferred_element_type=jnp.float32)   # [(K+1)*cout, Gn] f32
    rootT = xtT[K * cout:, :]                           # [cout, Gn] (8-aligned rows)
    kerT = xtT[:K * cout, :].astype(jnp.bfloat16)       # [K*cout, Gn]

    # Gather source-node features via one-hot matmul (bf16 MXU, f32 acc, exact).
    x_srcT = jnp.dot(kerT, gatT_bf,
                     preferred_element_type=jnp.float32).astype(MIX_ACCUM_DTYPE)

    # Mixture-weighted sum over the K kernels.  Every k-slice is a
    # sublane-tile-aligned row view (offset k*cout, cout % 8 == 0) and w[k]
    # broadcasts over sublanes -> no lane relayouts.  bf16 accumulation on
    # bf16-native VALUs (v6e/v7x); flip MIX_ACCUM_DTYPE to f32 on v5e.
    # TODO(synk): chunk the edge axis (512-1024 tiles, f32 scratch accumulator)
    # when porting to real superpixel graphs (e ~ 1400/graph) to bound x_srcT.
    msgT = x_srcT[0:cout, :] * w_acc[0:1, :]
    for k in range(1, K):                               # static, K small
        msgT = msgT + x_srcT[k * cout:(k + 1) * cout, :] * w_acc[k:k + 1, :]

    # Scatter-sum to destination nodes (exact bf16 one-hot), then mean in f32.
    aggT = jnp.dot(msgT.astype(jnp.bfloat16), dst_oh_bf,
                   preferred_element_type=jnp.float32)              # [cout, Gn]
    out = aggT * inv_deg_row + rootT + bias_ref[...]
    return _elu(out)


def monet_kernel(x0_ref, posr_ref, posc_ref, gatT_ref, dstoh_ref, invdeg_ref,
                 poolind_ref, invn_ref,
                 g1_ref, mu1_ref, s1_ref, b1_ref,
                 g2_ref, mu2_ref, s2_ref, b2_ref,
                 g3_ref, mu3_ref, s3_ref, b3_ref,
                 wfc1_ref, bfc1_ref, wfc2_ref, bfc2_ref,
                 out_ref, *, K):
    # One grid step == G packed graphs (leading block dim 1 -> index it away).
    x0 = x0_ref[0]                       # [1, Gn]   f32  (Cin == 1)
    posrT = posr_ref[0]                  # [2, Ge]   f32  (pos[row] = pos[src])
    poscT = posc_ref[0]                  # [2, Ge]   f32  (pos[col] = pos[dst])
    gatT = gatT_ref[0]                   # [Gn, Ge]  bf16 block-diagonal
    dst_oh = dstoh_ref[0]                # [Ge, Gn]  bf16 block-diagonal
    inv_deg = invdeg_ref[0]              # [1, Gn]   f32
    poolind = poolind_ref[...]           # [Gn, G]   bf16 segment indicator
    inv_n = invn_ref[...]                # [1, G]    f32  1/nodes-per-graph

    # Pseudo-coordinates (pos[col] - pos[row]) / (2*28*cutoff) + 0.5, computed
    # once and shared by the three convs (same packed graph; pooling skipped).
    edge_attr = (poscT - posrT) * INV_SCALE + 0.5          # [2, Ge]

    h1 = _gmm_layer_t(x0, edge_attr, gatT, dst_oh, inv_deg,
                      g1_ref, mu1_ref, s1_ref, b1_ref, K=K,
                      cin_is_one=True)                                 # [32, Gn]
    h2 = _gmm_layer_t(h1.astype(jnp.bfloat16), edge_attr, gatT, dst_oh, inv_deg,
                      g2_ref, mu2_ref, s2_ref, b2_ref, K=K)            # [64, Gn]
    h3 = _gmm_layer_t(h2.astype(jnp.bfloat16), edge_attr, gatT, dst_oh, inv_deg,
                      g3_ref, mu3_ref, s3_ref, b3_ref, K=K)            # [64, Gn]

    # global mean pool per packed graph as a segment matmul on the MXU:
    # exact bf16 indicator selection, 1/n scale applied in f32.
    pooled = jnp.dot(h3.astype(jnp.bfloat16), poolind,
                     preferred_element_type=jnp.float32) * inv_n       # [64, G]

    # MLP head, channel-major, lane-dense over the packed-graph axis G.
    h = jnp.dot(wfc1_ref[...], pooled.astype(jnp.bfloat16),
                preferred_element_type=jnp.float32) + bfc1_ref[...]    # [128, G]
    h = _elu(h)
    # F.dropout with training=False is the identity (inference semantics).
    logits = jnp.dot(wfc2_ref[...], h.astype(jnp.bfloat16),
                     preferred_element_type=jnp.float32) + bfc2_ref[...]  # [10, G]
    z = logits - jnp.max(logits, axis=0, keepdims=True)
    logsm = z - jnp.log(jnp.sum(jnp.exp(z), axis=0, keepdims=True))    # log_softmax
    out_ref[...] = logsm.reshape(1, logsm.shape[0], logsm.shape[1])


def monet_forward(x0, posrT, poscT, gatT, dst_oh, inv_deg, poolind, inv_n,
                  conv_params, head_params, K, G):
    S = x0.shape[0]   # grid steps; keep even so v7x megacore feeds both TCs
    (g1, mu1, s1, b1), (g2, mu2, s2, b2), (g3, mu3, s3, b3) = conv_params
    wfc1T, bfc1, wfc2T, bfc2 = head_params

    per_step = (x0, posrT, poscT, gatT, dst_oh, inv_deg)
    shared = (poolind, inv_n,
              g1, mu1, s1, b1, g2, mu2, s2, b2, g3, mu3, s3, b3,
              wfc1T, bfc1, wfc2T, bfc2)
    in_specs = ([_step_spec(a.shape) for a in per_step]
                + [_shared_spec(a.shape) for a in shared])

    out = pl.pallas_call(
        functools.partial(monet_kernel, K=K),
        out_shape=jax.ShapeDtypeStruct((S, 10, G), jnp.float32),
        grid=(S,),
        in_specs=in_specs,
        out_specs=pl.BlockSpec((1, 10, G), lambda s: (s, 0, 0)),
        compiler_params=pltpu.CompilerParams(
            dimension_semantics=("parallel",)),   # v7x: shard steps across both TCs
    )(*per_step, *shared)
    # [S, 10, G] -> [S*G, 10]  (graph-major rows of class log-probs)
    return jnp.swapaxes(out, 1, 2).reshape(S * G, 10)


# --------------------------------- driver ---------------------------------- #
if __name__ == "__main__":
    key = jax.random.PRNGKey(0)
    K = 8             # GMMConv kernel_size
    B = 16            # graphs in the batch
    G = 8             # graphs packed per grid step
    STEPS = B // G    # 2 -> even grid for v7x megacore
    n_per = 32        # nodes per graph
    e_per = 64        # edges per graph
    Gn = G * n_per    # 256 -> multiple of 256 (full v6e/v7x MXU pass; 128-ok on v5e)
    Ge = G * e_per    # 512

    keys = jax.random.split(key, 20)

    # ----- synthetic superpixel batch (deterministic, per-graph) -----
    x_feat = jax.random.uniform(keys[0], (B, n_per), jnp.float32)
    pos = jax.random.uniform(keys[1], (B, n_per, 2), jnp.float32, 0.0, 28.0)
    src = jax.random.randint(keys[2], (B, e_per), 0, n_per)
    dst = jax.random.randint(keys[3], (B, e_per), 0, n_per)

    # ----- pack G graphs per grid step along the lane axis -----
    node_off = (jnp.arange(G) * n_per)[None, :, None]                   # [1, G, 1]
    src_p = (src.reshape(STEPS, G, e_per) + node_off).reshape(STEPS, Ge)
    dst_p = (dst.reshape(STEPS, G, e_per) + node_off).reshape(STEPS, Ge)

    # block-diagonal one-hot gather / scatter (bf16-exact), mean degrees
    gat = jax.nn.one_hot(src_p, Gn, dtype=jnp.float32)                  # [S, Ge, Gn]
    gatT = jnp.swapaxes(gat, 1, 2).astype(jnp.bfloat16)                 # [S, Gn, Ge]
    dst_oh_f32 = jax.nn.one_hot(dst_p, Gn, dtype=jnp.float32)           # [S, Ge, Gn]
    dst_oh = dst_oh_f32.astype(jnp.bfloat16)
    deg = dst_oh_f32.sum(axis=1)                                        # [S, Gn]
    inv_deg = (1.0 / jnp.maximum(deg, 1.0))[:, None, :]                 # [S, 1, Gn]

    pos_p = pos.reshape(STEPS, Gn, 2)
    take = jax.vmap(lambda p, idx: p[idx])
    posrT = jnp.swapaxes(take(pos_p, src_p), 1, 2)                      # [S, 2, Ge]
    poscT = jnp.swapaxes(take(pos_p, dst_p), 1, 2)                      # [S, 2, Ge]

    # node features (Cin == 1), channel-major row
    x0 = x_feat.reshape(STEPS, 1, Gn)                                   # [S, 1, Gn] f32

    # segment-mean pooling operands (uniform graph sizes -> shared across steps)
    poolind = (jnp.arange(Gn)[:, None] // n_per ==
               jnp.arange(G)[None, :]).astype(jnp.bfloat16)             # [Gn, G]
    inv_n = jnp.full((1, G), 1.0 / n_per, jnp.float32)

    # ----- deterministic synthetic parameters -----
    def conv1_params(k, cout):
        k1, k2, k3, k4, k5 = jax.random.split(k, 5)
        g = jax.random.normal(k1, (1, K * cout), jnp.float32) * 0.1
        root = jax.random.normal(k4, (1, cout), jnp.float32) * 0.1
        gcol = jnp.concatenate([g, root], axis=1).T                     # [(K+1)*cout, 1] f32
        mu = jax.random.uniform(k2, (K, 2), jnp.float32)
        sigma = jax.random.uniform(k3, (K, 2), jnp.float32, 0.2, 1.0)
        nhis = -0.5 / (EPS + sigma ** 2)
        bias = (jax.random.normal(k5, (cout,), jnp.float32) * 0.01)[:, None]
        return gcol, mu, nhis, bias

    def conv_params(k, cin, cout):
        k1, k2, k3, k4, k5 = jax.random.split(k, 5)
        g = jax.random.normal(k1, (cin, K * cout), jnp.float32) * 0.1
        root = jax.random.normal(k4, (cin, cout), jnp.float32) * 0.1
        gT = jnp.concatenate([g, root], axis=1).T.astype(jnp.bfloat16)  # [(K+1)*cout, cin]
        mu = jax.random.uniform(k2, (K, 2), jnp.float32)
        sigma = jax.random.uniform(k3, (K, 2), jnp.float32, 0.2, 1.0)
        nhis = -0.5 / (EPS + sigma ** 2)
        bias = (jax.random.normal(k5, (cout,), jnp.float32) * 0.01)[:, None]
        return gT, mu, nhis, bias

    p1 = conv1_params(keys[6], 32)
    p2 = conv_params(keys[7], 32, 64)
    p3 = conv_params(keys[8], 64, 64)

    wfc1T = (jax.random.normal(keys[9], (64, 128), jnp.float32) * 0.1).T.astype(jnp.bfloat16)
    bfc1 = (jax.random.normal(keys[10], (128,), jnp.float32) * 0.01)[:, None]
    wfc2T = (jax.random.normal(keys[11], (128, 10), jnp.float32) * 0.1).T.astype(jnp.bfloat16)
    bfc2 = (jax.random.normal(keys[12], (10,), jnp.float32) * 0.01)[:, None]

    # ----- fused forward pass -----
    # TODO(synk): graclus clustering + max_pool (+ Cartesian transform) are
    # data-dependent greedy graph coarsening with no clean Pallas equivalent;
    # conv2/conv3 therefore operate on the original (uncoarsened) graph.
    out = monet_forward(x0, posrT, poscT, gatT, dst_oh, inv_deg, poolind, inv_n,
                        (p1, p2, p3), (wfc1T, bfc1, wfc2T, bfc2), K, G)
    out = jax.block_until_ready(out)

    assert out.shape == (B, 10)
    assert bool(jnp.all(jnp.isfinite(out)))
    print("KERNEL_OK")
</pallas_src>

<mosaic_0001>
module attributes {stable_mosaic.version = 11 : i64} {
  func.func @monet_kernel(%arg0: i32, %arg1: memref<1x1x256xf32, #tpu.memory_space<vmem>>, %arg2: memref<1x2x512xf32, #tpu.memory_space<vmem>>, %arg3: memref<1x2x512xf32, #tpu.memory_space<vmem>>, %arg4: memref<1x256x512xbf16, #tpu.memory_space<vmem>>, %arg5: memref<1x512x256xbf16, #tpu.memory_space<vmem>>, %arg6: memref<1x1x256xf32, #tpu.memory_space<vmem>>, %arg7: memref<256x8xbf16, #tpu.memory_space<vmem>>, %arg8: memref<1x8xf32, #tpu.memory_space<vmem>>, %arg9: memref<288x1xf32, #tpu.memory_space<vmem>>, %arg10: memref<8x2xf32, #tpu.memory_space<vmem>>, %arg11: memref<8x2xf32, #tpu.memory_space<vmem>>, %arg12: memref<32x1xf32, #tpu.memory_space<vmem>>, %arg13: memref<576x32xbf16, #tpu.memory_space<vmem>>, %arg14: memref<8x2xf32, #tpu.memory_space<vmem>>, %arg15: memref<8x2xf32, #tpu.memory_space<vmem>>, %arg16: memref<64x1xf32, #tpu.memory_space<vmem>>, %arg17: memref<576x64xbf16, #tpu.memory_space<vmem>>, %arg18: memref<8x2xf32, #tpu.memory_space<vmem>>, %arg19: memref<8x2xf32, #tpu.memory_space<vmem>>, %arg20: memref<64x1xf32, #tpu.memory_space<vmem>>, %arg21: memref<128x64xbf16, #tpu.memory_space<vmem>>, %arg22: memref<128x1xf32, #tpu.memory_space<vmem>>, %arg23: memref<10x128xbf16, #tpu.memory_space<vmem>>, %arg24: memref<10x1xf32, #tpu.memory_space<vmem>>, %arg25: memref<1x10x8xf32, #tpu.memory_space<vmem>>) attributes {dimension_semantics = [#tpu.dimension_semantics<parallel>], iteration_bounds = array<i64: 2>, scalar_prefetch = 0 : i64, scratch_operands = 0 : i64, tpu.core_type = #tpu.core_type<tc>, window_params = [{transform_indices = @transform_0, window_bounds = array<i64: 1, 1, 256>}, {transform_indices = @transform_1, window_bounds = array<i64: 1, 2, 512>}, {transform_indices = @transform_2, window_bounds = array<i64: 1, 2, 512>}, {transform_indices = @transform_3, window_bounds = array<i64: 1, 256, 512>}, {transform_indices = @transform_4, window_bounds = array<i64: 1, 512, 256>}, {transform_indices = @transform_5, window_bounds = array<i64: 1, 1, 256>}, {pipeline_mode = #tpu.pipeline_mode<synchronous>, transform_indices = @transform_6, window_bounds = array<i64: 256, 8>}, {pipeline_mode = #tpu.pipeline_mode<synchronous>, transform_indices = @transform_7, window_bounds = array<i64: 1, 8>}, {pipeline_mode = #tpu.pipeline_mode<synchronous>, transform_indices = @transform_8, window_bounds = array<i64: 288, 1>}, {pipeline_mode = #tpu.pipeline_mode<synchronous>, transform_indices = @transform_9, window_bounds = array<i64: 8, 2>}, {pipeline_mode = #tpu.pipeline_mode<synchronous>, transform_indices = @transform_10, window_bounds = array<i64: 8, 2>}, {pipeline_mode = #tpu.pipeline_mode<synchronous>, transform_indices = @transform_11, window_bounds = array<i64: 32, 1>}, {pipeline_mode = #tpu.pipeline_mode<synchronous>, transform_indices = @transform_12, window_bounds = array<i64: 576, 32>}, {pipeline_mode = #tpu.pipeline_mode<synchronous>, transform_indices = @transform_13, window_bounds = array<i64: 8, 2>}, {pipeline_mode = #tpu.pipeline_mode<synchronous>, transform_indices = @transform_14, window_bounds = array<i64: 8, 2>}, {pipeline_mode = #tpu.pipeline_mode<synchronous>, transform_indices = @transform_15, window_bounds = array<i64: 64, 1>}, {pipeline_mode = #tpu.pipeline_mode<synchronous>, transform_indices = @transform_16, window_bounds = array<i64: 576, 64>}, {pipeline_mode = #tpu.pipeline_mode<synchronous>, transform_indices = @transform_17, window_bounds = array<i64: 8, 2>}, {pipeline_mode = #tpu.pipeline_mode<synchronous>, transform_indices = @transform_18, window_bounds = array<i64: 8, 2>}, {pipeline_mode = #tpu.pipeline_mode<synchronous>, transform_indices = @transform_19, window_bounds = array<i64: 64, 1>}, {pipeline_mode = #tpu.pipeline_mode<synchronous>, transform_indices = @transform_20, window_bounds = array<i64: 128, 64>}, {pipeline_mode = #tpu.pipeline_mode<synchronous>, transform_indices = @transform_21, window_bounds = array<i64: 128, 1>}, {pipeline_mode = #tpu.pipeline_mode<synchronous>, transform_indices = @transform_22, window_bounds = array<i64: 10, 128>}, {pipeline_mode = #tpu.pipeline_mode<synchronous>, transform_indices = @transform_23, window_bounds = array<i64: 10, 1>}, {transform_indices = @transform_24, window_bounds = array<i64: 1, 10, 8>}]} {
    %c0 = arith.constant 0 : index
    %c0_0 = arith.constant 0 : index
    %c0_1 = arith.constant 0 : index
    %0 = vector.load %arg1[%c0, %c0_0, %c0_1] : memref<1x1x256xf32, #tpu.memory_space<vmem>>, vector<1x1x256xf32>
    %1 = vector.shape_cast %0 : vector<1x1x256xf32> to vector<1x256xf32>
    %c0_2 = arith.constant 0 : index
    %c0_3 = arith.constant 0 : index
    %c0_4 = arith.constant 0 : index
    %2 = vector.load %arg2[%c0_2, %c0_3, %c0_4] : memref<1x2x512xf32, #tpu.memory_space<vmem>>, vector<1x2x512xf32>
    %3 = vector.shape_cast %2 : vector<1x2x512xf32> to vector<2x512xf32>
    %c0_5 = arith.constant 0 : index
    %c0_6 = arith.constant 0 : index
    %c0_7 = arith.constant 0 : index
    %4 = vector.load %arg3[%c0_5, %c0_6, %c0_7] : memref<1x2x512xf32, #tpu.memory_space<vmem>>, vector<1x2x512xf32>
    %5 = vector.shape_cast %4 : vector<1x2x512xf32> to vector<2x512xf32>
    %c0_8 = arith.constant 0 : index
    %c0_9 = arith.constant 0 : index
    %c0_10 = arith.constant 0 : index
    %6 = vector.load %arg4[%c0_8, %c0_9, %c0_10] : memref<1x256x512xbf16, #tpu.memory_space<vmem>>, vector<1x256x512xbf16>
    %7 = vector.shape_cast %6 : vector<1x256x512xbf16> to vector<256x512xbf16>
    %c0_11 = arith.constant 0 : index
    %c0_12 = arith.constant 0 : index
    %c0_13 = arith.constant 0 : index
    %8 = vector.load %arg5[%c0_11, %c0_12, %c0_13] : memref<1x512x256xbf16, #tpu.memory_space<vmem>>, vector<1x512x256xbf16>
    %9 = vector.shape_cast %8 : vector<1x512x256xbf16> to vector<512x256xbf16>
    %c0_14 = arith.constant 0 : index
    %c0_15 = arith.constant 0 : index
    %c0_16 = arith.constant 0 : index
    %10 = vector.load %arg6[%c0_14, %c0_15, %c0_16] : memref<1x1x256xf32, #tpu.memory_space<vmem>>, vector<1x1x256xf32>
    %11 = vector.shape_cast %10 : vector<1x1x256xf32> to vector<1x256xf32>
    %c0_17 = arith.constant 0 : index
    %c0_18 = arith.constant 0 : index
    %12 = vector.load %arg7[%c0_17, %c0_18] : memref<256x8xbf16, #tpu.memory_space<vmem>>, vector<256x8xbf16>
    %c0_19 = arith.constant 0 : index
    %c0_20 = arith.constant 0 : index
    %13 = vector.load %arg8[%c0_19, %c0_20] : memref<1x8xf32, #tpu.memory_space<vmem>>, vector<1x8xf32>
    %14 = arith.subf %5, %3 : vector<2x512xf32>
    %cst = arith.constant 0.0554948822 : f32
    %15 = vector.broadcast %cst : f32 to vector<2x512xf32>
    %16 = arith.mulf %14, %15 : vector<2x512xf32>
    %cst_21 = arith.constant 5.000000e-01 : f32
    %17 = vector.broadcast %cst_21 : f32 to vector<2x512xf32>
    %18 = arith.addf %16, %17 : vector<2x512xf32>
    %c0_22 = arith.constant 0 : index
    %c0_23 = arith.constant 0 : index
    %19 = vector.load %arg10[%c0_22, %c0_23] : memref<8x2xf32, #tpu.memory_space<vmem>>, vector<8x2xf32>
    %c0_24 = arith.constant 0 : index
    %c0_25 = arith.constant 0 : index
    %20 = vector.load %arg11[%c0_24, %c0_25] : memref<8x2xf32, #tpu.memory_space<vmem>>, vector<8x2xf32>
    %21 = vector.extract_strided_slice %18 {offsets = [0, 0], sizes = [1, 512], strides = [1, 1]} : vector<2x512xf32> to vector<1x512xf32>
    %22 = vector.extract_strided_slice %19 {offsets = [0, 0], sizes = [8, 1], strides = [1, 1]} : vector<8x2xf32> to vector<8x1xf32>
    %23 = vector.broadcast %21 : vector<1x512xf32> to vector<8x512xf32>
    %24 = vector.broadcast %22 : vector<8x1xf32> to vector<8x512xf32>
    %25 = arith.subf %23, %24 : vector<8x512xf32>
    %26 = vector.extract_strided_slice %18 {offsets = [1, 0], sizes = [1, 512], strides = [1, 1]} : vector<2x512xf32> to vector<1x512xf32>
    %27 = vector.extract_strided_slice %19 {offsets = [0, 1], sizes = [8, 1], strides = [1, 1]} : vector<8x2xf32> to vector<8x1xf32>
    %28 = vector.broadcast %26 : vector<1x512xf32> to vector<8x512xf32>
    %29 = vector.broadcast %27 : vector<8x1xf32> to vector<8x512xf32>
    %30 = arith.subf %28, %29 : vector<8x512xf32>
    %31 = vector.extract_strided_slice %20 {offsets = [0, 0], sizes = [8, 1], strides = [1, 1]} : vector<8x2xf32> to vector<8x1xf32>
    %32 = vector.broadcast %31 : vector<8x1xf32> to vector<8x512xf32>
    %33 = arith.mulf %32, %25 : vector<8x512xf32>
    %34 = arith.mulf %33, %25 : vector<8x512xf32>
    %35 = vector.extract_strided_slice %20 {offsets = [0, 1], sizes = [8, 1], strides = [1, 1]} : vector<8x2xf32> to vector<8x1xf32>
    %36 = vector.broadcast %35 : vector<8x1xf32> to vector<8x512xf32>
    %37 = arith.mulf %36, %30 : vector<8x512xf32>
    %38 = arith.mulf %37, %30 : vector<8x512xf32>
    %39 = arith.addf %34, %38 : vector<8x512xf32>
    %40 = math.exp %39 : vector<8x512xf32>
    %41 = arith.truncf %40 : vector<8x512xf32> to vector<8x512xbf16>
    %c0_26 = arith.constant 0 : index
    %c0_27 = arith.constant 0 : index
    %42 = vector.load %arg9[%c0_26, %c0_27] : memref<288x1xf32, #tpu.memory_space<vmem>>, vector<288x1xf32>
    %43 = vector.broadcast %42 : vector<288x1xf32> to vector<288x256xf32>
    %44 = vector.broadcast %1 : vector<1x256xf32> to vector<288x256xf32>
    %45 = arith.mulf %43, %44 : vector<288x256xf32>
    %46 = vector.extract_strided_slice %45 {offsets = [256, 0], sizes = [32, 256], strides = [1, 1]} : vector<288x256xf32> to vector<32x256xf32>
    %47 = vector.extract_strided_slice %45 {offsets = [0, 0], sizes = [256, 256], strides = [1, 1]} : vector<288x256xf32> to vector<256x256xf32>
    %48 = arith.truncf %47 : vector<256x256xf32> to vector<256x256xbf16>
    %cst_28 = arith.constant dense<0.000000e+00> : vector<256x512xf32>
    %49 = tpu.matmul %48, %7, %cst_28 {dimension_numbers = #tpu.dot_dimension_numbers<[1], [0], [0], [1], [0, 0, 1, 1], [], []>} : vector<256x256xbf16>, vector<256x512xbf16>, vector<256x512xf32> -> vector<256x512xf32>
    %50 = arith.truncf %49 : vector<256x512xf32> to vector<256x512xbf16>
    %51 = vector.extract_strided_slice %50 {offsets = [0, 0], sizes = [32, 512], strides = [1, 1]} : vector<256x512xbf16> to vector<32x512xbf16>
    %52 = vector.extract_strided_slice %41 {offsets = [0, 0], sizes = [1, 512], strides = [1, 1]} : vector<8x512xbf16> to vector<1x512xbf16>
    %53 = vector.broadcast %52 : vector<1x512xbf16> to vector<32x512xbf16>
    %54 = arith.mulf %51, %53 : vector<32x512xbf16>
    %55 = vector.extract_strided_slice %50 {offsets = [32, 0], sizes = [32, 512], strides = [1, 1]} : vector<256x512xbf16> to vector<32x512xbf16>
    %56 = vector.extract_strided_slice %41 {offsets = [1, 0], sizes = [1, 512], strides = [1, 1]} : vector<8x512xbf16> to vector<1x512xbf16>
    %57 = vector.broadcast %56 : vector<1x512xbf16> to vector<32x512xbf16>
    %58 = arith.mulf %55, %57 : vector<32x512xbf16>
    %59 = arith.addf %54, %58 : vector<32x512xbf16>
    %60 = vector.extract_strided_slice %50 {offsets = [64, 0], sizes = [32, 512], strides = [1, 1]} : vector<256x512xbf16> to vector<32x512xbf16>
    %61 = vector.extract_strided_slice %41 {offsets = [2, 0], sizes = [1, 512], strides = [1, 1]} : vector<8x512xbf16> to vector<1x512xbf16>
    %62 = vector.broadcast %61 : vector<1x512xbf16> to vector<32x512xbf16>
    %63 = arith.mulf %60, %62 : vector<32x512xbf16>
    %64 = arith.addf %59, %63 : vector<32x512xbf16>
    %65 = vector.extract_strided_slice %50 {offsets = [96, 0], sizes = [32, 512], strides = [1, 1]} : vector<256x512xbf16> to vector<32x512xbf16>
    %66 = vector.extract_strided_slice %41 {offsets = [3, 0], sizes = [1, 512], strides = [1, 1]} : vector<8x512xbf16> to vector<1x512xbf16>
    %67 = vector.broadcast %66 : vector<1x512xbf16> to vector<32x512xbf16>
    %68 = arith.mulf %65, %67 : vector<32x512xbf16>
    %69 = arith.addf %64, %68 : vector<32x512xbf16>
    %70 = vector.extract_strided_slice %50 {offsets = [128, 0], sizes = [32, 512], strides = [1, 1]} : vector<256x512xbf16> to vector<32x512xbf16>
    %71 = vector.extract_strided_slice %41 {offsets = [4, 0], sizes = [1, 512], strides = [1, 1]} : vector<8x512xbf16> to vector<1x512xbf16>
    %72 = vector.broadcast %71 : vector<1x512xbf16> to vector<32x512xbf16>
    %73 = arith.mulf %70, %72 : vector<32x512xbf16>
    %74 = arith.addf %69, %73 : vector<32x512xbf16>
    %75 = vector.extract_strided_slice %50 {offsets = [160, 0], sizes = [32, 512], strides = [1, 1]} : vector<256x512xbf16> to vector<32x512xbf16>
    %76 = vector.extract_strided_slice %41 {offsets = [5, 0], sizes = [1, 512], strides = [1, 1]} : vector<8x512xbf16> to vector<1x512xbf16>
    %77 = vector.broadcast %76 : vector<1x512xbf16> to vector<32x512xbf16>
    %78 = arith.mulf %75, %77 : vector<32x512xbf16>
    %79 = arith.addf %74, %78 : vector<32x512xbf16>
    %80 = vector.extract_strided_slice %50 {offsets = [192, 0], sizes = [32, 512], strides = [1, 1]} : vector<256x512xbf16> to vector<32x512xbf16>
    %81 = vector.extract_strided_slice %41 {offsets = [6, 0], sizes = [1, 512], strides = [1, 1]} : vector<8x512xbf16> to vector<1x512xbf16>
    %82 = vector.broadcast %81 : vector<1x512xbf16> to vector<32x512xbf16>
    %83 = arith.mulf %80, %82 : vector<32x512xbf16>
    %84 = arith.addf %79, %83 : vector<32x512xbf16>
    %85 = vector.extract_strided_slice %50 {offsets = [224, 0], sizes = [32, 512], strides = [1, 1]} : vector<256x512xbf16> to vector<32x512xbf16>
    %86 = vector.extract_strided_slice %41 {offsets = [7, 0], sizes = [1, 512], strides = [1, 1]} : vector<8x512xbf16> to vector<1x512xbf16>
    %87 = vector.broadcast %86 : vector<1x512xbf16> to vector<32x512xbf16>
    %88 = arith.mulf %85, %87 : vector<32x512xbf16>
    %89 = arith.addf %84, %88 : vector<32x512xbf16>
    %cst_29 = arith.constant dense<0.000000e+00> : vector<32x256xf32>
    %90 = tpu.matmul %89, %9, %cst_29 {dimension_numbers = #tpu.dot_dimension_numbers<[1], [0], [0], [1], [0, 0, 1, 1], [], []>} : vector<32x512xbf16>, vector<512x256xbf16>, vector<32x256xf32> -> vector<32x256xf32>
    %91 = vector.broadcast %11 : vector<1x256xf32> to vector<32x256xf32>
    %92 = arith.mulf %90, %91 : vector<32x256xf32>
    %93 = arith.addf %92, %46 : vector<32x256xf32>
    %c0_30 = arith.constant 0 : index
    %c0_31 = arith.constant 0 : index
    %94 = vector.load %arg12[%c0_30, %c0_31] : memref<32x1xf32, #tpu.memory_space<vmem>>, vector<32x1xf32>
    %95 = vector.broadcast %94 : vector<32x1xf32> to vector<32x256xf32>
    %96 = arith.addf %93, %95 : vector<32x256xf32>
    %cst_32 = arith.constant 0.000000e+00 : f32
    %97 = vector.broadcast %cst_32 : f32 to vector<32x256xf32>
    %98 = arith.cmpf ogt, %96, %97 : vector<32x256xf32>
    %cst_33 = arith.constant 0.000000e+00 : f32
    %99 = vector.broadcast %cst_33 : f32 to vector<32x256xf32>
    %100 = arith.minimumf %96, %99 : vector<32x256xf32>
    %101 = math.exp %100 : vector<32x256xf32>
    %cst_34 = arith.constant 1.000000e+00 : f32
    %102 = vector.broadcast %cst_34 : f32 to vector<32x256xf32>
    %103 = arith.subf %101, %102 : vector<32x256xf32>
    %104 = arith.select %98, %96, %103 : vector<32x256xi1>, vector<32x256xf32>
    %105 = arith.truncf %104 : vector<32x256xf32> to vector<32x256xbf16>
    %c0_35 = arith.constant 0 : index
    %c0_36 = arith.constant 0 : index
    %106 = vector.load %arg14[%c0_35, %c0_36] : memref<8x2xf32, #tpu.memory_space<vmem>>, vector<8x2xf32>
    %c0_37 = arith.constant 0 : index
    %c0_38 = arith.constant 0 : index
    %107 = vector.load %arg15[%c0_37, %c0_38] : memref<8x2xf32, #tpu.memory_space<vmem>>, vector<8x2xf32>
    %108 = vector.extract_strided_slice %18 {offsets = [0, 0], sizes = [1, 512], strides = [1, 1]} : vector<2x512xf32> to vector<1x512xf32>
    %109 = vector.extract_strided_slice %106 {offsets = [0, 0], sizes = [8, 1], strides = [1, 1]} : vector<8x2xf32> to vector<8x1xf32>
    %110 = vector.broadcast %108 : vector<1x512xf32> to vector<8x512xf32>
    %111 = vector.broadcast %109 : vector<8x1xf32> to vector<8x512xf32>
    %112 = arith.subf %110, %111 : vector<8x512xf32>
    %113 = vector.extract_strided_slice %18 {offsets = [1, 0], sizes = [1, 512], strides = [1, 1]} : vector<2x512xf32> to vector<1x512xf32>
    %114 = vector.extract_strided_slice %106 {offsets = [0, 1], sizes = [8, 1], strides = [1, 1]} : vector<8x2xf32> to vector<8x1xf32>
    %115 = vector.broadcast %113 : vector<1x512xf32> to vector<8x512xf32>
    %116 = vector.broadcast %114 : vector<8x1xf32> to vector<8x512xf32>
    %117 = arith.subf %115, %116 : vector<8x512xf32>
    %118 = vector.extract_strided_slice %107 {offsets = [0, 0], sizes = [8, 1], strides = [1, 1]} : vector<8x2xf32> to vector<8x1xf32>
    %119 = vector.broadcast %118 : vector<8x1xf32> to vector<8x512xf32>
    %120 = arith.mulf %119, %112 : vector<8x512xf32>
    %121 = arith.mulf %120, %112 : vector<8x512xf32>
    %122 = vector.extract_strided_slice %107 {offsets = [0, 1], sizes = [8, 1], strides = [1, 1]} : vector<8x2xf32> to vector<8x1xf32>
    %123 = vector.broadcast %122 : vector<8x1xf32> to vector<8x512xf32>
    %124 = arith.mulf %123, %117 : vector<8x512xf32>
    %125 = arith.mulf %124, %117 : vector<8x512xf32>
    %126 = arith.addf %121, %125 : vector<8x512xf32>
    %127 = math.exp %126 : vector<8x512xf32>
    %128 = arith.truncf %127 : vector<8x512xf32> to vector<8x512xbf16>
    %c0_39 = arith.constant 0 : index
    %c0_40 = arith.constant 0 : index
    %129 = vector.load %arg13[%c0_39, %c0_40] : memref<576x32xbf16, #tpu.memory_space<vmem>>, vector<576x32xbf16>
    %cst_41 = arith.constant dense<0.000000e+00> : vector<576x256xf32>
    %130 = tpu.matmul %129, %105, %cst_41 {dimension_numbers = #tpu.dot_dimension_numbers<[1], [0], [0], [1], [0, 0, 1, 1], [], []>} : vector<576x32xbf16>, vector<32x256xbf16>, vector<576x256xf32> -> vector<576x256xf32>
    %131 = vector.extract_strided_slice %130 {offsets = [512, 0], sizes = [64, 256], strides = [1, 1]} : vector<576x256xf32> to vector<64x256xf32>
    %132 = vector.extract_strided_slice %130 {offsets = [0, 0], sizes = [512, 256], strides = [1, 1]} : vector<576x256xf32> to vector<512x256xf32>
    %133 = arith.truncf %132 : vector<512x256xf32> to vector<512x256xbf16>
    %cst_42 = arith.constant dense<0.000000e+00> : vector<512x512xf32>
    %134 = tpu.matmul %133, %7, %cst_42 {dimension_numbers = #tpu.dot_dimension_numbers<[1], [0], [0], [1], [0, 0, 1, 1], [], []>} : vector<512x256xbf16>, vector<256x512xbf16>, vector<512x512xf32> -> vector<512x512xf32>
    %135 = arith.truncf %134 : vector<512x512xf32> to vector<512x512xbf16>
    %136 = vector.extract_strided_slice %135 {offsets = [0, 0], sizes = [64, 512], strides = [1, 1]} : vector<512x512xbf16> to vector<64x512xbf16>
    %137 = vector.extract_strided_slice %128 {offsets = [0, 0], sizes = [1, 512], strides = [1, 1]} : vector<8x512xbf16> to vector<1x512xbf16>
    %138 = vector.broadcast %137 : vector<1x512xbf16> to vector<64x512xbf16>
    %139 = arith.mulf %136, %138 : vector<64x512xbf16>
    %140 = vector.extract_strided_slice %135 {offsets = [64, 0], sizes = [64, 512], strides = [1, 1]} : vector<512x512xbf16> to vector<64x512xbf16>
    %141 = vector.extract_strided_slice %128 {offsets = [1, 0], sizes = [1, 512], strides = [1, 1]} : vector<8x512xbf16> to vector<1x512xbf16>
    %142 = vector.broadcast %141 : vector<1x512xbf16> to vector<64x512xbf16>
    %143 = arith.mulf %140, %142 : vector<64x512xbf16>
    %144 = arith.addf %139, %143 : vector<64x512xbf16>
    %145 = vector.extract_strided_slice %135 {offsets = [128, 0], sizes = [64, 512], strides = [1, 1]} : vector<512x512xbf16> to vector<64x512xbf16>
    %146 = vector.extract_strided_slice %128 {offsets = [2, 0], sizes = [1, 512], strides = [1, 1]} : vector<8x512xbf16> to vector<1x512xbf16>
    %147 = vector.broadcast %146 : vector<1x512xbf16> to vector<64x512xbf16>
    %148 = arith.mulf %145, %147 : vector<64x512xbf16>
    %149 = arith.addf %144, %148 : vector<64x512xbf16>
    %150 = vector.extract_strided_slice %135 {offsets = [192, 0], sizes = [64, 512], strides = [1, 1]} : vector<512x512xbf16> to vector<64x512xbf16>
    %151 = vector.extract_strided_slice %128 {offsets = [3, 0], sizes = [1, 512], strides = [1, 1]} : vector<8x512xbf16> to vector<1x512xbf16>
    %152 = vector.broadcast %151 : vector<1x512xbf16> to vector<64x512xbf16>
    %153 = arith.mulf %150, %152 : vector<64x512xbf16>
    %154 = arith.addf %149, %153 : vector<64x512xbf16>
    %155 = vector.extract_strided_slice %135 {offsets = [256, 0], sizes = [64, 512], strides = [1, 1]} : vector<512x512xbf16> to vector<64x512xbf16>
    %156 = vector.extract_strided_slice %128 {offsets = [4, 0], sizes = [1, 512], strides = [1, 1]} : vector<8x512xbf16> to vector<1x512xbf16>
    %157 = vector.broadcast %156 : vector<1x512xbf16> to vector<64x512xbf16>
    %158 = arith.mulf %155, %157 : vector<64x512xbf16>
    %159 = arith.addf %154, %158 : vector<64x512xbf16>
    %160 = vector.extract_strided_slice %135 {offsets = [320, 0], sizes = [64, 512], strides = [1, 1]} : vector<512x512xbf16> to vector<64x512xbf16>
    %161 = vector.extract_strided_slice %128 {offsets = [5, 0], sizes = [1, 512], strides = [1, 1]} : vector<8x512xbf16> to vector<1x512xbf16>
    %162 = vector.broadcast %161 : vector<1x512xbf16> to vector<64x512xbf16>
    %163 = arith.mulf %160, %162 : vector<64x512xbf16>
    %164 = arith.addf %159, %163 : vector<64x512xbf16>
    %165 = vector.extract_strided_slice %135 {offsets = [384, 0], sizes = [64, 512], strides = [1, 1]} : vector<512x512xbf16> to vector<64x512xbf16>
    %166 = vector.extract_strided_slice %128 {offsets = [6, 0], sizes = [1, 512], strides = [1, 1]} : vector<8x512xbf16> to vector<1x512xbf16>
    %167 = vector.broadcast %166 : vector<1x512xbf16> to vector<64x512xbf16>
    %168 = arith.mulf %165, %167 : vector<64x512xbf16>
    %169 = arith.addf %164, %168 : vector<64x512xbf16>
    %170 = vector.extract_strided_slice %135 {offsets = [448, 0], sizes = [64, 512], strides = [1, 1]} : vector<512x512xbf16> to vector<64x512xbf16>
    %171 = vector.extract_strided_slice %128 {offsets = [7, 0], sizes = [1, 512], strides = [1, 1]} : vector<8x512xbf16> to vector<1x512xbf16>
    %172 = vector.broadcast %171 : vector<1x512xbf16> to vector<64x512xbf16>
    %173 = arith.mulf %170, %172 : vector<64x512xbf16>
    %174 = arith.addf %169, %173 : vector<64x512xbf16>
    %cst_43 = arith.constant dense<0.000000e+00> : vector<64x256xf32>
    %175 = tpu.matmul %174, %9, %cst_43 {dimension_numbers = #tpu.dot_dimension_numbers<[1], [0], [0], [1], [0, 0, 1, 1], [], []>} : vector<64x512xbf16>, vector<512x256xbf16>, vector<64x256xf32> -> vector<64x256xf32>
    %176 = vector.broadcast %11 : vector<1x256xf32> to vector<64x256xf32>
    %177 = arith.mulf %175, %176 : vector<64x256xf32>
    %178 = arith.addf %177, %131 : vector<64x256xf32>
    %c0_44 = arith.constant 0 : index
    %c0_45 = arith.constant 0 : index
    %179 = vector.load %arg16[%c0_44, %c0_45] : memref<64x1xf32, #tpu.memory_space<vmem>>, vector<64x1xf32>
    %180 = vector.broadcast %179 : vector<64x1xf32> to vector<64x256xf32>
    %181 = arith.addf %178, %180 : vector<64x256xf32>
    %cst_46 = arith.constant 0.000000e+00 : f32
    %182 = vector.broadcast %cst_46 : f32 to vector<64x256xf32>
    %183 = arith.cmpf ogt, %181, %182 : vector<64x256xf32>
    %cst_47 = arith.constant 0.000000e+00 : f32
    %184 = vector.broadcast %cst_47 : f32 to vector<64x256xf32>
    %185 = arith.minimumf %181, %184 : vector<64x256xf32>
    %186 = math.exp %185 : vector<64x256xf32>
    %cst_48 = arith.constant 1.000000e+00 : f32
    %187 = vector.broadcast %cst_48 : f32 to vector<64x256xf32>
    %188 = arith.subf %186, %187 : vector<64x256xf32>
    %189 = arith.select %183, %181, %188 : vector<64x256xi1>, vector<64x256xf32>
    %190 = arith.truncf %189 : vector<64x256xf32> to vector<64x256xbf16>
    %c0_49 = arith.constant 0 : index
    %c0_50 = arith.constant 0 : index
    %191 = vector.load %arg18[%c0_49, %c0_50] : memref<8x2xf32, #tpu.memory_space<vmem>>, vector<8x2xf32>
    %c0_51 = arith.constant 0 : index
    %c0_52 = arith.constant 0 : index
    %192 = vector.load %arg19[%c0_51, %c0_52] : memref<8x2xf32, #tpu.memory_space<vmem>>, vector<8x2xf32>
    %193 = vector.extract_strided_slice %18 {offsets = [0, 0], sizes = [1, 512], strides = [1, 1]} : vector<2x512xf32> to vector<1x512xf32>
    %194 = vector.extract_strided_slice %191 {offsets = [0, 0], sizes = [8, 1], strides = [1, 1]} : vector<8x2xf32> to vector<8x1xf32>
    %195 = vector.broadcast %193 : vector<1x512xf32> to vector<8x512xf32>
    %196 = vector.broadcast %194 : vector<8x1xf32> to vector<8x512xf32>
    %197 = arith.subf %195, %196 : vector<8x512xf32>
    %198 = vector.extract_strided_slice %18 {offsets = [1, 0], sizes = [1, 512], strides = [1, 1]} : vector<2x512xf32> to vector<1x512xf32>
    %199 = vector.extract_strided_slice %191 {offsets = [0, 1], sizes = [8, 1], strides = [1, 1]} : vector<8x2xf32> to vector<8x1xf32>
    %200 = vector.broadcast %198 : vector<1x512xf32> to vector<8x512xf32>
    %201 = vector.broadcast %199 : vector<8x1xf32> to vector<8x512xf32>
    %202 = arith.subf %200, %201 : vector<8x512xf32>
    %203 = vector.extract_strided_slice %192 {offsets = [0, 0], sizes = [8, 1], strides = [1, 1]} : vector<8x2xf32> to vector<8x1xf32>
    %204 = vector.broadcast %203 : vector<8x1xf32> to vector<8x512xf32>
    %205 = arith.mulf %204, %197 : vector<8x512xf32>
    %206 = arith.mulf %205, %197 : vector<8x512xf32>
    %207 = vector.extract_strided_slice %192 {offsets = [0, 1], sizes = [8, 1], strides = [1, 1]} : vector<8x2xf32> to vector<8x1xf32>
    %208 = vector.broadcast %207 : vector<8x1xf32> to vector<8x512xf32>
    %209 = arith.mulf %208, %202 : vector<8x512xf32>
    %210 = arith.mulf %209, %202 : vector<8x512xf32>
    %211 = arith.addf %206, %210 : vector<8x512xf32>
    %212 = math.exp %211 : vector<8x512xf32>
    %213 = arith.truncf %212 : vector<8x512xf32> to vector<8x512xbf16>
    %c0_53 = arith.constant 0 : index
    %c0_54 = arith.constant 0 : index
    %214 = vector.load %arg17[%c0_53, %c0_54] : memref<576x64xbf16, #tpu.memory_space<vmem>>, vector<576x64xbf16>
    %cst_55 = arith.constant dense<0.000000e+00> : vector<576x256xf32>
    %215 = tpu.matmul %214, %190, %cst_55 {dimension_numbers = #tpu.dot_dimension_numbers<[1], [0], [0], [1], [0, 0, 1, 1], [], []>} : vector<576x64xbf16>, vector<64x256xbf16>, vector<576x256xf32> -> vector<576x256xf32>
    %216 = vector.extract_strided_slice %215 {offsets = [512, 0], sizes = [64, 256], strides = [1, 1]} : vector<576x256xf32> to vector<64x256xf32>
    %217 = vector.extract_strided_slice %215 {offsets = [0, 0], sizes = [512, 256], strides = [1, 1]} : vector<576x256xf32> to vector<512x256xf32>
    %218 = arith.truncf %217 : vector<512x256xf32> to vector<512x256xbf16>
    %cst_56 = arith.constant dense<0.000000e+00> : vector<512x512xf32>
    %219 = tpu.matmul %218, %7, %cst_56 {dimension_numbers = #tpu.dot_dimension_numbers<[1], [0], [0], [1], [0, 0, 1, 1], [], []>} : vector<512x256xbf16>, vector<256x512xbf16>, vector<512x512xf32> -> vector<512x512xf32>
    %220 = arith.truncf %219 : vector<512x512xf32> to vector<512x512xbf16>
    %221 = vector.extract_strided_slice %220 {offsets = [0, 0], sizes = [64, 512], strides = [1, 1]} : vector<512x512xbf16> to vector<64x512xbf16>
    %222 = vector.extract_strided_slice %213 {offsets = [0, 0], sizes = [1, 512], strides = [1, 1]} : vector<8x512xbf16> to vector<1x512xbf16>
    %223 = vector.broadcast %222 : vector<1x512xbf16> to vector<64x512xbf16>
    %224 = arith.mulf %221, %223 : vector<64x512xbf16>
    %225 = vector.extract_strided_slice %220 {offsets = [64, 0], sizes = [64, 512], strides = [1, 1]} : vector<512x512xbf16> to vector<64x512xbf16>
    %226 = vector.extract_strided_slice %213 {offsets = [1, 0], sizes = [1, 512], strides = [1, 1]} : vector<8x512xbf16> to vector<1x512xbf16>
    %227 = vector.broadcast %226 : vector<1x512xbf16> to vector<64x512xbf16>
    %228 = arith.mulf %225, %227 : vector<64x512xbf16>
    %229 = arith.addf %224, %228 : vector<64x512xbf16>
    %230 = vector.extract_strided_slice %220 {offsets = [128, 0], sizes = [64, 512], strides = [1, 1]} : vector<512x512xbf16> to vector<64x512xbf16>
    %231 = vector.extract_strided_slice %213 {offsets = [2, 0], sizes = [1, 512], strides = [1, 1]} : vector<8x512xbf16> to vector<1x512xbf16>
    %232 = vector.broadcast %231 : vector<1x512xbf16> to vector<64x512xbf16>
    %233 = arith.mulf %230, %232 : vector<64x512xbf16>
    %234 = arith.addf %229, %233 : vector<64x512xbf16>
    %235 = vector.extract_strided_slice %220 {offsets = [192, 0], sizes = [64, 512], strides = [1, 1]} : vector<512x512xbf16> to vector<64x512xbf16>
    %236 = vector.extract_strided_slice %213 {offsets = [3, 0], sizes = [1, 512], strides = [1, 1]} : vector<8x512xbf16> to vector<1x512xbf16>
    %237 = vector.broadcast %236 : vector<1x512xbf16> to vector<64x512xbf16>
    %238 = arith.mulf %235, %237 : vector<64x512xbf16>
    %239 = arith.addf %234, %238 : vector<64x512xbf16>
    %240 = vector.extract_strided_slice %220 {offsets = [256, 0], sizes = [64, 512], strides = [1, 1]} : vector<512x512xbf16> to vector<64x512xbf16>
    %241 = vector.extract_strided_slice %213 {offsets = [4, 0], sizes = [1, 512], strides = [1, 1]} : vector<8x512xbf16> to vector<1x512xbf16>
    %242 = vector.broadcast %241 : vector<1x512xbf16> to vector<64x512xbf16>
    %243 = arith.mulf %240, %242 : vector<64x512xbf16>
    %244 = arith.addf %239, %243 : vector<64x512xbf16>
    %245 = vector.extract_strided_slice %220 {offsets = [320, 0], sizes = [64, 512], strides = [1, 1]} : vector<512x512xbf16> to vector<64x512xbf16>
    %246 = vector.extract_strided_slice %213 {offsets = [5, 0], sizes = [1, 512], strides = [1, 1]} : vector<8x512xbf16> to vector<1x512xbf16>
    %247 = vector.broadcast %246 : vector<1x512xbf16> to vector<64x512xbf16>
    %248 = arith.mulf %245, %247 : vector<64x512xbf16>
    %249 = arith.addf %244, %248 : vector<64x512xbf16>
    %250 = vector.extract_strided_slice %220 {offsets = [384, 0], sizes = [64, 512], strides = [1, 1]} : vector<512x512xbf16> to vector<64x512xbf16>
    %251 = vector.extract_strided_slice %213 {offsets = [6, 0], sizes = [1, 512], strides = [1, 1]} : vector<8x512xbf16> to vector<1x512xbf16>
    %252 = vector.broadcast %251 : vector<1x512xbf16> to vector<64x512xbf16>
    %253 = arith.mulf %250, %252 : vector<64x512xbf16>
    %254 = arith.addf %249, %253 : vector<64x512xbf16>
    %255 = vector.extract_strided_slice %220 {offsets = [448, 0], sizes = [64, 512], strides = [1, 1]} : vector<512x512xbf16> to vector<64x512xbf16>
    %256 = vector.extract_strided_slice %213 {offsets = [7, 0], sizes = [1, 512], strides = [1, 1]} : vector<8x512xbf16> to vector<1x512xbf16>
    %257 = vector.broadcast %256 : vector<1x512xbf16> to vector<64x512xbf16>
    %258 = arith.mulf %255, %257 : vector<64x512xbf16>
    %259 = arith.addf %254, %258 : vector<64x512xbf16>
    %cst_57 = arith.constant dense<0.000000e+00> : vector<64x256xf32>
    %260 = tpu.matmul %259, %9, %cst_57 {dimension_numbers = #tpu.dot_dimension_numbers<[1], [0], [0], [1], [0, 0, 1, 1], [], []>} : vector<64x512xbf16>, vector<512x256xbf16>, vector<64x256xf32> -> vector<64x256xf32>
    %261 = vector.broadcast %11 : vector<1x256xf32> to vector<64x256xf32>
    %262 = arith.mulf %260, %261 : vector<64x256xf32>
    %263 = arith.addf %262, %216 : vector<64x256xf32>
    %c0_58 = arith.constant 0 : index
    %c0_59 = arith.constant 0 : index
    %264 = vector.load %arg20[%c0_58, %c0_59] : memref<64x1xf32, #tpu.memory_space<vmem>>, vector<64x1xf32>
    %265 = vector.broadcast %264 : vector<64x1xf32> to vector<64x256xf32>
    %266 = arith.addf %263, %265 : vector<64x256xf32>
    %cst_60 = arith.constant 0.000000e+00 : f32
    %267 = vector.broadcast %cst_60 : f32 to vector<64x256xf32>
    %268 = arith.cmpf ogt, %266, %267 : vector<64x256xf32>
    %cst_61 = arith.constant 0.000000e+00 : f32
    %269 = vector.broadcast %cst_61 : f32 to vector<64x256xf32>
    %270 = arith.minimumf %266, %269 : vector<64x256xf32>
    %271 = math.exp %270 : vector<64x256xf32>
    %cst_62 = arith.constant 1.000000e+00 : f32
    %272 = vector.broadcast %cst_62 : f32 to vector<64x256xf32>
    %273 = arith.subf %271, %272 : vector<64x256xf32>
    %274 = arith.select %268, %266, %273 : vector<64x256xi1>, vector<64x256xf32>
    %275 = arith.truncf %274 : vector<64x256xf32> to vector<64x256xbf16>
    %cst_63 = arith.constant dense<0.000000e+00> : vector<64x8xf32>
    %276 = tpu.matmul %275, %12, %cst_63 {dimension_numbers = #tpu.dot_dimension_numbers<[1], [0], [0], [1], [0, 0, 1, 1], [], []>} : vector<64x256xbf16>, vector<256x8xbf16>, vector<64x8xf32> -> vector<64x8xf32>
    %277 = vector.broadcast %13 : vector<1x8xf32> to vector<64x8xf32>
    %278 = arith.mulf %276, %277 : vector<64x8xf32>
    %c0_64 = arith.constant 0 : index
    %c0_65 = arith.constant 0 : index
    %279 = vector.load %arg21[%c0_64, %c0_65] : memref<128x64xbf16, #tpu.memory_space<vmem>>, vector<128x64xbf16>
    %280 = arith.truncf %278 : vector<64x8xf32> to vector<64x8xbf16>
    %cst_66 = arith.constant dense<0.000000e+00> : vector<128x8xf32>
    %281 = tpu.matmul %279, %280, %cst_66 {dimension_numbers = #tpu.dot_dimension_numbers<[1], [0], [0], [1], [0, 0, 1, 1], [], []>} : vector<128x64xbf16>, vector<64x8xbf16>, vector<128x8xf32> -> vector<128x8xf32>
    %c0_67 = arith.constant 0 : index
    %c0_68 = arith.constant 0 : index
    %282 = vector.load %arg22[%c0_67, %c0_68] : memref<128x1xf32, #tpu.memory_space<vmem>>, vector<128x1xf32>
    %283 = vector.broadcast %282 : vector<128x1xf32> to vector<128x8xf32>
    %284 = arith.addf %281, %283 : vector<128x8xf32>
    %cst_69 = arith.constant 0.000000e+00 : f32
    %285 = vector.broadcast %cst_69 : f32 to vector<128x8xf32>
    %286 = arith.cmpf ogt, %284, %285 : vector<128x8xf32>
    %cst_70 = arith.constant 0.000000e+00 : f32
    %287 = vector.broadcast %cst_70 : f32 to vector<128x8xf32>
    %288 = arith.minimumf %284, %287 : vector<128x8xf32>
    %289 = math.exp %288 : vector<128x8xf32>
    %cst_71 = arith.constant 1.000000e+00 : f32
    %290 = vector.broadcast %cst_71 : f32 to vector<128x8xf32>
    %291 = arith.subf %289, %290 : vector<128x8xf32>
    %292 = arith.select %286, %284, %291 : vector<128x8xi1>, vector<128x8xf32>
    %c0_72 = arith.constant 0 : index
    %c0_73 = arith.constant 0 : index
    %293 = vector.load %arg23[%c0_72, %c0_73] : memref<10x128xbf16, #tpu.memory_space<vmem>>, vector<10x128xbf16>
    %294 = arith.truncf %292 : vector<128x8xf32> to vector<128x8xbf16>
    %cst_74 = arith.constant dense<0.000000e+00> : vector<10x8xf32>
    %295 = tpu.matmul %293, %294, %cst_74 {dimension_numbers = #tpu.dot_dimension_numbers<[1], [0], [0], [1], [0, 0, 1, 1], [], []>} : vector<10x128xbf16>, vector<128x8xbf16>, vector<10x8xf32> -> vector<10x8xf32>
    %c0_75 = arith.constant 0 : index
    %c0_76 = arith.constant 0 : index
    %296 = vector.load %arg24[%c0_75, %c0_76] : memref<10x1xf32, #tpu.memory_space<vmem>>, vector<10x1xf32>
    %297 = vector.broadcast %296 : vector<10x1xf32> to vector<10x8xf32>
    %298 = arith.addf %295, %297 : vector<10x8xf32>
    %cst_77 = arith.constant dense<0xFF800000> : vector<8xf32>
    %299 = vector.multi_reduction <maximumf>, %298, %cst_77 [0] : vector<10x8xf32> to vector<8xf32>
    %300 = vector.shape_cast %299 : vector<8xf32> to vector<1x8xf32>
    %301 = vector.broadcast %300 : vector<1x8xf32> to vector<10x8xf32>
    %302 = arith.subf %298, %301 : vector<10x8xf32>
    %303 = math.exp %302 : vector<10x8xf32>
    %cst_78 = arith.constant dense<0.000000e+00> : vector<8xf32>
    %304 = vector.multi_reduction <add>, %303, %cst_78 [0] : vector<10x8xf32> to vector<8xf32>
    %305 = vector.shape_cast %304 : vector<8xf32> to vector<1x8xf32>
    %306 = math.log %305 : vector<1x8xf32>
    %307 = vector.broadcast %306 : vector<1x8xf32> to vector<10x8xf32>
    %308 = arith.subf %302, %307 : vector<10x8xf32>
    %309 = vector.shape_cast %308 : vector<10x8xf32> to vector<1x10x8xf32>
    %c0_79 = arith.constant 0 : index
    %c0_80 = arith.constant 0 : index
    %c0_81 = arith.constant 0 : index
    %310 = vector.load %arg25[%c0_79, %c0_80, %c0_81] : memref<1x10x8xf32, #tpu.memory_space<vmem>>, vector<1x10x8xf32>
    tpu.vector_store %arg25[%c0_79, %c0_80, %c0_81], %309 {strides = array<i32>} : memref<1x10x8xf32, #tpu.memory_space<vmem>>, vector<1x10x8xf32>,
    return
  }
  func.func @transform_0(%arg0: i32) -> (i32, i32, i32) {
    %c0_i32 = arith.constant 0 : i32
    %c0_i32_0 = arith.constant 0 : i32
    %c0_i32_1 = arith.constant 0 : i32
    return %arg0, %c0_i32, %c0_i32_0 : i32, i32, i32
  }
  func.func @transform_1(%arg0: i32) -> (i32, i32, i32) {
    %c0_i32 = arith.constant 0 : i32
    %c0_i32_0 = arith.constant 0 : i32
    %c0_i32_1 = arith.constant 0 : i32
    return %arg0, %c0_i32, %c0_i32_0 : i32, i32, i32
  }
  func.func @transform_2(%arg0: i32) -> (i32, i32, i32) {
    %c0_i32 = arith.constant 0 : i32
    %c0_i32_0 = arith.constant 0 : i32
    %c0_i32_1 = arith.constant 0 : i32
    return %arg0, %c0_i32, %c0_i32_0 : i32, i32, i32
  }
  func.func @transform_3(%arg0: i32) -> (i32, i32, i32) {
    %c0_i32 = arith.constant 0 : i32
    %c0_i32_0 = arith.constant 0 : i32
    %c0_i32_1 = arith.constant 0 : i32
    return %arg0, %c0_i32, %c0_i32_0 : i32, i32, i32
  }
  func.func @transform_4(%arg0: i32) -> (i32, i32, i32) {
    %c0_i32 = arith.constant 0 : i32
    %c0_i32_0 = arith.constant 0 : i32
    %c0_i32_1 = arith.constant 0 : i32
    return %arg0, %c0_i32, %c0_i32_0 : i32, i32, i32
  }
  func.func @transform_5(%arg0: i32) -> (i32, i32, i32) {
    %c0_i32 = arith.constant 0 : i32
    %c0_i32_0 = arith.constant 0 : i32
    %c0_i32_1 = arith.constant 0 : i32
    return %arg0, %c0_i32, %c0_i32_0 : i32, i32, i32
  }
  func.func @transform_6(%arg0: i32) -> (i32, i32) {
    %c0_i32 = arith.constant 0 : i32
    %c0_i32_0 = arith.constant 0 : i32
    %c0_i32_1 = arith.constant 0 : i32
    return %c0_i32, %c0_i32_0 : i32, i32
  }
  func.func @transform_7(%arg0: i32) -> (i32, i32) {
    %c0_i32 = arith.constant 0 : i32
    %c0_i32_0 = arith.constant 0 : i32
    %c0_i32_1 = arith.constant 0 : i32
    return %c0_i32, %c0_i32_0 : i32, i32
  }
  func.func @transform_8(%arg0: i32) -> (i32, i32) {
    %c0_i32 = arith.constant 0 : i32
    %c0_i32_0 = arith.constant 0 : i32
    %c0_i32_1 = arith.constant 0 : i32
    return %c0_i32, %c0_i32_0 : i32, i32
  }
  func.func @transform_9(%arg0: i32) -> (i32, i32) {
    %c0_i32 = arith.constant 0 : i32
    %c0_i32_0 = arith.constant 0 : i32
    %c0_i32_1 = arith.constant 0 : i32
    return %c0_i32, %c0_i32_0 : i32, i32
  }
  func.func @transform_10(%arg0: i32) -> (i32, i32) {
    %c0_i32 = arith.constant 0 : i32
    %c0_i32_0 = arith.constant 0 : i32
    %c0_i32_1 = arith.constant 0 : i32
    return %c0_i32, %c0_i32_0 : i32, i32
  }
  func.func @transform_11(%arg0: i32) -> (i32, i32) {
    %c0_i32 = arith.constant 0 : i32
    %c0_i32_0 = arith.constant 0 : i32
    %c0_i32_1 = arith.constant 0 : i32
    return %c0_i32, %c0_i32_0 : i32, i32
  }
  func.func @transform_12(%arg0: i32) -> (i32, i32) {
    %c0_i32 = arith.constant 0 : i32
    %c0_i32_0 = arith.constant 0 : i32
    %c0_i32_1 = arith.constant 0 : i32
    return %c0_i32, %c0_i32_0 : i32, i32
  }
  func.func @transform_13(%arg0: i32) -> (i32, i32) {
    %c0_i32 = arith.constant 0 : i32
    %c0_i32_0 = arith.constant 0 : i32
    %c0_i32_1 = arith.constant 0 : i32
    return %c0_i32, %c0_i32_0 : i32, i32
  }
  func.func @transform_14(%arg0: i32) -> (i32, i32) {
    %c0_i32 = arith.constant 0 : i32
    %c0_i32_0 = arith.constant 0 : i32
    %c0_i32_1 = arith.constant 0 : i32
    return %c0_i32, %c0_i32_0 : i32, i32
  }
  func.func @transform_15(%arg0: i32) -> (i32, i32) {
    %c0_i32 = arith.constant 0 : i32
    %c0_i32_0 = arith.constant 0 : i32
    %c0_i32_1 = arith.constant 0 : i32
    return %c0_i32, %c0_i32_0 : i32, i32
  }
  func.func @transform_16(%arg0: i32) -> (i32, i32) {
    %c0_i32 = arith.constant 0 : i32
    %c0_i32_0 = arith.constant 0 : i32
    %c0_i32_1 = arith.constant 0 : i32
    return %c0_i32, %c0_i32_0 : i32, i32
  }
  func.func @transform_17(%arg0: i32) -> (i32, i32) {
    %c0_i32 = arith.constant 0 : i32
    %c0_i32_0 = arith.constant 0 : i32
    %c0_i32_1 = arith.constant 0 : i32
    return %c0_i32, %c0_i32_0 : i32, i32
  }
  func.func @transform_18(%arg0: i32) -> (i32, i32) {
    %c0_i32 = arith.constant 0 : i32
    %c0_i32_0 = arith.constant 0 : i32
    %c0_i32_1 = arith.constant 0 : i32
    return %c0_i32, %c0_i32_0 : i32, i32
  }
  func.func @transform_19(%arg0: i32) -> (i32, i32) {
    %c0_i32 = arith.constant 0 : i32
    %c0_i32_0 = arith.constant 0 : i32
    %c0_i32_1 = arith.constant 0 : i32
    return %c0_i32, %c0_i32_0 : i32, i32
  }
  func.func @transform_20(%arg0: i32) -> (i32, i32) {
    %c0_i32 = arith.constant 0 : i32
    %c0_i32_0 = arith.constant 0 : i32
    %c0_i32_1 = arith.constant 0 : i32
    return %c0_i32, %c0_i32_0 : i32, i32
  }
  func.func @transform_21(%arg0: i32) -> (i32, i32) {
    %c0_i32 = arith.constant 0 : i32
    %c0_i32_0 = arith.constant 0 : i32
    %c0_i32_1 = arith.constant 0 : i32
    return %c0_i32, %c0_i32_0 : i32, i32
  }
  func.func @transform_22(%arg0: i32) -> (i32, i32) {
    %c0_i32 = arith.constant 0 : i32
    %c0_i32_0 = arith.constant 0 : i32
    %c0_i32_1 = arith.constant 0 : i32
    return %c0_i32, %c0_i32_0 : i32, i32
  }
  func.func @transform_23(%arg0: i32) -> (i32, i32) {
    %c0_i32 = arith.constant 0 : i32
    %c0_i32_0 = arith.constant 0 : i32
    %c0_i32_1 = arith.constant 0 : i32
    return %c0_i32, %c0_i32_0 : i32, i32
  }
  func.func @transform_24(%arg0: i32) -> (i32, i32, i32) {
    %c0_i32 = arith.constant 0 : i32
    %c0_i32_0 = arith.constant 0 : i32
    %c0_i32_1 = arith.constant 0 : i32
    return %arg0, %c0_i32, %c0_i32_0 : i32, i32, i32
  }
}

</mosaic_0001>

<bundles_post_ra>
// kernel: tpu_custom_call.1
= control target key start
LH: loop header
LB: loop body
LE: loop exit
PB: predicated region body
PF: predicated region fallthrough
CT: control target
= control target key end

     0   :  { %s14436_s0 = inlined_call_operand.vmem [shape: f32[2,1,256], index: 0, kind: input, shape index: {}]   ;;  %s14437_s1 = inlined_call_operand.vmem [shape: f32[2,2,512], index: 1, kind: input, shape index: {}]   ;;  %s14438_s2 = inlined_call_operand.vmem [shape: f32[2,2,512], index: 2, kind: input, shape index: {}]   ;;  %s14439_s3 = inlined_call_operand.vmem [shape: bf16[2,256,512], index: 3, kind: input, shape index: {}]   ;;  %s14440_s4 = inlined_call_operand.hbm [shape: bf16[2,512,256], index: 4, kind: input, shape index: {}]   ;;  %s14441_s5 = inlined_call_operand.vmem [shape: f32[2,1,256], index: 5, kind: input, shape index: {}]   ;;  %s14442_s6 = inlined_call_operand.vmem [shape: bf16[256,8], index: 6, kind: input, shape index: {}]   ;;  %s14443_s7 = inlined_call_operand.vmem [shape: f32[1,8], index: 7, kind: input, shape index: {}]   ;;  %s14444_s8 = inlined_call_operand.vmem [shape: f32[288,1], index: 8, kind: input, shape index: {}]   ;;  %s14445_s9 = inlined_call_operand.vmem [shape: f32[8,2], index: 9, kind: input, shape index: {}]   ;;  %s14446_s10 = inlined_call_operand.vmem [shape: f32[8,2], index: 10, kind: input, shape index: {}]   ;;  %s14447_s11 = inlined_call_operand.vmem [shape: f32[32,1], index: 11, kind: input, shape index: {}]   ;;  %s14448_s12 = inlined_call_operand.vmem [shape: bf16[576,32], index: 12, kind: input, shape index: {}]   ;;  %s14449_s13 = inlined_call_operand.vmem [shape: f32[8,2], index: 13, kind: input, shape index: {}]   ;;  %s14450_s14 = inlined_call_operand.vmem [shape: f32[8,2], index: 14, kind: input, shape index: {}]   ;;  %s14451_s15 = inlined_call_operand.vmem [shape: f32[64,1], index: 15, kind: input, shape index: {}]   ;;  %s14452_s16 = inlined_call_operand.vmem [shape: bf16[576,64], index: 16, kind: input, shape index: {}]   ;;  %s14453_s17 = inlined_call_operand.vmem [shape: f32[8,2], index: 17, kind: input, shape index: {}]   ;;  %s14454_s18 = inlined_call_operand.vmem [shape: f32[8,2], index: 18, kind: input, shape index: {}]   ;;  %s14455_s19 = inlined_call_operand.vmem [shape: f32[64,1], index: 19, kind: input, shape index: {}]   ;;  %s14456_s20 = inlined_call_operand.vmem [shape: bf16[128,64], index: 20, kind: input, shape index: {}]   ;;  %s14457_s21 = inlined_call_operand.vmem [shape: f32[128,1], index: 21, kind: input, shape index: {}]   ;;  %s14458_s22 = inlined_call_operand.vmem [shape: bf16[10,128], index: 22, kind: input, shape index: {}]   ;;  %s14459_s23 = inlined_call_operand.vmem [shape: f32[10,1], index: 23, kind: input, shape index: {}]   ;;  %s14460_s24 = inlined_call_operand.vmem [shape: f32[2,10,8], index: 24, kind: output, shape index: {}]  }
   0x1   :  { %14492 = sst [smem:[#allocation40_spill]] %s14436_s0 }
   0x2   :  { %14493 = sst [smem:[#allocation41_spill]] %s14437_s1 }
   0x3   :  { %14494 = sst [smem:[#allocation42_spill]] %s14438_s2 }
   0x4   :  { %14495 = sst [smem:[#allocation43_spill]] %s14439_s3 }
   0x5   :  { %14496 = sst [smem:[#allocation44_spill]] %s14440_s4 }
   0x6   :  { %14497 = sst [smem:[#allocation45_spill]] %s14441_s5 }
   0x7   :  { %14498 = sst [smem:[#allocation46_spill]] %s14442_s6 }
   0x8   :  { %14499 = sst [smem:[#allocation47_spill]] %s14443_s7 }
   0x9   :  { %14500 = sst [smem:[#allocation48_spill]] %s14444_s8 }
   0xa   :  { %14501 = sst [smem:[#allocation49_spill]] %s14460_s24 }
   0xb   :  { %29 = vsyncpa [#allocation3], 0 }
   0xc   :  { %31 = vsyncpa [#allocation3 + $0x1], 0  ;;  %s10194_s5 = smov 0   ;;  %s10196_s26 = smov 0  }
   0xd   :  { %s10198_s27 = smov 0   ;;  %s10200_s28 = smov 0  }
   0xe LB: > { %14502 = sst [smem:[#allocation5_spill]] %s10056_s27  ;;  %s10213_s6 = sadd.s32 4294967295, %s10060_s28   ;;  %s10060_s28 = sphi %s10200_s28, %s14708_s28   ;;  %s10056_s27 = sphi %s10198_s27, %s14710_s27   ;;  %s10052_s26 = sphi %s10196_s26, %s14712_s26   ;;  %s10048_s5 = sphi %s10194_s5, %s14711_s5  }
   0xf   : > { %s10216_s2 = sadd.s32 1, %s10060_s28   ;;  %s148_s0 = sadd.s32 1, %s10056_s27 }
  0x10   : > { %14503 = sst [smem:[#allocation6_spill]] %s10216_s2  ;;  %s145_s29 = ssub.s32 %s10060_s28, %s10216_s2 }
  0x11   : > { %p146_p0 = scmp.eq.s32.totalorder %s145_s29, 0  ;;  %p155_p1 = scmp.ne.s32.totalorder %s10056_s27, %s10052_s26 }
  0x12   : > { %p156_p2 = scmp.eq.s32.totalorder %s10060_s28, 0  ;;  %p161_p3 = scmp.ne.s32.totalorder %s10052_s26, %s10048_s5 }
  0x13   : > { %s10226_s7 = scalar_select %p146_p0, %s10056_s27, %s148_s0  }
  0x14   : > { %p157_p4 = por %p156_p2, %p155_p1  ;;  %p162_p5 = scmp.eq.s32.totalorder %s10213_s6, 0 }
  0x15   : > { %14504 = sst [smem:[#allocation7_spill]] %s10226_s7  ;;  %p9294_p6 = scmp.lt.s32.totalorder %s10060_s28, 2 }
  0x16   : > { %p10230_p7 = por %p162_p5, %p161_p3  ;;  %s700_s3 = sand.u32 1, %s10056_s27  }
  0x17   : > { %s8743_s25 = sshll.u32 %s700_s3, 9  ;;  %s9122_s8 = sshll.u32 %s10060_s28, 13 }
  0x18   : > { %s14506_s2 = sld [smem:[#allocation44_spill]]  ;;  %s704_s5 = scalar_lea.vmem [#allocation2], %s8743_s25 }
  0x19   : > { %s711_s0 = sshll.u32 %s704_s5, 4  ;;  %p10243_p8 = pnand %p9294_p6, %p157_p4  ;;  %s10241_s0 = int_to_ptr.vmem [resolvable:$true] %s711_s0 }
  0x1a   : > { %s10248_s27 = scalar_lea.sflag [#allocation3], %s700_s3 }
  0x1b   : > { %p9998_p11 = pneg %p10243_p8 }
  0x1e   : > { %s10239_s29 = scalar_lea.hbm %s14506_s2, %s9122_s8  ;;  %s10001_s1 = scalar_lea.hbm %s14506_s2, 16384 }
  0x1f   : > { %s9996_s4 = scalar_lea.hbm %s10239_s29, 8192  ;;  %p10002_p0 = scmp.lt.u32.totalorder %s10239_s29, %s14506_s2 }
  0x20   : > { %p9997_p10 = scmp.ne.s32.totalorder %s10239_s29, %s9996_s4  ;;  %p10003_p1 = scmp.lt.u32.totalorder %s10001_s1, %s9996_s4 }
  0x21   : > { %p10005_p3 = scmp.lt.u32.totalorder %s9996_s4, %s10239_s29 }
  0x22   : > { %p9999_p12 = pnand %p9998_p11, %p9997_p10  ;;  %p10004_p2 = por %p10003_p1, %p10002_p0 }
  0x24   : > { %p10000_p13 = pneg %p9999_p12  ;;  %p10006_p4 = por %p10005_p3, %p10004_p2 }
  0x26   : > { %p10007_p5 = pnand %p10006_p4, %p10000_p13 }
  0x28   : > { %10010 = shalt.err (!%p10007_p5)
}
  0x29   : > { %s10011_s3 = scalar_lea.vmem %s10241_s0, 8192  ;;  %s10062_s25 = smov [#allocation2]  }
  0x2a   : > { %p10012_p6 = scmp.ne.s32.totalorder %s10241_s0, %s10011_s3  ;;  %s10016_s8 = sshll.u32 %s10062_s25, 4  ;;  %s10017_s8 = int_to_ptr.vmem [resolvable:$false] %s10016_s8 }
  0x2b   : > { %s10018_s24 = scalar_lea.vmem %s10017_s8, 16384  ;;  %p10019_p9 = scmp.lt.s32.totalorder %s10241_s0, %s10017_s8 }
  0x2c   : > { %p10014_p10 = pnand %p10012_p6, %p9998_p11  ;;  %p10020_p0 = scmp.lt.s32.totalorder %s10018_s24, %s10011_s3 }
  0x2e   : > { %p10015_p12 = pneg %p10014_p10  ;;  %p10021_p1 = por %p10020_p0, %p10019_p9 }
  0x30   : > { %p10022_p2 = pnand %p10021_p1, %p10015_p12 }
  0x32   : > { %10025 = shalt.err (!%p10022_p2)
}
  0x33   : > { %s10063_s4 = smov 128   ;;  %s10064_s1 = smov 8  }
  0x34   : > { %9293 = dma.hbm_to_vmem [thread:$0]  (!%p10243_p8), %s10239_s29, 8192, %s10241_s0, %s10248_s27, %s10063_s4, %s10063_s4, %s10064_s1  }
  0x35   : > { %p726_p11 = scmp.lt.s32.totalorder %s10060_s28, 3  ;;  %p14508_p13 = scmp.ge.s32.totalorder %s10060_s28, 1 }
  0x37   : > { %p727_p3 = pnand %p14508_p13, %p726_p11 }
  0x39   : > { %730 = sbr.rel (%p727_p3) target bundleno = 3582 (0xdfe), region = 116 }
  0x40   : > { %s732_s5 = sand.u32 1, %s10052_s26  }
  0x41   : > { %s8747_s3 = sshll.u32 %s732_s5, 9  ;;  %s733_s25 = scalar_lea.sflag [#allocation3], %s732_s5 }
  0x42   : > { %s10280_s8 = scalar_lea.vmem [#allocation2], %s8747_s3 }
  0x43   : > { %10043 = dma.done.wait (%p10230_p7), %s733_s25, 8192  }
  0x44   : > { %10045 = vsyncadd (%p10230_p7), %s733_s25, 4294959104  ;;  %v14468_v0 = vmov 0   ;;  %p824_p8 = scmp.lt.s32.totalorder %s10213_s6, 1  ;;  %s14509_s7 = sld [smem:[#allocation48_spill]]  ;;  %vm3376_vm8 = vcmask 261120  }
  0x45   : > { %9334 = vset.pattern.permute.xlu1 %v14468_v0  ;;  %9333 = vset.pattern.permute.xlu0 %v14468_v0  ;;  %s14510_s30 = sld [smem:[#allocation43_spill]]  ;;  %s14514_s1 = sld [smem:[#allocation41_spill]] }
  0x46   : > { %s14714_s6 = smov (!%p824_p8, %s10213_s6), 1  ;;  %s14540_s4 = sld [smem:[#allocation45_spill]] }
  0x47   : > { %s9125_s28 = sshll.u32 %s14714_s6, 9  ;;  %s8748_s25 = sshll.u32 %s14714_s6, 1 }
  0x48   : > { %s14706_s3 = sld [smem:[#allocation47_spill]] }
  0x4a   : > { %v1156_v1 = vld [vmem:[%s14509_s7 + $0x10] sm:$0xff]  ;;  %v1154_v2 = vld [vmem:[%s14509_s7] sm:$0xff]  ;;  %v1157_v3 = vld [vmem:[%s14509_s7 + $0x18] sm:$0xff] }
  0x4b   : > { %1202 = vperm.xlu1 %9334, %v1156_v1   ;;  %1192 = vperm.xlu0 %9333, %v1154_v2   ;;  %v1155_v4 = vld [vmem:[%s14509_s7 + $0x8] sm:$0xff]  ;;  %v1158_v6 = vld [vmem:[%s14509_s7 + $0x20] sm:$0xff]  ;;  %s10314_s24 = scalar_lea.vmem %s14510_s30, %s9125_s28  ;;  %v1161_v7 = vld [vmem:[%s14509_s7 + $0x38] sm:$0xff]  ;;  %s14513_s28 = sld [smem:[#allocation40_spill]] }
  0x4c   : > { %v1159_v5 = vld [vmem:[%s14509_s7 + $0x28] sm:$0xff]  ;;  %v1160_v8 = vld [vmem:[%s14509_s7 + $0x30] sm:$0xff]  ;;  %v1162_v12 = vld [vmem:[%s14509_s7 + $0x40] sm:$0xff]  ;;  %s9123_s30 = sshll.u32 %s14714_s6, 3  ;;  %s846_s2 = scalar_lea.vmem %s14540_s4, %s8748_s25 }
  0x4d   : > { %v9341_v9 = vld [vmem:[%s10314_s24 + $0x4] ss:$16 sps:$4 sm:$0xff]   ;;  %v1163_v10 = vld [vmem:[%s14509_s7 + $0x48] sm:$0xff]  ;;  %v9345_v13 = vld [vmem:[%s10314_s24] ss:$16 sps:$4 sm:$0xff]   ;;  %s832_s5 = scalar_lea.vmem %s14514_s1, %s9123_s30  ;;  %s14675_s4 = sld [smem:[#allocation46_spill]] }
  0x4e   : > { %v9343_v11 = vld [vmem:[%s10314_s24 + $0xc] ss:$16 sps:$4 sm:$0xff]   ;;  %1805 = vmatprep.subr.bf16.mxu0 %v9341_v9  ;;  %v9346_v14 = vld [vmem:[%s10314_s24 + $0x8] ss:$16 sps:$4 sm:$0xff]   ;;  %v9347_v15 = vld [vmem:[%s10314_s24 + $0x24] ss:$16 sps:$4 sm:$0xff]  }
  0x4f   : > { %1207 = vperm.xlu1 %9334, %v1157_v3   ;;  %1197 = vperm.xlu0 %9333, %v1155_v4   ;;  %v9349_v16 = vld [vmem:[%s10314_s24 + $0x2c] ss:$16 sps:$4 sm:$0xff]   ;;  %v9351_v18 = vld [vmem:[%s10314_s24 + $0x20] ss:$16 sps:$4 sm:$0xff]   ;;  %v9352_v19 = vld [vmem:[%s10314_s24 + $0x28] ss:$16 sps:$4 sm:$0xff]  }
  0x50   : > { %1998 = vmatprep.subr.bf16.mxu1 %v9343_v11  ;;  %1806 = vmatpush1.bf16.msra.mxu0 %v9345_v13  ;;  %v1165_v17 = vld [vmem:[%s14509_s7 + $0x58] sm:$0xff]  ;;  %v1164_v20 = vld [vmem:[%s14509_s7 + $0x50] sm:$0xff]  ;;  %v1167_v22 = vld [vmem:[%s14509_s7 + $0x68] sm:$0xff] }
  0x51   : > { %1999 = vmatpush1.bf16.msra.mxu1 %v9346_v14  ;;  %1807 = vmatprep.subr.bf16.mxu0 %v9347_v15  ;;  %v9353_v21 = vld [vmem:[%s10314_s24 + $0x44] ss:$16 sps:$4 sm:$0xff]   ;;  %v9355_v23 = vld [vmem:[%s10314_s24 + $0x4c] ss:$16 sps:$4 sm:$0xff]   ;;  %v9357_v24 = vld [vmem:[%s10314_s24 + $0x40] ss:$16 sps:$4 sm:$0xff]   ;;  %s827_s29 = scalar_lea.vmem %s14513_s28, %s8748_s25 }
  0x52   : > { %2000 = vmatprep.subr.bf16.mxu1 %v9349_v16  ;;  %v1166_v25 = vld [vmem:[%s14509_s7 + $0x60] sm:$0xff]  ;;  %v9358_v26 = vld [vmem:[%s10314_s24 + $0x48] ss:$16 sps:$4 sm:$0xff]   ;;  %v9361_v28 = vld [vmem:[%s10314_s24 + $0x6c] ss:$16 sps:$4 sm:$0xff]   ;;  %s14515_s28 = sld [smem:[#allocation42_spill]] }
  0x53   : > { %1217 = vperm.xlu1 %9334, %v1159_v5   ;;  %1212 = vperm.xlu0 %9333, %v1158_v6   ;;  %v9359_v27 = vld [vmem:[%s10314_s24 + $0x64] ss:$16 sps:$4 sm:$0xff]   ;;  %v1169_v29 = vld [vmem:[%s14509_s7 + $0x78] sm:$0xff]  ;;  %v9363_v31 = vld [vmem:[%s10314_s24 + $0x60] ss:$16 sps:$4 sm:$0xff]  }
  0x54   : > { %1808 = vmatpush1.bf16.msra.mxu0 %v9351_v18  ;;  %v1168_v30 = vld [vmem:[%s14509_s7 + $0x70] sm:$0xff]  ;;  %v9364_v32 = vld [vmem:[%s10314_s24 + $0x68] ss:$16 sps:$4 sm:$0xff]   ;;  %v9367_v34 = vld [vmem:[%s10314_s24 + $0x8c] ss:$16 sps:$4 sm:$0xff]  }
  0x55   : > { %2001 = vmatpush1.bf16.msra.mxu1 %v9352_v19  ;;  %1809 = vmatprep.subr.bf16.mxu0 %v9353_v21  ;;  %v9365_v33 = vld [vmem:[%s10314_s24 + $0x84] ss:$16 sps:$4 sm:$0xff]   ;;  %v9369_v35 = vld [vmem:[%s10314_s24 + $0x80] ss:$16 sps:$4 sm:$0xff]   ;;  %v9370_v36 = vld [vmem:[%s10314_s24 + $0x88] ss:$16 sps:$4 sm:$0xff]  }
  0x56   : > { %2002 = vmatprep.subr.bf16.mxu1 %v9355_v23  ;;  %v1171_v37 = vld [vmem:[%s14509_s7 + $0x88] sm:$0xff]  ;;  %v1170_v38 = vld [vmem:[%s14509_s7 + $0x80] sm:$0xff]  ;;  %v1173_v43 = vld [vmem:[%s14509_s7 + $0x98] sm:$0xff] }
  0x57   : > { %1227 = vperm.xlu1 %9334, %v1161_v7   ;;  %1222 = vperm.xlu0 %9333, %v1160_v8   ;;  %v9371_v39 = vld [vmem:[%s10314_s24 + $0xa4] ss:$16 sps:$4 sm:$0xff]   ;;  %v9373_v40 = vld [vmem:[%s10314_s24 + $0xac] ss:$16 sps:$4 sm:$0xff]   ;;  %v9375_v41 = vld [vmem:[%s10314_s24 + $0xa0] ss:$16 sps:$4 sm:$0xff]  }
  0x58   : > { %1810 = vmatpush1.bf16.msra.mxu0 %v9357_v24  ;;  %v9376_v42 = vld [vmem:[%s10314_s24 + $0xa8] ss:$16 sps:$4 sm:$0xff]   ;;  %v1172_v44 = vld [vmem:[%s14509_s7 + $0x90] sm:$0xff]  ;;  %v9379_v46 = vld [vmem:[%s10314_s24 + $0xcc] ss:$16 sps:$4 sm:$0xff]  }
  0x59   : > { %2003 = vmatpush1.bf16.msra.mxu1 %v9358_v26  ;;  %1811 = vmatprep.subr.bf16.mxu0 %v9359_v27  ;;  %v9377_v45 = vld [vmem:[%s10314_s24 + $0xc4] ss:$16 sps:$4 sm:$0xff]   ;;  %v1175_v47 = vld [vmem:[%s14509_s7 + $0xa8] sm:$0xff]  ;;  %v9381_v48 = vld [vmem:[%s10314_s24 + $0xc0] ss:$16 sps:$4 sm:$0xff]   ;;  %v10066_v27 = vmov 1  }
  0x5a   : > { %2004 = vmatprep.subr.bf16.mxu1 %v9361_v28  ;;  %v9382_v49 = vld [vmem:[%s10314_s24 + $0xc8] ss:$16 sps:$4 sm:$0xff]   ;;  %v1174_v50 = vld [vmem:[%s14509_s7 + $0xa0] sm:$0xff]  ;;  %v9385_v52 = vld [vmem:[%s10314_s24 + $0xec] ss:$16 sps:$4 sm:$0xff]  }
  0x5b   : > { %1237 = vperm.xlu1 %9334, %v1163_v10   ;;  %1232 = vperm.xlu0 %9333, %v1162_v12   ;;  %v9383_v51 = vld [vmem:[%s10314_s24 + $0xe4] ss:$16 sps:$4 sm:$0xff]   ;;  %v1177_v53 = vld [vmem:[%s14509_s7 + $0xb8] sm:$0xff]  ;;  %v9387_v55 = vld [vmem:[%s10314_s24 + $0xe0] ss:$16 sps:$4 sm:$0xff]  }
  0x5c   : > { %1812 = vmatpush1.bf16.msra.mxu0 %v9363_v31  ;;  %v1176_v54 = vld [vmem:[%s14509_s7 + $0xb0] sm:$0xff]  ;;  %v9388_v56 = vld [vmem:[%s10314_s24 + $0xe8] ss:$16 sps:$4 sm:$0xff]   ;;  %v9391_v58 = vld [vmem:[%s10314_s24 + $0x10c] ss:$16 sps:$4 sm:$0xff]  }
  0x5d   : > { %2005 = vmatpush1.bf16.msra.mxu1 %v9364_v32  ;;  %1813 = vmatprep.subr.bf16.mxu0 %v9365_v33  ;;  %v9389_v57 = vld [vmem:[%s10314_s24 + $0x104] ss:$16 sps:$4 sm:$0xff]   ;;  %v9393_v59 = vld [vmem:[%s10314_s24 + $0x100] ss:$16 sps:$4 sm:$0xff]   ;;  %v9394_v60 = vld [vmem:[%s10314_s24 + $0x108] ss:$16 sps:$4 sm:$0xff]  }
  0x5e   : > { %2006 = vmatprep.subr.bf16.mxu1 %v9367_v34  ;;  %v1179_v61 = vld [vmem:[%s14509_s7 + $0xc8] sm:$0xff]  ;;  %v1178_v62 = vld [vmem:[%s14509_s7 + $0xc0] sm:$0xff]  ;;  %v1181_v4 = vld [vmem:[%s14509_s7 + $0xd8] sm:$0xff] }
  0x5f   : > { %1247 = vperm.xlu1 %9334, %v1165_v17   ;;  %1242 = vperm.xlu0 %9333, %v1164_v20   ;;  %v9395_v63 = vld [vmem:[%s10314_s24 + $0x124] ss:$16 sps:$4 sm:$0xff]   ;;  %v9397_v1 = vld [vmem:[%s10314_s24 + $0x12c] ss:$16 sps:$4 sm:$0xff]   ;;  %v9399_v2 = vld [vmem:[%s10314_s24 + $0x120] ss:$16 sps:$4 sm:$0xff]  }
  0x60   : > { %1814 = vmatpush1.bf16.msra.mxu0 %v9369_v35  ;;  %v9400_v3 = vld [vmem:[%s10314_s24 + $0x128] ss:$16 sps:$4 sm:$0xff]   ;;  %v1180_v5 = vld [vmem:[%s14509_s7 + $0xd0] sm:$0xff]  ;;  %v9403_v7 = vld [vmem:[%s10314_s24 + $0x14c] ss:$16 sps:$4 sm:$0xff]  }
  0x61   : > { %2007 = vmatpush1.bf16.msra.mxu1 %v9370_v36  ;;  %1815 = vmatprep.subr.bf16.mxu0 %v9371_v39  ;;  %v9401_v6 = vld [vmem:[%s10314_s24 + $0x144] ss:$16 sps:$4 sm:$0xff]   ;;  %v1183_v8 = vld [vmem:[%s14509_s7 + $0xe8] sm:$0xff]  ;;  %v9405_v10 = vld [vmem:[%s10314_s24 + $0x140] ss:$16 sps:$4 sm:$0xff]  }
  0x62   : > { %2008 = vmatprep.subr.bf16.mxu1 %v9373_v40  ;;  %v1182_v9 = vld [vmem:[%s14509_s7 + $0xe0] sm:$0xff]  ;;  %v9406_v11 = vld [vmem:[%s10314_s24 + $0x148] ss:$16 sps:$4 sm:$0xff]   ;;  %v9409_v13 = vld [vmem:[%s10314_s24 + $0x16c] ss:$16 sps:$4 sm:$0xff]  }
  0x63   : > { %1257 = vperm.xlu1 %9334, %v1167_v22   ;;  %1252 = vperm.xlu0 %9333, %v1166_v25   ;;  %v9407_v12 = vld [vmem:[%s10314_s24 + $0x164] ss:$16 sps:$4 sm:$0xff]   ;;  %v1185_v14 = vld [vmem:[%s14509_s7 + $0xf8] sm:$0xff]  ;;  %v9411_v15 = vld [vmem:[%s10314_s24 + $0x160] ss:$16 sps:$4 sm:$0xff]  }
  0x64   : > { %1816 = vmatpush1.bf16.msra.mxu0 %v9375_v41  ;;  %v9412_v16 = vld [vmem:[%s10314_s24 + $0x168] ss:$16 sps:$4 sm:$0xff]   ;;  %v1184_v17 = vld [vmem:[%s14509_s7 + $0xf0] sm:$0xff]  ;;  %v9415_v19 = vld [vmem:[%s10314_s24 + $0x18c] ss:$16 sps:$4 sm:$0xff]  }
  0x65   : > { %2009 = vmatpush1.bf16.msra.mxu1 %v9376_v42  ;;  %1817 = vmatprep.subr.bf16.mxu0 %v9377_v45  ;;  %v9413_v18 = vld [vmem:[%s10314_s24 + $0x184] ss:$16 sps:$4 sm:$0xff]   ;;  %v9417_v20 = vld [vmem:[%s10314_s24 + $0x180] ss:$16 sps:$4 sm:$0xff]   ;;  %v9418_v21 = vld [vmem:[%s10314_s24 + $0x188] ss:$16 sps:$4 sm:$0xff]  }
  0x66   : > { %2010 = vmatprep.subr.bf16.mxu1 %v9379_v46  ;;  %v1021_v22 = vld [vmem:[%s14445_s9] sm:$0xff]  ;;  %v9421_v24 = vld [vmem:[%s10314_s24 + $0x1ac] ss:$16 sps:$4 sm:$0xff]   ;;  %v9424_v26 = vld [vmem:[%s10314_s24 + $0x1a8] ss:$16 sps:$4 sm:$0xff]  }
  0x67   : > { %1267 = vperm.xlu1 %9334, %v1169_v29   ;;  %1262 = vperm.xlu0 %9333, %v1168_v30   ;;  %v9419_v23 = vld [vmem:[%s10314_s24 + $0x1a4] ss:$16 sps:$4 sm:$0xff]   ;;  %v9423_v25 = vld [vmem:[%s10314_s24 + $0x1a0] ss:$16 sps:$4 sm:$0xff]   ;;  %v9427_v30 = vld [vmem:[%s10314_s24 + $0x1cc] ss:$16 sps:$4 sm:$0xff]  }
  0x68   : > { %1818 = vmatpush1.bf16.msra.mxu0 %v9381_v48  ;;  %v1022_v28 = vld [vmem:[%s14446_s10] sm:$0xff]  ;;  %v9430_v32 = vld [vmem:[%s10314_s24 + $0x1c8] ss:$16 sps:$4 sm:$0xff]   ;;  %v9433_v35 = vld [vmem:[%s10314_s24 + $0x1ec] ss:$16 sps:$4 sm:$0xff]  }
  0x69   : > { %2011 = vmatpush1.bf16.msra.mxu1 %v9382_v49  ;;  %1819 = vmatprep.subr.bf16.mxu0 %v9383_v51  ;;  %v9425_v29 = vld [vmem:[%s10314_s24 + $0x1c4] ss:$16 sps:$4 sm:$0xff]   ;;  %v9429_v31 = vld [vmem:[%s10314_s24 + $0x1c0] ss:$16 sps:$4 sm:$0xff]   ;;  %v1187_v36 = vld [vmem:[%s14509_s7 + $0x108] sm:$0xff] }
  0x6a   : > { %2012 = vmatprep.subr.bf16.mxu1 %v9385_v52  ;;  %v9431_v33 = vld [vmem:[%s10314_s24 + $0x1e4] ss:$16 sps:$4 sm:$0xff]   ;;  %v1189_v40 = vld [vmem:[%s14509_s7 + $0x118] sm:$0xff]  ;;  %v2981_v42 = vld [vmem:[%s14447_s11 + $0x8] sm:$0xff] }
  0x6b   : > { %1277 = vperm.xlu1 %9334, %v1171_v37   ;;  %1272 = vperm.xlu0 %9333, %v1170_v38   ;;  %v1186_v34 = vld [vmem:[%s14509_s7 + $0x100] sm:$0xff]  ;;  %v9436_v38 = vld [vmem:[%s10314_s24 + $0x1e8] ss:$16 sps:$4 sm:$0xff]   ;;  %v1188_v39 = vld [vmem:[%s14509_s7 + $0x110] sm:$0xff] }
  0x6c   : > { %1820 = vmatpush1.bf16.msra.mxu0 %v9387_v55  ;;  %v9435_v37 = vld [vmem:[%s10314_s24 + $0x1e0] ss:$16 sps:$4 sm:$0xff]   ;;  %v2983_v45 = vld [vmem:[%s14447_s11 + $0x18] sm:$0xff]  ;;  %v5347_v52 = vld [vmem:[%s14451_s15 + $0x8] sm:$0xff] }
  0x6d   : > { %2013 = vmatpush1.bf16.msra.mxu1 %v9388_v56  ;;  %1821 = vmatprep.subr.bf16.mxu0 %v9389_v57  ;;  %v2980_v41 = vld [vmem:[%s14447_s11] sm:$0xff]  ;;  %v5351_v56 = vld [vmem:[%s14451_s15 + $0x28] sm:$0xff]  ;;  %v5352_v57 = vld [vmem:[%s14451_s15 + $0x30] sm:$0xff] }
  0x6e   : > { %2014 = vmatprep.subr.bf16.mxu1 %v9391_v58  ;;  %v5346_v51 = vld [vmem:[%s14451_s15] sm:$0xff]  ;;  %v5353_v58 = vld [vmem:[%s14451_s15 + $0x38] sm:$0xff] }
  0x6f   : > { %1287 = vperm.xlu1 %9334, %v1173_v43   ;;  %1282 = vperm.xlu0 %9333, %v1172_v44   ;;  %v1024_v43 = vlaneseq  ;;  %v2982_v44 = vld [vmem:[%s14447_s11 + $0x10] sm:$0xff]  ;;  %v5350_v55 = vld [vmem:[%s14451_s15 + $0x20] sm:$0xff] }
  0x70   : > { %1822 = vmatpush1.bf16.msra.mxu0 %v9393_v59  ;;  %v5514_v59 = vld [vmem:[%s14453_s17] sm:$0xff] }
  0x71   : > { %2015 = vmatpush1.bf16.msra.mxu1 %v9394_v60  ;;  %1823 = vmatprep.subr.bf16.mxu0 %v9395_v63  ;;  %v10490_v46 = vshrl.u32 %v1024_v43, 7  ;;  %v5515_v60 = vld [vmem:[%s14454_s18] sm:$0xff] }
  0x72   : > { %2016 = vmatprep.subr.bf16.mxu1 %v9397_v1  ;;  %v853_v63 = vld [vmem:[%s827_s29] sm:$0x3]  ;;  %s837_s29 = scalar_lea.vmem %s14515_s28, %s9123_s30 }
  0x73   : > { %1297 = vperm.xlu1 %9334, %v1175_v47   ;;  %1292 = vperm.xlu0 %9333, %v1174_v50   ;;  %v3064_v47 = vld [vmem:[%s14449_s13] sm:$0xff]  ;;  %v10497_v48 = vsub.s32 0, %v10490_v46  ;;  %v10500_v49 = vsub.s32 1, %v10490_v46 }
  0x74   : > { %1824 = vmatpush1.bf16.msra.mxu0 %v9399_v2  ;;  %v3065_v50 = vld [vmem:[%s14450_s14] sm:$0xff] }
  0x75   : > { %2017 = vmatpush1.bf16.msra.mxu1 %v9400_v3  ;;  %1825 = vmatprep.subr.bf16.mxu0 %v9401_v6  ;;  %14511 = vst [vmem:[#allocation8_spill] sm:$0xff] %v10497_v48  ;;  %14512 = vst [vmem:[#allocation9_spill] sm:$0xff] %v10500_v49  ;;  %v7800_v1 = vld [vmem:[%s14455_s19 + $0x20] sm:$0xff]  ;;  %v10554_v3 = vrot.slane %v853_v63, %v10497_v48  ;;  %v10560_v6 = vrot.slane %v853_v63, %v10500_v49 }
  0x76   : > { %2018 = vmatprep.subr.bf16.mxu1 %v9403_v7 }
  0x77   : > { %1307 = vperm.xlu1 %9334, %v1177_v53   ;;  %1302 = vperm.xlu0 %9333, %v1176_v54   ;;  %v5348_v53 = vld [vmem:[%s14451_s15 + $0x10] sm:$0xff]  ;;  %v5349_v54 = vld [vmem:[%s14451_s15 + $0x18] sm:$0xff] }
  0x78   : > { %1826 = vmatpush1.bf16.msra.mxu0 %v9405_v10 }
  0x79   : > { %2019 = vmatpush1.bf16.msra.mxu1 %v9406_v11  ;;  %1827 = vmatprep.subr.bf16.mxu0 %v9407_v12  ;;  %v8159_v11 = vld [vmem:[%s14457_s21] sm:$0xff] }
  0x7a   : > { %2020 = vmatprep.subr.bf16.mxu1 %v9409_v13 }
  0x7b   : > { %1317 = vperm.xlu1 %9334, %v1179_v61   ;;  %1312 = vperm.xlu0 %9333, %v1178_v62   ;;  %v7796_v61 = vld [vmem:[%s14455_s19] sm:$0xff]  ;;  %v7798_v62 = vld [vmem:[%s14455_s19 + $0x10] sm:$0xff] }
  0x7c   : > { %1828 = vmatpush1.bf16.msra.mxu0 %v9411_v15 }
  0x7d   : > { %2021 = vmatpush1.bf16.msra.mxu1 %v9412_v16  ;;  %1829 = vmatprep.subr.bf16.mxu0 %v9413_v18 }
  0x7e   : > { %2022 = vmatprep.subr.bf16.mxu1 %v9415_v19 }
  0x7f   : > { %1327 = vperm.xlu1 %9334, %v1181_v4   ;;  %1322 = vperm.xlu0 %9333, %v1180_v5   ;;  %v7802_v5 = vld [vmem:[%s14455_s19 + $0x30] sm:$0xff] }
  0x80   : > { %1830 = vmatpush1.bf16.msra.mxu0 %v9417_v20 }
  0x81   : > { %2023 = vmatpush1.bf16.msra.mxu1 %v9418_v21  ;;  %1831 = vmatprep.subr.bf16.mxu0 %v9419_v23  ;;  %v8161_v21 = vld [vmem:[%s14457_s21 + $0x10] sm:$0xff] }
  0x82   : > { %2024 = vmatprep.subr.bf16.mxu1 %v9421_v24  ;;  %v8163_v24 = vld [vmem:[%s14457_s21 + $0x20] sm:$0xff] }
  0x83   : > { %1337 = vperm.xlu1 %9334, %v1183_v8   ;;  %1332 = vperm.xlu0 %9333, %v1182_v9  }
  0x84   : > { %1832 = vmatpush1.bf16.msra.mxu0 %v9423_v25 }
  0x85   : > { %2025 = vmatpush1.bf16.msra.mxu1 %v9424_v26  ;;  %1833 = vmatprep.subr.bf16.mxu0 %v9425_v29 }
  0x86   : > { %2026 = vmatprep.subr.bf16.mxu1 %v9427_v30 }
  0x87   : > { %1347 = vperm.xlu1 %9334, %v1185_v14   ;;  %1342 = vperm.xlu0 %9333, %v1184_v17  }
  0x88   : > { %1834 = vmatpush1.bf16.msra.mxu0 %v9429_v31  ;;  %v8165_v31 = vld [vmem:[%s14457_s21 + $0x30] sm:$0xff] }
  0x89   : > { %2027 = vmatpush1.bf16.msra.mxu1 %v9430_v32  ;;  %1835 = vmatprep.subr.bf16.mxu0 %v9431_v33 }
  0x8a   : > { %2028 = vmatprep.subr.bf16.mxu1 %v9433_v35 }
  0x8b   : > { %9335 = vset.pattern.permute.xlu1 %v10066_v27  ;;  %1062 = vperm.xlu0 %9333, %v1021_v22  }
  0x8c   : > { %1106 = vperm.xlu1 %9335, %v1021_v22   ;;  %1836 = vmatpush1.bf16.msra.mxu0 %v9435_v37 }
  0x8d   : > { %2029 = vmatpush1.bf16.msra.mxu1 %v9436_v38 }
  0x8f   : > { %1115 = vperm.xlu0 %9333, %v1022_v28  }
  0x90   : > { %1127 = vperm.xlu1 %9335, %v1022_v28  }
  0x93   : > { %1352 = vperm.xlu0 %9333, %v1186_v34  }
  0x94   : > { %9336 = vset.pattern.permute.xlu1 %v14468_v0 }
  0x95   : > { %1357 = vperm.xlu1 %9336, %v1187_v36   ;;  %v8167_v36 = vld [vmem:[%s14457_s21 + $0x40] sm:$0xff] }
  0x97   : > { %1362 = vperm.xlu0 %9333, %v1188_v39  }
  0x99   : > { %1367 = vperm.xlu1 %9336, %v1189_v40  }
  0x9b   : > { %2986 = vperm.xlu0 %9333, %v2980_v41  }
  0x9d   : > { %2991 = vperm.xlu1 %9336, %v2981_v42  }
  0x9f   : > { %2996 = vperm.xlu0 %9333, %v2982_v44  }
  0xa1   : > { %3001 = vperm.xlu1 %9336, %v2983_v45   ;;  %v8169_v45 = vld [vmem:[%s14457_s21 + $0x50] sm:$0xff] }
  0xa3   : > { %3068 = vperm.xlu0 %9333, %v3064_v47  }
  0xa5   : > { %9337 = vset.pattern.permute.xlu1 %v10066_v27 }
  0xa6   : > { %3076 = vperm.xlu1 %9337, %v3064_v47  }
  0xa7   : > { %3085 = vperm.xlu0 %9333, %v3065_v50  }
  0xaa   : > { %3097 = vperm.xlu1 %9337, %v3065_v50  }
  0xab   : > { %5356 = vperm.xlu0 %9333, %v5346_v51  }
  0xae   : > { %9338 = vset.pattern.permute.xlu1 %v14468_v0 }
  0xaf   : > { %5361 = vperm.xlu1 %9338, %v5347_v52   ;;  %5366 = vperm.xlu0 %9333, %v5348_v53  }
  0xb3   : > { %5371 = vperm.xlu1 %9338, %v5349_v54   ;;  %5376 = vperm.xlu0 %9333, %v5350_v55   ;;  %v8171_v55 = vld [vmem:[%s14457_s21 + $0x60] sm:$0xff] }
  0xb7   : > { %5381 = vperm.xlu1 %9338, %v5351_v56   ;;  %5386 = vperm.xlu0 %9333, %v5352_v57  }
  0xbb   : > { %5391 = vperm.xlu1 %9338, %v5353_v58   ;;  %5518 = vperm.xlu0 %9333, %v5514_v59  }
  0xbf   : > { %9339 = vset.pattern.permute.xlu1 %v10066_v27  ;;  %5535 = vperm.xlu0 %9333, %v5515_v60  }
  0xc0   : > { %5526 = vperm.xlu1 %9339, %v5514_v59  }
  0xc3   : > { %7806 = vperm.xlu0 %9333, %v7796_v61  }
  0xc4   : > { %5547 = vperm.xlu1 %9339, %v5515_v60   ;;  %v8173_v60 = vld [vmem:[%s14457_s21 + $0x70] sm:$0xff] }
  0xc7   : > { %7816 = vperm.xlu0 %9333, %v7798_v62  }
  0xc8   : > { %9340 = vset.pattern.permute.xlu1 %v14468_v0 }
  0xca   : > { %v1203_v2 = vpop.permute.xlu1 %1202  ;;  %v1193_v4 = vpop.permute.xlu0 %1192 }
  0xcb   : > { %7826 = vperm.xlu0 %9333, %v7800_v1   ;;  %v1386_v7 = vmul.f32 %v10560_v6, %v1203_v2  ;;  %v1381_v8 = vmul.f32 %v10554_v3, %v1193_v4  ;;  %v1382_v12 = vmul.f32 %v10560_v6, %v1193_v4  ;;  %v1385_v25 = vmul.f32 %v10554_v3, %v1203_v2 }
  0xce   : > { %v1208_v9 = vpop.permute.xlu1 %1207  ;;  %v1198_v10 = vpop.permute.xlu0 %1197 }
  0xcf   : > { %v1388_v13 = vmul.f32 %v10560_v6, %v1208_v9  ;;  %v1383_v14 = vmul.f32 %v10554_v3, %v1198_v10  ;;  %v1384_v15 = vmul.f32 %v10560_v6, %v1198_v10  ;;  %7836 = vperm.xlu0 %9333, %v7802_v5   ;;  %v1387_v26 = vmul.f32 %v10554_v3, %v1208_v9  ;;  %v8522_v5 = vld [vmem:[%s14459_s23] sm:$0xff] }
  0xd0   : > { %v9439_v9 = vld [vmem:[%s10280_s8 + $0x4] ss:$8 sps:$4 sm:$0xff]  }
  0xd1   : > { %v1453_v16 = vpack.c.bf16 %v1383_v14, %v1381_v8  ;;  %v1454_v17 = vpack.c.bf16 %v1384_v15, %v1382_v12  ;;  %v1456_v18 = vpack.c.bf16 %v1388_v13, %v1386_v7  ;;  %v1455_v32 = vpack.c.bf16 %v1387_v26, %v1385_v25  ;;  %v9437_v13 = vld [vmem:[%s10280_s8] ss:$8 sps:$4 sm:$0xff]   ;;  %2847 = vmatprep.subr.bf16.mxu1 %v9439_v9 }
  0xd2   : > { %v1218_v19 = vpop.permute.xlu1 %1217  ;;  %v1213_v20 = vpop.permute.xlu0 %1212  ;;  %v9440_v14 = vld [vmem:[%s10280_s8 + $0x100] ss:$8 sps:$4 sm:$0xff]  }
  0xd3   : > { %8177 = vperm.xlu0 %9333, %v8159_v11   ;;  %1837 = vmatprep.mubr.bf16.mxu0 %v1454_v17  ;;  %v1392_v27 = vmul.f32 %v10560_v6, %v1218_v19  ;;  %v1390_v28 = vmul.f32 %v10560_v6, %v1213_v20  ;;  %v1391_v37 = vmul.f32 %v10554_v3, %v1218_v19  ;;  %v9442_v11 = vld [vmem:[%s10280_s8 + $0x104] ss:$8 sps:$4 sm:$0xff]  }
  0xd4   : > { %2030 = vmatprep.mubr.bf16.mxu1 %v1454_v17  ;;  %1838 = vmatmul.mubr.bf16.vlgmr.msra.gmra.mrb[0].mxu0 %v1453_v16  ;;  %v1389_v38 = vmul.f32 %v10554_v3, %v1213_v20 }
  0xd5   : > { %2031 = vmatmul.mubr.bf16.vlgmr.msra.gmra.mrb[0].mxu1 %v1453_v16  ;;  %1847 = vmatprep.mubr.bf16.mxu0 %v1456_v18  ;;  %v1458_v33 = vpack.c.bf16 %v1392_v27, %v1390_v28 }
  0xd6   : > { %v1228_v22 = vpop.permute.xlu1 %1227  ;;  %v1223_v23 = vpop.permute.xlu0 %1222  ;;  %2040 = vmatprep.mubr.bf16.mxu1 %v1456_v18  ;;  %v1457_v43 = vpack.c.bf16 %v1391_v37, %v1389_v38  ;;  %2900 = vmatprep.subr.bf16.mxu0 %v9442_v11  ;;  %v1034_v11 = vsub.s32 4, %v10490_v46 }
  0xd7   : > { %8187 = vperm.xlu0 %9333, %v8161_v21   ;;  %v1396_v39 = vmul.f32 %v10560_v6, %v1228_v22  ;;  %v1394_v40 = vmul.f32 %v10560_v6, %v1223_v23  ;;  %v1395_v51 = vmul.f32 %v10554_v3, %v1228_v22  ;;  %v1393_v52 = vmul.f32 %v10554_v3, %v1223_v23 }
  0xd8   : > { %2848 = vmatpush1.bf16.msra.mxu1 %v9437_v13  ;;  %2901 = vmatpush1.bf16.msra.mxu0 %v9440_v14  ;;  %v10718_v13 = vsub.s32 2, %v10490_v46  ;;  %v1038_v14 = vsub.s32 6, %v10490_v46 }
  0xd9   : > { %v1460_v44 = vpack.c.bf16 %v1396_v39, %v1394_v40  ;;  %v1459_v58 = vpack.c.bf16 %v1395_v51, %v1393_v52 }
  0xda   : > { %v1238_v29 = vpop.permute.xlu1 %1237  ;;  %v1233_v30 = vpop.permute.xlu0 %1232  ;;  %14516 = vst [vmem:[#allocation10_spill] sm:$0xff] %v10718_v13 }
  0xdb   : > { %8197 = vperm.xlu0 %9333, %v8163_v24   ;;  %v1400_v53 = vmul.f32 %v10560_v6, %v1238_v29  ;;  %v1398_v54 = vmul.f32 %v10560_v6, %v1233_v30  ;;  %v1399_v63 = vmul.f32 %v10554_v3, %v1238_v29  ;;  %v1397_v1 = vmul.f32 %v10554_v3, %v1233_v30 }
  0xdc   : > { %1848 = vmatmul.mubr.bf16.gmra.mrb[4].mxu0 %v1455_v32 }
  0xdd   : > { %2041 = vmatmul.mubr.bf16.gmra.mrb[4].mxu1 %v1455_v32  ;;  %1857 = vmatprep.mubr.bf16.mxu0 %v1458_v33  ;;  %v1462_v59 = vpack.c.bf16 %v1400_v53, %v1398_v54  ;;  %v1461_v10 = vpack.c.bf16 %v1399_v63, %v1397_v1 }
  0xde   : > { %2050 = vmatprep.mubr.bf16.mxu1 %v1458_v33  ;;  %v1248_v34 = vpop.permute.xlu1 %1247  ;;  %v1243_v35 = vpop.permute.xlu0 %1242 }
  0xdf   : > { %8207 = vperm.xlu0 %9333, %v8165_v31   ;;  %v1404_v2 = vmul.f32 %v10560_v6, %v1248_v34  ;;  %v1402_v4 = vmul.f32 %v10560_v6, %v1243_v35  ;;  %v1403_v17 = vmul.f32 %v10554_v3, %v1248_v34  ;;  %v1401_v18 = vmul.f32 %v10554_v3, %v1243_v35 }
  0xe1   : > { %v1464_v12 = vpack.c.bf16 %v1404_v2, %v1402_v4  ;;  %v1463_v23 = vpack.c.bf16 %v1403_v17, %v1401_v18 }
  0xe2   : > { %v10591_v41 = vpop.permute.xlu1 %1257  ;;  %v10593_v42 = vpop.permute.xlu0 %1252 }
  0xe3   : > { %8217 = vperm.xlu0 %9333, %v8167_v36   ;;  %v1408_v19 = vmul.f32 %v10560_v6, %v10591_v41  ;;  %v1406_v20 = vmul.f32 %v10560_v6, %v10593_v42  ;;  %v1407_v27 = vmul.f32 %v10554_v3, %v10591_v41  ;;  %v1405_v28 = vmul.f32 %v10554_v3, %v10593_v42 }
  0xe4   : > { %1858 = vmatmul.mubr.bf16.gmra.mrb[8].mxu0 %v1457_v43 }
  0xe5   : > { %2051 = vmatmul.mubr.bf16.gmra.mrb[8].mxu1 %v1457_v43  ;;  %1867 = vmatprep.mubr.bf16.mxu0 %v1460_v44  ;;  %v1466_v24 = vpack.c.bf16 %v1408_v19, %v1406_v20  ;;  %v1465_v33 = vpack.c.bf16 %v1407_v27, %v1405_v28  ;;  %v1079_v19 = vsub.s32 5, %v10490_v46  ;;  %v1083_v20 = vsub.s32 7, %v10490_v46 }
  0xe6   : > { %2060 = vmatprep.mubr.bf16.mxu1 %v1460_v44  ;;  %v10598_v47 = vpop.permute.xlu1 %1267  ;;  %v10600_v50 = vpop.permute.xlu0 %1262 }
  0xe7   : > { %8227 = vperm.xlu0 %9333, %v8169_v45   ;;  %v1412_v29 = vmul.f32 %v10560_v6, %v10598_v47  ;;  %v1410_v30 = vmul.f32 %v10560_v6, %v10600_v50  ;;  %v1411_v37 = vmul.f32 %v10554_v3, %v10598_v47  ;;  %v1409_v38 = vmul.f32 %v10554_v3, %v10600_v50  ;;  %v854_v45 = vld [vmem:[%s832_s5] sm:$0xff] }
  0xe8   : > { %v855_v47 = vld [vmem:[%s837_s29] sm:$0xff]  ;;  %s9126_s29 = sshll.u32 %s14714_s6, 4 }
  0xe9   : > { %v1468_v34 = vpack.c.bf16 %v1412_v29, %v1410_v30  ;;  %v1467_v42 = vpack.c.bf16 %v1411_v37, %v1409_v38 }
  0xea   : > { %v10609_v56 = vpop.permute.xlu1 %1277  ;;  %v10611_v57 = vpop.permute.xlu0 %1272 }
  0xeb   : > { %8237 = vperm.xlu0 %9333, %v8171_v55   ;;  %v1416_v39 = vmul.f32 %v10560_v6, %v10609_v56  ;;  %v1414_v40 = vmul.f32 %v10560_v6, %v10611_v57  ;;  %v1415_v51 = vmul.f32 %v10554_v3, %v10609_v56  ;;  %v1413_v52 = vmul.f32 %v10554_v3, %v10611_v57 }
  0xec   : > { %1868 = vmatmul.mubr.bf16.gmra.mrb[12].mxu0 %v1459_v58 }
  0xed   : > { %2061 = vmatmul.mubr.bf16.gmra.mrb[12].mxu1 %v1459_v58  ;;  %1877 = vmatprep.mubr.bf16.mxu0 %v1462_v59  ;;  %v1470_v44 = vpack.c.bf16 %v1416_v39, %v1414_v40  ;;  %v1018_v58 = vsub.f32 %v855_v47, %v854_v45 }
  0xee   : > { %2070 = vmatprep.mubr.bf16.mxu1 %v1462_v59  ;;  %v10616_v61 = vpop.permute.xlu1 %1287  ;;  %v10618_v62 = vpop.permute.xlu0 %1282 }
  0xef   : > { %8247 = vperm.xlu0 %9333, %v8173_v60   ;;  %v1420_v53 = vmul.f32 %v10560_v6, %v10616_v61  ;;  %v1418_v54 = vmul.f32 %v10560_v6, %v10618_v62  ;;  %v1469_v60 = vpack.c.bf16 %v1415_v51, %v1413_v52  ;;  %v1019_v2 = vmul.f32 0.055494882, %v1018_v58 }
  0xf0   : > { %v1419_v57 = vmul.f32 %v10554_v3, %v10616_v61  ;;  %v1417_v4 = vmul.f32 %v10554_v3, %v10618_v62  ;;  %v10724_v62 = vsub.s32 3, %v10490_v46 }
  0xf1   : > { %v1472_v63 = vpack.c.bf16 %v1420_v53, %v1418_v54 }
  0xf2   : > { %v10627_v7 = vpop.permute.xlu1 %1297  ;;  %v10629_v8 = vpop.permute.xlu0 %1292  ;;  %v1471_v17 = vpack.c.bf16 %v1419_v57, %v1417_v4  ;;  %14517 = vst [vmem:[#allocation11_spill] sm:$0xff] %v10724_v62 }
  0xf3   : > { %8526 = vperm.xlu0 %9333, %v8522_v5   ;;  %v1424_v5 = vmul.f32 %v10560_v6, %v10627_v7  ;;  %v1422_v9 = vmul.f32 %v10560_v6, %v10629_v8  ;;  %v1421_v46 = vmul.f32 %v10554_v3, %v10629_v8 }
  0xf4   : > { %1878 = vmatmul.mubr.bf16.gmra.mrb[16].mxu0 %v1461_v10 }
  0xf5   : > { %2071 = vmatmul.mubr.bf16.gmra.mrb[16].mxu1 %v1461_v10  ;;  %1887 = vmatprep.mubr.bf16.mxu0 %v1464_v12  ;;  %v1474_v18 = vpack.c.bf16 %v1424_v5, %v1422_v9 }
  0xf6   : > { %2080 = vmatprep.mubr.bf16.mxu1 %v1464_v12  ;;  %v10635_v15 = vpop.permute.xlu1 %1307  ;;  %v10637_v16 = vpop.permute.xlu0 %1302  ;;  %v1020_v12 = vadd.f32 0.5, %v1019_v2 }
  0xf7   : > { %v1428_v38 = vmul.f32 %v10560_v6, %v10635_v15  ;;  %v1426_v39 = vmul.f32 %v10560_v6, %v10637_v16  ;;  %v1427_v4 = vmul.f32 %v10554_v3, %v10635_v15  ;;  %v1425_v5 = vmul.f32 %v10554_v3, %v10637_v16 }
  0xf8   : > { %v1027_v27 = vrot.slane %v1020_v12, %v10497_v48  ;;  %v1031_v28 = vrot.slane %v1020_v12, %v10718_v13  ;;  %v1039_v29 = vrot.slane %v1020_v12, %v1038_v14  ;;  %v1076_v37 = vrot.slane %v1020_v12, %v10724_v62 }
  0xf9   : > { %v1080_v40 = vrot.slane %v1020_v12, %v1079_v19 }
  0xfa   : > { %v10645_v21 = vpop.permute.xlu1 %1317  ;;  %v10647_v22 = vpop.permute.xlu0 %1312  ;;  %v10753_v8 = vrot.slane %v1031_v28, %v10497_v48  ;;  %v10756_v47 = vrot.slane %v1039_v29, %v10497_v48  ;;  %v10762_v54 = vrot.slane %v1076_v37, %v10500_v49 }
  0xfb   : > { %v1432_v9 = vmul.f32 %v10560_v6, %v10645_v21  ;;  %v1430_v15 = vmul.f32 %v10560_v6, %v10647_v22 }
  0xfc   : > { %1888 = vmatmul.mubr.bf16.gmra.mrb[20].mxu0 %v1463_v23 }
  0xfd   : > { %2081 = vmatmul.mubr.bf16.gmra.mrb[20].mxu1 %v1463_v23  ;;  %1897 = vmatprep.mubr.bf16.mxu0 %v1466_v24 }
  0xfe   : > { %2090 = vmatprep.mubr.bf16.mxu1 %v1466_v24  ;;  %v10649_v25 = vpop.permute.xlu1 %1327  ;;  %v10651_v26 = vpop.permute.xlu0 %1322  ;;  %v1035_v24 = vrot.slane %v1020_v12, %v1034_v11 }
 0x100   : > { %v10747_v45 = vrot.slane %v1035_v24, %v10497_v48 }
 0x102   : > { %v10661_v31 = vpop.permute.xlu1 %1337  ;;  %v10663_v32 = vpop.permute.xlu0 %1332 }
 0x104   : > { %1898 = vmatmul.mubr.bf16.gmra.mrb[24].mxu0 %v1465_v33 }
 0x105   : > { %2091 = vmatmul.mubr.bf16.gmra.mrb[24].mxu1 %v1465_v33  ;;  %1907 = vmatprep.mubr.bf16.mxu0 %v1468_v34  ;;  %v1423_v33 = vmul.f32 %v10554_v3, %v10627_v7  ;;  %v10750_v7 = vrot.slane %v1027_v27, %v10497_v48 }
 0x106   : > { %2100 = vmatprep.mubr.bf16.mxu1 %v1468_v34  ;;  %v10665_v35 = vpop.permute.xlu1 %1347  ;;  %v10667_v36 = vpop.permute.xlu0 %1342  ;;  %v1072_v34 = vrot.slane %v1020_v12, %v10500_v49 }
 0x107   : > { %v1473_v52 = vpack.c.bf16 %v1423_v33, %v1421_v46 }
 0x108   : > { %v10759_v53 = vrot.slane %v1072_v34, %v10500_v49 }
 0x10a   : > { %v10678_v41 = vpop.permute.xlu0 %1062 }
 0x10b   : > { %v10686_v43 = vpop.permute.xlu1 %1106 }
 0x10c   : > { %1908 = vmatmul.mubr.bf16.gmra.mrb[28].mxu0 %v1467_v42 }
 0x10d   : > { %2101 = vmatmul.mubr.bf16.gmra.mrb[28].mxu1 %v1467_v42  ;;  %1917 = vmatprep.mubr.bf16.mxu0 %v1470_v44  ;;  %v1084_v42 = vrot.slane %v1020_v12, %v1083_v20 }
 0x10e   : > { %2110 = vmatprep.mubr.bf16.mxu1 %v1470_v44  ;;  %v10688_v50 = vpop.permute.xlu0 %1115 }
 0x10f   : > { %v10698_v55 = vpop.permute.xlu1 %1127  ;;  %v10769_v2 = vrot.slane %v1084_v42, %v10500_v49 }
 0x112   : > { %v10700_v59 = vpop.permute.xlu0 %1352 }
 0x114   : > { %v10702_v1 = vpop.permute.xlu1 %1357  ;;  %1918 = vmatmul.mubr.bf16.gmra.mrb[32].mxu0 %v1469_v60 }
 0x115   : > { %2111 = vmatmul.mubr.bf16.gmra.mrb[32].mxu1 %v1469_v60  ;;  %1927 = vmatprep.mubr.bf16.mxu0 %v1472_v63  ;;  %v1476_v60 = vpack.c.bf16 %v1428_v38, %v1426_v39  ;;  %v1475_v39 = vpack.c.bf16 %v1427_v4, %v1425_v5 }
 0x116   : > { %2120 = vmatprep.mubr.bf16.mxu1 %v1472_v63  ;;  %v10704_v56 = vpop.permute.xlu0 %1362  ;;  %v10766_v63 = vrot.slane %v1080_v40, %v10500_v49 }
 0x118   : > { %v10714_v10 = vpop.permute.xlu1 %1367 }
 0x11a   : > { %v10721_v61 = vpop.permute.xlu0 %2986 }
 0x11c   : > { %v10728_v23 = vpop.permute.xlu1 %2991  ;;  %1928 = vmatmul.mubr.bf16.gmra.mrb[36].mxu0 %v1471_v17 }
 0x11d   : > { %2121 = vmatmul.mubr.bf16.gmra.mrb[36].mxu1 %v1471_v17  ;;  %1937 = vmatprep.mubr.bf16.mxu0 %v1474_v18 }
 0x11e   : > { %2130 = vmatprep.mubr.bf16.mxu1 %v1474_v18  ;;  %v10732_v30 = vpop.permute.xlu0 %2996 }
 0x11f   : > { %14518 = vst [vmem:[#allocation12_spill] sm:$0xff] %v10732_v30 }
 0x120   : > { %v10744_v44 = vpop.permute.xlu1 %3001 }
 0x121   : > { %14519 = vst [vmem:[#allocation13_spill] sm:$0xff] %v10744_v44 }
 0x122   : > { %v3069_v51 = vpop.permute.xlu0 %3068 }
 0x123   : > { %v3073_v58 = vsub.f32 %v10747_v45, %v3069_v51  ;;  %v3074_v57 = vsub.f32 %v10756_v47, %v3069_v51  ;;  %v3071_v12 = vsub.f32 %v10750_v7, %v3069_v51  ;;  %v3072_v14 = vsub.f32 %v10753_v8, %v3069_v51 }
 0x124   : > { %1938 = vmatmul.mubr.bf16.gmra.mrb[40].mxu0 %v1473_v52 }
 0x125   : > { %2131 = vmatmul.mubr.bf16.gmra.mrb[40].mxu1 %v1473_v52  ;;  %v3077_v11 = vpop.permute.xlu1 %3076  ;;  %1947 = vmatprep.mubr.bf16.mxu0 %v1476_v60  ;;  %v1478_v52 = vpack.c.bf16 %v1432_v9, %v1430_v15  ;;  %v9443_v9 = vld [vmem:[%s10280_s8 + $0x10] ss:$8 sps:$4 sm:$0xff]  }
 0x126   : > { %v3079_v17 = vsub.f32 %v10759_v53, %v3077_v11  ;;  %2140 = vmatprep.mubr.bf16.mxu1 %v1476_v60  ;;  %v3086_v18 = vpop.permute.xlu0 %3085  ;;  %v3080_v16 = vsub.f32 %v10762_v54, %v3077_v11  ;;  %v3081_v19 = vsub.f32 %v10766_v63, %v3077_v11  ;;  %v3082_v20 = vsub.f32 %v10769_v2, %v3077_v11 }
 0x127   : > { %v3088_v24 = vmul.f32 %v3086_v18, %v3071_v12  ;;  %v3089_v27 = vmul.f32 %v3086_v18, %v3072_v14  ;;  %v3090_v28 = vmul.f32 %v3086_v18, %v3073_v58  ;;  %v3091_v29 = vmul.f32 %v3086_v18, %v3074_v57 }
 0x129   : > { %v3098_v33 = vpop.permute.xlu1 %3097  ;;  %v3094_v46 = vmul.f32 %v3090_v28, %v3073_v58  ;;  %v3095_v34 = vmul.f32 %v3091_v29, %v3074_v57  ;;  %v3092_v60 = vmul.f32 %v3088_v24, %v3071_v12  ;;  %v3093_v11 = vmul.f32 %v3089_v27, %v3072_v14  ;;  %v9445_v12 = vld [vmem:[%s10280_s8 + $0x14] ss:$8 sps:$4 sm:$0xff]   ;;  %v9446_v14 = vld [vmem:[%s10280_s8 + $0x110] ss:$8 sps:$4 sm:$0xff]   ;;  %v9449_v29 = vld [vmem:[%s10280_s8 + $0x20] ss:$8 sps:$4 sm:$0xff]  }
 0x12a   : > { %v3100_v37 = vmul.f32 %v3098_v33, %v3079_v17  ;;  %v10786_v38 = vpop.permute.xlu0 %5356  ;;  %v3101_v40 = vmul.f32 %v3098_v33, %v3080_v16  ;;  %v3102_v42 = vmul.f32 %v3098_v33, %v3081_v19  ;;  %v3103_v51 = vmul.f32 %v3098_v33, %v3082_v20  ;;  %2849 = vmatprep.subr.bf16.mxu1 %v9445_v12  ;;  %v9451_v33 = vld [vmem:[%s10280_s8 + $0x24] ss:$8 sps:$4 sm:$0xff]  }
 0x12b   : > { %14520 = vst [vmem:[#allocation14_spill] sm:$0xff] %v10786_v38  ;;  %v1431_v58 = vmul.f32 %v10554_v3, %v10645_v21  ;;  %v1436_v21 = vmul.f32 %v10560_v6, %v10649_v25  ;;  %2850 = vmatpush1.bf16.msra.mxu1 %v9443_v9  ;;  %v1437_v9 = vmul.f32 %v10554_v3, %v10663_v32 }
 0x12c   : > { %v3104_v0 = vmul.f32 %v3100_v37, %v3079_v17  ;;  %v3105_v44 = vmul.f32 %v3101_v40, %v3080_v16  ;;  %v3106_v30 = vmul.f32 %v3102_v42, %v3081_v19  ;;  %v3107_v18 = vmul.f32 %v3103_v51, %v3082_v20  ;;  %1948 = vmatmul.mubr.bf16.gmra.mrb[44].mxu0 %v1475_v39 }
 0x12d   : > { %2141 = vmatmul.mubr.bf16.gmra.mrb[44].mxu1 %v1475_v39  ;;  %1957 = vmatprep.mubr.bf16.mxu0 %v1478_v52  ;;  %v1429_v17 = vmul.f32 %v10554_v3, %v10647_v22  ;;  %v1434_v20 = vmul.f32 %v10560_v6, %v10651_v26  ;;  %v1433_v37 = vmul.f32 %v10554_v3, %v10651_v26  ;;  %v9454_v39 = vld [vmem:[%s10280_s8 + $0x124] ss:$8 sps:$4 sm:$0xff]  }
 0x12e   : > { %v10790_v57 = vadd.f32 %v3104_v0, %v3092_v60  ;;  %2150 = vmatprep.mubr.bf16.mxu1 %v1478_v52  ;;  %v10792_v4 = vpop.permute.xlu0 %5366  ;;  %v10794_v5 = vpop.permute.xlu1 %5361  ;;  %v10801_v15 = vadd.f32 %v3105_v44, %v3093_v11  ;;  %v10803_v16 = vadd.f32 %v3106_v30, %v3094_v46  ;;  %v10805_v19 = vadd.f32 %v3107_v18, %v3095_v34  ;;  %v9448_v0 = vld [vmem:[%s10280_s8 + $0x114] ss:$8 sps:$4 sm:$0xff]   ;;  %v9452_v46 = vld [vmem:[%s10280_s8 + $0x120] ss:$8 sps:$4 sm:$0xff]  }
 0x12f   : > { %14522 = vst [vmem:[#allocation16_spill] sm:$0xff] %v10792_v4  ;;  %14523 = vst [vmem:[#allocation17_spill] sm:$0xff] %v10794_v5  ;;  %2902 = vmatprep.subr.bf16.mxu0 %v9448_v0  ;;  %v1477_v44 = vpack.c.bf16 %v1431_v58, %v1429_v17  ;;  %v1480_v24 = vpack.c.bf16 %v1436_v21, %v1434_v20  ;;  %v1435_v34 = vmul.f32 %v10554_v3, %v10649_v25  ;;  %v9455_v0 = vld [vmem:[%s10280_s8 + $0x30] ss:$8 sps:$4 sm:$0xff]   ;;  %v9457_v21 = vld [vmem:[%s10280_s8 + $0x34] ss:$8 sps:$4 sm:$0xff]  }
 0x130   : > { %14521 = vst [vmem:[#allocation15_spill] sm:$0xff] %v10790_v57  ;;  %14524 = vst [vmem:[#allocation18_spill] sm:$0xff] %v10801_v15  ;;  %2903 = vmatpush1.bf16.msra.mxu0 %v9446_v14  ;;  %v1440_v40 = vmul.f32 %v10560_v6, %v10661_v31  ;;  %v1438_v42 = vmul.f32 %v10560_v6, %v10663_v32  ;;  %2851 = vmatprep.subr.bf16.mxu1 %v9451_v33 }
 0x131   : > { %14525 = vst [vmem:[#allocation19_spill] sm:$0xff] %v10803_v16  ;;  %14526 = vst [vmem:[#allocation20_spill] sm:$0xff] %v10805_v19  ;;  %2904 = vmatprep.subr.bf16.mxu0 %v9454_v39  ;;  %2852 = vmatpush1.bf16.msra.mxu1 %v9449_v29  ;;  %v1479_v25 = vpack.c.bf16 %v1435_v34, %v1433_v37  ;;  %v1439_v58 = vmul.f32 %v10554_v3, %v10661_v31  ;;  %v9458_v39 = vld [vmem:[%s10280_s8 + $0x130] ss:$8 sps:$4 sm:$0xff]  }
 0x132   : > { %v10812_v22 = vpop.permute.xlu0 %5376  ;;  %v10814_v30 = vpop.permute.xlu1 %5371  ;;  %v1482_v11 = vpack.c.bf16 %v1440_v40, %v1438_v42  ;;  %v1444_v12 = vmul.f32 %v10560_v6, %v10665_v35  ;;  %v1442_v14 = vmul.f32 %v10560_v6, %v10667_v36  ;;  %2853 = vmatprep.subr.bf16.mxu1 %v9457_v21 }
 0x133   : > { %14527 = vst [vmem:[#allocation21_spill] sm:$0xff] %v10812_v22  ;;  %14528 = vst [vmem:[#allocation22_spill] sm:$0xff] %v10814_v30  ;;  %v1481_v33 = vpack.c.bf16 %v1439_v58, %v1437_v9 }
 0x134   : > { %1958 = vmatmul.mubr.bf16.gmra.mrb[48].mxu0 %v1477_v44  ;;  %v1484_v32 = vpack.c.bf16 %v1444_v12, %v1442_v14 }
 0x135   : > { %2151 = vmatmul.mubr.bf16.gmra.mrb[48].mxu1 %v1477_v44  ;;  %1967 = vmatprep.mubr.bf16.mxu0 %v1480_v24 }
 0x136   : > { %2160 = vmatprep.mubr.bf16.mxu1 %v1480_v24  ;;  %v10816_v27 = vpop.permute.xlu0 %5386  ;;  %v10818_v28 = vpop.permute.xlu1 %5381  ;;  %2905 = vmatpush1.bf16.msra.mxu0 %v9452_v46  ;;  %v9460_v24 = vld [vmem:[%s10280_s8 + $0x134] ss:$8 sps:$4 sm:$0xff]  }
 0x137   : > { %14529 = vst [vmem:[#allocation23_spill] sm:$0xff] %v10816_v27  ;;  %14530 = vst [vmem:[#allocation24_spill] sm:$0xff] %v10818_v28  ;;  %2906 = vmatprep.subr.bf16.mxu0 %v9460_v24  ;;  %2854 = vmatpush1.bf16.msra.mxu1 %v9455_v0  ;;  %v9463_v24 = vld [vmem:[%s10280_s8 + $0x44] ss:$8 sps:$4 sm:$0xff]  }
 0x138   : > { %2855 = vmatprep.subr.bf16.mxu1 %v9463_v24  ;;  %v9497_v24 = vld [vmem:[%s10280_s8 + $0xa0] ss:$8 sps:$4 sm:$0xff]  }
 0x13a   : > { %v5519_v51 = vpop.permute.xlu0 %5518  ;;  %v10832_v52 = vpop.permute.xlu1 %5391  ;;  %2907 = vmatpush1.bf16.msra.mxu0 %v9458_v39  ;;  %v9470_v39 = vld [vmem:[%s10280_s8 + $0x150] ss:$8 sps:$4 sm:$0xff]  }
 0x13b   : > { %14531 = vst [vmem:[#allocation25_spill] sm:$0xff] %v10832_v52  ;;  %v5523_v60 = vsub.f32 %v10747_v45, %v5519_v51  ;;  %v5524_v26 = vsub.f32 %v10756_v47, %v5519_v51  ;;  %v5521_v20 = vsub.f32 %v10750_v7, %v5519_v51  ;;  %v5522_v29 = vsub.f32 %v10753_v8, %v5519_v51 }
 0x13c   : > { %1968 = vmatmul.mubr.bf16.gmra.mrb[52].mxu0 %v1479_v25 }
 0x13d   : > { %2161 = vmatmul.mubr.bf16.gmra.mrb[52].mxu1 %v1479_v25  ;;  %1977 = vmatprep.mubr.bf16.mxu0 %v1482_v11 }
 0x13e   : > { %2170 = vmatprep.mubr.bf16.mxu1 %v1482_v11  ;;  %v5536_v18 = vpop.permute.xlu0 %5535 }
 0x13f   : > { %v5527_v17 = vpop.permute.xlu1 %5526  ;;  %v5540_v44 = vmul.f32 %v5536_v18, %v5523_v60  ;;  %v5541_v31 = vmul.f32 %v5536_v18, %v5524_v26  ;;  %v5538_v46 = vmul.f32 %v5536_v18, %v5521_v20  ;;  %v5539_v40 = vmul.f32 %v5536_v18, %v5522_v29 }
 0x140   : > { %v5529_v25 = vsub.f32 %v10759_v53, %v5527_v17  ;;  %v5530_v11 = vsub.f32 %v10762_v54, %v5527_v17  ;;  %v5531_v52 = vsub.f32 %v10766_v63, %v5527_v17  ;;  %v5532_v51 = vsub.f32 %v10769_v2, %v5527_v17 }
 0x141   : > { %v5544_v34 = vmul.f32 %v5540_v44, %v5523_v60  ;;  %v5545_v42 = vmul.f32 %v5541_v31, %v5524_v26  ;;  %v1443_v26 = vmul.f32 %v10554_v3, %v10665_v35  ;;  %v1441_v18 = vmul.f32 %v10554_v3, %v10667_v36  ;;  %v9461_v44 = vld [vmem:[%s10280_s8 + $0x40] ss:$8 sps:$4 sm:$0xff]   ;;  %v9466_v35 = vld [vmem:[%s10280_s8 + $0x144] ss:$8 sps:$4 sm:$0xff]  }
 0x142   : > { %v5542_v14 = vmul.f32 %v5538_v46, %v5521_v20  ;;  %v5543_v17 = vmul.f32 %v5539_v40, %v5522_v29  ;;  %v9464_v31 = vld [vmem:[%s10280_s8 + $0x140] ss:$8 sps:$4 sm:$0xff]   ;;  %2908 = vmatprep.subr.bf16.mxu0 %v9466_v35  ;;  %2856 = vmatpush1.bf16.msra.mxu1 %v9461_v44  ;;  %v9469_v46 = vld [vmem:[%s10280_s8 + $0x54] ss:$8 sps:$4 sm:$0xff]   ;;  %v9503_v35 = vld [vmem:[%s10280_s8 + $0xb0] ss:$8 sps:$4 sm:$0xff]  }
 0x143   : > { %v5548_v37 = vpop.permute.xlu1 %5547  ;;  %2909 = vmatpush1.bf16.msra.mxu0 %v9464_v31  ;;  %v9472_v40 = vld [vmem:[%s10280_s8 + $0x154] ss:$8 sps:$4 sm:$0xff]   ;;  %2857 = vmatprep.subr.bf16.mxu1 %v9469_v46  ;;  %v9499_v31 = vld [vmem:[%s10280_s8 + $0xa4] ss:$8 sps:$4 sm:$0xff]  }
 0x144   : > { %1978 = vmatmul.mubr.bf16.gmra.mrb[56].mxu0 %v1481_v33  ;;  %v5550_v60 = vmul.f32 %v5548_v37, %v5529_v25  ;;  %v5551_v58 = vmul.f32 %v5548_v37, %v5530_v11  ;;  %v5552_v9 = vmul.f32 %v5548_v37, %v5531_v52  ;;  %v5553_v12 = vmul.f32 %v5548_v37, %v5532_v51  ;;  %v9496_v44 = vld [vmem:[%s10280_s8 + $0x194] ss:$8 sps:$4 sm:$0xff]  }
 0x145   : > { %2171 = vmatmul.mubr.bf16.gmra.mrb[56].mxu1 %v1481_v33  ;;  %1987 = vmatprep.mubr.bf16.mxu0 %v1484_v32  ;;  %v1483_v37 = vpack.c.bf16 %v1443_v26, %v1441_v18  ;;  %v9484_v26 = vld [vmem:[%s10280_s8 + $0x174] ss:$8 sps:$4 sm:$0xff]   ;;  %v9485_v18 = vld [vmem:[%s10280_s8 + $0x80] ss:$8 sps:$4 sm:$0xff]  }
 0x146   : > { %2180 = vmatprep.mubr.bf16.mxu1 %v1484_v32  ;;  %v5554_v0 = vmul.f32 %v5550_v60, %v5529_v25  ;;  %v5555_v21 = vmul.f32 %v5551_v58, %v5530_v11  ;;  %v5556_v33 = vmul.f32 %v5552_v9, %v5531_v52  ;;  %v5557_v32 = vmul.f32 %v5553_v12, %v5532_v51  ;;  %v9467_v52 = vld [vmem:[%s10280_s8 + $0x50] ss:$8 sps:$4 sm:$0xff]   ;;  %v9476_v25 = vld [vmem:[%s10280_s8 + $0x160] ss:$8 sps:$4 sm:$0xff]   ;;  %v9478_v11 = vld [vmem:[%s10280_s8 + $0x164] ss:$8 sps:$4 sm:$0xff]  }
 0x147   : > { %2910 = vmatprep.subr.bf16.mxu0 %v9472_v40  ;;  %2858 = vmatpush1.bf16.msra.mxu1 %v9467_v52  ;;  %v9479_v51 = vld [vmem:[%s10280_s8 + $0x70] ss:$8 sps:$4 sm:$0xff]   ;;  %v9481_v60 = vld [vmem:[%s10280_s8 + $0x74] ss:$8 sps:$4 sm:$0xff]   ;;  %v9487_v9 = vld [vmem:[%s10280_s8 + $0x84] ss:$8 sps:$4 sm:$0xff]  }
 0x148   : > { %v10862_v27 = vadd.f32 %v5554_v0, %v5542_v14  ;;  %v10864_v36 = vadd.f32 %v5555_v21, %v5543_v17  ;;  %v10866_v20 = vadd.f32 %v5556_v33, %v5544_v34  ;;  %v10868_v29 = vadd.f32 %v5557_v32, %v5545_v42  ;;  %2911 = vmatpush1.bf16.msra.mxu0 %v9470_v39  ;;  %v9473_v34 = vld [vmem:[%s10280_s8 + $0x60] ss:$8 sps:$4 sm:$0xff]   ;;  %v9475_v42 = vld [vmem:[%s10280_s8 + $0x64] ss:$8 sps:$4 sm:$0xff]   ;;  %v9482_v58 = vld [vmem:[%s10280_s8 + $0x170] ss:$8 sps:$4 sm:$0xff]  }
 0x149   : > { %2859 = vmatprep.subr.bf16.mxu1 %v9475_v42  ;;  %2912 = vmatprep.subr.bf16.mxu0 %v9478_v11  ;;  %v9488_v12 = vld [vmem:[%s10280_s8 + $0x180] ss:$8 sps:$4 sm:$0xff]   ;;  %v9490_v14 = vld [vmem:[%s10280_s8 + $0x184] ss:$8 sps:$4 sm:$0xff]   ;;  %v9491_v17 = vld [vmem:[%s10280_s8 + $0x90] ss:$8 sps:$4 sm:$0xff]   ;;  %v1110_v11 = vsub.f32 %v10762_v54, %v10686_v43  ;;  %v1068_v54 = vsub.f32 %v10756_v47, %v10678_v41 }
 0x14a   : > { %14532 = vst [vmem:[#allocation26_spill] sm:$0xff] %v10862_v27  ;;  %14533 = vst [vmem:[#allocation27_spill] sm:$0xff] %v10864_v36  ;;  %v9493_v0 = vld [vmem:[%s10280_s8 + $0x94] ss:$8 sps:$4 sm:$0xff]   ;;  %v9494_v21 = vld [vmem:[%s10280_s8 + $0x190] ss:$8 sps:$4 sm:$0xff]  }
 0x14b   : > { %14534 = vst [vmem:[#allocation28_spill] sm:$0xff] %v10866_v20  ;;  %14535 = vst [vmem:[#allocation29_spill] sm:$0xff] %v10868_v29  ;;  %2860 = vmatpush1.bf16.msra.mxu1 %v9473_v34  ;;  %v9500_v33 = vld [vmem:[%s10280_s8 + $0x1a0] ss:$8 sps:$4 sm:$0xff]   ;;  %v9502_v32 = vld [vmem:[%s10280_s8 + $0x1a4] ss:$8 sps:$4 sm:$0xff]  }
 0x14c   : > { %1988 = vmatmul.mubr.bf16.gmra.mrb[60].mxu0 %v1483_v37  ;;  %2861 = vmatprep.subr.bf16.mxu1 %v9481_v60  ;;  %v9506_v52 = vld [vmem:[%s10280_s8 + $0x1b0] ss:$8 sps:$4 sm:$0xff]   ;;  %v9508_v46 = vld [vmem:[%s10280_s8 + $0x1b4] ss:$8 sps:$4 sm:$0xff]   ;;  %v9509_v39 = vld [vmem:[%s10280_s8 + $0xc0] ss:$8 sps:$4 sm:$0xff]   ;;  %v1111_v60 = vsub.f32 %v10766_v63, %v10686_v43 }
 0x14d   : > { %2181 = vmatmul.mubr.bf16.gmra.mrb[60].mxu1 %v1483_v37  ;;  %2913 = vmatpush1.bf16.msra.mxu0 %v9476_v25  ;;  %v9505_v37 = vld [vmem:[%s10280_s8 + $0xb4] ss:$8 sps:$4 sm:$0xff]   ;;  %v9511_v40 = vld [vmem:[%s10280_s8 + $0xc4] ss:$8 sps:$4 sm:$0xff]   ;;  %v9512_v34 = vld [vmem:[%s10280_s8 + $0x1c0] ss:$8 sps:$4 sm:$0xff]   ;;  %v1109_v25 = vsub.f32 %v10759_v53, %v10686_v43 }
 0x14e   : > { %2914 = vmatprep.subr.bf16.mxu0 %v9484_v26  ;;  %v9514_v42 = vld [vmem:[%s10280_s8 + $0x1c4] ss:$8 sps:$4 sm:$0xff]   ;;  %v1066_v26 = vsub.f32 %v10753_v8, %v10678_v41  ;;  %v9515_v53 = vld [vmem:[%s10280_s8 + $0xd0] ss:$8 sps:$4 sm:$0xff]   ;;  %v9520_v63 = vld [vmem:[%s10280_s8 + $0x1d4] ss:$8 sps:$4 sm:$0xff]   ;;  %v1131_v8 = vmul.f32 %v10698_v55, %v1110_v11 }
 0x14f   : > { %2862 = vmatpush1.bf16.msra.mxu1 %v9479_v51  ;;  %v1065_v51 = vsub.f32 %v10750_v7, %v10678_v41 }
 0x150   : > { %2863 = vmatprep.subr.bf16.mxu1 %v9487_v9  ;;  %v9517_v9 = vld [vmem:[%s10280_s8 + $0xd4] ss:$8 sps:$4 sm:$0xff]  }
 0x151   : > { %2915 = vmatpush1.bf16.msra.mxu0 %v9482_v58  ;;  %v1112_v58 = vsub.f32 %v10769_v2, %v10686_v43  ;;  %v1118_v7 = vmul.f32 %v10688_v50, %v1065_v51  ;;  %v1132_v2 = vmul.f32 %v10698_v55, %v1111_v60 }
 0x152   : > { %2916 = vmatprep.subr.bf16.mxu0 %v9490_v14  ;;  %v1130_v14 = vmul.f32 %v10698_v55, %v1109_v25 }
 0x153   : > { %2864 = vmatpush1.bf16.msra.mxu1 %v9485_v18  ;;  %v1067_v18 = vsub.f32 %v10747_v45, %v10678_v41  ;;  %v1121_v45 = vmul.f32 %v10688_v50, %v1068_v54  ;;  %v1133_v41 = vmul.f32 %v10698_v55, %v1112_v58  ;;  %v1122_v47 = vmul.f32 %v1118_v7, %v1065_v51  ;;  %v9527_v51 = vld [vmem:[%s10280_s8 + $0xf0] ss:$8 sps:$4 sm:$0xff]  }
 0x154   : > { %2865 = vmatprep.subr.bf16.mxu1 %v9493_v0  ;;  %v1134_v0 = vmul.f32 %v1130_v14, %v1109_v25 }
 0x155   : > { %2917 = vmatpush1.bf16.msra.mxu0 %v9488_v12  ;;  %v9518_v12 = vld [vmem:[%s10280_s8 + $0x1d0] ss:$8 sps:$4 sm:$0xff]   ;;  %v1120_v43 = vmul.f32 %v10688_v50, %v1067_v18 }
 0x156   : > { %2918 = vmatprep.subr.bf16.mxu0 %v9496_v44  ;;  %v1135_v44 = vmul.f32 %v1131_v8, %v1110_v11 }
 0x157   : > { %2866 = vmatpush1.bf16.msra.mxu1 %v9491_v17  ;;  %v1119_v17 = vmul.f32 %v10688_v50, %v1066_v26  ;;  %v9523_v50 = vld [vmem:[%s10280_s8 + $0xe4] ss:$8 sps:$4 sm:$0xff]  }
 0x158   : > { %2867 = vmatprep.subr.bf16.mxu1 %v9499_v31  ;;  %v1125_v31 = vmul.f32 %v1121_v45, %v1068_v54 }
 0x159   : > { %2919 = vmatpush1.bf16.msra.mxu0 %v9494_v21  ;;  %v1123_v21 = vmul.f32 %v1119_v17, %v1066_v26  ;;  %v9532_v26 = vld [vmem:[%s10280_s8 + $0x1f4] ss:$8 sps:$4 sm:$0xff]  }
 0x15a   : > { %2920 = vmatprep.subr.bf16.mxu0 %v9502_v32  ;;  %v1137_v32 = vmul.f32 %v1133_v41, %v1112_v58  ;;  %v9530_v58 = vld [vmem:[%s10280_s8 + $0x1f0] ss:$8 sps:$4 sm:$0xff]  }
 0x15b   : > { %2868 = vmatpush1.bf16.msra.mxu1 %v9497_v24  ;;  %v1124_v24 = vmul.f32 %v1120_v43, %v1067_v18  ;;  %v1139_v55 = vadd.f32 %v1135_v44, %v1123_v21  ;;  %v9772_v18 = vld [vmem:[%s10314_s24 + $0x4] ss:$16 sps:$4 sm:$0xff]  }
 0x15c   : > { %2869 = vmatprep.subr.bf16.mxu1 %v9505_v37  ;;  %v9524_v37 = vld [vmem:[%s10280_s8 + $0x1e0] ss:$8 sps:$4 sm:$0xff]  }
 0x15d   : > { %2921 = vmatpush1.bf16.msra.mxu0 %v9500_v33  ;;  %v1136_v33 = vmul.f32 %v1132_v2, %v1111_v60  ;;  %v9529_v60 = vld [vmem:[%s10280_s8 + $0xf4] ss:$8 sps:$4 sm:$0xff]  }
 0x15e   : > { %2922 = vmatprep.subr.bf16.mxu0 %v9508_v46  ;;  %v1138_v46 = vadd.f32 %v1134_v0, %v1122_v47 }
 0x15f   : > { %2870 = vmatpush1.bf16.msra.mxu1 %v9503_v35  ;;  %v9521_v35 = vld [vmem:[%s10280_s8 + $0xe0] ss:$8 sps:$4 sm:$0xff]  }
 0x160   : > { %2871 = vmatprep.subr.bf16.mxu1 %v9511_v40  ;;  %v1141_v40 = vadd.f32 %v1137_v32, %v1125_v31 }
 0x161   : > { %2923 = vmatpush1.bf16.msra.mxu0 %v9506_v52  ;;  %v9526_v52 = vld [vmem:[%s10280_s8 + $0x1e4] ss:$8 sps:$4 sm:$0xff]  }
 0x162   : > { %2924 = vmatprep.subr.bf16.mxu0 %v9514_v42  ;;  %v1144_v42 = vmul.f32 1.442695, %v1139_v55  ;;  %v1148_v11 = vmul.f32 1.442695, %v1141_v40 }
 0x163   : > { %2872 = vmatpush1.bf16.msra.mxu1 %v9509_v39  ;;  %v1140_v39 = vadd.f32 %v1136_v33, %v1124_v24 }
 0x164   : > { %2873 = vmatprep.subr.bf16.mxu1 %v9517_v9 }
 0x165   : > { %2925 = vmatpush1.bf16.msra.mxu0 %v9512_v34  ;;  %v1142_v34 = vmul.f32 1.442695, %v1138_v46  ;;  %v1146_v25 = vmul.f32 1.442695, %v1140_v39 }
 0x166   : > { %2926 = vmatprep.subr.bf16.mxu0 %v9520_v63 }
 0x167   : > { %2874 = vmatpush1.bf16.msra.mxu1 %v9515_v53  ;;  %9630 = vpow2.f32 %v1142_v34 }
 0x168   : > { %2875 = vmatprep.subr.bf16.mxu1 %v9523_v50  ;;  %9632 = vpow2.f32 %v1144_v42 }
 0x169   : > { %2927 = vmatpush1.bf16.msra.mxu0 %v9518_v12  ;;  %9634 = vpow2.f32 %v1146_v25 }
 0x16a   : > { %2928 = vmatprep.subr.bf16.mxu0 %v9526_v52  ;;  %9636 = vpow2.f32 %v1148_v11 }
 0x16b   : > { %2876 = vmatpush1.bf16.msra.mxu1 %v9521_v35 }
 0x16c   : > { %2877 = vmatprep.subr.bf16.mxu1 %v9529_v60 }
 0x16d   : > { %2929 = vmatpush1.bf16.msra.mxu0 %v9524_v37 }
 0x16e   : > { %2930 = vmatprep.subr.bf16.mxu0 %v9532_v26 }
 0x16f   : > { %2878 = vmatpush1.bf16.msra.mxu1 %v9527_v51 }
 0x171   : > { %2931 = vmatpush1.bf16.msra.mxu0 %v9530_v58  ;;  %v9631_v7 = vpop.eup %9630 }
 0x172   : > { %3942 = vmatprep.subr.bf16.mxu0 %v9772_v18  ;;  %v9633_v17 = vpop.eup %9632  ;;  %v1150_v44 = vpack.c.bf16 %v9631_v7, %v9631_v7 }
 0x173   : > { %v9635_v41 = vpop.eup %9634  ;;  %v1151_v31 = vpack.c.bf16 %v9633_v17, %v9633_v17 }
 0x174   : > { %v9637_v21 = vpop.eup %9636  ;;  %v1152_v24 = vpack.c.bf16 %v9635_v41, %v9635_v41  ;;  %v2291_v55 = vshrl.u32 %v1150_v44, 16  ;;  %v10975_v26 = vpack.i.b16 %v1150_v44, %v1150_v44 }
 0x175   : > { %v1153_v33 = vpack.c.bf16 %v9637_v21, %v9637_v21  ;;  %v2298_v11 = vshrl.u32 %v1151_v31, 16 }
 0x176   : > { %v2305_v39 = vshrl.u32 %v1152_v24, 16  ;;  %v10977_v18 = vpack.i.b16 %v1152_v24, %v1152_v24  ;;  %v2261_v41 = vrot.slane %v10975_v26, %v10497_v48 }
 0x177   : > { %v2312_v51 = vshrl.u32 %v1153_v33, 16 }
 0x178   : > { %v2275_v21 = vrot.slane %v10977_v18, %v10497_v48 }
 0x179   : > { %v10989_v17 = vpack.i.b16 %v2312_v51, %v2312_v51 }
 0x1a7   : > { %v10939_v53 = vpop.f32.mrb[0].mxu0 }
 0x1a8   : > { %v10941_v9 = vpop.f32.mrb[0].mxu1  ;;  %v10943_v12 = vpop.f32.mrb[1].mxu0 }
 0x1a9   : > { %v10945_v54 = vpop.f32.mrb[1].mxu1  ;;  %v1843_v14 = vpop.f32.mrb[2].mxu0 }
 0x1aa   : > { %v2036_v63 = vpop.f32.mrb[2].mxu1  ;;  %v2191_v43 = vpack.c.bf16 %v1843_v14, %v10939_v53  ;;  %v1845_v45 = vpop.f32.mrb[3].mxu0  ;;  %v10979_v53 = vpack.i.b16 %v1151_v31, %v1151_v31 }
 0x1ab   : > { %v2193_v8 = vpack.c.bf16 %v2036_v63, %v10941_v9  ;;  %v2038_v2 = vpop.f32.mrb[3].mxu1  ;;  %v2192_v47 = vpack.c.bf16 %v1845_v45, %v10943_v12  ;;  %v10981_v9 = vpack.i.b16 %v1153_v33, %v1153_v33  ;;  %v10983_v12 = vpack.i.b16 %v2291_v55, %v2291_v55 }
 0x1ac   : > { %v2194_v0 = vpack.c.bf16 %v2038_v2, %v10945_v54  ;;  %v10985_v54 = vpack.i.b16 %v2305_v39, %v2305_v39  ;;  %v10987_v63 = vpack.i.b16 %v2298_v11, %v2298_v11  ;;  %v2268_v44 = vrot.slane %v10979_v53, %v10497_v48 }
 0x1ad   : > { %v2282_v24 = vrot.slane %v10981_v9, %v10497_v48  ;;  %v2283_v11 = vmul.bf16 %v2261_v41, %v2191_v43  ;;  %v2285_v51 = vmul.bf16 %v2275_v21, %v2193_v8 }
 0x1ae   : > { %v2304_v39 = vrot.slane %v10987_v63, %v10497_v48  ;;  %v2284_v29 = vmul.bf16 %v2268_v44, %v2192_v47 }
 0x1af   : > { %v10951_v32 = vpop.f32.mrb[4].mxu0  ;;  %v2286_v20 = vmul.bf16 %v2282_v24, %v2194_v0 }
 0x1b0   : > { %v10953_v35 = vpop.f32.mrb[4].mxu1  ;;  %v10955_v50 = vpop.f32.mrb[5].mxu0 }
 0x1b1   : > { %v10957_v37 = vpop.f32.mrb[5].mxu1  ;;  %v10959_v52 = vpop.f32.mrb[6].mxu0 }
 0x1b2   : > { %v10961_v46 = vpop.f32.mrb[6].mxu1  ;;  %v2195_v40 = vpack.c.bf16 %v10959_v52, %v10951_v32  ;;  %v10967_v42 = vpop.f32.mrb[7].mxu0 }
 0x1b3   : > { %v2197_v34 = vpack.c.bf16 %v10961_v46, %v10953_v35  ;;  %v10969_v25 = vpop.f32.mrb[7].mxu1  ;;  %v2196_v60 = vpack.c.bf16 %v10967_v42, %v10955_v50  ;;  %v2297_v35 = vrot.slane %v10983_v12, %v10497_v48 }
 0x1b4   : > { %v2198_v58 = vpack.c.bf16 %v10969_v25, %v10957_v37  ;;  %v2311_v37 = vrot.slane %v10985_v54, %v10497_v48  ;;  %v2318_v25 = vrot.slane %v10989_v17, %v10497_v48  ;;  %v2287_v47 = vmul.bf16 %v2261_v41, %v2195_v40 }
 0x1b5   : > { %v2289_v0 = vmul.bf16 %v2275_v21, %v2197_v34  ;;  %v2350_v21 = vrot.slane %v10981_v9, %v10500_v49 }
 0x1b7   : > { %v1859_v7 = vpop.f32.mrb[8].mxu0 }
 0x1b8   : > { %v2052_v14 = vpop.f32.mrb[8].mxu1  ;;  %v1861_v45 = vpop.f32.mrb[9].mxu0 }
 0x1b9   : > { %v2054_v2 = vpop.f32.mrb[9].mxu1  ;;  %v1863_v31 = vpop.f32.mrb[10].mxu0 }
 0x1ba   : > { %v2056_v33 = vpop.f32.mrb[10].mxu1  ;;  %v2199_v32 = vpack.c.bf16 %v1863_v31, %v1859_v7  ;;  %v1865_v52 = vpop.f32.mrb[11].mxu0 }
 0x1bb   : > { %v2201_v50 = vpack.c.bf16 %v2056_v33, %v2052_v14  ;;  %v2058_v46 = vpop.f32.mrb[11].mxu1  ;;  %v2200_v55 = vpack.c.bf16 %v1865_v52, %v1861_v45 }
 0x1bc   : > { %v2202_v42 = vpack.c.bf16 %v2058_v46, %v2054_v2  ;;  %v2319_v7 = vmul.bf16 %v2297_v35, %v2199_v32 }
 0x1bd   : > { %v2321_v31 = vmul.bf16 %v2311_v37, %v2201_v50  ;;  %v2320_v14 = vmul.bf16 %v2304_v39, %v2200_v55 }
 0x1be   : > { %v2322_v33 = vmul.bf16 %v2318_v25, %v2202_v42  ;;  %v2327_v36 = vadd.bf16 %v2319_v7, %v2283_v11  ;;  %v2288_v11 = vmul.bf16 %v2268_v44, %v2196_v60 }
 0x1bf   : > { %v2329_v27 = vadd.bf16 %v2321_v31, %v2285_v51  ;;  %v2328_v28 = vadd.bf16 %v2320_v14, %v2284_v29  ;;  %v1869_v45 = vpop.f32.mrb[12].mxu0  ;;  %v2290_v51 = vmul.bf16 %v2282_v24, %v2198_v58  ;;  %v2342_v58 = vrot.slane %v10979_v53, %v10500_v49 }
 0x1c0   : > { %v2330_v22 = vadd.bf16 %v2322_v33, %v2286_v20  ;;  %v2062_v52 = vpop.f32.mrb[12].mxu1  ;;  %v1871_v30 = vpop.f32.mrb[13].mxu0 }
 0x1c1   : > { %v2064_v4 = vpop.f32.mrb[13].mxu1  ;;  %v1873_v2 = vpop.f32.mrb[14].mxu0 }
 0x1c2   : > { %v2066_v46 = vpop.f32.mrb[14].mxu1  ;;  %v2203_v5 = vpack.c.bf16 %v1873_v2, %v1869_v45  ;;  %v1875_v43 = vpop.f32.mrb[15].mxu0 }
 0x1c3   : > { %v2205_v38 = vpack.c.bf16 %v2066_v46, %v2062_v52  ;;  %v2068_v8 = vpop.f32.mrb[15].mxu1  ;;  %v2204_v32 = vpack.c.bf16 %v1875_v43, %v1871_v30 }
 0x1c4   : > { %v2206_v50 = vpack.c.bf16 %v2068_v8, %v2064_v4  ;;  %v2323_v55 = vmul.bf16 %v2297_v35, %v2203_v5  ;;  %v2338_v4 = vrot.slane %v10975_v26, %v10500_v49 }
 0x1c5   : > { %v2325_v42 = vmul.bf16 %v2311_v37, %v2205_v38  ;;  %v2324_v29 = vmul.bf16 %v2304_v39, %v2204_v32  ;;  %v2346_v38 = vrot.slane %v10977_v18, %v10500_v49 }
 0x1c6   : > { %v2326_v20 = vmul.bf16 %v2318_v25, %v2206_v50  ;;  %v2331_v7 = vadd.bf16 %v2323_v55, %v2287_v47 }
 0x1c7   : > { %v2333_v31 = vadd.bf16 %v2325_v42, %v2289_v0  ;;  %v2332_v14 = vadd.bf16 %v2324_v29, %v2288_v11  ;;  %v1879_v19 = vpop.f32.mrb[16].mxu0 }
 0x1c8   : > { %v2334_v33 = vadd.bf16 %v2326_v20, %v2290_v51  ;;  %v2072_v16 = vpop.f32.mrb[16].mxu1  ;;  %v1881_v45 = vpop.f32.mrb[17].mxu0 }
 0x1c9   : > { %v2074_v52 = vpop.f32.mrb[17].mxu1  ;;  %v1883_v2 = vpop.f32.mrb[18].mxu0 }
 0x1ca   : > { %v2076_v46 = vpop.f32.mrb[18].mxu1  ;;  %v2207_v30 = vpack.c.bf16 %v1883_v2, %v1879_v19  ;;  %v1885_v40 = vpop.f32.mrb[19].mxu0 }
 0x1cb   : > { %v2209_v5 = vpack.c.bf16 %v2076_v46, %v2072_v16  ;;  %v2078_v34 = vpop.f32.mrb[19].mxu1  ;;  %v2208_v60 = vpack.c.bf16 %v1885_v40, %v1881_v45 }
 0x1cc   : > { %v2210_v41 = vpack.c.bf16 %v2078_v34, %v2074_v52  ;;  %v2351_v44 = vmul.bf16 %v2338_v4, %v2207_v30 }
 0x1cd   : > { %v2353_v24 = vmul.bf16 %v2346_v38, %v2209_v5  ;;  %v2352_v19 = vmul.bf16 %v2342_v58, %v2208_v60 }
 0x1ce   : > { %v2354_v35 = vmul.bf16 %v2350_v21, %v2210_v41  ;;  %v11015_v37 = vadd.bf16 %v2351_v44, %v2327_v36 }
 0x1cf   : > { %v11017_v16 = vadd.bf16 %v2353_v24, %v2329_v27  ;;  %v11019_v39 = vadd.bf16 %v2352_v19, %v2328_v28  ;;  %v1889_v43 = vpop.f32.mrb[20].mxu0  ;;  %v2382_v24 = vrot.slane %v10989_v17, %v10500_v49 }
 0x1d0   : > { %v11021_v25 = vadd.bf16 %v2354_v35, %v2330_v22  ;;  %v2082_v8 = vpop.f32.mrb[20].mxu1  ;;  %v1891_v32 = vpop.f32.mrb[21].mxu0 }
 0x1d1   : > { %v2084_v50 = vpop.f32.mrb[21].mxu1  ;;  %v1893_v47 = vpop.f32.mrb[22].mxu0 }
 0x1d2   : > { %v2086_v0 = vpop.f32.mrb[22].mxu1  ;;  %v2211_v55 = vpack.c.bf16 %v1893_v47, %v1889_v43  ;;  %v1895_v11 = vpop.f32.mrb[23].mxu0 }
 0x1d3   : > { %v2213_v42 = vpack.c.bf16 %v2086_v0, %v2082_v8  ;;  %v2088_v51 = vpop.f32.mrb[23].mxu1  ;;  %v2212_v29 = vpack.c.bf16 %v1895_v11, %v1891_v32 }
 0x1d4   : > { %v2214_v20 = vpack.c.bf16 %v2088_v51, %v2084_v50  ;;  %v2355_v36 = vmul.bf16 %v2338_v4, %v2211_v55  ;;  %v2370_v4 = vrot.slane %v10983_v12, %v10500_v49 }
 0x1d5   : > { %v2357_v45 = vmul.bf16 %v2346_v38, %v2213_v42  ;;  %v2356_v27 = vmul.bf16 %v2342_v58, %v2212_v29 }
 0x1d6   : > { %v2358_v52 = vmul.bf16 %v2350_v21, %v2214_v20  ;;  %v11023_v28 = vadd.bf16 %v2355_v36, %v2331_v7  ;;  %v2378_v7 = vrot.slane %v10985_v54, %v10500_v49 }
 0x1d7   : > { %v11025_v22 = vadd.bf16 %v2357_v45, %v2333_v31  ;;  %v11027_v2 = vadd.bf16 %v2356_v27, %v2332_v14  ;;  %v1899_v30 = vpop.f32.mrb[24].mxu0 }
 0x1d8   : > { %v11029_v46 = vadd.bf16 %v2358_v52, %v2334_v33  ;;  %v2092_v5 = vpop.f32.mrb[24].mxu1  ;;  %v1901_v40 = vpop.f32.mrb[25].mxu0  ;;  %v2374_v33 = vrot.slane %v10987_v63, %v10500_v49 }
 0x1d9   : > { %v2094_v34 = vpop.f32.mrb[25].mxu1  ;;  %v1903_v60 = vpop.f32.mrb[26].mxu0 }
 0x1da   : > { %v2096_v41 = vpop.f32.mrb[26].mxu1  ;;  %v2215_v44 = vpack.c.bf16 %v1903_v60, %v1899_v30  ;;  %v1905_v31 = vpop.f32.mrb[27].mxu0 }
 0x1db   : > { %v2217_v38 = vpack.c.bf16 %v2096_v41, %v2092_v5  ;;  %v2098_v58 = vpop.f32.mrb[27].mxu1  ;;  %v2216_v14 = vpack.c.bf16 %v1905_v31, %v1901_v40 }
 0x1dc   : > { %v2218_v21 = vpack.c.bf16 %v2098_v58, %v2094_v34  ;;  %v2383_v19 = vmul.bf16 %v2370_v4, %v2215_v44 }
 0x1dd   : > { %v2385_v35 = vmul.bf16 %v2378_v7, %v2217_v38  ;;  %v2384_v43 = vmul.bf16 %v2374_v33, %v2216_v14 }
 0x1de   : > { %v2386_v8 = vmul.bf16 %v2382_v24, %v2218_v21  ;;  %v2391_v32 = vadd.bf16 %v2383_v19, %v11015_v37 }
 0x1df   : > { %v2393_v50 = vadd.bf16 %v2385_v35, %v11017_v16  ;;  %v2392_v47 = vadd.bf16 %v2384_v43, %v11019_v39  ;;  %v1909_v55 = vpop.f32.mrb[28].mxu0  ;;  %v2414_v35 = vrot.slane %v10981_v9, %v10718_v13 }
 0x1e0   : > { %v2394_v0 = vadd.bf16 %v2386_v8, %v11021_v25  ;;  %v2102_v42 = vpop.f32.mrb[28].mxu1  ;;  %v1911_v11 = vpop.f32.mrb[29].mxu0 }
 0x1e1   : > { %v2104_v51 = vpop.f32.mrb[29].mxu1  ;;  %v1913_v29 = vpop.f32.mrb[30].mxu0 }
 0x1e2   : > { %v2106_v20 = vpop.f32.mrb[30].mxu1  ;;  %v2219_v36 = vpack.c.bf16 %v1913_v29, %v1909_v55  ;;  %v1915_v27 = vpop.f32.mrb[31].mxu0 }
 0x1e3   : > { %v2221_v45 = vpack.c.bf16 %v2106_v20, %v2102_v42  ;;  %v2108_v52 = vpop.f32.mrb[31].mxu1  ;;  %v2220_v30 = vpack.c.bf16 %v1915_v27, %v1911_v11 }
 0x1e4   : > { %v2222_v5 = vpack.c.bf16 %v2108_v52, %v2104_v51  ;;  %v2387_v40 = vmul.bf16 %v2370_v4, %v2219_v36  ;;  %v2402_v4 = vrot.slane %v10975_v26, %v10718_v13 }
 0x1e5   : > { %v2389_v37 = vmul.bf16 %v2378_v7, %v2221_v45  ;;  %v2388_v34 = vmul.bf16 %v2374_v33, %v2220_v30 }
 0x1e6   : > { %v2390_v16 = vmul.bf16 %v2382_v24, %v2222_v5  ;;  %v2395_v39 = vadd.bf16 %v2387_v40, %v11023_v28  ;;  %v2410_v28 = vrot.slane %v10977_v18, %v10718_v13 }
 0x1e7   : > { %v2397_v25 = vadd.bf16 %v2389_v37, %v11025_v22  ;;  %v2396_v60 = vadd.bf16 %v2388_v34, %v11027_v2  ;;  %v1919_v44 = vpop.f32.mrb[32].mxu0  ;;  %v2406_v2 = vrot.slane %v10979_v53, %v10718_v13 }
 0x1e8   : > { %v2398_v41 = vadd.bf16 %v2390_v16, %v11029_v46  ;;  %v2112_v38 = vpop.f32.mrb[32].mxu1  ;;  %v1921_v31 = vpop.f32.mrb[33].mxu0 }
 0x1e9   : > { %v2114_v58 = vpop.f32.mrb[33].mxu1  ;;  %v1923_v14 = vpop.f32.mrb[34].mxu0 }
 0x1ea   : > { %v2116_v21 = vpop.f32.mrb[34].mxu1  ;;  %v2223_v19 = vpack.c.bf16 %v1923_v14, %v1919_v44  ;;  %v1925_v33 = vpop.f32.mrb[35].mxu0 }
 0x1eb   : > { %v2225_v7 = vpack.c.bf16 %v2116_v21, %v2112_v38  ;;  %v2118_v22 = vpop.f32.mrb[35].mxu1  ;;  %v2224_v24 = vpack.c.bf16 %v1925_v33, %v1921_v31 }
 0x1ec   : > { %v2226_v46 = vpack.c.bf16 %v2118_v22, %v2114_v58  ;;  %v2415_v43 = vmul.bf16 %v2402_v4, %v2223_v19 }
 0x1ed   : > { %v2417_v8 = vmul.bf16 %v2410_v28, %v2225_v7  ;;  %v2416_v55 = vmul.bf16 %v2406_v2, %v2224_v24 }
 0x1ee   : > { %v2418_v42 = vmul.bf16 %v2414_v35, %v2226_v46  ;;  %v11055_v11 = vadd.bf16 %v2415_v43, %v2391_v32 }
 0x1ef   : > { %v11057_v51 = vadd.bf16 %v2417_v8, %v2393_v50  ;;  %v11059_v29 = vadd.bf16 %v2416_v55, %v2392_v47  ;;  %v1929_v36 = vpop.f32.mrb[36].mxu0  ;;  %v2446_v8 = vrot.slane %v10989_v17, %v10718_v13 }
 0x1f0   : > { %v11061_v20 = vadd.bf16 %v2418_v42, %v2394_v0  ;;  %v2122_v45 = vpop.f32.mrb[36].mxu1  ;;  %v1931_v27 = vpop.f32.mrb[37].mxu0 }
 0x1f1   : > { %v2124_v52 = vpop.f32.mrb[37].mxu1  ;;  %v1933_v30 = vpop.f32.mrb[38].mxu0 }
 0x1f2   : > { %v2126_v5 = vpop.f32.mrb[38].mxu1  ;;  %v2227_v40 = vpack.c.bf16 %v1933_v30, %v1929_v36  ;;  %v1935_v34 = vpop.f32.mrb[39].mxu0 }
 0x1f3   : > { %v2229_v37 = vpack.c.bf16 %v2126_v5, %v2122_v45  ;;  %v2128_v16 = vpop.f32.mrb[39].mxu1  ;;  %v2228_v44 = vpack.c.bf16 %v1935_v34, %v1931_v27 }
 0x1f4   : > { %v2230_v38 = vpack.c.bf16 %v2128_v16, %v2124_v52  ;;  %v2419_v32 = vmul.bf16 %v2402_v4, %v2227_v40  ;;  %v2434_v4 = vrot.slane %v10983_v12, %v10718_v13 }
 0x1f5   : > { %v2421_v31 = vmul.bf16 %v2410_v28, %v2229_v37  ;;  %v2420_v50 = vmul.bf16 %v2406_v2, %v2228_v44 }
 0x1f6   : > { %v2422_v58 = vmul.bf16 %v2414_v35, %v2230_v38  ;;  %v11063_v47 = vadd.bf16 %v2419_v32, %v2395_v39  ;;  %v2442_v39 = vrot.slane %v10985_v54, %v10718_v13 }
 0x1f7   : > { %v11065_v0 = vadd.bf16 %v2421_v31, %v2397_v25  ;;  %v11067_v14 = vadd.bf16 %v2420_v50, %v2396_v60  ;;  %v1939_v19 = vpop.f32.mrb[40].mxu0 }
 0x1f8   : > { %v11069_v21 = vadd.bf16 %v2422_v58, %v2398_v41  ;;  %v2132_v7 = vpop.f32.mrb[40].mxu1  ;;  %v1941_v33 = vpop.f32.mrb[41].mxu0  ;;  %v2438_v41 = vrot.slane %v10987_v63, %v10718_v13 }
 0x1f9   : > { %v2134_v22 = vpop.f32.mrb[41].mxu1  ;;  %v1943_v24 = vpop.f32.mrb[42].mxu0 }
 0x1fa   : > { %v2136_v46 = vpop.f32.mrb[42].mxu1  ;;  %v2231_v43 = vpack.c.bf16 %v1943_v24, %v1939_v19  ;;  %v1945_v25 = vpop.f32.mrb[43].mxu0 }
 0x1fb   : > { %v2233_v28 = vpack.c.bf16 %v2136_v46, %v2132_v7  ;;  %v2138_v2 = vpop.f32.mrb[43].mxu1  ;;  %v2232_v60 = vpack.c.bf16 %v1945_v25, %v1941_v33 }
 0x1fc   : > { %v2234_v35 = vpack.c.bf16 %v2138_v2, %v2134_v22  ;;  %v2447_v55 = vmul.bf16 %v2434_v4, %v2231_v43 }
 0x1fd   : > { %v2449_v42 = vmul.bf16 %v2442_v39, %v2233_v28  ;;  %v2448_v36 = vmul.bf16 %v2438_v41, %v2232_v60 }
 0x1fe   : > { %v2450_v45 = vmul.bf16 %v2446_v8, %v2234_v35  ;;  %v2455_v27 = vadd.bf16 %v2447_v55, %v11055_v11 }
 0x1ff   : > { %v2457_v52 = vadd.bf16 %v2449_v42, %v11057_v51  ;;  %v2456_v30 = vadd.bf16 %v2448_v36, %v11059_v29  ;;  %v1949_v40 = vpop.f32.mrb[44].mxu0  ;;  %v2478_v42 = vrot.slane %v10981_v9, %v10724_v62 }
 0x200   : > { %v2458_v5 = vadd.bf16 %v2450_v45, %v11061_v20  ;;  %v2142_v37 = vpop.f32.mrb[44].mxu1  ;;  %v1951_v34 = vpop.f32.mrb[45].mxu0 }
 0x201   : > { %v2144_v16 = vpop.f32.mrb[45].mxu1  ;;  %v1953_v44 = vpop.f32.mrb[46].mxu0 }
 0x202   : > { %v2146_v38 = vpop.f32.mrb[46].mxu1  ;;  %v2235_v32 = vpack.c.bf16 %v1953_v44, %v1949_v40  ;;  %v1955_v50 = vpop.f32.mrb[47].mxu0 }
 0x203   : > { %v2237_v31 = vpack.c.bf16 %v2146_v38, %v2142_v37  ;;  %v2148_v58 = vpop.f32.mrb[47].mxu1  ;;  %v2236_v19 = vpack.c.bf16 %v1955_v50, %v1951_v34 }
 0x204   : > { %v2238_v7 = vpack.c.bf16 %v2148_v58, %v2144_v16  ;;  %v2451_v33 = vmul.bf16 %v2434_v4, %v2235_v32  ;;  %v2466_v4 = vrot.slane %v10975_v26, %v10724_v62 }
 0x205   : > { %v2453_v11 = vmul.bf16 %v2442_v39, %v2237_v31  ;;  %v2452_v22 = vmul.bf16 %v2438_v41, %v2236_v19 }
 0x206   : > { %v2454_v51 = vmul.bf16 %v2446_v8, %v2238_v7  ;;  %v2459_v29 = vadd.bf16 %v2451_v33, %v11063_v47  ;;  %v2474_v47 = vrot.slane %v10977_v18, %v10724_v62 }
 0x207   : > { %v2461_v20 = vadd.bf16 %v2453_v11, %v11065_v0  ;;  %v2460_v24 = vadd.bf16 %v2452_v22, %v11067_v14  ;;  %v1959_v43 = vpop.f32.mrb[48].mxu0  ;;  %v2470_v14 = vrot.slane %v10979_v53, %v10724_v62 }
 0x208   : > { %v2462_v46 = vadd.bf16 %v2454_v51, %v11069_v21  ;;  %v2152_v28 = vpop.f32.mrb[48].mxu1  ;;  %v1961_v25 = vpop.f32.mrb[49].mxu0 }
 0x209   : > { %v2154_v2 = vpop.f32.mrb[49].mxu1  ;;  %v1963_v60 = vpop.f32.mrb[50].mxu0 }
 0x20a   : > { %v2156_v35 = vpop.f32.mrb[50].mxu1  ;;  %v2239_v55 = vpack.c.bf16 %v1963_v60, %v1959_v43  ;;  %v1965_v41 = vpop.f32.mrb[51].mxu0 }
 0x20b   : > { %v2241_v39 = vpack.c.bf16 %v2156_v35, %v2152_v28  ;;  %v2158_v0 = vpop.f32.mrb[51].mxu1  ;;  %v2240_v8 = vpack.c.bf16 %v1965_v41, %v1961_v25 }
 0x20c   : > { %v2242_v21 = vpack.c.bf16 %v2158_v0, %v2154_v2  ;;  %v2479_v36 = vmul.bf16 %v2466_v4, %v2239_v55  ;;  %v2498_v0 = vrot.slane %v10983_v12, %v10724_v62 }
 0x20d   : > { %v2481_v45 = vmul.bf16 %v2474_v47, %v2241_v39  ;;  %v2480_v40 = vmul.bf16 %v2470_v14, %v2240_v8 }
 0x20e   : > { %v2482_v37 = vmul.bf16 %v2478_v42, %v2242_v21  ;;  %v2487_v34 = vadd.bf16 %v2479_v36, %v2455_v27 }
 0x20f   : > { %v2489_v26 = vadd.bf16 %v2481_v45, %v2457_v52  ;;  %v1969_v16 = vpop.f32.mrb[52].mxu0  ;;  %v2488_v38 = vadd.bf16 %v2480_v40, %v2456_v30 }
 0x210   : > { %v2162_v44 = vpop.f32.mrb[52].mxu1  ;;  %v2490_v18 = vadd.bf16 %v2482_v37, %v2458_v5  ;;  %v1971_v32 = vpop.f32.mrb[53].mxu0 }
 0x211   : > { %v2164_v31 = vpop.f32.mrb[53].mxu1  ;;  %v1973_v50 = vpop.f32.mrb[54].mxu0 }
 0x212   : > { %v2166_v58 = vpop.f32.mrb[54].mxu1  ;;  %v2243_v19 = vpack.c.bf16 %v1973_v50, %v1969_v16  ;;  %v1975_v7 = vpop.f32.mrb[55].mxu0 }
 0x213   : > { %v2245_v53 = vpack.c.bf16 %v2166_v58, %v2162_v44  ;;  %v2168_v33 = vpop.f32.mrb[55].mxu1  ;;  %v2244_v11 = vpack.c.bf16 %v1975_v7, %v1971_v32 }
 0x214   : > { %v2246_v9 = vpack.c.bf16 %v2168_v33, %v2164_v31  ;;  %v2483_v22 = vmul.bf16 %v2466_v4, %v2243_v19  ;;  %v2506_v4 = vrot.slane %v10985_v54, %v10724_v62  ;;  %v11108_v33 = vld [vmem:[%s10314_s24 + $0x24] ss:$16 sps:$4 sm:$0xff]  }
 0x215   : > { %v2485_v51 = vmul.bf16 %v2474_v47, %v2245_v53  ;;  %v2484_v43 = vmul.bf16 %v2470_v14, %v2244_v11 }
 0x216   : > { %v2486_v28 = vmul.bf16 %v2478_v42, %v2246_v9  ;;  %v2491_v27 = vadd.bf16 %v2483_v22, %v2459_v29 }
 0x217   : > { %v2493_v52 = vadd.bf16 %v2485_v51, %v2461_v20  ;;  %v1979_v25 = vpop.f32.mrb[56].mxu0  ;;  %v2492_v30 = vadd.bf16 %v2484_v43, %v2460_v24  ;;  %v2502_v20 = vrot.slane %v10987_v63, %v10724_v62 }
 0x218   : > { %v2172_v2 = vpop.f32.mrb[56].mxu1  ;;  %v2494_v5 = vadd.bf16 %v2486_v28, %v2462_v46  ;;  %v1981_v60 = vpop.f32.mrb[57].mxu0  ;;  %v2510_v46 = vrot.slane %v10989_v17, %v10724_v62 }
 0x219   : > { %v2174_v35 = vpop.f32.mrb[57].mxu1  ;;  %v1983_v55 = vpop.f32.mrb[58].mxu0 }
 0x21a   : > { %v2176_v39 = vpop.f32.mrb[58].mxu1  ;;  %v2247_v41 = vpack.c.bf16 %v1983_v55, %v1979_v25  ;;  %v1985_v47 = vpop.f32.mrb[59].mxu0  ;;  %v11112_v25 = vld [vmem:[%s10314_s24 + $0x20] ss:$16 sps:$4 sm:$0xff]   ;;  %v11141_v55 = vld [vmem:[%s10314_s24 + $0xa4] ss:$16 sps:$4 sm:$0xff]  }
 0x21b   : > { %v2249_v8 = vpack.c.bf16 %v2176_v39, %v2172_v2  ;;  %v2178_v14 = vpop.f32.mrb[59].mxu1  ;;  %v2248_v29 = vpack.c.bf16 %v1985_v47, %v1981_v60  ;;  %v11116_v2 = vld [vmem:[%s10314_s24 + $0x44] ss:$16 sps:$4 sm:$0xff]   ;;  %v11145_v39 = vld [vmem:[%s10314_s24 + $0xa0] ss:$16 sps:$4 sm:$0xff]  }
 0x21c   : > { %v2250_v24 = vpack.c.bf16 %v2178_v14, %v2174_v35  ;;  %v2511_v21 = vmul.bf16 %v2498_v0, %v2247_v41  ;;  %v11133_v60 = vld [vmem:[%s10314_s24 + $0x84] ss:$16 sps:$4 sm:$0xff]   ;;  %v11137_v35 = vld [vmem:[%s10314_s24 + $0x80] ss:$16 sps:$4 sm:$0xff]  }
 0x21d   : > { %v2513_v42 = vmul.bf16 %v2506_v4, %v2249_v8  ;;  %v2512_v36 = vmul.bf16 %v2502_v20, %v2248_v29  ;;  %v11149_v41 = vld [vmem:[%s10314_s24 + $0xc4] ss:$16 sps:$4 sm:$0xff]   ;;  %v11169_v14 = vld [vmem:[%s10314_s24 + $0x100] ss:$16 sps:$4 sm:$0xff]  }
 0x21e   : > { %v2514_v45 = vmul.bf16 %v2510_v46, %v2250_v24  ;;  %v2519_v40 = vadd.bf16 %v2511_v21, %v2487_v34  ;;  %v11157_v8 = vld [vmem:[%s10314_s24 + $0xe4] ss:$16 sps:$4 sm:$0xff]  }
 0x21f   : > { %v2521_v12 = vadd.bf16 %v2513_v42, %v2489_v26  ;;  %v1989_v37 = vpop.f32.mrb[60].mxu0  ;;  %v2520_v44 = vadd.bf16 %v2512_v36, %v2488_v38  ;;  %v11104_v38 = vld [vmem:[%s10314_s24] ss:$16 sps:$4 sm:$0xff]   ;;  %v11165_v47 = vld [vmem:[%s10314_s24 + $0x104] ss:$16 sps:$4 sm:$0xff]  }
 0x220   : > { %v2182_v16 = vpop.f32.mrb[60].mxu1  ;;  %v2522_v54 = vadd.bf16 %v2514_v45, %v2490_v18  ;;  %v1991_v32 = vpop.f32.mrb[61].mxu0  ;;  %v11173_v29 = vld [vmem:[%s10314_s24 + $0x124] ss:$16 sps:$4 sm:$0xff]   ;;  %v11193_v42 = vld [vmem:[%s10314_s24 + $0x160] ss:$16 sps:$4 sm:$0xff]  }
 0x221   : > { %v2184_v31 = vpop.f32.mrb[61].mxu1  ;;  %v1993_v50 = vpop.f32.mrb[62].mxu0  ;;  %2879 = vmatprep.mubr.bf16.mxu1 %v2520_v44  ;;  %v11181_v24 = vld [vmem:[%s10314_s24 + $0x144] ss:$16 sps:$4 sm:$0xff]   ;;  %v11201_v45 = vld [vmem:[%s10314_s24 + $0x180] ss:$16 sps:$4 sm:$0xff]  }
 0x222   : > { %v2186_v63 = vpop.f32.mrb[62].mxu1  ;;  %2932 = vmatprep.mubr.bf16.mxu0 %v2522_v54  ;;  %v2251_v58 = vpack.c.bf16 %v1993_v50, %v1989_v37  ;;  %v1995_v19 = vpop.f32.mrb[63].mxu0  ;;  %2880 = vmatmul.mubr.bf16.vlgmr.msra.gmra.mrb[64].mxu1 %v2519_v40  ;;  %v11189_v21 = vld [vmem:[%s10314_s24 + $0x164] ss:$16 sps:$4 sm:$0xff]   ;;  %v11225_v54 = vld [vmem:[%s10314_s24 + $0x1e0] ss:$16 sps:$4 sm:$0xff]  }
 0x223   : > { %v2253_v17 = vpack.c.bf16 %v2186_v63, %v2182_v16  ;;  %v2188_v53 = vpop.f32.mrb[63].mxu1  ;;  %2933 = vmatmul.mubr.bf16.vlgmr.msra.gmra.mrb[64].mxu0 %v2521_v12  ;;  %v2252_v34 = vpack.c.bf16 %v1995_v19, %v1991_v32  ;;  %v11197_v36 = vld [vmem:[%s10314_s24 + $0x184] ss:$16 sps:$4 sm:$0xff]   ;;  %v11209_v12 = vld [vmem:[%s10314_s24 + $0x1a0] ss:$16 sps:$4 sm:$0xff]   ;;  %14538 = vst [vmem:[#allocation31_spill] sm:$0xff] %v11225_v54 }
 0x224   : > { %v2254_v26 = vpack.c.bf16 %v2188_v53, %v2184_v31  ;;  %3943 = vmatpush1.bf16.msra.mxu0 %v11104_v38  ;;  %v2515_v18 = vmul.bf16 %v2498_v0, %v2251_v58  ;;  %v11153_v0 = vld [vmem:[%s10314_s24 + $0xc0] ss:$16 sps:$4 sm:$0xff]   ;;  %v11205_v40 = vld [vmem:[%s10314_s24 + $0x1a4] ss:$16 sps:$4 sm:$0xff]  }
 0x225   : > { %v2517_v7 = vmul.bf16 %v2506_v4, %v2253_v17  ;;  %3944 = vmatprep.subr.bf16.mxu0 %v11108_v33  ;;  %v2516_v11 = vmul.bf16 %v2502_v20, %v2252_v34  ;;  %v11161_v4 = vld [vmem:[%s10314_s24 + $0xe0] ss:$16 sps:$4 sm:$0xff]   ;;  %v11213_v37 = vld [vmem:[%s10314_s24 + $0x1c4] ss:$16 sps:$4 sm:$0xff]  }
 0x226   : > { %v2518_v9 = vmul.bf16 %v2510_v46, %v2254_v26  ;;  %v2523_v22 = vadd.bf16 %v2515_v18, %v2491_v27  ;;  %v14536_v27 = vmov 0   ;;  %v11177_v20 = vld [vmem:[%s10314_s24 + $0x120] ss:$16 sps:$4 sm:$0xff]   ;;  %v11221_v44 = vld [vmem:[%s10314_s24 + $0x1e4] ss:$16 sps:$4 sm:$0xff]  }
 0x227   : > { %v2525_v51 = vadd.bf16 %v2517_v7, %v2493_v52  ;;  %v2524_v43 = vadd.bf16 %v2516_v11, %v2492_v30  ;;  %v11121_v52 = vld [vmem:[%s10314_s24 + $0x40] ss:$16 sps:$4 sm:$0xff]   ;;  %v11125_v30 = vld [vmem:[%s10314_s24 + $0x64] ss:$16 sps:$4 sm:$0xff]   ;;  %14537 = vst [vmem:[#allocation30_spill] sm:$0xff] %v11221_v44  ;;  %v1445_v11 = vmul.f32 %v10554_v3, %v10700_v59 }
 0x228   : > { %v2526_v28 = vadd.bf16 %v2518_v9, %v2494_v5  ;;  %3945 = vmatpush1.bf16.msra.mxu0 %v11112_v25  ;;  %v11129_v5 = vld [vmem:[%s10314_s24 + $0x60] ss:$16 sps:$4 sm:$0xff]   ;;  %v11229_v32 = vld [vmem:[%s10280_s8 + $0x4] ss:$8 sps:$4 sm:$0xff]   ;;  %v1447_v9 = vmul.f32 %v10554_v3, %v10702_v1 }
 0x229   : > { %3946 = vmatprep.subr.bf16.mxu0 %v11116_v2  ;;  %2889 = vmatprep.mubr.bf16.mxu1 %v2524_v43  ;;  %v11185_v46 = vld [vmem:[%s10314_s24 + $0x140] ss:$16 sps:$4 sm:$0xff]   ;;  %14539 = vst [vmem:[#allocation32_spill] sm:$0xff] %v11229_v32 }
 0x22a   : > { %2942 = vmatprep.mubr.bf16.mxu0 %v2526_v28  ;;  %2890 = vmatmul.mubr.bf16.gmra.mrb[68].mxu1 %v2523_v22  ;;  %v11217_v16 = vld [vmem:[%s10314_s24 + $0x1c0] ss:$16 sps:$4 sm:$0xff]  }
 0x22b   : > { %2943 = vmatmul.mubr.bf16.gmra.mrb[68].mxu0 %v2525_v51  ;;  %3517 = vmatprep.mubr.bf16.mxu1 %v14536_v27  ;;  %v984_v31 = vld [vmem:[%s846_s2] sm:$0x3]  ;;  %s14707_s2 = sld [smem:[#allocation49_spill]] }
 0x22c   : > { %3947 = vmatpush1.bf16.msra.mxu0 %v11121_v52  ;;  %v11238_v50 = vrot.slane %v984_v31, %v10497_v48  ;;  %v11241_v17 = vrot.slane %v984_v31, %v10500_v49  ;;  %v1446_v31 = vmul.f32 %v10560_v6, %v10700_v59 }
 0x22d   : > { %3948 = vmatprep.subr.bf16.mxu0 %v11125_v30 }
 0x230   : > { %3949 = vmatpush1.bf16.msra.mxu0 %v11129_v5 }
 0x231   : > { %3950 = vmatprep.subr.bf16.mxu0 %v11133_v60  ;;  %s851_s25 = scalar_lea.vmem %s14707_s2, %s9126_s29 }
 0x234   : > { %3951 = vmatpush1.bf16.msra.mxu0 %v11137_v35 }
 0x235   : > { %3952 = vmatprep.subr.bf16.mxu0 %v11141_v55 }
 0x238   : > { %3953 = vmatpush1.bf16.msra.mxu0 %v11145_v39 }
 0x239   : > { %3954 = vmatprep.subr.bf16.mxu0 %v11149_v41 }
 0x23c   : > { %3955 = vmatpush1.bf16.msra.mxu0 %v11153_v0 }
 0x23d   : > { %3956 = vmatprep.subr.bf16.mxu0 %v11157_v8 }
 0x240   : > { %3957 = vmatpush1.bf16.msra.mxu0 %v11161_v4 }
 0x241   : > { %3958 = vmatprep.subr.bf16.mxu0 %v11165_v47 }
 0x244   : > { %3959 = vmatpush1.bf16.msra.mxu0 %v11169_v14 }
 0x245   : > { %3960 = vmatprep.subr.bf16.mxu0 %v11173_v29 }
 0x248   : > { %3961 = vmatpush1.bf16.msra.mxu0 %v11177_v20 }
 0x249   : > { %3962 = vmatprep.subr.bf16.mxu0 %v11181_v24 }
 0x24c   : > { %3963 = vmatpush1.bf16.msra.mxu0 %v11185_v46 }
 0x24d   : > { %3964 = vmatprep.subr.bf16.mxu0 %v11189_v21 }
 0x250   : > { %3965 = vmatpush1.bf16.msra.mxu0 %v11193_v42 }
 0x251   : > { %3966 = vmatprep.subr.bf16.mxu0 %v11197_v36 }
 0x254   : > { %3967 = vmatpush1.bf16.msra.mxu0 %v11201_v45 }
 0x255   : > { %3968 = vmatprep.subr.bf16.mxu0 %v11205_v40 }
 0x258   : > { %3969 = vmatpush1.bf16.msra.mxu0 %v11209_v12 }
 0x259   : > { %3970 = vmatprep.subr.bf16.mxu0 %v11213_v37 }
 0x25c   : > { %3971 = vmatpush1.bf16.msra.mxu0 %v11217_v16 }
 0x25d   : > { %3972 = vmatprep.subr.bf16.mxu0 %v11221_v44 }
 0x260   : > { %3973 = vmatpush1.bf16.msra.mxu0 %v11225_v54 }
 0x261   : > { %5168 = vmatprep.subr.bf16.mxu0 %v11229_v32 }
 0x2f5   : > { %v2881_v63 = vpop.f32.mrb[64].mxu1 }
 0x2f6   : > { %v2934_v58 = vpop.f32.mrb[64].mxu0  ;;  %v2883_v53 = vpop.f32.mrb[65].mxu1 }
 0x2f7   : > { %v2935_v19 = vadd.f32 %v2934_v58, %v2881_v63  ;;  %v2936_v34 = vpop.f32.mrb[65].mxu0  ;;  %v2885_v18 = vpop.f32.mrb[66].mxu1  ;;  %v1448_v63 = vmul.f32 %v10560_v6, %v10702_v1 }
 0x2f8   : > { %v2937_v26 = vadd.f32 %v2936_v34, %v2883_v53  ;;  %v2938_v7 = vpop.f32.mrb[66].mxu0  ;;  %v2887_v43 = vpop.f32.mrb[67].mxu1 }
 0x2f9   : > { %v2964_v22 = vmul.f32 %v11238_v50, %v2935_v19  ;;  %v2939_v51 = vadd.f32 %v2938_v7, %v2885_v18  ;;  %v2940_v28 = vpop.f32.mrb[67].mxu0  ;;  %v1449_v7 = vmul.f32 %v10554_v3, %v10704_v56 }
 0x2fa   : > { %v2965_v58 = vmul.f32 %v11241_v17, %v2937_v26  ;;  %v2941_v53 = vadd.f32 %v2940_v28, %v2887_v43  ;;  %v1450_v26 = vmul.f32 %v10560_v6, %v10704_v56 }
 0x2fb   : > { %v2972_v34 = vadd.f32 %v2964_v22, %v1445_v11  ;;  %v2966_v62 = vmul.f32 %v11238_v50, %v2939_v51 }
 0x2fc   : > { %v2973_v13 = vadd.f32 %v2965_v58, %v1446_v31  ;;  %v2967_v49 = vmul.f32 %v11241_v17, %v2941_v53 }
 0x2fd   : > { %v11256_v19 = vadd.f32 %v10721_v61, %v2972_v34  ;;  %v2974_v18 = vadd.f32 %v2966_v62, %v1447_v9  ;;  %v2891_v48 = vpop.f32.mrb[68].mxu1  ;;  %v1451_v62 = vmul.f32 %v10554_v3, %v10714_v10 }
 0x2fe   : > { %v2975_v59 = vadd.f32 %v2967_v49, %v1448_v63  ;;  %v2944_v15 = vpop.f32.mrb[68].mxu0  ;;  %v11261_v1 = vadd.f32 %v10721_v61, %v2973_v13  ;;  %v2893_v43 = vpop.f32.mrb[69].mxu1 }
 0x2ff   : > { %v3020_v11 = vmin.f32 %v11256_v19, 0.0  ;;  %v3006_v22 = vadd.f32 %v10728_v23, %v2974_v18  ;;  %v2945_v51 = vadd.f32 %v2944_v15, %v2891_v48  ;;  %v2946_v28 = vpop.f32.mrb[69].mxu0  ;;  %v2895_v49 = vpop.f32.mrb[70].mxu1  ;;  %v1452_v48 = vmul.f32 %v10560_v6, %v10714_v10 }
 0x300   : > { %v2947_v9 = vadd.f32 %v2946_v28, %v2893_v43  ;;  %v2948_v31 = vpop.f32.mrb[70].mxu0  ;;  %v3007_v63 = vadd.f32 %v10728_v23, %v2975_v59  ;;  %v3021_v13 = vmin.f32 %v11261_v1, 0.0  ;;  %v2897_v34 = vpop.f32.mrb[71].mxu1  ;;  %vm3012_vm0 = vcmp.gt.f32.partialorder %v11256_v19, 0.0 }
 0x301   : > { %v3028_v61 = vmul.f32 1.442695, %v3020_v11  ;;  %v3022_v58 = vmin.f32 %v3006_v22, 0.0  ;;  %v2968_v56 = vmul.f32 %v11238_v50, %v2945_v51  ;;  %v2949_v53 = vadd.f32 %v2948_v31, %v2895_v49  ;;  %v2950_v18 = vpop.f32.mrb[71].mxu0  ;;  %v14541_v49 = vld [vmem:[#allocation12_spill] sm:$0xff] }
 0x302   : > { %v2969_v15 = vmul.f32 %v11241_v17, %v2947_v9  ;;  %v2951_v3 = vadd.f32 %v2950_v18, %v2897_v34  ;;  %v3023_v43 = vmin.f32 %v3007_v63, 0.0  ;;  %v3030_v32 = vmul.f32 1.442695, %v3021_v13  ;;  %v14542_v9 = vld [vmem:[#allocation13_spill] sm:$0xff] }
 0x303   : > { %9638 = vpow2.f32 %v3028_v61  ;;  %v3032_v28 = vmul.f32 1.442695, %v3022_v58  ;;  %v2976_v57 = vadd.f32 %v2968_v56, %v1449_v7  ;;  %v2970_v23 = vmul.f32 %v11238_v50, %v2949_v53 }
 0x304   : > { %v2977_v59 = vadd.f32 %v2969_v15, %v1450_v26  ;;  %v2971_v11 = vmul.f32 %v11241_v17, %v2951_v3  ;;  %v3034_v51 = vmul.f32 1.442695, %v3023_v43  ;;  %vm3014_vm1 = vcmp.gt.f32.partialorder %v3006_v22, 0.0 }
 0x305   : > { %9640 = vpow2.f32 %v3032_v28  ;;  %v3008_v31 = vadd.f32 %v14541_v49, %v2976_v57  ;;  %v2978_v54 = vadd.f32 %v2970_v23, %v1451_v62  ;;  %vm3013_vm2 = vcmp.gt.f32.partialorder %v11261_v1, 0.0 }
 0x306   : > { %v2979_v44 = vadd.f32 %v2971_v11, %v1452_v48  ;;  %9642 = vpow2.f32 %v3030_v32  ;;  %v3009_v6 = vadd.f32 %v14541_v49, %v2977_v59  ;;  %vm3015_vm3 = vcmp.gt.f32.partialorder %v3007_v63, 0.0 }
 0x307   : > { %v3024_v10 = vmin.f32 %v3008_v31, 0.0  ;;  %v3010_v61 = vadd.f32 %v14542_v9, %v2978_v54  ;;  %9644 = vpow2.f32 %v3034_v51  ;;  %vm3016_vm4 = vcmp.gt.f32.partialorder %v3008_v31, 0.0 }
 0x308   : > { %v3011_v7 = vadd.f32 %v14542_v9, %v2979_v44  ;;  %v3025_v58 = vmin.f32 %v3009_v6, 0.0  ;;  %vm3017_vm6 = vcmp.gt.f32.partialorder %v3009_v6, 0.0 }
 0x309   : > { %v3036_v26 = vmul.f32 1.442695, %v3024_v10  ;;  %v3026_v56 = vmin.f32 %v3010_v61, 0.0  ;;  %vm3018_vm5 = vcmp.gt.f32.partialorder %v3010_v61, 0.0 }
 0x30a   : > { %v3027_v53 = vmin.f32 %v3011_v7, 0.0  ;;  %v3038_v13 = vmul.f32 1.442695, %v3025_v58  ;;  %vm3019_vm7 = vcmp.gt.f32.partialorder %v3011_v7, 0.0 }
 0x30b   : > { %9646 = vpow2.f32 %v3036_v26  ;;  %v3040_v34 = vmul.f32 1.442695, %v3026_v56 }
 0x30c   : > { %9648 = vpow2.f32 %v3038_v13  ;;  %v3042_v57 = vmul.f32 1.442695, %v3027_v53 }
 0x30d   : > { %v9639_v62 = vpop.eup %9638  ;;  %9650 = vpow2.f32 %v3040_v34 }
 0x30e   : > { %v8886_v32 = vadd.f32 -1.0, %v9639_v62  ;;  %9652 = vpow2.f32 %v3042_v57  ;;  %v9533_v62 = vld [vmem:[%s14448_s12] sm:$0xff]  }
 0x30f   : > { %v9641_v18 = vpop.eup %9640 }
 0x310   : > { %v9643_v48 = vpop.eup %9642  ;;  %v8888_v15 = vadd.f32 -1.0, %v9641_v18  ;;  %v3052_v43 = vsel %vm3012_vm0, %v11256_v19, %v8886_v32  ;;  %v9805_v32 = vld [vmem:[%s10314_s24 + $0xc] ss:$16 sps:$4 sm:$0xff]  }
 0x311   : > { %v9645_v54 = vpop.eup %9644  ;;  %v8887_v3 = vadd.f32 -1.0, %v9643_v48  ;;  %v9809_v18 = vld [vmem:[%s10314_s24 + $0x4c] ss:$16 sps:$4 sm:$0xff]   ;;  %v9810_v48 = vld [vmem:[%s10314_s24 + $0x48] ss:$16 sps:$4 sm:$0xff]  }
 0x312   : > { %v8889_v44 = vadd.f32 -1.0, %v9645_v54  ;;  %v3054_v28 = vsel %vm3014_vm1, %v3006_v22, %v8888_v15  ;;  %v9811_v15 = vld [vmem:[%s10314_s24 + $0x6c] ss:$16 sps:$4 sm:$0xff]   ;;  %v9535_v54 = vld [vmem:[%s14448_s12 + $0x10] sm:$0xff]  }
 0x313   : > { %v3060_v23 = vpack.c.bf16 %v3054_v28, %v3052_v43  ;;  %v3053_v59 = vsel %vm3013_vm2, %v11261_v1, %v8887_v3  ;;  %v9812_v3 = vld [vmem:[%s10314_s24 + $0x68] ss:$16 sps:$4 sm:$0xff]   ;;  %v9815_v28 = vld [vmem:[%s10314_s24 + $0xac] ss:$16 sps:$4 sm:$0xff]  }
 0x314   : > { %v3055_v11 = vsel %vm3015_vm3, %v3007_v63, %v8889_v44  ;;  %v9813_v44 = vld [vmem:[%s10314_s24 + $0x8c] ss:$16 sps:$4 sm:$0xff]   ;;  %v9814_v43 = vld [vmem:[%s10314_s24 + $0x88] ss:$16 sps:$4 sm:$0xff]  }
 0x315   : > { %v9647_v51 = vpop.eup %9646  ;;  %v3061_v49 = vpack.c.bf16 %v3055_v11, %v3053_v59  ;;  %v9816_v59 = vld [vmem:[%s10314_s24 + $0xa8] ss:$16 sps:$4 sm:$0xff]   ;;  %v9817_v11 = vld [vmem:[%s10314_s24 + $0xcc] ss:$16 sps:$4 sm:$0xff]  }
 0x316   : > { %v9649_v10 = vpop.eup %9648  ;;  %v8890_v9 = vadd.f32 -1.0, %v9647_v51  ;;  %v9818_v51 = vld [vmem:[%s10314_s24 + $0xc8] ss:$16 sps:$4 sm:$0xff]  }
 0x317   : > { %v9651_v58 = vpop.eup %9650  ;;  %3485 = vmatprep.subr.bf16.mxu1 %v3061_v49  ;;  %v8891_v26 = vadd.f32 -1.0, %v9649_v10  ;;  %v9819_v49 = vld [vmem:[%s10314_s24 + $0xec] ss:$16 sps:$4 sm:$0xff]   ;;  %v9537_v10 = vld [vmem:[%s14448_s12 + $0x20] sm:$0xff]  }
 0x318   : > { %v9653_v56 = vpop.eup %9652  ;;  %3486 = vmatpush1.bf16.msra.mxu1 %v3060_v23  ;;  %v8892_v53 = vadd.f32 -1.0, %v9651_v58  ;;  %v3056_v22 = vsel %vm3016_vm4, %v3008_v31, %v8890_v9  ;;  %v9806_v31 = vld [vmem:[%s10314_s24 + $0x8] ss:$16 sps:$4 sm:$0xff]   ;;  %v9821_v58 = vld [vmem:[%s10314_s24 + $0x10c] ss:$16 sps:$4 sm:$0xff]  }
 0x319   : > { %v8893_v19 = vadd.f32 -1.0, %v9653_v56  ;;  %v3057_v63 = vsel %vm3017_vm6, %v3009_v6, %v8891_v26  ;;  %v9807_v6 = vld [vmem:[%s10314_s24 + $0x2c] ss:$16 sps:$4 sm:$0xff]   ;;  %v9820_v9 = vld [vmem:[%s10314_s24 + $0xe8] ss:$16 sps:$4 sm:$0xff]  }
 0x31a   : > { %v3058_v1 = vsel %vm3018_vm5, %v3010_v61, %v8892_v53  ;;  %v9534_v61 = vld [vmem:[%s14448_s12 + $0x8] sm:$0xff]   ;;  %v9536_v23 = vld [vmem:[%s14448_s12 + $0x18] sm:$0xff]  }
 0x31b   : > { %v3059_v13 = vsel %vm3019_vm7, %v3011_v7, %v8893_v19  ;;  %v3062_v34 = vpack.c.bf16 %v3058_v1, %v3056_v22  ;;  %v9808_v7 = vld [vmem:[%s10314_s24 + $0x28] ss:$16 sps:$4 sm:$0xff]   ;;  %v9823_v56 = vld [vmem:[%s10314_s24 + $0x12c] ss:$16 sps:$4 sm:$0xff]  }
 0x31c   : > { %v3063_v57 = vpack.c.bf16 %v3059_v13, %v3057_v63  ;;  %v9822_v26 = vld [vmem:[%s10314_s24 + $0x108] ss:$16 sps:$4 sm:$0xff]   ;;  %v9825_v22 = vld [vmem:[%s10314_s24 + $0x14c] ss:$16 sps:$4 sm:$0xff]   ;;  %v9539_v13 = vld [vmem:[%s14448_s12 + $0x30] sm:$0xff]  }
 0x31d   : > { %v9538_v53 = vld [vmem:[%s14448_s12 + $0x28] sm:$0xff]  }
 0x31e   : > { %3487 = vmatprep.subr.bf16.mxu1 %v3063_v57  ;;  %v9824_v19 = vld [vmem:[%s10314_s24 + $0x128] ss:$16 sps:$4 sm:$0xff]   ;;  %v9827_v63 = vld [vmem:[%s10314_s24 + $0x16c] ss:$16 sps:$4 sm:$0xff]  }
 0x31f   : > { %3488 = vmatpush1.bf16.msra.mxu1 %v3062_v34  ;;  %v9826_v1 = vld [vmem:[%s10314_s24 + $0x148] ss:$16 sps:$4 sm:$0xff]   ;;  %v9829_v57 = vld [vmem:[%s10314_s24 + $0x18c] ss:$16 sps:$4 sm:$0xff]  }
 0x320   : > { %4295 = vmatprep.subr.bf16.mxu1 %v9805_v32  ;;  %v9828_v34 = vld [vmem:[%s10314_s24 + $0x168] ss:$16 sps:$4 sm:$0xff]   ;;  %v9831_v32 = vld [vmem:[%s10314_s24 + $0x1ac] ss:$16 sps:$4 sm:$0xff]  }
 0x322   : > { %8930 = vmatmul.mubr.msk.bf16.vlgmr.msra.gmra.mrb[72].mxu1 %vm3376_vm8, %v9533_v62  ;;  %v9830_v62 = vld [vmem:[%s10314_s24 + $0x188] ss:$16 sps:$4 sm:$0xff]  }
 0x323   : > { %4296 = vmatpush1.bf16.msra.mxu1 %v9806_v31  ;;  %3527 = vmatprep.mubr.bf16.mxu1 %v14536_v27  ;;  %v9540_v31 = vld [vmem:[%s14448_s12 + $0x38] sm:$0xff]  }
 0x324   : > { %4297 = vmatprep.subr.bf16.mxu1 %v9807_v6  ;;  %v9832_v6 = vld [vmem:[%s10314_s24 + $0x1a8] ss:$16 sps:$4 sm:$0xff]  }
 0x327   : > { %4298 = vmatpush1.bf16.msra.mxu1 %v9808_v7  ;;  %v9834_v7 = vld [vmem:[%s10314_s24 + $0x1c8] ss:$16 sps:$4 sm:$0xff]  }
 0x328   : > { %4299 = vmatprep.subr.bf16.mxu1 %v9809_v18  ;;  %v9835_v18 = vld [vmem:[%s10314_s24 + $0x1ec] ss:$16 sps:$4 sm:$0xff]  }
 0x32a   : > { %8931 = vmatmul.mubr.msk.bf16.gmra.mrb[76].mxu1 %vm3376_vm8, %v9534_v61  ;;  %v9833_v61 = vld [vmem:[%s10314_s24 + $0x1cc] ss:$16 sps:$4 sm:$0xff]  }
 0x32b   : > { %3537 = vmatprep.mubr.bf16.mxu1 %v14536_v27  ;;  %4300 = vmatpush1.bf16.msra.mxu1 %v9810_v48  ;;  %v9541_v48 = vld [vmem:[%s14448_s12 + $0x40] sm:$0xff]  }
 0x32c   : > { %4301 = vmatprep.subr.bf16.mxu1 %v9811_v15  ;;  %v9836_v15 = vld [vmem:[%s10314_s24 + $0x1e8] ss:$16 sps:$4 sm:$0xff]  }
 0x32f   : > { %4302 = vmatpush1.bf16.msra.mxu1 %v9812_v3  ;;  %v9542_v3 = vld [vmem:[%s14448_s12 + $0x48] sm:$0xff]  }
 0x330   : > { %4303 = vmatprep.subr.bf16.mxu1 %v9813_v44  ;;  %v9543_v44 = vld [vmem:[%s14448_s12 + $0x50] sm:$0xff]  }
 0x332   : > { %8932 = vmatmul.mubr.msk.bf16.gmra.mrb[80].mxu1 %vm3376_vm8, %v9535_v54  ;;  %v9837_v54 = vld [vmem:[%s10314_s24 + $0x4] ss:$16 sps:$4 sm:$0xff]  }
 0x333   : > { %3547 = vmatprep.mubr.bf16.mxu1 %v14536_v27  ;;  %4304 = vmatpush1.bf16.msra.mxu1 %v9814_v43  ;;  %v9544_v43 = vld [vmem:[%s14448_s12 + $0x58] sm:$0xff]  }
 0x334   : > { %4305 = vmatprep.subr.bf16.mxu1 %v9815_v28  ;;  %v9545_v28 = vld [vmem:[%s14448_s12 + $0x60] sm:$0xff]  }
 0x337   : > { %4306 = vmatpush1.bf16.msra.mxu1 %v9816_v59  ;;  %v9547_v59 = vld [vmem:[%s14448_s12 + $0x70] sm:$0xff]  }
 0x338   : > { %4307 = vmatprep.subr.bf16.mxu1 %v9817_v11  ;;  %v9548_v11 = vld [vmem:[%s14448_s12 + $0x78] sm:$0xff]  }
 0x33a   : > { %8933 = vmatmul.mubr.msk.bf16.gmra.mrb[84].mxu1 %vm3376_vm8, %v9536_v23  ;;  %v9546_v23 = vld [vmem:[%s14448_s12 + $0x68] sm:$0xff]  }
 0x33b   : > { %3557 = vmatprep.mubr.bf16.mxu1 %v14536_v27  ;;  %4308 = vmatpush1.bf16.msra.mxu1 %v9818_v51  ;;  %v9549_v51 = vld [vmem:[%s14448_s12 + $0x80] sm:$0xff]  }
 0x33c   : > { %4309 = vmatprep.subr.bf16.mxu1 %v9819_v49  ;;  %v9550_v49 = vld [vmem:[%s14448_s12 + $0x88] sm:$0xff]  }
 0x33f   : > { %4310 = vmatpush1.bf16.msra.mxu1 %v9820_v9  ;;  %v9552_v9 = vld [vmem:[%s14448_s12 + $0x98] sm:$0xff]  }
 0x340   : > { %4311 = vmatprep.subr.bf16.mxu1 %v9821_v58  ;;  %v9553_v58 = vld [vmem:[%s14448_s12 + $0xa0] sm:$0xff]  }
 0x342   : > { %8934 = vmatmul.mubr.msk.bf16.gmra.mrb[88].mxu1 %vm3376_vm8, %v9537_v10  ;;  %v9551_v10 = vld [vmem:[%s14448_s12 + $0x90] sm:$0xff]  }
 0x343   : > { %3567 = vmatprep.mubr.bf16.mxu1 %v14536_v27  ;;  %4312 = vmatpush1.bf16.msra.mxu1 %v9822_v26  ;;  %v9554_v26 = vld [vmem:[%s14448_s12 + $0xa8] sm:$0xff]  }
 0x344   : > { %4313 = vmatprep.subr.bf16.mxu1 %v9823_v56  ;;  %v9555_v56 = vld [vmem:[%s14448_s12 + $0xb0] sm:$0xff]  }
 0x347   : > { %4314 = vmatpush1.bf16.msra.mxu1 %v9824_v19  ;;  %v9557_v19 = vld [vmem:[%s14448_s12 + $0xc0] sm:$0xff]  }
 0x348   : > { %4315 = vmatprep.subr.bf16.mxu1 %v9825_v22  ;;  %v9558_v22 = vld [vmem:[%s14448_s12 + $0xc8] sm:$0xff]  }
 0x34a   : > { %8935 = vmatmul.mubr.msk.bf16.gmra.mrb[92].mxu1 %vm3376_vm8, %v9538_v53  ;;  %v9556_v53 = vld [vmem:[%s14448_s12 + $0xb8] sm:$0xff]  }
 0x34b   : > { %3577 = vmatprep.mubr.bf16.mxu1 %v14536_v27  ;;  %4316 = vmatpush1.bf16.msra.mxu1 %v9826_v1  ;;  %v9559_v1 = vld [vmem:[%s14448_s12 + $0xd0] sm:$0xff]  }
 0x34c   : > { %4317 = vmatprep.subr.bf16.mxu1 %v9827_v63 }
 0x34f   : > { %4318 = vmatpush1.bf16.msra.mxu1 %v9828_v34  ;;  %v9560_v34 = vld [vmem:[%s14448_s12 + $0xd8] sm:$0xff]  }
 0x350   : > { %4319 = vmatprep.subr.bf16.mxu1 %v9829_v57 }
 0x352   : > { %8936 = vmatmul.mubr.msk.bf16.gmra.mrb[96].mxu1 %vm3376_vm8, %v9539_v13 }
 0x353   : > { %3587 = vmatprep.mubr.bf16.mxu1 %v14536_v27  ;;  %4320 = vmatpush1.bf16.msra.mxu1 %v9830_v62 }
 0x354   : > { %4321 = vmatprep.subr.bf16.mxu1 %v9831_v32 }
 0x357   : > { %4322 = vmatpush1.bf16.msra.mxu1 %v9832_v6 }
 0x358   : > { %4323 = vmatprep.subr.bf16.mxu1 %v9833_v61  ;;  %v9838_v61 = vld [vmem:[%s10280_s8] ss:$8 sps:$4 sm:$0xff]  }
 0x35a   : > { %8937 = vmatmul.mubr.msk.bf16.gmra.mrb[100].mxu1 %vm3376_vm8, %v9540_v31 }
 0x35b   : > { %3597 = vmatprep.mubr.bf16.mxu1 %v14536_v27  ;;  %4324 = vmatpush1.bf16.msra.mxu1 %v9834_v7 }
 0x35c   : > { %4325 = vmatprep.subr.bf16.mxu1 %v9835_v18  ;;  %v9561_v18 = vld [vmem:[%s14448_s12 + $0xe0] sm:$0xff]  }
 0x35f   : > { %4326 = vmatpush1.bf16.msra.mxu1 %v9836_v15 }
 0x360   : > { %6392 = vmatprep.subr.bf16.mxu1 %v9837_v54 }
 0x362   : > { %8938 = vmatmul.mubr.msk.bf16.gmra.mrb[104].mxu1 %vm3376_vm8, %v9541_v48  ;;  %v9839_v48 = vld [vmem:[%s10280_s8 + $0x14] ss:$8 sps:$4 sm:$0xff]  }
 0x363   : > { %3607 = vmatprep.mubr.bf16.mxu1 %v14536_v27 }
 0x36a   : > { %8939 = vmatmul.mubr.msk.bf16.gmra.mrb[108].mxu1 %vm3376_vm8, %v9542_v3 }
 0x36b   : > { %3617 = vmatprep.mubr.bf16.mxu1 %v14536_v27 }
 0x372   : > { %8940 = vmatmul.mubr.msk.bf16.gmra.mrb[112].mxu1 %vm3376_vm8, %v9543_v44 }
 0x373   : > { %3627 = vmatprep.mubr.bf16.mxu1 %v14536_v27 }
 0x37a   : > { %8941 = vmatmul.mubr.msk.bf16.gmra.mrb[116].mxu1 %vm3376_vm8, %v9544_v43  ;;  %v9840_v43 = vld [vmem:[%s10280_s8 + $0x10] ss:$8 sps:$4 sm:$0xff]  }
 0x37b   : > { %3637 = vmatprep.mubr.bf16.mxu1 %v14536_v27 }
 0x382   : > { %8942 = vmatmul.mubr.msk.bf16.gmra.mrb[120].mxu1 %vm3376_vm8, %v9545_v28  ;;  %v9841_v28 = vld [vmem:[%s10280_s8 + $0x24] ss:$8 sps:$4 sm:$0xff]  }
 0x383   : > { %3647 = vmatprep.mubr.bf16.mxu1 %v14536_v27 }
 0x38a   : > { %8943 = vmatmul.mubr.msk.bf16.gmra.mrb[124].mxu1 %vm3376_vm8, %v9546_v23 }
 0x38b   : > { %3657 = vmatprep.mubr.bf16.mxu1 %v14536_v27 }
 0x392   : > { %8944 = vmatmul.mubr.msk.bf16.gmra.mrb[128].mxu1 %vm3376_vm8, %v9547_v59  ;;  %v9842_v59 = vld [vmem:[%s10280_s8 + $0x20] ss:$8 sps:$4 sm:$0xff]  }
 0x393   : > { %3667 = vmatprep.mubr.bf16.mxu1 %v14536_v27 }
 0x39a   : > { %8945 = vmatmul.mubr.msk.bf16.gmra.mrb[132].mxu1 %vm3376_vm8, %v9548_v11 }
 0x39b   : > { %3677 = vmatprep.mubr.bf16.mxu1 %v14536_v27 }
 0x3a2   : > { %8946 = vmatmul.mubr.msk.bf16.gmra.mrb[136].mxu1 %vm3376_vm8, %v9549_v51  ;;  %v9562_v51 = vld [vmem:[%s14448_s12 + $0xe8] sm:$0xff]  }
 0x3a3   : > { %3687 = vmatprep.mubr.bf16.mxu1 %v14536_v27 }
 0x3aa   : > { %8947 = vmatmul.mubr.msk.bf16.gmra.mrb[140].mxu1 %vm3376_vm8, %v9550_v49  ;;  %v9843_v49 = vld [vmem:[%s10280_s8 + $0x34] ss:$8 sps:$4 sm:$0xff]  }
 0x3ab   : > { %3697 = vmatprep.mubr.bf16.mxu1 %v14536_v27 }
 0x3b2   : > { %8948 = vmatmul.mubr.msk.bf16.gmra.mrb[144].mxu1 %vm3376_vm8, %v9551_v10 }
 0x3b3   : > { %3707 = vmatprep.mubr.bf16.mxu1 %v14536_v27 }
 0x3ba   : > { %8949 = vmatmul.mubr.msk.bf16.gmra.mrb[148].mxu1 %vm3376_vm8, %v9552_v9 }
 0x3bb   : > { %3717 = vmatprep.mubr.bf16.mxu1 %v14536_v27 }
 0x3c2   : > { %8950 = vmatmul.mubr.msk.bf16.gmra.mrb[152].mxu1 %vm3376_vm8, %v9553_v58 }
 0x3c3   : > { %3727 = vmatprep.mubr.bf16.mxu1 %v14536_v27 }
 0x3ca   : > { %8951 = vmatmul.mubr.msk.bf16.gmra.mrb[156].mxu1 %vm3376_vm8, %v9554_v26 }
 0x3cb   : > { %3737 = vmatprep.mubr.bf16.mxu1 %v14536_v27 }
 0x3d2   : > { %8952 = vmatmul.mubr.msk.bf16.gmra.mrb[160].mxu1 %vm3376_vm8, %v9555_v56  ;;  %v9844_v56 = vld [vmem:[%s10280_s8 + $0x30] ss:$8 sps:$4 sm:$0xff]  }
 0x3d3   : > { %3747 = vmatprep.mubr.bf16.mxu1 %v14536_v27 }
 0x3da   : > { %8953 = vmatmul.mubr.msk.bf16.gmra.mrb[164].mxu1 %vm3376_vm8, %v9556_v53  ;;  %v9845_v53 = vld [vmem:[%s10280_s8 + $0x44] ss:$8 sps:$4 sm:$0xff]  }
 0x3db   : > { %3757 = vmatprep.mubr.bf16.mxu1 %v14536_v27 }
 0x3e2   : > { %8954 = vmatmul.mubr.msk.bf16.gmra.mrb[168].mxu1 %vm3376_vm8, %v9557_v19 }
 0x3e3   : > { %3767 = vmatprep.mubr.bf16.mxu1 %v14536_v27 }
 0x3ea   : > { %8955 = vmatmul.mubr.msk.bf16.gmra.mrb[172].mxu1 %vm3376_vm8, %v9558_v22  ;;  %v9846_v22 = vld [vmem:[%s10280_s8 + $0x40] ss:$8 sps:$4 sm:$0xff]  }
 0x3eb   : > { %3777 = vmatprep.mubr.bf16.mxu1 %v14536_v27 }
 0x3f2   : > { %8956 = vmatmul.mubr.msk.bf16.gmra.mrb[176].mxu1 %vm3376_vm8, %v9559_v1 }
 0x3f3   : > { %3787 = vmatprep.mubr.bf16.mxu1 %v14536_v27 }
 0x3f5   : > { %v3519_v63 = vpop.f32.mrb[72].mxu1 }
 0x3f6   : > { %v3521_v13 = vpop.f32.mrb[73].mxu1 }
 0x3f7   : > { %v3523_v57 = vpop.f32.mrb[74].mxu1 }
 0x3f8   : > { %v11456_v62 = vpack.c.bf16 %v3523_v57, %v3519_v63  ;;  %v3525_v32 = vpop.f32.mrb[75].mxu1  ;;  %v9563_v63 = vld [vmem:[%s14448_s12 + $0xf0] sm:$0xff]  }
 0x3f9   : > { %v11458_v31 = vpack.c.bf16 %v3525_v32, %v3521_v13  ;;  %v9847_v13 = vld [vmem:[%s10280_s8 + $0x54] ss:$8 sps:$4 sm:$0xff]  }
 0x3fa   : > { %8957 = vmatmul.mubr.msk.bf16.gmra.mrb[180].mxu1 %vm3376_vm8, %v9560_v34 }
 0x3fb   : > { %3974 = vmatprep.mubr.bf16.mxu0 %v11458_v31  ;;  %3797 = vmatprep.mubr.bf16.mxu1 %v14536_v27 }
 0x3fc   : > { %3975 = vmatmul.mubr.bf16.vlgmr.msra.gmra.mrb[72].mxu0 %v11456_v62 }
 0x3fd   : > { %v3529_v6 = vpop.f32.mrb[76].mxu1  ;;  %5169 = vmatpush1.bf16.msra.mxu0 %v9838_v61  ;;  %v9848_v61 = vld [vmem:[%s10280_s8 + $0x50] ss:$8 sps:$4 sm:$0xff]  }
 0x3fe   : > { %v3531_v7 = vpop.f32.mrb[77].mxu1  ;;  %5170 = vmatprep.subr.bf16.mxu0 %v9839_v48  ;;  %v9850_v48 = vld [vmem:[%s10280_s8 + $0x60] ss:$8 sps:$4 sm:$0xff]  }
 0x3ff   : > { %v3533_v15 = vpop.f32.mrb[78].mxu1 }
 0x400   : > { %v11469_v54 = vpack.c.bf16 %v3533_v15, %v3529_v6  ;;  %v3535_v3 = vpop.f32.mrb[79].mxu1 }
 0x401   : > { %v11471_v44 = vpack.c.bf16 %v3535_v3, %v3531_v7  ;;  %5171 = vmatpush1.bf16.msra.mxu0 %v9840_v43  ;;  %v9849_v7 = vld [vmem:[%s10280_s8 + $0x64] ss:$8 sps:$4 sm:$0xff]   ;;  %v9564_v3 = vld [vmem:[%s14448_s12 + $0xf8] sm:$0xff]  }
 0x402   : > { %8958 = vmatmul.mubr.msk.bf16.gmra.mrb[184].mxu1 %vm3376_vm8, %v9561_v18  ;;  %5172 = vmatprep.subr.bf16.mxu0 %v9841_v28  ;;  %v9851_v43 = vld [vmem:[%s10280_s8 + $0x74] ss:$8 sps:$4 sm:$0xff]  }
 0x403   : > { %3984 = vmatprep.mubr.bf16.mxu0 %v11471_v44  ;;  %3807 = vmatprep.mubr.bf16.mxu1 %v14536_v27 }
 0x404   : > { %3985 = vmatmul.mubr.bf16.gmra.mrb[76].mxu0 %v11469_v54 }
 0x405   : > { %v3539_v23 = vpop.f32.mrb[80].mxu1  ;;  %5173 = vmatpush1.bf16.msra.mxu0 %v9842_v59 }
 0x406   : > { %v3541_v11 = vpop.f32.mrb[81].mxu1  ;;  %5174 = vmatprep.subr.bf16.mxu0 %v9843_v49  ;;  %v9853_v49 = vld [vmem:[%s10280_s8 + $0x84] ss:$8 sps:$4 sm:$0xff]  }
 0x407   : > { %v3543_v10 = vpop.f32.mrb[82].mxu1 }
 0x408   : > { %v11484_v9 = vpack.c.bf16 %v3543_v10, %v3539_v23  ;;  %v3545_v58 = vpop.f32.mrb[83].mxu1 }
 0x409   : > { %v11486_v26 = vpack.c.bf16 %v3545_v58, %v3541_v11  ;;  %5175 = vmatpush1.bf16.msra.mxu0 %v9844_v56  ;;  %v9854_v58 = vld [vmem:[%s10280_s8 + $0x80] ss:$8 sps:$4 sm:$0xff]  }
 0x40a   : > { %8959 = vmatmul.mubr.msk.bf16.gmra.mrb[188].mxu1 %vm3376_vm8, %v9562_v51  ;;  %5176 = vmatprep.subr.bf16.mxu0 %v9845_v53  ;;  %v9852_v51 = vld [vmem:[%s10280_s8 + $0x70] ss:$8 sps:$4 sm:$0xff]   ;;  %v9565_v53 = vld [vmem:[%s14448_s12 + $0x100] sm:$0xff]  }
 0x40b   : > { %3994 = vmatprep.mubr.bf16.mxu0 %v11486_v26  ;;  %3817 = vmatprep.mubr.bf16.mxu1 %v14536_v27 }
 0x40c   : > { %3995 = vmatmul.mubr.bf16.gmra.mrb[80].mxu0 %v11484_v9 }
 0x40d   : > { %v3549_v19 = vpop.f32.mrb[84].mxu1  ;;  %5177 = vmatpush1.bf16.msra.mxu0 %v9846_v22 }
 0x40e   : > { %v3551_v1 = vpop.f32.mrb[85].mxu1  ;;  %5178 = vmatprep.subr.bf16.mxu0 %v9847_v13 }
 0x40f   : > { %v3553_v34 = vpop.f32.mrb[86].mxu1 }
 0x410   : > { %v11499_v57 = vpack.c.bf16 %v3553_v34, %v3549_v19  ;;  %v3555_v32 = vpop.f32.mrb[87].mxu1  ;;  %v9855_v19 = vld [vmem:[%s10280_s8 + $0x94] ss:$8 sps:$4 sm:$0xff]   ;;  %v9856_v34 = vld [vmem:[%s10280_s8 + $0x90] ss:$8 sps:$4 sm:$0xff]  }
 0x411   : > { %v11501_v6 = vpack.c.bf16 %v3555_v32, %v3551_v1  ;;  %5179 = vmatpush1.bf16.msra.mxu0 %v9848_v61  ;;  %v9857_v32 = vld [vmem:[%s10280_s8 + $0xa4] ss:$8 sps:$4 sm:$0xff]  }
 0x412   : > { %8960 = vmatmul.mubr.msk.bf16.gmra.mrb[192].mxu1 %vm3376_vm8, %v9563_v63  ;;  %5180 = vmatprep.subr.bf16.mxu0 %v9849_v7  ;;  %v9858_v7 = vld [vmem:[%s10280_s8 + $0xa0] ss:$8 sps:$4 sm:$0xff]  }
 0x413   : > { %4004 = vmatprep.mubr.bf16.mxu0 %v11501_v6  ;;  %3827 = vmatprep.mubr.bf16.mxu1 %v14536_v27 }
 0x414   : > { %4005 = vmatmul.mubr.bf16.gmra.mrb[84].mxu0 %v11499_v57 }
 0x415   : > { %v3559_v18 = vpop.f32.mrb[88].mxu1  ;;  %5181 = vmatpush1.bf16.msra.mxu0 %v9850_v48  ;;  %v9566_v48 = vld [vmem:[%s14448_s12 + $0x108] sm:$0xff]  }
 0x416   : > { %v3561_v15 = vpop.f32.mrb[89].mxu1  ;;  %5182 = vmatprep.subr.bf16.mxu0 %v9851_v43 }
 0x417   : > { %v3563_v28 = vpop.f32.mrb[90].mxu1 }
 0x418   : > { %v11514_v23 = vpack.c.bf16 %v3563_v28, %v3559_v18  ;;  %v3565_v59 = vpop.f32.mrb[91].mxu1 }
 0x419   : > { %v11516_v11 = vpack.c.bf16 %v3565_v59, %v3561_v15  ;;  %5183 = vmatpush1.bf16.msra.mxu0 %v9852_v51  ;;  %v9859_v15 = vld [vmem:[%s10280_s8 + $0xb4] ss:$8 sps:$4 sm:$0xff]   ;;  %v9860_v51 = vld [vmem:[%s10280_s8 + $0xb0] ss:$8 sps:$4 sm:$0xff]  }
 0x41a   : > { %8961 = vmatmul.mubr.msk.bf16.gmra.mrb[196].mxu1 %vm3376_vm8, %v9564_v3  ;;  %5184 = vmatprep.subr.bf16.mxu0 %v9853_v49  ;;  %v9861_v49 = vld [vmem:[%s10280_s8 + $0xc4] ss:$8 sps:$4 sm:$0xff]  }
 0x41b   : > { %4014 = vmatprep.mubr.bf16.mxu0 %v11516_v11  ;;  %3837 = vmatprep.mubr.bf16.mxu1 %v14536_v27 }
 0x41c   : > { %4015 = vmatmul.mubr.bf16.gmra.mrb[88].mxu0 %v11514_v23 }
 0x41d   : > { %v3569_v10 = vpop.f32.mrb[92].mxu1  ;;  %5185 = vmatpush1.bf16.msra.mxu0 %v9854_v58  ;;  %v9862_v58 = vld [vmem:[%s10280_s8 + $0xc0] ss:$8 sps:$4 sm:$0xff]  }
 0x41e   : > { %v3571_v56 = vpop.f32.mrb[93].mxu1  ;;  %5186 = vmatprep.subr.bf16.mxu0 %v9855_v19  ;;  %v9863_v19 = vld [vmem:[%s10280_s8 + $0xd4] ss:$8 sps:$4 sm:$0xff]  }
 0x41f   : > { %v3573_v22 = vpop.f32.mrb[94].mxu1 }
 0x420   : > { %v11529_v1 = vpack.c.bf16 %v3573_v22, %v3569_v10  ;;  %v3575_v63 = vpop.f32.mrb[95].mxu1 }
 0x421   : > { %v11531_v13 = vpack.c.bf16 %v3575_v63, %v3571_v56  ;;  %5187 = vmatpush1.bf16.msra.mxu0 %v9856_v34 }
 0x422   : > { %8962 = vmatmul.mubr.msk.bf16.gmra.mrb[200].mxu1 %vm3376_vm8, %v9565_v53  ;;  %5188 = vmatprep.subr.bf16.mxu0 %v9857_v32  ;;  %v9567_v53 = vld [vmem:[%s14448_s12 + $0x110] sm:$0xff]  }
 0x423   : > { %4024 = vmatprep.mubr.bf16.mxu0 %v11531_v13  ;;  %3847 = vmatprep.mubr.bf16.mxu1 %v14536_v27 }
 0x424   : > { %4025 = vmatmul.mubr.bf16.gmra.mrb[92].mxu0 %v11529_v1 }
 0x425   : > { %v3579_v61 = vpop.f32.mrb[96].mxu1  ;;  %5189 = vmatpush1.bf16.msra.mxu0 %v9858_v7  ;;  %v9865_v7 = vld [vmem:[%s10280_s8 + $0xe4] ss:$8 sps:$4 sm:$0xff]  }
 0x426   : > { %v3581_v18 = vpop.f32.mrb[97].mxu1  ;;  %5190 = vmatprep.subr.bf16.mxu0 %v9859_v15 }
 0x427   : > { %v3583_v3 = vpop.f32.mrb[98].mxu1 }
 0x428   : > { %v11544_v43 = vpack.c.bf16 %v3583_v3, %v3579_v61  ;;  %v3585_v28 = vpop.f32.mrb[99].mxu1  ;;  %v9864_v61 = vld [vmem:[%s10280_s8 + $0xd0] ss:$8 sps:$4 sm:$0xff]  }
 0x429   : > { %v11546_v59 = vpack.c.bf16 %v3585_v28, %v3581_v18  ;;  %5191 = vmatpush1.bf16.msra.mxu0 %v9860_v51  ;;  %v9568_v3 = vld [vmem:[%s14448_s12 + $0x118] sm:$0xff]  }
 0x42a   : > { %8963 = vmatmul.mubr.msk.bf16.gmra.mrb[204].mxu1 %vm3376_vm8, %v9566_v48  ;;  %5192 = vmatprep.subr.bf16.mxu0 %v9861_v49  ;;  %v9866_v48 = vld [vmem:[%s10280_s8 + $0xe0] ss:$8 sps:$4 sm:$0xff]   ;;  %v9867_v28 = vld [vmem:[%s10280_s8 + $0xf4] ss:$8 sps:$4 sm:$0xff]  }
 0x42b   : > { %4034 = vmatprep.mubr.bf16.mxu0 %v11546_v59  ;;  %3857 = vmatprep.mubr.bf16.mxu1 %v14536_v27 }
 0x42c   : > { %4035 = vmatmul.mubr.bf16.gmra.mrb[96].mxu0 %v11544_v43 }
 0x42d   : > { %v3589_v10 = vpop.f32.mrb[100].mxu1  ;;  %5193 = vmatpush1.bf16.msra.mxu0 %v9862_v58 }
 0x42e   : > { %v3591_v56 = vpop.f32.mrb[101].mxu1  ;;  %5194 = vmatprep.subr.bf16.mxu0 %v9863_v19 }
 0x42f   : > { %v3593_v22 = vpop.f32.mrb[102].mxu1 }
 0x430   : > { %v11559_v63 = vpack.c.bf16 %v3593_v22, %v3589_v10  ;;  %v3595_v34 = vpop.f32.mrb[103].mxu1 }
 0x431   : > { %v11561_v32 = vpack.c.bf16 %v3595_v34, %v3591_v56  ;;  %5195 = vmatpush1.bf16.msra.mxu0 %v9864_v61  ;;  %v9868_v56 = vld [vmem:[%s10280_s8 + $0xf0] ss:$8 sps:$4 sm:$0xff]  }
 0x432   : > { %8964 = vmatmul.mubr.msk.bf16.gmra.mrb[208].mxu1 %vm3376_vm8, %v9567_v53  ;;  %5196 = vmatprep.subr.bf16.mxu0 %v9865_v7  ;;  %v9869_v53 = vld [vmem:[%s10280_s8 + $0x104] ss:$8 sps:$4 sm:$0xff]  }
 0x433   : > { %4044 = vmatprep.mubr.bf16.mxu0 %v11561_v32  ;;  %3867 = vmatprep.mubr.bf16.mxu1 %v14536_v27 }
 0x434   : > { %4045 = vmatmul.mubr.bf16.gmra.mrb[100].mxu0 %v11559_v63 }
 0x435   : > { %v3599_v18 = vpop.f32.mrb[104].mxu1  ;;  %5197 = vmatpush1.bf16.msra.mxu0 %v9866_v48 }
 0x436   : > { %v3601_v15 = vpop.f32.mrb[105].mxu1  ;;  %5198 = vmatprep.subr.bf16.mxu0 %v9867_v28 }
 0x437   : > { %v3603_v51 = vpop.f32.mrb[106].mxu1 }
 0x438   : > { %v11574_v49 = vpack.c.bf16 %v3603_v51, %v3599_v18  ;;  %v3605_v10 = vpop.f32.mrb[107].mxu1 }
 0x439   : > { %v11576_v58 = vpack.c.bf16 %v3605_v10, %v3601_v15  ;;  %5199 = vmatpush1.bf16.msra.mxu0 %v9868_v56  ;;  %v14544_v56 = vld [vmem:[#allocation31_spill] sm:$0xff] }
 0x43a   : > { %8965 = vmatmul.mubr.msk.bf16.gmra.mrb[212].mxu1 %vm3376_vm8, %v9568_v3  ;;  %5241 = vmatprep.subr.bf16.mxu0 %v9869_v53 }
 0x43b   : > { %4054 = vmatprep.mubr.bf16.mxu0 %v11576_v58  ;;  %4327 = vmatprep.mubr.bf16.mxu1 %v11458_v31 }
 0x43c   : > { %4055 = vmatmul.mubr.bf16.gmra.mrb[104].mxu0 %v11574_v49 }
 0x43d   : > { %v3609_v19 = vpop.f32.mrb[108].mxu1 }
 0x43e   : > { %v3611_v22 = vpop.f32.mrb[109].mxu1 }
 0x43f   : > { %v3613_v34 = vpop.f32.mrb[110].mxu1 }
 0x440   : > { %v11584_v61 = vpack.c.bf16 %v3613_v34, %v3609_v19  ;;  %v3615_v7 = vpop.f32.mrb[111].mxu1 }
 0x441   : > { %v11586_v18 = vpack.c.bf16 %v3615_v7, %v3611_v22 }
 0x442   : > { %4328 = vmatmul.mubr.bf16.vlgmr.msra.gmra.mrb[216].mxu1 %v11456_v62 }
 0x443   : > { %4064 = vmatprep.mubr.bf16.mxu0 %v11586_v18  ;;  %4337 = vmatprep.mubr.bf16.mxu1 %v11471_v44 }
 0x444   : > { %4065 = vmatmul.mubr.bf16.gmra.mrb[108].mxu0 %v11584_v61  ;;  %6393 = vmatpush1.bf16.msra.mxu1 %v11104_v38 }
 0x445   : > { %v3619_v31 = vpop.f32.mrb[112].mxu1  ;;  %6394 = vmatprep.subr.bf16.mxu1 %v11108_v33 }
 0x446   : > { %v3621_v48 = vpop.f32.mrb[113].mxu1 }
 0x447   : > { %v3623_v15 = vpop.f32.mrb[114].mxu1 }
 0x448   : > { %v11594_v3 = vpack.c.bf16 %v3623_v15, %v3619_v31  ;;  %v3625_v28 = vpop.f32.mrb[115].mxu1  ;;  %6395 = vmatpush1.bf16.msra.mxu1 %v11112_v25 }
 0x449   : > { %v11597_v51 = vpack.c.bf16 %v3625_v28, %v3621_v48  ;;  %6396 = vmatprep.subr.bf16.mxu1 %v11116_v2 }
 0x44a   : > { %4338 = vmatmul.mubr.bf16.gmra.mrb[220].mxu1 %v11469_v54 }
 0x44b   : > { %4074 = vmatprep.mubr.bf16.mxu0 %v11597_v51  ;;  %4347 = vmatprep.mubr.bf16.mxu1 %v11486_v26 }
 0x44c   : > { %4075 = vmatmul.mubr.bf16.gmra.mrb[112].mxu0 %v11594_v3  ;;  %6397 = vmatpush1.bf16.msra.mxu1 %v11121_v52 }
 0x44d   : > { %v3629_v38 = vpop.f32.mrb[116].mxu1  ;;  %6398 = vmatprep.subr.bf16.mxu1 %v11125_v30 }
 0x44e   : > { %v3631_v33 = vpop.f32.mrb[117].mxu1 }
 0x44f   : > { %v3633_v62 = vpop.f32.mrb[118].mxu1 }
 0x450   : > { %v11606_v25 = vpack.c.bf16 %v3633_v62, %v3629_v38  ;;  %v3635_v44 = vpop.f32.mrb[119].mxu1  ;;  %6399 = vmatpush1.bf16.msra.mxu1 %v11129_v5 }
 0x451   : > { %v11609_v2 = vpack.c.bf16 %v3635_v44, %v3631_v33  ;;  %6400 = vmatprep.subr.bf16.mxu1 %v11133_v60 }
 0x452   : > { %4348 = vmatmul.mubr.bf16.gmra.mrb[224].mxu1 %v11484_v9 }
 0x453   : > { %4084 = vmatprep.mubr.bf16.mxu0 %v11609_v2  ;;  %4357 = vmatprep.mubr.bf16.mxu1 %v11501_v6 }
 0x454   : > { %4085 = vmatmul.mubr.bf16.gmra.mrb[116].mxu0 %v11606_v25  ;;  %6401 = vmatpush1.bf16.msra.mxu1 %v11137_v35 }
 0x455   : > { %v3639_v52 = vpop.f32.mrb[120].mxu1  ;;  %6402 = vmatprep.subr.bf16.mxu1 %v11141_v55 }
 0x456   : > { %v3641_v30 = vpop.f32.mrb[121].mxu1 }
 0x457   : > { %v3643_v54 = vpop.f32.mrb[122].mxu1 }
 0x458   : > { %v11618_v5 = vpack.c.bf16 %v3643_v54, %v3639_v52  ;;  %v3645_v26 = vpop.f32.mrb[123].mxu1  ;;  %6403 = vmatpush1.bf16.msra.mxu1 %v11145_v39 }
 0x459   : > { %v11621_v60 = vpack.c.bf16 %v3645_v26, %v3641_v30  ;;  %6404 = vmatprep.subr.bf16.mxu1 %v11149_v41 }
 0x45a   : > { %4358 = vmatmul.mubr.bf16.gmra.mrb[228].mxu1 %v11499_v57 }
 0x45b   : > { %4094 = vmatprep.mubr.bf16.mxu0 %v11621_v60  ;;  %4367 = vmatprep.mubr.bf16.mxu1 %v11516_v11 }
 0x45c   : > { %4095 = vmatmul.mubr.bf16.gmra.mrb[120].mxu0 %v11618_v5  ;;  %6405 = vmatpush1.bf16.msra.mxu1 %v11153_v0 }
 0x45d   : > { %v3649_v35 = vpop.f32.mrb[124].mxu1  ;;  %6406 = vmatprep.subr.bf16.mxu1 %v11157_v8 }
 0x45e   : > { %v3651_v55 = vpop.f32.mrb[125].mxu1 }
 0x45f   : > { %v3653_v9 = vpop.f32.mrb[126].mxu1 }
 0x460   : > { %v11630_v39 = vpack.c.bf16 %v3653_v9, %v3649_v35  ;;  %v3655_v6 = vpop.f32.mrb[127].mxu1  ;;  %6407 = vmatpush1.bf16.msra.mxu1 %v11161_v4 }
 0x461   : > { %v11633_v41 = vpack.c.bf16 %v3655_v6, %v3651_v55  ;;  %6408 = vmatprep.subr.bf16.mxu1 %v11165_v47 }
 0x462   : > { %4368 = vmatmul.mubr.bf16.gmra.mrb[232].mxu1 %v11514_v23 }
 0x463   : > { %4104 = vmatprep.mubr.bf16.mxu0 %v11633_v41  ;;  %4377 = vmatprep.mubr.bf16.mxu1 %v11531_v13 }
 0x464   : > { %4105 = vmatmul.mubr.bf16.gmra.mrb[124].mxu0 %v11630_v39  ;;  %6409 = vmatpush1.bf16.msra.mxu1 %v11169_v14 }
 0x465   : > { %v3659_v0 = vpop.f32.mrb[128].mxu1  ;;  %6410 = vmatprep.subr.bf16.mxu1 %v11173_v29 }
 0x466   : > { %v3661_v8 = vpop.f32.mrb[129].mxu1 }
 0x467   : > { %v3663_v57 = vpop.f32.mrb[130].mxu1 }
 0x468   : > { %v11642_v4 = vpack.c.bf16 %v3663_v57, %v3659_v0  ;;  %v3665_v11 = vpop.f32.mrb[131].mxu1  ;;  %6411 = vmatpush1.bf16.msra.mxu1 %v11177_v20 }
 0x469   : > { %v11645_v47 = vpack.c.bf16 %v3665_v11, %v3661_v8  ;;  %6412 = vmatprep.subr.bf16.mxu1 %v11181_v24 }
 0x46a   : > { %4378 = vmatmul.mubr.bf16.gmra.mrb[236].mxu1 %v11529_v1 }
 0x46b   : > { %4114 = vmatprep.mubr.bf16.mxu0 %v11645_v47  ;;  %4387 = vmatprep.mubr.bf16.mxu1 %v11546_v59 }
 0x46c   : > { %4115 = vmatmul.mubr.bf16.gmra.mrb[128].mxu0 %v11642_v4  ;;  %6413 = vmatpush1.bf16.msra.mxu1 %v11185_v46 }
 0x46d   : > { %v3669_v14 = vpop.f32.mrb[132].mxu1  ;;  %6414 = vmatprep.subr.bf16.mxu1 %v11189_v21 }
 0x46e   : > { %v3671_v29 = vpop.f32.mrb[133].mxu1 }
 0x46f   : > { %v3673_v23 = vpop.f32.mrb[134].mxu1 }
 0x470   : > { %v11654_v20 = vpack.c.bf16 %v3673_v23, %v3669_v14  ;;  %v3675_v13 = vpop.f32.mrb[135].mxu1  ;;  %6415 = vmatpush1.bf16.msra.mxu1 %v11193_v42  ;;  %v14546_v23 = vld [vmem:[#allocation15_spill] sm:$0xff] }
 0x471   : > { %v11657_v24 = vpack.c.bf16 %v3675_v13, %v3671_v29  ;;  %6416 = vmatprep.subr.bf16.mxu1 %v11197_v36  ;;  %v3112_v13 = vmul.f32 1.442695, %v14546_v23 }
 0x472   : > { %4388 = vmatmul.mubr.bf16.gmra.mrb[240].mxu1 %v11544_v43 }
 0x473   : > { %4124 = vmatprep.mubr.bf16.mxu0 %v11657_v24  ;;  %4397 = vmatprep.mubr.bf16.mxu1 %v11561_v32  ;;  %9654 = vpow2.f32 %v3112_v13 }
 0x474   : > { %4125 = vmatmul.mubr.bf16.gmra.mrb[132].mxu0 %v11654_v20  ;;  %6417 = vmatpush1.bf16.msra.mxu1 %v11201_v45 }
 0x475   : > { %v3679_v46 = vpop.f32.mrb[136].mxu1  ;;  %6418 = vmatprep.subr.bf16.mxu1 %v11205_v40  ;;  %v14543_v40 = vld [vmem:[#allocation30_spill] sm:$0xff] }
 0x476   : > { %v3681_v21 = vpop.f32.mrb[137].mxu1 }
 0x477   : > { %v3683_v1 = vpop.f32.mrb[138].mxu1 }
 0x478   : > { %v11666_v42 = vpack.c.bf16 %v3683_v1, %v3679_v46  ;;  %v3685_v59 = vpop.f32.mrb[139].mxu1  ;;  %6419 = vmatpush1.bf16.msra.mxu1 %v11209_v12 }
 0x479   : > { %v11669_v36 = vpack.c.bf16 %v3685_v59, %v3681_v21  ;;  %6420 = vmatprep.subr.bf16.mxu1 %v11213_v37  ;;  %v14547_v21 = vld [vmem:[#allocation18_spill] sm:$0xff] }
 0x47a   : > { %4398 = vmatmul.mubr.bf16.gmra.mrb[244].mxu1 %v11559_v63  ;;  %v14545_v63 = vld [vmem:[#allocation32_spill] sm:$0xff]  ;;  %v3114_v1 = vmul.f32 1.442695, %v14547_v21 }
 0x47b   : > { %4134 = vmatprep.mubr.bf16.mxu0 %v11669_v36  ;;  %4407 = vmatprep.mubr.bf16.mxu1 %v11576_v58 }
 0x47c   : > { %4135 = vmatmul.mubr.bf16.gmra.mrb[136].mxu0 %v11666_v42  ;;  %6421 = vmatpush1.bf16.msra.mxu1 %v11217_v16  ;;  %9656 = vpow2.f32 %v3114_v1 }
 0x47d   : > { %v3689_v45 = vpop.f32.mrb[140].mxu1  ;;  %6422 = vmatprep.subr.bf16.mxu1 %v14543_v40 }
 0x47e   : > { %v3691_v43 = vpop.f32.mrb[141].mxu1 }
 0x47f   : > { %v3693_v32 = vpop.f32.mrb[142].mxu1 }
 0x480   : > { %v11678_v12 = vpack.c.bf16 %v3693_v32, %v3689_v45  ;;  %v3695_v10 = vpop.f32.mrb[143].mxu1  ;;  %6423 = vmatpush1.bf16.msra.mxu1 %v14544_v56  ;;  %v9655_v32 = vpop.eup %9654 }
 0x481   : > { %v11681_v37 = vpack.c.bf16 %v3695_v10, %v3691_v43  ;;  %7618 = vmatprep.subr.bf16.mxu1 %v14545_v63 }
 0x482   : > { %4408 = vmatmul.mubr.bf16.gmra.mrb[248].mxu1 %v11574_v49 }
 0x483   : > { %4144 = vmatprep.mubr.bf16.mxu0 %v11681_v37  ;;  %4417 = vmatprep.mubr.bf16.mxu1 %v11586_v18 }
 0x484   : > { %4145 = vmatmul.mubr.bf16.gmra.mrb[140].mxu0 %v11678_v12 }
 0x485   : > { %v3699_v16 = vpop.f32.mrb[144].mxu1 }
 0x486   : > { %v3701_v58 = vpop.f32.mrb[145].mxu1  ;;  %v9657_v56 = vpop.eup %9656 }
 0x487   : > { %v3703_v53 = vpop.f32.mrb[146].mxu1 }
 0x488   : > { %v11688_v19 = vpack.c.bf16 %v3703_v53, %v3699_v16  ;;  %v3705_v22 = vpop.f32.mrb[147].mxu1  ;;  %v11758_v53 = vpack.c.bf16 %v9655_v32, %v9655_v32 }
 0x489   : > { %v11690_v34 = vpack.c.bf16 %v3705_v22, %v3701_v58 }
 0x48a   : > { %4418 = vmatmul.mubr.bf16.gmra.mrb[252].mxu1 %v11584_v61  ;;  %v11768_v22 = vpack.i.b16 %v11758_v53, %v11758_v53 }
 0x48b   : > { %4154 = vmatprep.mubr.bf16.mxu0 %v11690_v34  ;;  %4427 = vmatprep.mubr.bf16.mxu1 %v11597_v51 }
 0x48c   : > { %4155 = vmatmul.mubr.bf16.gmra.mrb[144].mxu0 %v11688_v19 }
 0x48d   : > { %v3709_v49 = vpop.f32.mrb[148].mxu1 }
 0x48e   : > { %v3711_v7 = vpop.f32.mrb[149].mxu1 }
 0x48f   : > { %v3713_v18 = vpop.f32.mrb[150].mxu1 }
 0x490   : > { %v11696_v31 = vpack.c.bf16 %v3713_v18, %v3709_v49  ;;  %v3715_v48 = vpop.f32.mrb[151].mxu1 }
 0x491   : > { %v11698_v15 = vpack.c.bf16 %v3715_v48, %v3711_v7 }
 0x492   : > { %4428 = vmatmul.mubr.bf16.gmra.mrb[0].mxu1 %v11594_v3 }
 0x493   : > { %4164 = vmatprep.mubr.bf16.mxu0 %v11698_v15  ;;  %4437 = vmatprep.mubr.bf16.mxu1 %v11609_v2 }
 0x494   : > { %4165 = vmatmul.mubr.bf16.gmra.mrb[148].mxu0 %v11696_v31 }
 0x495   : > { %v3719_v61 = vpop.f32.mrb[152].mxu1 }
 0x496   : > { %v3721_v28 = vpop.f32.mrb[153].mxu1 }
 0x497   : > { %v3723_v51 = vpop.f32.mrb[154].mxu1 }
 0x498   : > { %v11704_v38 = vpack.c.bf16 %v3723_v51, %v3719_v61  ;;  %v3725_v33 = vpop.f32.mrb[155].mxu1 }
 0x499   : > { %v11706_v62 = vpack.c.bf16 %v3725_v33, %v3721_v28 }
 0x49a   : > { %4438 = vmatmul.mubr.bf16.gmra.mrb[4].mxu1 %v11606_v25 }
 0x49b   : > { %4174 = vmatprep.mubr.bf16.mxu0 %v11706_v62  ;;  %4447 = vmatprep.mubr.bf16.mxu1 %v11621_v60 }
 0x49c   : > { %4175 = vmatmul.mubr.bf16.gmra.mrb[152].mxu0 %v11704_v38 }
 0x49d   : > { %v3729_v3 = vpop.f32.mrb[156].mxu1 }
 0x49e   : > { %v3731_v44 = vpop.f32.mrb[157].mxu1 }
 0x49f   : > { %v3733_v2 = vpop.f32.mrb[158].mxu1 }
 0x4a0   : > { %v11712_v52 = vpack.c.bf16 %v3733_v2, %v3729_v3  ;;  %v3735_v30 = vpop.f32.mrb[159].mxu1  ;;  %v14548_v3 = vld [vmem:[#allocation8_spill] sm:$0xff] }
 0x4a1   : > { %v11714_v54 = vpack.c.bf16 %v3735_v30, %v3731_v44  ;;  %v11780_v44 = vrot.slane %v11768_v22, %v14548_v3 }
 0x4a2   : > { %4448 = vmatmul.mubr.bf16.gmra.mrb[8].mxu1 %v11618_v5 }
 0x4a3   : > { %4184 = vmatprep.mubr.bf16.mxu0 %v11714_v54  ;;  %4457 = vmatprep.mubr.bf16.mxu1 %v11633_v41 }
 0x4a4   : > { %4185 = vmatmul.mubr.bf16.gmra.mrb[156].mxu0 %v11712_v52 }
 0x4a5   : > { %v3739_v25 = vpop.f32.mrb[160].mxu1 }
 0x4a6   : > { %v3741_v26 = vpop.f32.mrb[161].mxu1 }
 0x4a7   : > { %v3743_v60 = vpop.f32.mrb[162].mxu1 }
 0x4a8   : > { %v11720_v35 = vpack.c.bf16 %v3743_v60, %v3739_v25  ;;  %v3745_v55 = vpop.f32.mrb[163].mxu1 }
 0x4a9   : > { %v11722_v9 = vpack.c.bf16 %v3745_v55, %v3741_v26 }
 0x4aa   : > { %4458 = vmatmul.mubr.bf16.gmra.mrb[12].mxu1 %v11630_v39 }
 0x4ab   : > { %4194 = vmatprep.mubr.bf16.mxu0 %v11722_v9  ;;  %4467 = vmatprep.mubr.bf16.mxu1 %v11645_v47 }
 0x4ac   : > { %4195 = vmatmul.mubr.bf16.gmra.mrb[160].mxu0 %v11720_v35 }
 0x4ad   : > { %v3749_v5 = vpop.f32.mrb[164].mxu1 }
 0x4ae   : > { %v3751_v6 = vpop.f32.mrb[165].mxu1 }
 0x4af   : > { %v3753_v41 = vpop.f32.mrb[166].mxu1 }
 0x4b0   : > { %v11728_v0 = vpack.c.bf16 %v3753_v41, %v3749_v5  ;;  %v3755_v8 = vpop.f32.mrb[167].mxu1 }
 0x4b1   : > { %v11730_v57 = vpack.c.bf16 %v3755_v8, %v3751_v6 }
 0x4b2   : > { %4468 = vmatmul.mubr.bf16.gmra.mrb[16].mxu1 %v11642_v4 }
 0x4b3   : > { %4204 = vmatprep.mubr.bf16.mxu0 %v11730_v57  ;;  %4477 = vmatprep.mubr.bf16.mxu1 %v11657_v24 }
 0x4b4   : > { %4205 = vmatmul.mubr.bf16.gmra.mrb[164].mxu0 %v11728_v0 }
 0x4b5   : > { %v3759_v39 = vpop.f32.mrb[168].mxu1 }
 0x4b6   : > { %v3761_v11 = vpop.f32.mrb[169].mxu1 }
 0x4b7   : > { %v3763_v47 = vpop.f32.mrb[170].mxu1 }
 0x4b8   : > { %v11736_v14 = vpack.c.bf16 %v3763_v47, %v3759_v39  ;;  %v3765_v29 = vpop.f32.mrb[171].mxu1 }
 0x4b9   : > { %v11739_v46 = vpack.c.bf16 %v3765_v29, %v3761_v11 }
 0x4ba   : > { %4478 = vmatmul.mubr.bf16.gmra.mrb[20].mxu1 %v11654_v20 }
 0x4bb   : > { %4214 = vmatprep.mubr.bf16.mxu0 %v11739_v46  ;;  %4487 = vmatprep.mubr.bf16.mxu1 %v11669_v36 }
 0x4bc   : > { %4215 = vmatmul.mubr.bf16.gmra.mrb[168].mxu0 %v11736_v14 }
 0x4bd   : > { %v3769_v4 = vpop.f32.mrb[172].mxu1 }
 0x4be   : > { %v3771_v24 = vpop.f32.mrb[173].mxu1 }
 0x4bf   : > { %v3773_v59 = vpop.f32.mrb[174].mxu1 }
 0x4c0   : > { %v11746_v45 = vpack.c.bf16 %v3773_v59, %v3769_v4  ;;  %v3775_v40 = vpop.f32.mrb[175].mxu1 }
 0x4c1   : > { %v11748_v43 = vpack.c.bf16 %v3775_v40, %v3771_v24 }
 0x4c2   : > { %4488 = vmatmul.mubr.bf16.gmra.mrb[24].mxu1 %v11666_v42  ;;  %v11761_v42 = vpack.c.bf16 %v9657_v56, %v9657_v56 }
 0x4c3   : > { %4224 = vmatprep.mubr.bf16.mxu0 %v11748_v43  ;;  %4497 = vmatprep.mubr.bf16.mxu1 %v11681_v37 }
 0x4c4   : > { %4225 = vmatmul.mubr.bf16.gmra.mrb[172].mxu0 %v11746_v45  ;;  %v11772_v7 = vpack.i.b16 %v11761_v42, %v11761_v42 }
 0x4c5   : > { %v3779_v20 = vpop.f32.mrb[176].mxu1 }
 0x4c6   : > { %v3781_v36 = vpop.f32.mrb[177].mxu1  ;;  %v4789_v25 = vrot.slane %v11772_v7, %v14548_v3 }
 0x4c7   : > { %v3783_v10 = vpop.f32.mrb[178].mxu1 }
 0x4c8   : > { %v11754_v63 = vpack.c.bf16 %v3783_v10, %v3779_v20  ;;  %v3785_v16 = vpop.f32.mrb[179].mxu1 }
 0x4c9   : > { %v11756_v58 = vpack.c.bf16 %v3785_v16, %v3781_v36 }
 0x4ca   : > { %4498 = vmatmul.mubr.bf16.gmra.mrb[28].mxu1 %v11678_v12 }
 0x4cb   : > { %4234 = vmatprep.mubr.bf16.mxu0 %v11756_v58  ;;  %4507 = vmatprep.mubr.bf16.mxu1 %v11690_v34 }
 0x4cc   : > { %4235 = vmatmul.mubr.bf16.gmra.mrb[176].mxu0 %v11754_v63 }
 0x4cd   : > { %v3789_v37 = vpop.f32.mrb[180].mxu1 }
 0x4ce   : > { %v3791_v49 = vpop.f32.mrb[181].mxu1 }
 0x4cf   : > { %v3793_v18 = vpop.f32.mrb[182].mxu1  ;;  %v3976_v12 = vpop.f32.mrb[72].mxu0 }
 0x4d0   : > { %v11774_v48 = vpack.c.bf16 %v3793_v18, %v3789_v37  ;;  %v3795_v61 = vpop.f32.mrb[183].mxu1  ;;  %v3978_v28 = vpop.f32.mrb[73].mxu0 }
 0x4d1   : > { %v11776_v51 = vpack.c.bf16 %v3795_v61, %v3791_v49  ;;  %v3980_v34 = vpop.f32.mrb[74].mxu0 }
 0x4d2   : > { %v4648_v33 = vpack.c.bf16 %v3980_v34, %v3976_v12  ;;  %v3982_v2 = vpop.f32.mrb[75].mxu0  ;;  %4508 = vmatmul.mubr.bf16.gmra.mrb[32].mxu1 %v11688_v19 }
 0x4d3   : > { %v4649_v30 = vpack.c.bf16 %v3982_v2, %v3978_v28  ;;  %4244 = vmatprep.mubr.bf16.mxu0 %v11776_v51  ;;  %4517 = vmatprep.mubr.bf16.mxu1 %v11698_v15 }
 0x4d4   : > { %v11788_v26 = vmul.bf16 %v11780_v44, %v4648_v33  ;;  %4245 = vmatmul.mubr.bf16.gmra.mrb[180].mxu0 %v11774_v48 }
 0x4d5   : > { %v11791_v60 = vmul.bf16 %v4789_v25, %v4649_v30  ;;  %v3799_v55 = vpop.f32.mrb[184].mxu1 }
 0x4d6   : > { %v3801_v5 = vpop.f32.mrb[185].mxu1 }
 0x4d7   : > { %v3803_v6 = vpop.f32.mrb[186].mxu1  ;;  %v3986_v41 = vpop.f32.mrb[76].mxu0 }
 0x4d8   : > { %v11793_v19 = vpack.c.bf16 %v3803_v6, %v3799_v55  ;;  %v3805_v8 = vpop.f32.mrb[187].mxu1  ;;  %v3988_v39 = vpop.f32.mrb[77].mxu0 }
 0x4d9   : > { %v11795_v11 = vpack.c.bf16 %v3805_v8, %v3801_v5  ;;  %v3990_v47 = vpop.f32.mrb[78].mxu0  ;;  %v4827_v5 = vshrl.u32 %v11761_v42, 16 }
 0x4da   : > { %v4652_v29 = vpack.c.bf16 %v3990_v47, %v3986_v41  ;;  %v3992_v15 = vpop.f32.mrb[79].mxu0  ;;  %4518 = vmatmul.mubr.bf16.gmra.mrb[36].mxu1 %v11696_v31 }
 0x4db   : > { %v4653_v23 = vpack.c.bf16 %v3992_v15, %v3988_v39  ;;  %4254 = vmatprep.mubr.bf16.mxu0 %v11795_v11  ;;  %4527 = vmatprep.mubr.bf16.mxu1 %v11706_v62 }
 0x4dc   : > { %v11801_v13 = vmul.bf16 %v11780_v44, %v4652_v29  ;;  %4255 = vmatmul.mubr.bf16.gmra.mrb[184].mxu0 %v11793_v19  ;;  %v11836_v29 = vpack.i.b16 %v4827_v5, %v4827_v5 }
 0x4dd   : > { %v11804_v21 = vmul.bf16 %v4789_v25, %v4653_v23  ;;  %v3809_v1 = vpop.f32.mrb[188].mxu1 }
 0x4de   : > { %v3811_v4 = vpop.f32.mrb[189].mxu1 }
 0x4df   : > { %v3813_v24 = vpop.f32.mrb[190].mxu1  ;;  %v3996_v59 = vpop.f32.mrb[80].mxu0 }
 0x4e0   : > { %v11806_v40 = vpack.c.bf16 %v3813_v24, %v3809_v1  ;;  %v3815_v20 = vpop.f32.mrb[191].mxu1  ;;  %v3998_v31 = vpop.f32.mrb[81].mxu0 }
 0x4e1   : > { %v11808_v36 = vpack.c.bf16 %v3815_v20, %v3811_v4  ;;  %v4000_v32 = vpop.f32.mrb[82].mxu0  ;;  %v4833_v20 = vrot.slane %v11836_v29, %v14548_v3 }
 0x4e2   : > { %v4656_v10 = vpack.c.bf16 %v4000_v32, %v3996_v59  ;;  %v4002_v62 = vpop.f32.mrb[83].mxu0  ;;  %4528 = vmatmul.mubr.bf16.gmra.mrb[40].mxu1 %v11704_v38 }
 0x4e3   : > { %v4657_v56 = vpack.c.bf16 %v4002_v62, %v3998_v31  ;;  %4264 = vmatprep.mubr.bf16.mxu0 %v11808_v36  ;;  %4537 = vmatprep.mubr.bf16.mxu1 %v11714_v54  ;;  %v4820_v54 = vshrl.u32 %v11758_v53, 16 }
 0x4e4   : > { %v11814_v16 = vmul.bf16 %v11780_v44, %v4656_v10  ;;  %4265 = vmatmul.mubr.bf16.gmra.mrb[188].mxu0 %v11806_v40 }
 0x4e5   : > { %v11817_v37 = vmul.bf16 %v4789_v25, %v4657_v56  ;;  %v3819_v49 = vpop.f32.mrb[192].mxu1  ;;  %v11834_v53 = vpack.i.b16 %v4820_v54, %v4820_v54 }
 0x4e6   : > { %v3821_v18 = vpop.f32.mrb[193].mxu1 }
 0x4e7   : > { %v3823_v12 = vpop.f32.mrb[194].mxu1  ;;  %v4006_v61 = vpop.f32.mrb[84].mxu0 }
 0x4e8   : > { %v11819_v28 = vpack.c.bf16 %v3823_v12, %v3819_v49  ;;  %v3825_v34 = vpop.f32.mrb[195].mxu1  ;;  %v4008_v38 = vpop.f32.mrb[85].mxu0 }
 0x4e9   : > { %v11821_v33 = vpack.c.bf16 %v3825_v34, %v3821_v18  ;;  %v4010_v2 = vpop.f32.mrb[86].mxu0 }
 0x4ea   : > { %v4660_v30 = vpack.c.bf16 %v4010_v2, %v4006_v61  ;;  %v4012_v55 = vpop.f32.mrb[87].mxu0  ;;  %4538 = vmatmul.mubr.bf16.gmra.mrb[44].mxu1 %v11712_v52 }
 0x4eb   : > { %v4661_v6 = vpack.c.bf16 %v4012_v55, %v4008_v38  ;;  %4274 = vmatprep.mubr.bf16.mxu0 %v11821_v33  ;;  %4547 = vmatprep.mubr.bf16.mxu1 %v11722_v9 }
 0x4ec   : > { %v11829_v41 = vmul.bf16 %v11780_v44, %v4660_v30  ;;  %4275 = vmatmul.mubr.bf16.gmra.mrb[192].mxu0 %v11819_v28 }
 0x4ed   : > { %v11832_v8 = vmul.bf16 %v4789_v25, %v4661_v6  ;;  %v3829_v39 = vpop.f32.mrb[196].mxu1  ;;  %v4826_v25 = vrot.slane %v11834_v53, %v14548_v3 }
 0x4ee   : > { %v3831_v47 = vpop.f32.mrb[197].mxu1 }
 0x4ef   : > { %v3833_v52 = vpop.f32.mrb[198].mxu1  ;;  %v4016_v42 = vpop.f32.mrb[88].mxu0 }
 0x4f0   : > { %v11838_v15 = vpack.c.bf16 %v3833_v52, %v3829_v39  ;;  %v3835_v23 = vpop.f32.mrb[199].mxu1  ;;  %v4018_v1 = vpop.f32.mrb[89].mxu0  ;;  %v14555_v39 = vld [vmem:[#allocation19_spill] sm:$0xff] }
 0x4f1   : > { %v11840_v9 = vpack.c.bf16 %v3835_v23, %v3831_v47  ;;  %v4020_v44 = vpop.f32.mrb[90].mxu0  ;;  %v3116_v47 = vmul.f32 1.442695, %v14555_v39 }
 0x4f2   : > { %v4664_v4 = vpack.c.bf16 %v4020_v44, %v4016_v42  ;;  %v4022_v24 = vpop.f32.mrb[91].mxu0  ;;  %4548 = vmatmul.mubr.bf16.gmra.mrb[48].mxu1 %v11720_v35 }
 0x4f3   : > { %v4665_v59 = vpack.c.bf16 %v4022_v24, %v4018_v1  ;;  %4284 = vmatprep.mubr.bf16.mxu0 %v11840_v9  ;;  %4557 = vmatprep.mubr.bf16.mxu1 %v11730_v57  ;;  %9658 = vpow2.f32 %v3116_v47 }
 0x4f4   : > { %v11849_v31 = vmul.bf16 %v4826_v25, %v4664_v4  ;;  %4285 = vmatmul.mubr.bf16.gmra.mrb[196].mxu0 %v11838_v15 }
 0x4f5   : > { %v11852_v32 = vmul.bf16 %v4833_v20, %v4665_v59  ;;  %v11854_v10 = vpop.f32.mrb[200].mxu1 }
 0x4f6   : > { %14549 = vst [vmem:[#allocation12_spill] sm:$0xff] %v11854_v10  ;;  %v11858_v35 = vpop.f32.mrb[201].mxu1 }
 0x4f7   : > { %14550 = vst [vmem:[#allocation13_spill] sm:$0xff] %v11858_v35  ;;  %v11862_v49 = vpop.f32.mrb[202].mxu1  ;;  %v4026_v18 = vpop.f32.mrb[92].mxu0 }
 0x4f8   : > { %14551 = vst [vmem:[#allocation30_spill] sm:$0xff] %v11862_v49  ;;  %v11864_v57 = vpop.f32.mrb[203].mxu1  ;;  %v4028_v12 = vpop.f32.mrb[93].mxu0 }
 0x4f9   : > { %14552 = vst [vmem:[#allocation31_spill] sm:$0xff] %v11864_v57  ;;  %v4030_v61 = vpop.f32.mrb[94].mxu0 }
 0x4fa   : > { %v4668_v34 = vpack.c.bf16 %v4030_v61, %v4026_v18  ;;  %v4032_v38 = vpop.f32.mrb[95].mxu0  ;;  %4558 = vmatmul.mubr.bf16.gmra.mrb[52].mxu1 %v11728_v0 }
 0x4fb   : > { %v4669_v2 = vpack.c.bf16 %v4032_v38, %v4028_v12  ;;  %4567 = vmatprep.mubr.bf16.mxu1 %v11739_v46  ;;  %v14557_v46 = vld [vmem:[#allocation20_spill] sm:$0xff] }
 0x4fc   : > { %v11868_v54 = vmul.bf16 %v4826_v25, %v4668_v34  ;;  %v3118_v23 = vmul.f32 1.442695, %v14557_v46 }
 0x4fd   : > { %v11870_v30 = vmul.bf16 %v4833_v20, %v4669_v2  ;;  %v11872_v55 = vpop.f32.mrb[204].mxu1 }
 0x4fe   : > { %14553 = vst [vmem:[#allocation32_spill] sm:$0xff] %v11872_v55  ;;  %v11876_v6 = vpop.f32.mrb[205].mxu1  ;;  %9660 = vpow2.f32 %v3118_v23 }
 0x4ff   : > { %14554 = vst [vmem:[#allocation15_spill] sm:$0xff] %v11876_v6  ;;  %v11881_v0 = vpop.f32.mrb[206].mxu1  ;;  %v4036_v42 = vpop.f32.mrb[96].mxu0 }
 0x500   : > { %14556 = vst [vmem:[#allocation18_spill] sm:$0xff] %v11881_v0  ;;  %v11884_v1 = vpop.f32.mrb[207].mxu1  ;;  %v4038_v44 = vpop.f32.mrb[97].mxu0 }
 0x501   : > { %14558 = vst [vmem:[#allocation19_spill] sm:$0xff] %v11884_v1  ;;  %v4040_v4 = vpop.f32.mrb[98].mxu0 }
 0x502   : > { %v4672_v24 = vpack.c.bf16 %v4040_v4, %v4036_v42  ;;  %v4042_v59 = vpop.f32.mrb[99].mxu0  ;;  %4568 = vmatmul.mubr.bf16.gmra.mrb[56].mxu1 %v11736_v14 }
 0x503   : > { %v4673_v18 = vpack.c.bf16 %v4042_v59, %v4038_v44  ;;  %4577 = vmatprep.mubr.bf16.mxu1 %v11748_v43  ;;  %v9659_v59 = vpop.eup %9658 }
 0x504   : > { %v11888_v12 = vmul.bf16 %v4826_v25, %v4672_v24 }
 0x505   : > { %v11890_v61 = vmul.bf16 %v4833_v20, %v4673_v18  ;;  %v11892_v34 = vpop.f32.mrb[208].mxu1 }
 0x506   : > { %14559 = vst [vmem:[#allocation20_spill] sm:$0xff] %v11892_v34  ;;  %v11896_v2 = vpop.f32.mrb[209].mxu1 }
 0x507   : > { %14560 = vst [vmem:[#allocation33_spill] sm:$0xff] %v11896_v2  ;;  %v11900_v14 = vpop.f32.mrb[210].mxu1  ;;  %v4046_v47 = vpop.f32.mrb[100].mxu0 }
 0x508   : > { %14561 = vst [vmem:[#allocation34_spill] sm:$0xff] %v11900_v14  ;;  %v11902_v42 = vpop.f32.mrb[211].mxu1  ;;  %v4048_v43 = vpop.f32.mrb[101].mxu0 }
 0x509   : > { %14562 = vst [vmem:[#allocation35_spill] sm:$0xff] %v11902_v42  ;;  %v4050_v46 = vpop.f32.mrb[102].mxu0  ;;  %v9661_v38 = vpop.eup %9660 }
 0x50a   : > { %v4676_v23 = vpack.c.bf16 %v4050_v46, %v4046_v47  ;;  %v4052_v44 = vpop.f32.mrb[103].mxu0  ;;  %4578 = vmatmul.mubr.bf16.gmra.mrb[60].mxu1 %v11746_v45  ;;  %v11924_v46 = vpack.c.bf16 %v9661_v38, %v9661_v38 }
 0x50b   : > { %v4677_v4 = vpack.c.bf16 %v4052_v44, %v4048_v43  ;;  %4587 = vmatprep.mubr.bf16.mxu1 %v11756_v58  ;;  %v11920_v58 = vpack.c.bf16 %v9659_v59, %v9659_v59 }
 0x50c   : > { %v11906_v24 = vmul.bf16 %v4826_v25, %v4676_v23 }
 0x50d   : > { %v11908_v18 = vmul.bf16 %v4833_v20, %v4677_v4  ;;  %v11910_v39 = vpop.f32.mrb[212].mxu1  ;;  %v14567_v4 = vld [vmem:[#allocation9_spill] sm:$0xff]  ;;  %v11938_v38 = vpack.i.b16 %v11920_v58, %v11920_v58 }
 0x50e   : > { %14563 = vst [vmem:[#allocation36_spill] sm:$0xff] %v11910_v39  ;;  %v11914_v5 = vpop.f32.mrb[213].mxu1  ;;  %v11928_v52 = vrot.slane %v11768_v22, %v14567_v4  ;;  %v11933_v62 = vrot.slane %v11772_v7, %v14567_v4 }
 0x50f   : > { %14564 = vst [vmem:[#allocation37_spill] sm:$0xff] %v11914_v5  ;;  %v11918_v45 = vpop.f32.mrb[214].mxu1  ;;  %v4056_v43 = vpop.f32.mrb[104].mxu0  ;;  %v11958_v42 = vrot.slane %v11938_v38, %v14548_v3 }
 0x510   : > { %14565 = vst [vmem:[#allocation38_spill] sm:$0xff] %v11918_v45  ;;  %v11922_v25 = vpop.f32.mrb[215].mxu1  ;;  %v4058_v20 = vpop.f32.mrb[105].mxu0 }
 0x511   : > { %14566 = vst [vmem:[#allocation39_spill] sm:$0xff] %v11922_v25  ;;  %v4060_v23 = vpop.f32.mrb[106].mxu0 }
 0x512   : > { %v4680_v44 = vpack.c.bf16 %v4060_v23, %v4056_v43  ;;  %v4062_v56 = vpop.f32.mrb[107].mxu0  ;;  %4588 = vmatmul.mubr.bf16.gmra.mrb[64].mxu1 %v11754_v63  ;;  %v11943_v43 = vpack.i.b16 %v11924_v46, %v11924_v46 }
 0x513   : > { %v4681_v47 = vpack.c.bf16 %v4062_v56, %v4058_v20  ;;  %4597 = vmatprep.mubr.bf16.mxu1 %v11776_v51  ;;  %v14568_v56 = vadd.bf16 %v11849_v31, %v11788_v26  ;;  %v14569_v51 = vadd.bf16 %v11852_v32, %v11791_v60 }
 0x514   : > { %v4896_v59 = vmul.bf16 %v11928_v52, %v4680_v44  ;;  %v11962_v26 = vrot.slane %v11943_v43, %v14548_v3 }
 0x515   : > { %v4897_v23 = vmul.bf16 %v11933_v62, %v4681_v47  ;;  %v4329_v63 = vpop.f32.mrb[216].mxu1 }
 0x516   : > { %v11949_v20 = vadd.bf16 %v4896_v59, %v14568_v56  ;;  %v4331_v25 = vpop.f32.mrb[217].mxu1 }
 0x517   : > { %v11954_v45 = vadd.bf16 %v4897_v23, %v14569_v51  ;;  %v4066_v5 = vpop.f32.mrb[108].mxu0  ;;  %v4333_v44 = vpop.f32.mrb[218].mxu1  ;;  %v14570_v51 = vadd.bf16 %v11868_v54, %v11801_v13 }
 0x518   : > { %v4650_v39 = vpack.c.bf16 %v4333_v44, %v4329_v63  ;;  %v4068_v47 = vpop.f32.mrb[109].mxu0  ;;  %v4335_v14 = vpop.f32.mrb[219].mxu1 }
 0x519   : > { %v4651_v2 = vpack.c.bf16 %v4335_v14, %v4331_v25  ;;  %v4070_v31 = vpop.f32.mrb[110].mxu0 }
 0x51a   : > { %v11965_v59 = vmul.bf16 %v11958_v42, %v4650_v39  ;;  %v4684_v60 = vpack.c.bf16 %v4070_v31, %v4066_v5  ;;  %v4072_v32 = vpop.f32.mrb[111].mxu0  ;;  %4598 = vmatmul.mubr.bf16.gmra.mrb[68].mxu1 %v11774_v48  ;;  %v14571_v48 = vadd.bf16 %v11870_v30, %v11804_v21 }
 0x51b   : > { %v11969_v23 = vmul.bf16 %v11962_v26, %v4651_v2  ;;  %v4685_v63 = vpack.c.bf16 %v4072_v32, %v4068_v47  ;;  %4607 = vmatprep.mubr.bf16.mxu1 %v11795_v11 }
 0x51c   : > { %v4900_v14 = vmul.bf16 %v11928_v52, %v4684_v60 }
 0x51d   : > { %v4901_v25 = vmul.bf16 %v11933_v62, %v4685_v63  ;;  %v4339_v56 = vpop.f32.mrb[220].mxu1 }
 0x51e   : > { %v11977_v39 = vadd.bf16 %v4900_v14, %v14570_v51  ;;  %v4341_v5 = vpop.f32.mrb[221].mxu1 }
 0x51f   : > { %v11982_v44 = vadd.bf16 %v4901_v25, %v14571_v48  ;;  %v4076_v2 = vpop.f32.mrb[112].mxu0  ;;  %v4343_v47 = vpop.f32.mrb[222].mxu1 }
 0x520   : > { %v4654_v31 = vpack.c.bf16 %v4343_v47, %v4339_v56  ;;  %v4078_v11 = vpop.f32.mrb[113].mxu0  ;;  %v4345_v32 = vpop.f32.mrb[223].mxu1  ;;  %v14572_v56 = vadd.bf16 %v11888_v12, %v11814_v16 }
 0x521   : > { %v4655_v60 = vpack.c.bf16 %v4345_v32, %v4341_v5  ;;  %v4080_v34 = vpop.f32.mrb[114].mxu0 }
 0x522   : > { %v11985_v63 = vmul.bf16 %v11958_v42, %v4654_v31  ;;  %v4688_v1 = vpack.c.bf16 %v4080_v34, %v4076_v2  ;;  %v4082_v13 = vpop.f32.mrb[115].mxu0  ;;  %4608 = vmatmul.mubr.bf16.gmra.mrb[72].mxu1 %v11793_v19  ;;  %v14573_v19 = vadd.bf16 %v11890_v61, %v11817_v37 }
 0x523   : > { %v11989_v54 = vmul.bf16 %v11962_v26, %v4655_v60  ;;  %v4689_v21 = vpack.c.bf16 %v4082_v13, %v4078_v11  ;;  %4617 = vmatprep.mubr.bf16.mxu1 %v11808_v36 }
 0x524   : > { %v4904_v30 = vmul.bf16 %v11928_v52, %v4688_v1 }
 0x525   : > { %v4905_v14 = vmul.bf16 %v11933_v62, %v4689_v21  ;;  %v4349_v25 = vpop.f32.mrb[224].mxu1 }
 0x526   : > { %v11997_v51 = vadd.bf16 %v4904_v30, %v14572_v56  ;;  %v4351_v34 = vpop.f32.mrb[225].mxu1  ;;  %v14574_v30 = vadd.bf16 %v11906_v24, %v11829_v41 }
 0x527   : > { %v12002_v5 = vadd.bf16 %v4905_v14, %v14573_v19  ;;  %v4086_v48 = vpop.f32.mrb[116].mxu0  ;;  %v4353_v2 = vpop.f32.mrb[226].mxu1 }
 0x528   : > { %v4658_v47 = vpack.c.bf16 %v4353_v2, %v4349_v25  ;;  %v4088_v36 = vpop.f32.mrb[117].mxu0  ;;  %v4355_v31 = vpop.f32.mrb[227].mxu1 }
 0x529   : > { %v4659_v1 = vpack.c.bf16 %v4355_v31, %v4351_v34  ;;  %v4090_v11 = vpop.f32.mrb[118].mxu0 }
 0x52a   : > { %v12005_v32 = vmul.bf16 %v11958_v42, %v4658_v47  ;;  %v4692_v60 = vpack.c.bf16 %v4090_v11, %v4086_v48  ;;  %v4092_v16 = vpop.f32.mrb[119].mxu0  ;;  %4618 = vmatmul.mubr.bf16.gmra.mrb[76].mxu1 %v11806_v40  ;;  %v14575_v40 = vadd.bf16 %v11908_v18, %v11832_v8  ;;  %v12031_v8 = vrot.slane %v11834_v53, %v14567_v4 }
 0x52b   : > { %v12009_v12 = vmul.bf16 %v11962_v26, %v4659_v1  ;;  %v4693_v37 = vpack.c.bf16 %v4092_v16, %v4088_v36  ;;  %4627 = vmatprep.mubr.bf16.mxu1 %v11821_v33  ;;  %v4834_v33 = vshrl.u32 %v11920_v58, 16 }
 0x52c   : > { %v4908_v61 = vmul.bf16 %v11928_v52, %v4692_v60 }
 0x52d   : > { %v4909_v13 = vmul.bf16 %v11933_v62, %v4693_v37  ;;  %v4359_v21 = vpop.f32.mrb[228].mxu1  ;;  %v4841_v62 = vshrl.u32 %v11924_v46, 16  ;;  %v12039_v46 = vrot.slane %v11836_v29, %v14567_v4 }
 0x52e   : > { %v12017_v14 = vadd.bf16 %v4908_v61, %v14574_v30  ;;  %v4361_v25 = vpop.f32.mrb[229].mxu1 }
 0x52f   : > { %v12022_v56 = vadd.bf16 %v4909_v13, %v14575_v40  ;;  %v4096_v34 = vpop.f32.mrb[120].mxu0  ;;  %v4363_v19 = vpop.f32.mrb[230].mxu1  ;;  %v12047_v11 = vpack.i.b16 %v4841_v62, %v4841_v62 }
 0x530   : > { %v4662_v48 = vpack.c.bf16 %v4363_v19, %v4359_v21  ;;  %v4098_v52 = vpop.f32.mrb[121].mxu0  ;;  %v4365_v2 = vpop.f32.mrb[231].mxu1 }
 0x531   : > { %v4663_v47 = vpack.c.bf16 %v4365_v2, %v4361_v25  ;;  %v4100_v36 = vpop.f32.mrb[122].mxu0 }
 0x532   : > { %v12027_v41 = vmul.bf16 %v11958_v42, %v4662_v48  ;;  %v4696_v24 = vpack.c.bf16 %v4100_v36, %v4096_v34  ;;  %v4102_v18 = vpop.f32.mrb[123].mxu0  ;;  %4628 = vmatmul.mubr.bf16.gmra.mrb[80].mxu1 %v11819_v28  ;;  %v12042_v42 = vpack.i.b16 %v4834_v33, %v4834_v33  ;;  %v12062_v34 = vrot.slane %v12047_v11, %v14548_v3 }
 0x533   : > { %v12035_v58 = vmul.bf16 %v11962_v26, %v4663_v47  ;;  %v4697_v31 = vpack.c.bf16 %v4102_v18, %v4098_v52  ;;  %4637 = vmatprep.mubr.bf16.mxu1 %v11840_v9 }
 0x534   : > { %v12045_v1 = vmul.bf16 %v12031_v8, %v4696_v24  ;;  %v12058_v21 = vrot.slane %v12042_v42, %v14548_v3 }
 0x535   : > { %v12050_v60 = vmul.bf16 %v12039_v46, %v4697_v31  ;;  %v4369_v28 = vpop.f32.mrb[232].mxu1 }
 0x536   : > { %v4371_v16 = vpop.f32.mrb[233].mxu1 }
 0x537   : > { %v4106_v61 = vpop.f32.mrb[124].mxu0  ;;  %v4373_v9 = vpop.f32.mrb[234].mxu1 }
 0x538   : > { %v4666_v13 = vpack.c.bf16 %v4373_v9, %v4369_v28  ;;  %v4108_v30 = vpop.f32.mrb[125].mxu0  ;;  %v4375_v25 = vpop.f32.mrb[235].mxu1 }
 0x539   : > { %v4667_v40 = vpack.c.bf16 %v4375_v25, %v4371_v16  ;;  %v4110_v19 = vpop.f32.mrb[126].mxu0 }
 0x53a   : > { %v12065_v33 = vmul.bf16 %v12058_v21, %v4666_v13  ;;  %v4700_v48 = vpack.c.bf16 %v4110_v19, %v4106_v61  ;;  %v4112_v52 = vpop.f32.mrb[127].mxu0  ;;  %4638 = vmatmul.mubr.bf16.gmra.mrb[84].mxu1 %v11838_v15 }
 0x53b   : > { %v12069_v2 = vmul.bf16 %v12062_v34, %v4667_v40  ;;  %v4701_v62 = vpack.c.bf16 %v4112_v52, %v4108_v30 }
 0x53c   : > { %v12074_v36 = vmul.bf16 %v12031_v8, %v4700_v48 }
 0x53d   : > { %v12079_v18 = vmul.bf16 %v12039_v46, %v4701_v62  ;;  %v4379_v31 = vpop.f32.mrb[236].mxu1  ;;  %v14580_v35 = vadd.bf16 %v12069_v2, %v11969_v23 }
 0x53e   : > { %v4381_v28 = vpop.f32.mrb[237].mxu1 }
 0x53f   : > { %v4116_v61 = vpop.f32.mrb[128].mxu0  ;;  %v4383_v9 = vpop.f32.mrb[238].mxu1 }
 0x540   : > { %v4670_v13 = vpack.c.bf16 %v4383_v9, %v4379_v31  ;;  %v4118_v30 = vpop.f32.mrb[129].mxu0  ;;  %v4385_v25 = vpop.f32.mrb[239].mxu1 }
 0x541   : > { %v4671_v40 = vpack.c.bf16 %v4385_v25, %v4381_v28  ;;  %v4120_v19 = vpop.f32.mrb[130].mxu0 }
 0x542   : > { %v12086_v48 = vmul.bf16 %v12058_v21, %v4670_v13  ;;  %v4704_v52 = vpack.c.bf16 %v4120_v19, %v4116_v61  ;;  %v4122_v62 = vpop.f32.mrb[131].mxu0 }
 0x543   : > { %v12089_v24 = vmul.bf16 %v12062_v34, %v4671_v40  ;;  %v4705_v15 = vpack.c.bf16 %v4122_v62, %v4118_v30 }
 0x544   : > { %v12094_v16 = vmul.bf16 %v12031_v8, %v4704_v52 }
 0x545   : > { %v12099_v28 = vmul.bf16 %v12039_v46, %v4705_v15  ;;  %v4389_v9 = vpop.f32.mrb[240].mxu1 }
 0x546   : > { %v4391_v13 = vpop.f32.mrb[241].mxu1 }
 0x547   : > { %v4126_v25 = vpop.f32.mrb[132].mxu0  ;;  %v4393_v40 = vpop.f32.mrb[242].mxu1 }
 0x548   : > { %v4674_v19 = vpack.c.bf16 %v4393_v40, %v4389_v9  ;;  %v4128_v62 = vpop.f32.mrb[133].mxu0  ;;  %v4395_v52 = vpop.f32.mrb[243].mxu1 }
 0x549   : > { %v4675_v47 = vpack.c.bf16 %v4395_v52, %v4391_v13  ;;  %v4130_v37 = vpop.f32.mrb[134].mxu0 }
 0x54a   : > { %v12106_v31 = vmul.bf16 %v12058_v21, %v4674_v19  ;;  %v4708_v15 = vpack.c.bf16 %v4130_v37, %v4126_v25  ;;  %v4132_v26 = vpop.f32.mrb[135].mxu0 }
 0x54b   : > { %v12109_v3 = vmul.bf16 %v12062_v34, %v4675_v47  ;;  %v4709_v61 = vpack.c.bf16 %v4132_v26, %v4128_v62 }
 0x54c   : > { %v12114_v30 = vmul.bf16 %v12031_v8, %v4708_v15 }
 0x54d   : > { %v12119_v13 = vmul.bf16 %v12039_v46, %v4709_v61  ;;  %v4399_v40 = vpop.f32.mrb[244].mxu1  ;;  %v14576_v61 = vld [vmem:[#allocation10_spill] sm:$0xff] }
 0x54e   : > { %v4401_v25 = vpop.f32.mrb[245].mxu1  ;;  %v12130_v6 = vrot.slane %v11768_v22, %v14576_v61 }
 0x54f   : > { %v4136_v47 = vpop.f32.mrb[136].mxu0  ;;  %v4403_v19 = vpop.f32.mrb[246].mxu1 }
 0x550   : > { %v4678_v62 = vpack.c.bf16 %v4403_v19, %v4399_v40  ;;  %v4138_v52 = vpop.f32.mrb[137].mxu0  ;;  %v4405_v8 = vpop.f32.mrb[247].mxu1  ;;  %v12137_v40 = vrot.slane %v11772_v7, %v14576_v61 }
 0x551   : > { %v4679_v15 = vpack.c.bf16 %v4405_v8, %v4401_v25  ;;  %v4140_v0 = vpop.f32.mrb[138].mxu0 }
 0x552   : > { %v12126_v9 = vmul.bf16 %v12058_v21, %v4678_v62  ;;  %v4712_v46 = vpack.c.bf16 %v4140_v0, %v4136_v47  ;;  %v4142_v37 = vpop.f32.mrb[139].mxu0 }
 0x553   : > { %v12133_v55 = vmul.bf16 %v12062_v34, %v4679_v15  ;;  %v4713_v26 = vpack.c.bf16 %v4142_v37, %v4138_v52  ;;  %v14577_v34 = vadd.bf16 %v12045_v1, %v11949_v20  ;;  %v14578_v52 = vadd.bf16 %v12050_v60, %v11954_v45 }
 0x554   : > { %v4992_v25 = vmul.bf16 %v12130_v6, %v4712_v46  ;;  %v12161_v20 = vrot.slane %v11943_v43, %v14567_v4 }
 0x555   : > { %v4993_v0 = vmul.bf16 %v12137_v40, %v4713_v26  ;;  %v4409_v47 = vpop.f32.mrb[248].mxu1  ;;  %v12157_v26 = vrot.slane %v11938_v38, %v14567_v4 }
 0x556   : > { %v12148_v62 = vadd.bf16 %v4992_v25, %v14577_v34  ;;  %v4411_v37 = vpop.f32.mrb[249].mxu1 }
 0x557   : > { %v12153_v8 = vadd.bf16 %v4993_v0, %v14578_v52  ;;  %v4146_v15 = vpop.f32.mrb[140].mxu0  ;;  %v4413_v46 = vpop.f32.mrb[250].mxu1  ;;  %v14579_v52 = vadd.bf16 %v12065_v33, %v11965_v59 }
 0x558   : > { %v4682_v21 = vpack.c.bf16 %v4413_v46, %v4409_v47  ;;  %v4148_v57 = vpop.f32.mrb[141].mxu0  ;;  %v4415_v19 = vpop.f32.mrb[251].mxu1 }
 0x559   : > { %v4683_v49 = vpack.c.bf16 %v4415_v19, %v4411_v37  ;;  %v4150_v1 = vpop.f32.mrb[142].mxu0 }
 0x55a   : > { %v4898_v25 = vmul.bf16 %v12157_v26, %v4682_v21  ;;  %v4716_v45 = vpack.c.bf16 %v4150_v1, %v4146_v15  ;;  %v4152_v60 = vpop.f32.mrb[143].mxu0  ;;  %v14581_v21 = vadd.bf16 %v12074_v36, %v11977_v39  ;;  %v14582_v15 = vadd.bf16 %v12079_v18, %v11982_v44 }
 0x55b   : > { %v4899_v0 = vmul.bf16 %v12161_v20, %v4683_v49  ;;  %v4717_v34 = vpack.c.bf16 %v4152_v60, %v4148_v57  ;;  %v14583_v44 = vadd.bf16 %v12086_v48, %v11985_v63 }
 0x55c   : > { %v4996_v47 = vmul.bf16 %v12130_v6, %v4716_v45  ;;  %v12169_v46 = vadd.bf16 %v4898_v25, %v14579_v52 }
 0x55d   : > { %v4997_v19 = vmul.bf16 %v12137_v40, %v4717_v34  ;;  %v4419_v37 = vpop.f32.mrb[252].mxu1  ;;  %v12175_v10 = vadd.bf16 %v4899_v0, %v14580_v35 }
 0x55e   : > { %v12180_v49 = vadd.bf16 %v4996_v47, %v14581_v21  ;;  %v4421_v57 = vpop.f32.mrb[253].mxu1 }
 0x55f   : > { %v12185_v59 = vadd.bf16 %v4997_v19, %v14582_v15  ;;  %v4156_v33 = vpop.f32.mrb[144].mxu0  ;;  %v4423_v1 = vpop.f32.mrb[254].mxu1 }
 0x560   : > { %v4686_v25 = vpack.c.bf16 %v4423_v1, %v4419_v37  ;;  %v4158_v45 = vpop.f32.mrb[145].mxu0  ;;  %v4425_v60 = vpop.f32.mrb[255].mxu1  ;;  %v14584_v37 = vadd.bf16 %v12089_v24, %v11989_v54  ;;  %v14586_v1 = vadd.bf16 %v12099_v28, %v12002_v5  ;;  %v14587_v5 = vadd.bf16 %v12106_v31, %v12005_v32 }
 0x561   : > { %v4687_v34 = vpack.c.bf16 %v4425_v60, %v4421_v57  ;;  %v4160_v23 = vpop.f32.mrb[146].mxu0  ;;  %v14585_v57 = vadd.bf16 %v12094_v16, %v11997_v51 }
 0x562   : > { %v4902_v35 = vmul.bf16 %v12157_v26, %v4686_v25  ;;  %v4720_v2 = vpack.c.bf16 %v4160_v23, %v4156_v33  ;;  %v4162_v0 = vpop.f32.mrb[147].mxu0 }
 0x563   : > { %v4903_v39 = vmul.bf16 %v12161_v20, %v4687_v34  ;;  %v4721_v36 = vpack.c.bf16 %v4162_v0, %v4158_v45 }
 0x564   : > { %v5000_v47 = vmul.bf16 %v12130_v6, %v4720_v2  ;;  %v12193_v18 = vadd.bf16 %v4902_v35, %v14583_v44 }
 0x565   : > { %v5001_v52 = vmul.bf16 %v12137_v40, %v4721_v36  ;;  %v4429_v19 = vpop.f32.mrb[0].mxu1  ;;  %v12199_v21 = vadd.bf16 %v4903_v39, %v14584_v37 }
 0x566   : > { %v12204_v15 = vadd.bf16 %v5000_v47, %v14585_v57  ;;  %v4431_v33 = vpop.f32.mrb[1].mxu1  ;;  %v14588_v47 = vadd.bf16 %v12109_v3, %v12009_v12 }
 0x567   : > { %v12209_v63 = vadd.bf16 %v5001_v52, %v14586_v1  ;;  %v4166_v48 = vpop.f32.mrb[148].mxu0  ;;  %v4433_v25 = vpop.f32.mrb[2].mxu1  ;;  %v14589_v52 = vadd.bf16 %v12114_v30, %v12017_v14  ;;  %v12238_v14 = vrot.slane %v11834_v53, %v14576_v61 }
 0x568   : > { %v4690_v45 = vpack.c.bf16 %v4433_v25, %v4429_v19  ;;  %v4168_v60 = vpop.f32.mrb[149].mxu0  ;;  %v4435_v34 = vpop.f32.mrb[3].mxu1 }
 0x569   : > { %v4691_v23 = vpack.c.bf16 %v4435_v34, %v4431_v33  ;;  %v4170_v54 = vpop.f32.mrb[150].mxu0 }
 0x56a   : > { %v4906_v24 = vmul.bf16 %v12157_v26, %v4690_v45  ;;  %v4724_v35 = vpack.c.bf16 %v4170_v54, %v4166_v48  ;;  %v4172_v2 = vpop.f32.mrb[151].mxu0 }
 0x56b   : > { %v4907_v51 = vmul.bf16 %v12161_v20, %v4691_v23  ;;  %v4725_v16 = vpack.c.bf16 %v4172_v2, %v4168_v60  ;;  %v14591_v60 = vadd.bf16 %v12126_v9, %v12027_v41  ;;  %v14592_v23 = vadd.bf16 %v12133_v55, %v12035_v58 }
 0x56c   : > { %v5004_v0 = vmul.bf16 %v12130_v6, %v4724_v35  ;;  %v12217_v28 = vadd.bf16 %v4906_v24, %v14587_v5  ;;  %v14590_v6 = vadd.bf16 %v12119_v13, %v12022_v56  ;;  %v12243_v13 = vrot.slane %v11836_v29, %v14576_v61 }
 0x56d   : > { %v5005_v39 = vmul.bf16 %v12137_v40, %v4725_v16  ;;  %v4439_v36 = vpop.f32.mrb[4].mxu1  ;;  %v12223_v44 = vadd.bf16 %v4907_v51, %v14588_v47 }
 0x56e   : > { %v12228_v19 = vadd.bf16 %v5004_v0, %v14589_v52  ;;  %v4441_v37 = vpop.f32.mrb[5].mxu1  ;;  %v12267_v0 = vrot.slane %v12042_v42, %v14567_v4 }
 0x56f   : > { %v12233_v32 = vadd.bf16 %v5005_v39, %v14590_v6  ;;  %v4176_v31 = vpop.f32.mrb[152].mxu0  ;;  %v4443_v57 = vpop.f32.mrb[6].mxu1  ;;  %v12271_v39 = vrot.slane %v12047_v11, %v14567_v4 }
 0x570   : > { %v4694_v40 = vpack.c.bf16 %v4443_v57, %v4439_v36  ;;  %v4178_v33 = vpop.f32.mrb[153].mxu0  ;;  %v4445_v1 = vpop.f32.mrb[7].mxu1 }
 0x571   : > { %v4695_v48 = vpack.c.bf16 %v4445_v1, %v4441_v37  ;;  %v4180_v3 = vpop.f32.mrb[154].mxu0 }
 0x572   : > { %v4910_v12 = vmul.bf16 %v12157_v26, %v4694_v40  ;;  %v4728_v25 = vpack.c.bf16 %v4180_v3, %v4176_v31  ;;  %v4182_v30 = vpop.f32.mrb[155].mxu0 }
 0x573   : > { %v4911_v45 = vmul.bf16 %v12161_v20, %v4695_v48  ;;  %v4729_v56 = vpack.c.bf16 %v4182_v30, %v4178_v33 }
 0x574   : > { %v12248_v34 = vadd.bf16 %v4910_v12, %v14591_v60  ;;  %v12251_v26 = vmul.bf16 %v12238_v14, %v4728_v25 }
 0x575   : > { %v12256_v54 = vadd.bf16 %v4911_v45, %v14592_v23  ;;  %v12259_v20 = vmul.bf16 %v12243_v13, %v4729_v56  ;;  %v4449_v24 = vpop.f32.mrb[8].mxu1 }
 0x576   : > { %v5056_v35 = vadd.bf16 %v12251_v26, %v12148_v62  ;;  %v4451_v2 = vpop.f32.mrb[9].mxu1  ;;  %v12369_v62 = vrot.slane %v11943_v43, %v14576_v61 }
 0x577   : > { %v5057_v41 = vadd.bf16 %v12259_v20, %v12153_v8  ;;  %v4186_v9 = vpop.f32.mrb[156].mxu0  ;;  %v4453_v51 = vpop.f32.mrb[10].mxu1 }
 0x578   : > { %v4698_v16 = vpack.c.bf16 %v4453_v51, %v4449_v24  ;;  %v4188_v55 = vpop.f32.mrb[157].mxu0  ;;  %v4455_v58 = vpop.f32.mrb[11].mxu1 }
 0x579   : > { %v4699_v5 = vpack.c.bf16 %v4455_v58, %v4451_v2  ;;  %v4190_v36 = vpop.f32.mrb[158].mxu0 }
 0x57a   : > { %v12274_v47 = vmul.bf16 %v12267_v0, %v4698_v16  ;;  %v4732_v52 = vpack.c.bf16 %v4190_v36, %v4186_v9  ;;  %v4192_v37 = vpop.f32.mrb[159].mxu0 }
 0x57b   : > { %v12277_v6 = vmul.bf16 %v12271_v39, %v4699_v5  ;;  %v4733_v31 = vpack.c.bf16 %v4192_v37, %v4188_v55 }
 0x57c   : > { %v4962_v57 = vadd.bf16 %v12274_v47, %v12169_v46  ;;  %v12282_v40 = vmul.bf16 %v12238_v14, %v4732_v52 }
 0x57d   : > { %v12287_v1 = vmul.bf16 %v12243_v13, %v4733_v31  ;;  %v4459_v48 = vpop.f32.mrb[12].mxu1 }
 0x57e   : > { %v4461_v12 = vpop.f32.mrb[13].mxu1 }
 0x57f   : > { %v4196_v30 = vpop.f32.mrb[160].mxu0  ;;  %v4463_v45 = vpop.f32.mrb[14].mxu1  ;;  %v14596_v47 = vadd.bf16 %v12287_v1, %v12185_v59 }
 0x580   : > { %v4702_v56 = vpack.c.bf16 %v4463_v45, %v4459_v48  ;;  %v4198_v60 = vpop.f32.mrb[161].mxu0  ;;  %v4465_v23 = vpop.f32.mrb[15].mxu1 }
 0x581   : > { %v4703_v24 = vpack.c.bf16 %v4465_v23, %v4461_v12  ;;  %v4200_v2 = vpop.f32.mrb[162].mxu0 }
 0x582   : > { %v12294_v9 = vmul.bf16 %v12267_v0, %v4702_v56  ;;  %v4736_v51 = vpack.c.bf16 %v4200_v2, %v4196_v30  ;;  %v4202_v16 = vpop.f32.mrb[163].mxu0 }
 0x583   : > { %v12297_v55 = vmul.bf16 %v12271_v39, %v4703_v24  ;;  %v4737_v58 = vpack.c.bf16 %v4202_v16, %v4198_v60 }
 0x584   : > { %v12302_v36 = vmul.bf16 %v12238_v14, %v4736_v51 }
 0x585   : > { %v12307_v37 = vmul.bf16 %v12243_v13, %v4737_v58  ;;  %v4469_v31 = vpop.f32.mrb[16].mxu1  ;;  %v14598_v1 = vadd.bf16 %v12297_v55, %v12199_v21 }
 0x586   : > { %v4471_v12 = vpop.f32.mrb[17].mxu1 }
 0x587   : > { %v4206_v45 = vpop.f32.mrb[164].mxu0  ;;  %v4473_v56 = vpop.f32.mrb[18].mxu1 }
 0x588   : > { %v4706_v60 = vpack.c.bf16 %v4473_v56, %v4469_v31  ;;  %v4208_v23 = vpop.f32.mrb[165].mxu0  ;;  %v4475_v24 = vpop.f32.mrb[19].mxu1 }
 0x589   : > { %v4707_v2 = vpack.c.bf16 %v4475_v24, %v4471_v12  ;;  %v4210_v51 = vpop.f32.mrb[166].mxu0 }
 0x58a   : > { %v12314_v16 = vmul.bf16 %v12267_v0, %v4706_v60  ;;  %v4740_v58 = vpack.c.bf16 %v4210_v51, %v4206_v45  ;;  %v4212_v52 = vpop.f32.mrb[167].mxu0 }
 0x58b   : > { %v12317_v5 = vmul.bf16 %v12271_v39, %v4707_v2  ;;  %v4741_v48 = vpack.c.bf16 %v4212_v52, %v4208_v23 }
 0x58c   : > { %v12322_v30 = vmul.bf16 %v12238_v14, %v4740_v58 }
 0x58d   : > { %v12327_v12 = vmul.bf16 %v12243_v13, %v4741_v48  ;;  %v4479_v56 = vpop.f32.mrb[20].mxu1  ;;  %v14593_v48 = vld [vmem:[#allocation11_spill] sm:$0xff] }
 0x58e   : > { %v4481_v60 = vpop.f32.mrb[21].mxu1  ;;  %v12338_v3 = vrot.slane %v11768_v22, %v14593_v48 }
 0x58f   : > { %v4216_v23 = vpop.f32.mrb[168].mxu0  ;;  %v4483_v24 = vpop.f32.mrb[22].mxu1 }
 0x590   : > { %v4710_v2 = vpack.c.bf16 %v4483_v24, %v4479_v56  ;;  %v4218_v51 = vpop.f32.mrb[169].mxu0  ;;  %v4485_v14 = vpop.f32.mrb[23].mxu1  ;;  %v12345_v56 = vrot.slane %v11772_v7, %v14593_v48 }
 0x591   : > { %v4711_v58 = vpack.c.bf16 %v4485_v14, %v4481_v60  ;;  %v4220_v25 = vpop.f32.mrb[170].mxu0  ;;  %v12365_v14 = vrot.slane %v11938_v38, %v14576_v61 }
 0x592   : > { %v12334_v31 = vmul.bf16 %v12267_v0, %v4710_v2  ;;  %v4744_v13 = vpack.c.bf16 %v4220_v25, %v4216_v23  ;;  %v4222_v45 = vpop.f32.mrb[171].mxu0 }
 0x593   : > { %v12341_v33 = vmul.bf16 %v12271_v39, %v4711_v58  ;;  %v4745_v52 = vpack.c.bf16 %v4222_v45, %v4218_v51 }
 0x594   : > { %v4974_v60 = vadd.bf16 %v12334_v31, %v12248_v34  ;;  %v5088_v0 = vmul.bf16 %v12338_v3, %v4744_v13 }
 0x595   : > { %v5089_v22 = vmul.bf16 %v12345_v56, %v4745_v52  ;;  %v4489_v23 = vpop.f32.mrb[24].mxu1 }
 0x596   : > { %v12356_v39 = vadd.bf16 %v5088_v0, %v5056_v35  ;;  %v4491_v45 = vpop.f32.mrb[25].mxu1 }
 0x597   : > { %v4226_v24 = vpop.f32.mrb[172].mxu0  ;;  %v4493_v7 = vpop.f32.mrb[26].mxu1  ;;  %v12361_v2 = vadd.bf16 %v5089_v22, %v5057_v41 }
 0x598   : > { %v4714_v51 = vpack.c.bf16 %v4493_v7, %v4489_v23  ;;  %v4228_v52 = vpop.f32.mrb[173].mxu0  ;;  %v4495_v58 = vpop.f32.mrb[27].mxu1  ;;  %v14594_v23 = vadd.bf16 %v12277_v6, %v12175_v10 }
 0x599   : > { %v4715_v13 = vpack.c.bf16 %v4495_v58, %v4491_v45  ;;  %v4230_v26 = vpop.f32.mrb[174].mxu0  ;;  %v14595_v58 = vadd.bf16 %v12282_v40, %v12180_v49 }
 0x59a   : > { %v4994_v35 = vmul.bf16 %v12365_v14, %v4714_v51  ;;  %v4748_v0 = vpack.c.bf16 %v4230_v26, %v4226_v24  ;;  %v4232_v25 = vpop.f32.mrb[175].mxu0 }
 0x59b   : > { %v4995_v8 = vmul.bf16 %v12369_v62, %v4715_v13  ;;  %v4749_v20 = vpack.c.bf16 %v4232_v25, %v4228_v52 }
 0x59c   : > { %v12376_v41 = vadd.bf16 %v4994_v35, %v4962_v57  ;;  %v5092_v22 = vmul.bf16 %v12338_v3, %v4748_v0 }
 0x59d   : > { %v12382_v45 = vadd.bf16 %v4995_v8, %v14594_v23  ;;  %v5093_v7 = vmul.bf16 %v12345_v56, %v4749_v20  ;;  %v4499_v51 = vpop.f32.mrb[28].mxu1 }
 0x59e   : > { %v4501_v24 = vpop.f32.mrb[29].mxu1  ;;  %v12388_v25 = vadd.bf16 %v5092_v22, %v14595_v58  ;;  %v14597_v22 = vadd.bf16 %v12294_v9, %v12193_v18  ;;  %v14600_v9 = vadd.bf16 %v12307_v37, %v12209_v63  ;;  %v14602_v37 = vadd.bf16 %v12317_v5, %v12223_v44 }
 0x59f   : > { %v4236_v52 = vpop.f32.mrb[176].mxu0  ;;  %v4503_v46 = vpop.f32.mrb[30].mxu1  ;;  %v12393_v57 = vadd.bf16 %v5093_v7, %v14596_v47 }
 0x5a0   : > { %v4718_v13 = vpack.c.bf16 %v4503_v46, %v4499_v51  ;;  %v4238_v10 = vpop.f32.mrb[177].mxu0  ;;  %v4505_v6 = vpop.f32.mrb[31].mxu1 }
 0x5a1   : > { %v4719_v26 = vpack.c.bf16 %v4505_v6, %v4501_v24  ;;  %v4240_v35 = vpop.f32.mrb[178].mxu0 }
 0x5a2   : > { %v4998_v0 = vmul.bf16 %v12365_v14, %v4718_v13  ;;  %v4752_v8 = vpack.c.bf16 %v4240_v35, %v4236_v52  ;;  %v4242_v20 = vpop.f32.mrb[179].mxu0  ;;  %v14599_v52 = vadd.bf16 %v12302_v36, %v12204_v15 }
 0x5a3   : > { %v4999_v49 = vmul.bf16 %v12369_v62, %v4719_v26  ;;  %v4753_v40 = vpack.c.bf16 %v4242_v20, %v4238_v10  ;;  %v14601_v20 = vadd.bf16 %v12314_v16, %v12217_v28  ;;  %v14604_v16 = vadd.bf16 %v12327_v12, %v12233_v32 }
 0x5a4   : > { %v12400_v23 = vadd.bf16 %v4998_v0, %v14597_v22  ;;  %v5096_v59 = vmul.bf16 %v12338_v3, %v4752_v8  ;;  %v12451_v32 = vrot.slane %v11836_v29, %v14593_v48 }
 0x5a5   : > { %v12406_v7 = vadd.bf16 %v4999_v49, %v14598_v1  ;;  %v5097_v51 = vmul.bf16 %v12345_v56, %v4753_v40  ;;  %v4509_v24 = vpop.f32.mrb[32].mxu1 }
 0x5a6   : > { %v4511_v58 = vpop.f32.mrb[33].mxu1  ;;  %v12412_v46 = vadd.bf16 %v5096_v59, %v14599_v52 }
 0x5a7   : > { %v4246_v47 = vpop.f32.mrb[180].mxu0  ;;  %v4513_v18 = vpop.f32.mrb[34].mxu1  ;;  %v12417_v13 = vadd.bf16 %v5097_v51, %v14600_v9  ;;  %v14603_v51 = vadd.bf16 %v12322_v30, %v12228_v19  ;;  %v12446_v19 = vrot.slane %v11834_v53, %v14593_v48 }
 0x5a8   : > { %v4722_v10 = vpack.c.bf16 %v4513_v18, %v4509_v24  ;;  %v4248_v21 = vpop.f32.mrb[181].mxu0  ;;  %v4515_v55 = vpop.f32.mrb[35].mxu1 }
 0x5a9   : > { %v4723_v6 = vpack.c.bf16 %v4515_v55, %v4511_v58  ;;  %v4250_v26 = vpop.f32.mrb[182].mxu0  ;;  %v14605_v55 = vadd.bf16 %v12341_v33, %v12256_v54 }
 0x5aa   : > { %v5002_v35 = vmul.bf16 %v12365_v14, %v4722_v10  ;;  %v4756_v0 = vpack.c.bf16 %v4250_v26, %v4246_v47  ;;  %v4252_v8 = vpop.f32.mrb[183].mxu0 }
 0x5ab   : > { %v5003_v15 = vmul.bf16 %v12369_v62, %v4723_v6  ;;  %v4757_v36 = vpack.c.bf16 %v4252_v8, %v4248_v21 }
 0x5ac   : > { %v12424_v49 = vadd.bf16 %v5002_v35, %v14601_v20  ;;  %v5100_v63 = vmul.bf16 %v12338_v3, %v4756_v0 }
 0x5ad   : > { %v12430_v40 = vadd.bf16 %v5003_v15, %v14602_v37  ;;  %v5101_v22 = vmul.bf16 %v12345_v56, %v4757_v36  ;;  %v4519_v59 = vpop.f32.mrb[36].mxu1  ;;  %v12473_v15 = vrot.slane %v12047_v11, %v14576_v61 }
 0x5ae   : > { %v4521_v1 = vpop.f32.mrb[37].mxu1  ;;  %v12436_v24 = vadd.bf16 %v5100_v63, %v14603_v51  ;;  %v9871_v51 = vld [vmem:[%s10280_s8 + $0x114] ss:$8 sps:$4 sm:$0xff]  }
 0x5af   : > { %v4256_v58 = vpop.f32.mrb[184].mxu0  ;;  %v4523_v28 = vpop.f32.mrb[38].mxu1  ;;  %v12441_v3 = vadd.bf16 %v5101_v22, %v14604_v16  ;;  %v9870_v22 = vld [vmem:[%s10280_s8 + $0x100] ss:$8 sps:$4 sm:$0xff]  }
 0x5b0   : > { %v4726_v52 = vpack.c.bf16 %v4523_v28, %v4519_v59  ;;  %v4258_v44 = vpop.f32.mrb[185].mxu0  ;;  %v4525_v5 = vpop.f32.mrb[39].mxu1 }
 0x5b1   : > { %v4727_v47 = vpack.c.bf16 %v4525_v5, %v4521_v1  ;;  %v4260_v18 = vpop.f32.mrb[186].mxu0 }
 0x5b2   : > { %v5006_v56 = vmul.bf16 %v12365_v14, %v4726_v52  ;;  %v4760_v9 = vpack.c.bf16 %v4260_v18, %v4256_v58  ;;  %v4262_v30 = vpop.f32.mrb[187].mxu0 }
 0x5b3   : > { %v5007_v10 = vmul.bf16 %v12369_v62, %v4727_v47  ;;  %v4761_v21 = vpack.c.bf16 %v4262_v30, %v4258_v44 }
 0x5b4   : > { %v12456_v12 = vadd.bf16 %v5006_v56, %v4974_v60  ;;  %v5136_v14 = vmul.bf16 %v12446_v19, %v4760_v9  ;;  %v12469_v60 = vrot.slane %v12042_v42, %v14576_v61  ;;  %v9872_v56 = vld [vmem:[%s10280_s8 + $0x110] ss:$8 sps:$4 sm:$0xff]  }
 0x5b5   : > { %v12462_v53 = vadd.bf16 %v5007_v10, %v14605_v55  ;;  %v5137_v6 = vmul.bf16 %v12451_v32, %v4761_v21  ;;  %v4529_v62 = vpop.f32.mrb[40].mxu1  ;;  %v9873_v21 = vld [vmem:[%s10280_s8 + $0x124] ss:$8 sps:$4 sm:$0xff]  }
 0x5b6   : > { %v5152_v26 = vadd.bf16 %v5136_v14, %v12356_v39  ;;  %v4531_v35 = vpop.f32.mrb[41].mxu1 }
 0x5b7   : > { %v4266_v29 = vpop.f32.mrb[188].mxu0  ;;  %v4533_v0 = vpop.f32.mrb[42].mxu1  ;;  %v5153_v34 = vadd.bf16 %v5137_v6, %v12361_v2 }
 0x5b8   : > { %v4730_v31 = vpack.c.bf16 %v4533_v0, %v4529_v62  ;;  %v4268_v8 = vpop.f32.mrb[189].mxu0  ;;  %v4535_v54 = vpop.f32.mrb[43].mxu1 }
 0x5b9   : > { %v4731_v33 = vpack.c.bf16 %v4535_v54, %v4531_v35  ;;  %v4270_v39 = vpop.f32.mrb[190].mxu0  ;;  %5200 = vmatprep.mubr.bf16.mxu0 %v5153_v34  ;;  %v9874_v35 = vld [vmem:[%s10280_s8 + $0x120] ss:$8 sps:$4 sm:$0xff]   ;;  %v9875_v34 = vld [vmem:[%s10280_s8 + $0x134] ss:$8 sps:$4 sm:$0xff]  }
 0x5ba   : > { %v12476_v36 = vmul.bf16 %v12469_v60, %v4730_v31  ;;  %v4764_v20 = vpack.c.bf16 %v4270_v39, %v4266_v29  ;;  %v4272_v2 = vpop.f32.mrb[191].mxu0  ;;  %5201 = vmatmul.mubr.bf16.vlgmr.msra.gmra.mrb[200].mxu0 %v5152_v26 }
 0x5bb   : > { %v12479_v63 = vmul.bf16 %v12473_v15, %v4731_v33  ;;  %v4765_v37 = vpack.c.bf16 %v4272_v2, %v4268_v8  ;;  %5242 = vmatpush1.bf16.msra.mxu0 %v9870_v22  ;;  %v9876_v22 = vld [vmem:[%s10280_s8 + $0x130] ss:$8 sps:$4 sm:$0xff]  }
 0x5bc   : > { %v5058_v59 = vadd.bf16 %v12476_v36, %v12376_v41  ;;  %v5140_v1 = vmul.bf16 %v12446_v19, %v4764_v20  ;;  %5243 = vmatprep.subr.bf16.mxu0 %v9871_v51  ;;  %v9889_v41 = vld [vmem:[%s10280_s8 + $0x1a4] ss:$8 sps:$4 sm:$0xff]  }
 0x5bd   : > { %v5059_v58 = vadd.bf16 %v12479_v63, %v12382_v45  ;;  %v5141_v28 = vmul.bf16 %v12451_v32, %v4765_v37  ;;  %v4539_v16 = vpop.f32.mrb[44].mxu1  ;;  %v9891_v63 = vld [vmem:[%s10280_s8 + $0x1b4] ss:$8 sps:$4 sm:$0xff]  }
 0x5be   : > { %v4541_v52 = vpop.f32.mrb[45].mxu1  ;;  %v5156_v44 = vadd.bf16 %v5140_v1, %v12388_v25 }
 0x5bf   : > { %v4276_v5 = vpop.f32.mrb[192].mxu0  ;;  %v4543_v47 = vpop.f32.mrb[46].mxu1  ;;  %v5157_v18 = vadd.bf16 %v5141_v28, %v12393_v57  ;;  %5244 = vmatpush1.bf16.msra.mxu0 %v9872_v56  ;;  %v9878_v56 = vld [vmem:[%s10280_s8 + $0x140] ss:$8 sps:$4 sm:$0xff]  }
 0x5c0   : > { %v4734_v9 = vpack.c.bf16 %v4543_v47, %v4539_v16  ;;  %v4278_v30 = vpop.f32.mrb[193].mxu0  ;;  %v4545_v10 = vpop.f32.mrb[47].mxu1  ;;  %5245 = vmatprep.subr.bf16.mxu0 %v9873_v21  ;;  %v9877_v16 = vld [vmem:[%s10280_s8 + $0x144] ss:$8 sps:$4 sm:$0xff]  }
 0x5c1   : > { %v4735_v14 = vpack.c.bf16 %v4545_v10, %v4541_v52  ;;  %v4280_v55 = vpop.f32.mrb[194].mxu0  ;;  %5210 = vmatprep.mubr.bf16.mxu0 %v5157_v18  ;;  %v9879_v10 = vld [vmem:[%s10280_s8 + $0x154] ss:$8 sps:$4 sm:$0xff]  }
 0x5c2   : > { %v12494_v6 = vmul.bf16 %v12469_v60, %v4734_v9  ;;  %v4768_v25 = vpack.c.bf16 %v4280_v55, %v4276_v5  ;;  %v4282_v62 = vpop.f32.mrb[195].mxu0  ;;  %5211 = vmatmul.mubr.bf16.gmra.mrb[204].mxu0 %v5156_v44 }
 0x5c3   : > { %v12497_v57 = vmul.bf16 %v12473_v15, %v4735_v14  ;;  %v4769_v26 = vpack.c.bf16 %v4282_v62, %v4278_v30  ;;  %5246 = vmatpush1.bf16.msra.mxu0 %v9874_v35 }
 0x5c4   : > { %v5062_v29 = vadd.bf16 %v12494_v6, %v12400_v23  ;;  %v5144_v0 = vmul.bf16 %v12446_v19, %v4768_v25  ;;  %5247 = vmatprep.subr.bf16.mxu0 %v9875_v34  ;;  %v9893_v23 = vld [vmem:[%s10280_s8 + $0x1c4] ss:$8 sps:$4 sm:$0xff]  }
 0x5c5   : > { %v5063_v31 = vadd.bf16 %v12497_v57, %v12406_v7  ;;  %v5145_v8 = vmul.bf16 %v12451_v32, %v4769_v26  ;;  %v4549_v54 = vpop.f32.mrb[48].mxu1  ;;  %v9895_v57 = vld [vmem:[%s10280_s8 + $0x1d4] ss:$8 sps:$4 sm:$0xff]  }
 0x5c6   : > { %v4551_v33 = vpop.f32.mrb[49].mxu1  ;;  %v5160_v39 = vadd.bf16 %v5144_v0, %v12412_v46  ;;  %v9880_v0 = vld [vmem:[%s10280_s8 + $0x150] ss:$8 sps:$4 sm:$0xff]  }
 0x5c7   : > { %v4286_v20 = vpop.f32.mrb[196].mxu0  ;;  %v4553_v2 = vpop.f32.mrb[50].mxu1  ;;  %v5161_v37 = vadd.bf16 %v5145_v8, %v12417_v13  ;;  %5248 = vmatpush1.bf16.msra.mxu0 %v9876_v22  ;;  %v9881_v8 = vld [vmem:[%s10280_s8 + $0x164] ss:$8 sps:$4 sm:$0xff]   ;;  %v9884_v22 = vld [vmem:[%s10280_s8 + $0x170] ss:$8 sps:$4 sm:$0xff]  }
 0x5c8   : > { %v4738_v1 = vpack.c.bf16 %v4553_v2, %v4549_v54  ;;  %v4288_v51 = vpop.f32.mrb[197].mxu0  ;;  %v4555_v28 = vpop.f32.mrb[51].mxu1  ;;  %5249 = vmatprep.subr.bf16.mxu0 %v9877_v16 }
 0x5c9   : > { %v4739_v52 = vpack.c.bf16 %v4555_v28, %v4551_v33  ;;  %v4290_v44 = vpop.f32.mrb[198].mxu0  ;;  %5220 = vmatprep.mubr.bf16.mxu0 %v5161_v37  ;;  %v9882_v33 = vld [vmem:[%s10280_s8 + $0x160] ss:$8 sps:$4 sm:$0xff]   ;;  %v9885_v28 = vld [vmem:[%s10280_s8 + $0x184] ss:$8 sps:$4 sm:$0xff]  }
 0x5ca   : > { %v12512_v5 = vmul.bf16 %v12469_v60, %v4738_v1  ;;  %v4772_v46 = vpack.c.bf16 %v4290_v44, %v4286_v20  ;;  %v4292_v47 = vpop.f32.mrb[199].mxu0  ;;  %5221 = vmatmul.mubr.bf16.gmra.mrb[208].mxu0 %v5160_v39  ;;  %v9883_v39 = vld [vmem:[%s10280_s8 + $0x174] ss:$8 sps:$4 sm:$0xff]  }
 0x5cb   : > { %v12515_v13 = vmul.bf16 %v12473_v15, %v4739_v52  ;;  %v4773_v18 = vpack.c.bf16 %v4292_v47, %v4288_v51  ;;  %5250 = vmatpush1.bf16.msra.mxu0 %v9878_v56  ;;  %v5087_v52 = vrot.slane %v11943_v43, %v14593_v48  ;;  %v9886_v47 = vld [vmem:[%s10280_s8 + $0x180] ss:$8 sps:$4 sm:$0xff]  }
 0x5cc   : > { %v5066_v9 = vadd.bf16 %v12512_v5, %v12424_v49  ;;  %v5148_v30 = vmul.bf16 %v12446_v19, %v4772_v46  ;;  %5251 = vmatprep.subr.bf16.mxu0 %v9879_v10 }
 0x5cd   : > { %v5067_v21 = vadd.bf16 %v12515_v13, %v12430_v40  ;;  %v5149_v14 = vmul.bf16 %v12451_v32, %v4773_v18  ;;  %v4559_v55 = vpop.f32.mrb[52].mxu1  ;;  %v9899_v13 = vld [vmem:[%s10280_s8 + $0x1f4] ss:$8 sps:$4 sm:$0xff]  }
 0x5ce   : > { %v4561_v25 = vpop.f32.mrb[53].mxu1  ;;  %v5164_v62 = vadd.bf16 %v5148_v30, %v12436_v24 }
 0x5cf   : > { %v4563_v26 = vpop.f32.mrb[54].mxu1  ;;  %v5165_v35 = vadd.bf16 %v5149_v14, %v12441_v3  ;;  %5252 = vmatpush1.bf16.msra.mxu0 %v9880_v0  ;;  %v9888_v14 = vld [vmem:[%s10280_s8 + $0x190] ss:$8 sps:$4 sm:$0xff]  }
 0x5d0   : > { %v4742_v34 = vpack.c.bf16 %v4563_v26, %v4559_v55  ;;  %v4565_v19 = vpop.f32.mrb[55].mxu1  ;;  %5253 = vmatprep.subr.bf16.mxu0 %v9881_v8  ;;  %v9890_v26 = vld [vmem:[%s10280_s8 + $0x1a0] ss:$8 sps:$4 sm:$0xff]  }
 0x5d1   : > { %v4743_v54 = vpack.c.bf16 %v4565_v19, %v4561_v25  ;;  %5230 = vmatprep.mubr.bf16.mxu0 %v5165_v35  ;;  %v9892_v19 = vld [vmem:[%s10280_s8 + $0x1b0] ss:$8 sps:$4 sm:$0xff]  }
 0x5d2   : > { %v12530_v32 = vmul.bf16 %v12469_v60, %v4742_v34  ;;  %5231 = vmatmul.mubr.bf16.gmra.mrb[212].mxu0 %v5164_v62 }
 0x5d3   : > { %v12533_v24 = vmul.bf16 %v12473_v15, %v4743_v54  ;;  %5254 = vmatpush1.bf16.msra.mxu0 %v9882_v33  ;;  %v5083_v15 = vrot.slane %v11938_v38, %v14593_v48  ;;  %v9887_v38 = vld [vmem:[%s10280_s8 + $0x194] ss:$8 sps:$4 sm:$0xff]  }
 0x5d4   : > { %v5070_v3 = vadd.bf16 %v12530_v32, %v12456_v12  ;;  %5255 = vmatprep.subr.bf16.mxu0 %v9883_v39  ;;  %v9894_v39 = vld [vmem:[%s10280_s8 + $0x1c0] ss:$8 sps:$4 sm:$0xff]   ;;  %v5135_v12 = vrot.slane %v12047_v11, %v14593_v48 }
 0x5d5   : > { %v5071_v20 = vadd.bf16 %v12533_v24, %v12462_v53  ;;  %v4569_v2 = vpop.f32.mrb[56].mxu1 }
 0x5d6   : > { %v4571_v37 = vpop.f32.mrb[57].mxu1 }
 0x5d7   : > { %v4573_v60 = vpop.f32.mrb[58].mxu1  ;;  %5256 = vmatpush1.bf16.msra.mxu0 %v9884_v22  ;;  %v9896_v22 = vld [vmem:[%s10280_s8 + $0x1d0] ss:$8 sps:$4 sm:$0xff]  }
 0x5d8   : > { %v4746_v1 = vpack.c.bf16 %v4573_v60, %v4569_v2  ;;  %v4575_v51 = vpop.f32.mrb[59].mxu1  ;;  %5257 = vmatprep.subr.bf16.mxu0 %v9885_v28  ;;  %v9897_v28 = vld [vmem:[%s10280_s8 + $0x1e4] ss:$8 sps:$4 sm:$0xff]  }
 0x5d9   : > { %v4747_v16 = vpack.c.bf16 %v4575_v51, %v4571_v37 }
 0x5da   : > { %v5090_v44 = vmul.bf16 %v5083_v15, %v4746_v1 }
 0x5db   : > { %v5091_v46 = vmul.bf16 %v5087_v52, %v4747_v16  ;;  %5258 = vmatpush1.bf16.msra.mxu0 %v9886_v47  ;;  %v9898_v16 = vld [vmem:[%s10280_s8 + $0x1e0] ss:$8 sps:$4 sm:$0xff]  }
 0x5dc   : > { %v12551_v18 = vadd.bf16 %v5090_v44, %v5058_v59  ;;  %5259 = vmatprep.subr.bf16.mxu0 %v9887_v38  ;;  %v9900_v38 = vld [vmem:[%s10280_s8 + $0x1f0] ss:$8 sps:$4 sm:$0xff]  }
 0x5dd   : > { %v12557_v56 = vadd.bf16 %v5091_v46, %v5059_v58  ;;  %v4579_v43 = vpop.f32.mrb[60].mxu1 }
 0x5de   : > { %v4581_v30 = vpop.f32.mrb[61].mxu1 }
 0x5df   : > { %v4583_v10 = vpop.f32.mrb[62].mxu1  ;;  %5260 = vmatpush1.bf16.msra.mxu0 %v9888_v14 }
 0x5e0   : > { %v4750_v55 = vpack.c.bf16 %v4583_v10, %v4579_v43  ;;  %v4585_v25 = vpop.f32.mrb[63].mxu1  ;;  %5261 = vmatprep.subr.bf16.mxu0 %v9889_v41 }
 0x5e1   : > { %v4751_v36 = vpack.c.bf16 %v4585_v25, %v4581_v30 }
 0x5e2   : > { %v5094_v59 = vmul.bf16 %v5083_v15, %v4750_v55 }
 0x5e3   : > { %v5095_v62 = vmul.bf16 %v5087_v52, %v4751_v36  ;;  %5262 = vmatpush1.bf16.msra.mxu0 %v9890_v26 }
 0x5e4   : > { %v12565_v45 = vadd.bf16 %v5094_v59, %v5062_v29  ;;  %5263 = vmatprep.subr.bf16.mxu0 %v9891_v63 }
 0x5e5   : > { %v12571_v58 = vadd.bf16 %v5095_v62, %v5063_v31  ;;  %v4589_v35 = vpop.f32.mrb[64].mxu1 }
 0x5e6   : > { %v4591_v0 = vpop.f32.mrb[65].mxu1 }
 0x5e7   : > { %v4593_v34 = vpop.f32.mrb[66].mxu1  ;;  %5264 = vmatpush1.bf16.msra.mxu0 %v9892_v19 }
 0x5e8   : > { %v4754_v8 = vpack.c.bf16 %v4593_v34, %v4589_v35  ;;  %v4595_v54 = vpop.f32.mrb[67].mxu1  ;;  %5265 = vmatprep.subr.bf16.mxu0 %v9893_v23 }
 0x5e9   : > { %v4755_v6 = vpack.c.bf16 %v4595_v54, %v4591_v0 }
 0x5ea   : > { %v5098_v29 = vmul.bf16 %v5083_v15, %v4754_v8 }
 0x5eb   : > { %v5099_v33 = vmul.bf16 %v5087_v52, %v4755_v6  ;;  %5266 = vmatpush1.bf16.msra.mxu0 %v9894_v39 }
 0x5ec   : > { %v12579_v7 = vadd.bf16 %v5098_v29, %v5066_v9  ;;  %5267 = vmatprep.subr.bf16.mxu0 %v9895_v57 }
 0x5ed   : > { %v5115_v31 = vadd.bf16 %v5099_v33, %v5067_v21  ;;  %v4599_v2 = vpop.f32.mrb[68].mxu1 }
 0x5ee   : > { %v4601_v37 = vpop.f32.mrb[69].mxu1 }
 0x5ef   : > { %v4603_v60 = vpop.f32.mrb[70].mxu1  ;;  %5268 = vmatpush1.bf16.msra.mxu0 %v9896_v22 }
 0x5f0   : > { %v4758_v1 = vpack.c.bf16 %v4603_v60, %v4599_v2  ;;  %v4605_v51 = vpop.f32.mrb[71].mxu1  ;;  %5269 = vmatprep.subr.bf16.mxu0 %v9897_v28 }
 0x5f1   : > { %v4759_v49 = vpack.c.bf16 %v4605_v51, %v4601_v37 }
 0x5f2   : > { %v5102_v5 = vmul.bf16 %v5083_v15, %v4758_v1  ;;  %v5131_v15 = vrot.slane %v12042_v42, %v14593_v48  ;;  %v14606_v1 = vld [vmem:[#allocation12_spill] sm:$0xff] }
 0x5f3   : > { %v5103_v9 = vmul.bf16 %v5087_v52, %v4759_v49  ;;  %5270 = vmatpush1.bf16.msra.mxu0 %v9898_v16 }
 0x5f4   : > { %v5118_v40 = vadd.bf16 %v5102_v5, %v5070_v3  ;;  %5271 = vmatprep.subr.bf16.mxu0 %v9899_v13  ;;  %v14607_v5 = vld [vmem:[#allocation13_spill] sm:$0xff] }
 0x5f5   : > { %v5119_v21 = vadd.bf16 %v5103_v9, %v5071_v20  ;;  %v4609_v44 = vpop.f32.mrb[72].mxu1 }
 0x5f6   : > { %v4611_v46 = vpop.f32.mrb[73].mxu1 }
 0x5f7   : > { %v4613_v47 = vpop.f32.mrb[74].mxu1  ;;  %5272 = vmatpush1.bf16.msra.mxu0 %v9900_v38 }
 0x5f8   : > { %v4762_v43 = vpack.c.bf16 %v4613_v47, %v4609_v44  ;;  %v4615_v52 = vpop.f32.mrb[75].mxu1  ;;  %v14610_v47 = vld [vmem:[#allocation31_spill] sm:$0xff] }
 0x5f9   : > { %v4763_v30 = vpack.c.bf16 %v4615_v52, %v4611_v46 }
 0x5fa   : > { %v5138_v32 = vmul.bf16 %v5131_v15, %v4762_v43 }
 0x5fb   : > { %v5139_v3 = vmul.bf16 %v5135_v12, %v4763_v30 }
 0x5fc   : > { %v5154_v10 = vadd.bf16 %v5138_v32, %v12551_v18 }
 0x5fd   : > { %v4619_v53 = vpop.f32.mrb[76].mxu1  ;;  %v5155_v24 = vadd.bf16 %v5139_v3, %v12557_v56 }
 0x5fe   : > { %v4621_v20 = vpop.f32.mrb[77].mxu1 }
 0x5ff   : > { %v4623_v14 = vpop.f32.mrb[78].mxu1  ;;  %5273 = vmatprep.mubr.bf16.mxu0 %v5155_v24 }
 0x600   : > { %v4766_v55 = vpack.c.bf16 %v4623_v14, %v4619_v53  ;;  %v4625_v25 = vpop.f32.mrb[79].mxu1  ;;  %5274 = vmatmul.mubr.bf16.vlgmr.msra.gmra.mrb[200].mxu0 %v5154_v10 }
 0x601   : > { %v4767_v41 = vpack.c.bf16 %v4625_v25, %v4621_v20 }
 0x602   : > { %v5142_v42 = vmul.bf16 %v5131_v15, %v4766_v55 }
 0x603   : > { %v5143_v36 = vmul.bf16 %v5135_v12, %v4767_v41 }
 0x604   : > { %v5158_v59 = vadd.bf16 %v5142_v42, %v12565_v45  ;;  %v14612_v42 = vld [vmem:[#allocation32_spill] sm:$0xff] }
 0x605   : > { %v4629_v62 = vpop.f32.mrb[80].mxu1  ;;  %v5159_v11 = vadd.bf16 %v5143_v36, %v12571_v58 }
 0x606   : > { %v4631_v26 = vpop.f32.mrb[81].mxu1 }
 0x607   : > { %v4633_v63 = vpop.f32.mrb[82].mxu1  ;;  %5283 = vmatprep.mubr.bf16.mxu0 %v5159_v11 }
 0x608   : > { %v4770_v18 = vpack.c.bf16 %v4633_v63, %v4629_v62  ;;  %v4635_v35 = vpop.f32.mrb[83].mxu1  ;;  %5284 = vmatmul.mubr.bf16.gmra.mrb[204].mxu0 %v5158_v59 }
 0x609   : > { %v4771_v56 = vpack.c.bf16 %v4635_v35, %v4631_v26  ;;  %v14613_v26 = vld [vmem:[#allocation15_spill] sm:$0xff]  ;;  %v14614_v35 = vld [vmem:[#allocation16_spill] sm:$0xff] }
 0x60a   : > { %v5146_v0 = vmul.bf16 %v5131_v15, %v4770_v18 }
 0x60b   : > { %v5147_v34 = vmul.bf16 %v5135_v12, %v4771_v56 }
 0x60c   : > { %v5162_v19 = vadd.bf16 %v5146_v0, %v12579_v7  ;;  %v14615_v0 = vld [vmem:[#allocation18_spill] sm:$0xff] }
 0x60d   : > { %v4639_v8 = vpop.f32.mrb[84].mxu1  ;;  %v5163_v54 = vadd.bf16 %v5147_v34, %v5115_v31 }
 0x60e   : > { %v4641_v23 = vpop.f32.mrb[85].mxu1 }
 0x60f   : > { %v4643_v6 = vpop.f32.mrb[86].mxu1  ;;  %5293 = vmatprep.mubr.bf16.mxu0 %v5163_v54 }
 0x610   : > { %v4774_v45 = vpack.c.bf16 %v4643_v6, %v4639_v8  ;;  %v4645_v29 = vpop.f32.mrb[87].mxu1  ;;  %5294 = vmatmul.mubr.bf16.gmra.mrb[208].mxu0 %v5162_v19  ;;  %v14616_v8 = vld [vmem:[#allocation19_spill] sm:$0xff]  ;;  %v14617_v6 = vld [vmem:[#allocation22_spill] sm:$0xff] }
 0x611   : > { %v4775_v58 = vpack.c.bf16 %v4645_v29, %v4641_v23 }
 0x612   : > { %v5150_v33 = vmul.bf16 %v5131_v15, %v4774_v45  ;;  %v14611_v15 = vld [vmem:[#allocation17_spill] sm:$0xff] }
 0x613   : > { %v5151_v39 = vmul.bf16 %v5135_v12, %v4775_v58 }
 0x614   : > { %v5166_v57 = vadd.bf16 %v5150_v33, %v5118_v40  ;;  %v14608_v40 = vld [vmem:[#allocation14_spill] sm:$0xff] }
 0x615   : > { %v5167_v2 = vadd.bf16 %v5151_v39, %v5119_v21  ;;  %v14609_v21 = vld [vmem:[#allocation30_spill] sm:$0xff] }
 0x617   : > { %5303 = vmatprep.mubr.bf16.mxu0 %v5167_v2 }
 0x618   : > { %5304 = vmatmul.mubr.bf16.gmra.mrb[212].mxu0 %v5166_v57 }
 0x619   : > { %5967 = vmatprep.mubr.bf16.mxu0 %v14536_v27 }
 0x6d3   : > { %v5275_v37 = vpop.f32.mrb[200].mxu0 }
 0x6d4   : > { %v5314_v7 = vmul.f32 %v5275_v37, %v11238_v50  ;;  %v5277_v60 = vpop.f32.mrb[201].mxu0 }
 0x6d5   : > { %v5315_v31 = vmul.f32 %v5277_v60, %v11241_v17  ;;  %v5279_v22 = vpop.f32.mrb[202].mxu0 }
 0x6d6   : > { %v5330_v51 = vadd.f32 %v5314_v7, %v14606_v1  ;;  %v5316_v28 = vmul.f32 %v5279_v22, %v11238_v50  ;;  %v5281_v49 = vpop.f32.mrb[203].mxu0 }
 0x6d7   : > { %v5331_v9 = vadd.f32 %v5315_v31, %v14607_v5  ;;  %v5317_v16 = vmul.f32 %v5281_v49, %v11241_v17 }
 0x6d8   : > { %v12613_v13 = vadd.f32 %v14608_v40, %v5330_v51  ;;  %v5332_v44 = vadd.f32 %v5316_v28, %v14609_v21  ;;  %v14618_v51 = vld [vmem:[#allocation20_spill] sm:$0xff] }
 0x6d9   : > { %v12617_v46 = vadd.f32 %v14608_v40, %v5331_v9  ;;  %v5333_v38 = vadd.f32 %v5317_v16, %v14610_v47  ;;  %v14619_v16 = vld [vmem:[#allocation33_spill] sm:$0xff] }
 0x6da   : > { %v5426_v43 = vmin.f32 %v12613_v13, 0.0  ;;  %v12622_v52 = vadd.f32 %v14611_v15, %v5332_v44  ;;  %vm5410_vm9 = vcmp.gt.f32.partialorder %v12613_v13, 0.0  ;;  %v14620_v47 = vld [vmem:[#allocation21_spill] sm:$0xff] }
 0x6db   : > { %v5427_v30 = vmin.f32 %v12617_v46, 0.0  ;;  %v12626_v12 = vadd.f32 %v14611_v15, %v5333_v38  ;;  %v5285_v32 = vpop.f32.mrb[204].mxu0  ;;  %vm5411_vm10 = vcmp.gt.f32.partialorder %v12617_v46, 0.0 }
 0x6dc   : > { %v5442_v3 = vmul.f32 1.442695, %v5426_v43  ;;  %v5428_v10 = vmin.f32 %v12622_v52, 0.0  ;;  %v5318_v53 = vmul.f32 %v5285_v32, %v11238_v50  ;;  %v5287_v24 = vpop.f32.mrb[205].mxu0  ;;  %v14621_v43 = vld [vmem:[#allocation34_spill] sm:$0xff]  ;;  %vm5412_vm12 = vcmp.gt.f32.partialorder %v12622_v52, 0.0 }
 0x6dd   : > { %v5444_v20 = vmul.f32 1.442695, %v5427_v30  ;;  %v5429_v14 = vmin.f32 %v12626_v12, 0.0  ;;  %v5319_v55 = vmul.f32 %v5287_v24, %v11241_v17  ;;  %v5289_v25 = vpop.f32.mrb[206].mxu0  ;;  %vm5413_vm11 = vcmp.gt.f32.partialorder %v12626_v12, 0.0 }
 0x6de   : > { %9662 = vpow2.f32 %v5442_v3  ;;  %v5446_v41 = vmul.f32 1.442695, %v5428_v10  ;;  %v5334_v36 = vadd.f32 %v5318_v53, %v14612_v42  ;;  %v5320_v59 = vmul.f32 %v5289_v25, %v11238_v50  ;;  %v5291_v62 = vpop.f32.mrb[207].mxu0  ;;  %v14622_v3 = vld [vmem:[#allocation35_spill] sm:$0xff] }
 0x6df   : > { %v5448_v11 = vmul.f32 1.442695, %v5429_v14  ;;  %v5335_v63 = vadd.f32 %v5319_v55, %v14613_v26  ;;  %v5321_v18 = vmul.f32 %v5291_v62, %v11241_v17  ;;  %9664 = vpow2.f32 %v5444_v20  ;;  %v14623_v14 = vld [vmem:[#allocation24_spill] sm:$0xff] }
 0x6e0   : > { %9666 = vpow2.f32 %v5446_v41  ;;  %v12637_v56 = vadd.f32 %v14614_v35, %v5334_v36  ;;  %v5336_v34 = vadd.f32 %v5320_v59, %v14615_v0 }
 0x6e1   : > { %v12641_v19 = vadd.f32 %v14614_v35, %v5335_v63  ;;  %v5337_v54 = vadd.f32 %v5321_v18, %v14616_v8  ;;  %9668 = vpow2.f32 %v5448_v11 }
 0x6e2   : > { %v5430_v23 = vmin.f32 %v12637_v56, 0.0  ;;  %v12646_v45 = vadd.f32 %v14617_v6, %v5336_v34  ;;  %vm5414_vm13 = vcmp.gt.f32.partialorder %v12637_v56, 0.0 }
 0x6e3   : > { %v5431_v29 = vmin.f32 %v12641_v19, 0.0  ;;  %v12650_v58 = vadd.f32 %v14617_v6, %v5337_v54  ;;  %v5295_v33 = vpop.f32.mrb[208].mxu0  ;;  %vm5415_vm14 = vcmp.gt.f32.partialorder %v12641_v19, 0.0 }
 0x6e4   : > { %v5450_v39 = vmul.f32 1.442695, %v5430_v23  ;;  %v5432_v57 = vmin.f32 %v12646_v45, 0.0  ;;  %v5322_v2 = vmul.f32 %v5295_v33, %v11238_v50  ;;  %v5297_v37 = vpop.f32.mrb[209].mxu0  ;;  %vm5416_vm15 = vcmp.gt.f32.partialorder %v12646_v45, 0.0 }
 0x6e5   : > { %v5452_v7 = vmul.f32 1.442695, %v5431_v29  ;;  %v5433_v60 = vmin.f32 %v12650_v58, 0.0  ;;  %v5323_v31 = vmul.f32 %v5297_v37, %v11241_v17  ;;  %v5299_v22 = vpop.f32.mrb[210].mxu0  ;;  %vm5417_vm0 = vcmp.gt.f32.partialorder %v12650_v58, 0.0  ;;  %v14624_v29 = vld [vmem:[#allocation36_spill] sm:$0xff] }
 0x6e6   : > { %9670 = vpow2.f32 %v5450_v39  ;;  %v5454_v1 = vmul.f32 1.442695, %v5432_v57  ;;  %v5338_v28 = vadd.f32 %v5322_v2, %v14618_v51  ;;  %v5324_v49 = vmul.f32 %v5299_v22, %v11238_v50  ;;  %v5301_v5 = vpop.f32.mrb[211].mxu0  ;;  %v14625_v2 = vld [vmem:[#allocation37_spill] sm:$0xff]  ;;  %v14626_v22 = vld [vmem:[#allocation23_spill] sm:$0xff]  ;;  %v14627_v51 = vld [vmem:[#allocation38_spill] sm:$0xff] }
 0x6e7   : > { %v5456_v9 = vmul.f32 1.442695, %v5433_v60  ;;  %v5339_v40 = vadd.f32 %v5323_v31, %v14619_v16  ;;  %v5325_v21 = vmul.f32 %v5301_v5, %v11241_v17  ;;  %9672 = vpow2.f32 %v5452_v7  ;;  %v14628_v16 = vld [vmem:[#allocation39_spill] sm:$0xff] }
 0x6e8   : > { %v9663_v44 = vpop.eup %9662  ;;  %9674 = vpow2.f32 %v5454_v1  ;;  %v12662_v38 = vadd.f32 %v14620_v47, %v5338_v28  ;;  %v5340_v15 = vadd.f32 %v5324_v49, %v14621_v43 }
 0x6e9   : > { %v9665_v30 = vpop.eup %9664  ;;  %v12667_v32 = vadd.f32 %v14620_v47, %v5339_v40  ;;  %v5341_v10 = vadd.f32 %v5325_v21, %v14622_v3  ;;  %v8966_v53 = vadd.f32 -1.0, %v9663_v44  ;;  %9676 = vpow2.f32 %v5456_v9  ;;  %v14629_v47 = vld [vmem:[#allocation25_spill] sm:$0xff] }
 0x6ea   : > { %v9667_v24 = vpop.eup %9666  ;;  %v5434_v20 = vmin.f32 %v12662_v38, 0.0  ;;  %v12672_v55 = vadd.f32 %v14623_v14, %v5340_v15  ;;  %v8967_v59 = vadd.f32 -1.0, %v9665_v30  ;;  %vm5418_vm1 = vcmp.gt.f32.partialorder %v12662_v38, 0.0 }
 0x6eb   : > { %v9669_v25 = vpop.eup %9668  ;;  %v5435_v41 = vmin.f32 %v12667_v32, 0.0  ;;  %v12678_v42 = vadd.f32 %v14623_v14, %v5341_v10  ;;  %v5305_v36 = vpop.f32.mrb[212].mxu0  ;;  %v8968_v62 = vadd.f32 -1.0, %v9667_v24  ;;  %v5490_v23 = vsel %vm5410_vm9, %v12613_v13, %v8966_v53 }
 0x6ec   : > { %v5458_v11 = vmul.f32 1.442695, %v5434_v20  ;;  %v5436_v26 = vmin.f32 %v12672_v55, 0.0  ;;  %v5326_v63 = vmul.f32 %v5305_v36, %v11238_v50  ;;  %v5307_v18 = vpop.f32.mrb[213].mxu0  ;;  %v8969_v35 = vadd.f32 -1.0, %v9669_v25 }
 0x6ed   : > { %v5460_v0 = vmul.f32 1.442695, %v5435_v41  ;;  %v5437_v34 = vmin.f32 %v12678_v42, 0.0  ;;  %v5327_v8 = vmul.f32 %v5307_v18, %v11241_v17  ;;  %v5309_v54 = vpop.f32.mrb[214].mxu0  ;;  %v5491_v60 = vsel %vm5411_vm10, %v12617_v46, %v8967_v59 }
 0x6ee   : > { %9678 = vpow2.f32 %v5458_v11  ;;  %v5462_v6 = vmul.f32 1.442695, %v5436_v26  ;;  %v5342_v33 = vadd.f32 %v5326_v63, %v14624_v29  ;;  %v5328_v39 = vmul.f32 %v5309_v54, %v11238_v50  ;;  %v5311_v57 = vpop.f32.mrb[215].mxu0 }
 0x6ef   : > { %v5343_v37 = vadd.f32 %v5327_v8, %v14625_v2  ;;  %v5329_v7 = vmul.f32 %v5311_v57, %v11241_v17  ;;  %v5493_v13 = vsel %vm5413_vm11, %v12626_v12, %v8969_v35  ;;  %v5492_v46 = vsel %vm5412_vm12, %v12622_v52, %v8968_v62 }
 0x6f0   : > { %v9671_v31 = vpop.eup %9670  ;;  %9680 = vpow2.f32 %v5462_v6  ;;  %v12702_v1 = vadd.f32 %v14626_v22, %v5342_v33  ;;  %v5344_v28 = vadd.f32 %v5328_v39, %v14627_v51  ;;  %v5507_v49 = vpack.c.bf16 %v5493_v13, %v5491_v60 }
 0x6f1   : > { %v9673_v5 = vpop.eup %9672  ;;  %v12706_v9 = vadd.f32 %v14626_v22, %v5343_v37  ;;  %v5345_v40 = vadd.f32 %v5329_v7, %v14628_v16  ;;  %v8970_v21 = vadd.f32 -1.0, %v9671_v31  ;;  %v5506_v15 = vpack.c.bf16 %v5492_v46, %v5490_v23  ;;  %v9570_v46 = vld [vmem:[%s14452_s16 + $0x8] sm:$0xff]  }
 0x6f2   : > { %v9675_v12 = vpop.eup %9674  ;;  %v5438_v44 = vmin.f32 %v12702_v1, 0.0  ;;  %v5408_v43 = vadd.f32 %v14629_v47, %v5344_v28  ;;  %5935 = vmatprep.subr.bf16.mxu0 %v5507_v49  ;;  %v8971_v30 = vadd.f32 -1.0, %v9673_v5  ;;  %v5464_v10 = vmul.f32 1.442695, %v5437_v34 }
 0x6f3   : > { %v9677_v3 = vpop.eup %9676  ;;  %v5439_v53 = vmin.f32 %v12706_v9, 0.0  ;;  %v5409_v24 = vadd.f32 %v14629_v47, %v5345_v40  ;;  %v8972_v20 = vadd.f32 -1.0, %v9675_v12  ;;  %5936 = vmatpush1.bf16.msra.mxu0 %v5506_v15  ;;  %v5494_v41 = vsel %vm5414_vm13, %v12637_v56, %v8970_v21  ;;  %v9903_v40 = vld [vmem:[%s10314_s24 + $0x2c] ss:$16 sps:$4 sm:$0xff]   ;;  %v9904_v21 = vld [vmem:[%s10314_s24 + $0x28] ss:$16 sps:$4 sm:$0xff]  }
 0x6f4   : > { %v5466_v14 = vmul.f32 1.442695, %v5438_v44  ;;  %v5440_v25 = vmin.f32 %v5408_v43, 0.0  ;;  %v8973_v52 = vadd.f32 -1.0, %v9677_v3  ;;  %v5495_v62 = vsel %vm5415_vm14, %v12641_v19, %v8971_v30  ;;  %v9905_v12 = vld [vmem:[%s10314_s24 + $0x4c] ss:$16 sps:$4 sm:$0xff]  }
 0x6f5   : > { %v5468_v36 = vmul.f32 1.442695, %v5439_v53  ;;  %v5441_v59 = vmin.f32 %v5409_v24, 0.0  ;;  %v5496_v11 = vsel %vm5416_vm15, %v12646_v45, %v8972_v20  ;;  %vm5420_vm2 = vcmp.gt.f32.partialorder %v12672_v55, 0.0  ;;  %v9906_v44 = vld [vmem:[%s10314_s24 + $0x48] ss:$16 sps:$4 sm:$0xff]  }
 0x6f6   : > { %9682 = vpow2.f32 %v5466_v14  ;;  %v5470_v26 = vmul.f32 1.442695, %v5440_v25  ;;  %v5497_v63 = vsel %vm5417_vm0, %v12650_v58, %v8973_v52  ;;  %v5508_v18 = vpack.c.bf16 %v5496_v11, %v5494_v41  ;;  %v9907_v47 = vld [vmem:[%s10314_s24 + $0x6c] ss:$16 sps:$4 sm:$0xff]   ;;  %v9908_v15 = vld [vmem:[%s10314_s24 + $0x68] ss:$16 sps:$4 sm:$0xff]  }
 0x6f7   : > { %v5472_v35 = vmul.f32 1.442695, %v5441_v59  ;;  %v5509_v34 = vpack.c.bf16 %v5497_v63, %v5495_v62  ;;  %9684 = vpow2.f32 %v5460_v0  ;;  %vm5419_vm3 = vcmp.gt.f32.partialorder %v12667_v32, 0.0  ;;  %v9909_v30 = vld [vmem:[%s10314_s24 + $0x8c] ss:$16 sps:$4 sm:$0xff]   ;;  %v9573_v52 = vld [vmem:[%s14452_s16 + $0x20] sm:$0xff]  }
 0x6f8   : > { %v9679_v56 = vpop.eup %9678  ;;  %9686 = vpow2.f32 %v5470_v26  ;;  %vm5422_vm4 = vcmp.gt.f32.partialorder %v12702_v1, 0.0  ;;  %vm5424_vm5 = vcmp.gt.f32.partialorder %v5408_v43, 0.0  ;;  %vm5421_vm6 = vcmp.gt.f32.partialorder %v12678_v42, 0.0  ;;  %v9910_v3 = vld [vmem:[%s10314_s24 + $0x88] ss:$16 sps:$4 sm:$0xff]  }
 0x6f9   : > { %5937 = vmatprep.subr.bf16.mxu0 %v5509_v34  ;;  %9688 = vpow2.f32 %v5464_v10  ;;  %v8974_v8 = vadd.f32 -1.0, %v9679_v56  ;;  %vm5423_vm7 = vcmp.gt.f32.partialorder %v12706_v9, 0.0  ;;  %vm5425_vm8 = vcmp.gt.f32.partialorder %v5409_v24, 0.0  ;;  %v9911_v10 = vld [vmem:[%s10314_s24 + $0xac] ss:$16 sps:$4 sm:$0xff]   ;;  %v9575_v34 = vld [vmem:[%s14452_s16 + $0x30] sm:$0xff]  }
 0x6fa   : > { %v9681_v19 = vpop.eup %9680  ;;  %5938 = vmatpush1.bf16.msra.mxu0 %v5508_v18  ;;  %9690 = vpow2.f32 %v5468_v36  ;;  %vm5826_vm9 = vcmask 523264   ;;  %v9572_v53 = vld [vmem:[%s14452_s16 + $0x18] sm:$0xff]   ;;  %v9574_v11 = vld [vmem:[%s14452_s16 + $0x28] sm:$0xff]  }
 0x6fb   : > { %v8976_v54 = vadd.f32 -1.0, %v9681_v19  ;;  %9692 = vpow2.f32 %v5472_v35  ;;  %v5498_v45 = vsel %vm5418_vm1, %v12662_v38, %v8974_v8  ;;  %v9913_v20 = vld [vmem:[%s10314_s24 + $0xcc] ss:$16 sps:$4 sm:$0xff]   ;;  %v9914_v14 = vld [vmem:[%s10314_s24 + $0xc8] ss:$16 sps:$4 sm:$0xff]  }
 0x6fc   : > { %v9915_v25 = vld [vmem:[%s10314_s24 + $0xec] ss:$16 sps:$4 sm:$0xff]   ;;  %v9916_v41 = vld [vmem:[%s10314_s24 + $0xe8] ss:$16 sps:$4 sm:$0xff]  }
 0x6fd   : > { %v5500_v58 = vsel %vm5420_vm2, %v12672_v55, %v8976_v54  ;;  %v9917_v36 = vld [vmem:[%s10314_s24 + $0x10c] ss:$16 sps:$4 sm:$0xff]   ;;  %v9918_v59 = vld [vmem:[%s10314_s24 + $0x108] ss:$16 sps:$4 sm:$0xff]  }
 0x6fe   : > { %v5510_v23 = vpack.c.bf16 %v5500_v58, %v5498_v45  ;;  %v9919_v62 = vld [vmem:[%s10314_s24 + $0x12c] ss:$16 sps:$4 sm:$0xff]   ;;  %v9920_v26 = vld [vmem:[%s10314_s24 + $0x128] ss:$16 sps:$4 sm:$0xff]  }
 0x6ff   : > { %v9921_v63 = vld [vmem:[%s10314_s24 + $0x14c] ss:$16 sps:$4 sm:$0xff]   ;;  %v9922_v18 = vld [vmem:[%s10314_s24 + $0x148] ss:$16 sps:$4 sm:$0xff]  }
 0x700   : > { %v9683_v0 = vpop.eup %9682  ;;  %v9923_v35 = vld [vmem:[%s10314_s24 + $0x16c] ss:$16 sps:$4 sm:$0xff]   ;;  %v9924_v56 = vld [vmem:[%s10314_s24 + $0x168] ss:$16 sps:$4 sm:$0xff]  }
 0x701   : > { %v9685_v6 = vpop.eup %9684  ;;  %v8978_v29 = vadd.f32 -1.0, %v9683_v0  ;;  %v9925_v8 = vld [vmem:[%s10314_s24 + $0x18c] ss:$16 sps:$4 sm:$0xff]   ;;  %v9926_v19 = vld [vmem:[%s10314_s24 + $0x188] ss:$16 sps:$4 sm:$0xff]  }
 0x702   : > { %v9687_v33 = vpop.eup %9686  ;;  %v8975_v39 = vadd.f32 -1.0, %v9685_v6  ;;  %v9927_v54 = vld [vmem:[%s10314_s24 + $0x1ac] ss:$16 sps:$4 sm:$0xff]   ;;  %v9928_v58 = vld [vmem:[%s10314_s24 + $0x1a8] ss:$16 sps:$4 sm:$0xff]  }
 0x703   : > { %v9689_v57 = vpop.eup %9688  ;;  %v8980_v2 = vadd.f32 -1.0, %v9687_v33  ;;  %v5502_v55 = vsel %vm5422_vm4, %v12702_v1, %v8978_v29  ;;  %v9576_v45 = vld [vmem:[%s14452_s16 + $0x38] sm:$0xff]   ;;  %v9577_v29 = vld [vmem:[%s14452_s16 + $0x40] sm:$0xff]  }
 0x704   : > { %v9691_v37 = vpop.eup %9690  ;;  %v8977_v7 = vadd.f32 -1.0, %v9689_v57  ;;  %v5499_v31 = vsel %vm5419_vm3, %v12667_v32, %v8975_v39  ;;  %v9569_v32 = vld [vmem:[%s14452_s16] sm:$0xff]   ;;  %v9930_v0 = vld [vmem:[%s10314_s24 + $0x1c8] ss:$16 sps:$4 sm:$0xff]   ;;  %v9931_v6 = vld [vmem:[%s10314_s24 + $0x1ec] ss:$16 sps:$4 sm:$0xff]  }
 0x705   : > { %v9693_v60 = vpop.eup %9692  ;;  %v8979_v38 = vadd.f32 -1.0, %v9691_v37  ;;  %v5504_v13 = vsel %vm5424_vm5, %v5408_v43, %v8980_v2  ;;  %v9571_v43 = vld [vmem:[%s14452_s16 + $0x10] sm:$0xff]   ;;  %v9932_v33 = vld [vmem:[%s10314_s24 + $0x1e8] ss:$16 sps:$4 sm:$0xff]   ;;  %v9581_v37 = vld [vmem:[%s14452_s16 + $0x60] sm:$0xff]  }
 0x706   : > { %v5501_v22 = vsel %vm5421_vm6, %v12678_v42, %v8977_v7  ;;  %v8981_v51 = vadd.f32 -1.0, %v9693_v60  ;;  %v5512_v28 = vpack.c.bf16 %v5504_v13, %v5502_v55  ;;  %v9901_v42 = vld [vmem:[%s10314_s24 + $0xc] ss:$16 sps:$4 sm:$0xff]   ;;  %v9579_v57 = vld [vmem:[%s14452_s16 + $0x50] sm:$0xff]   ;;  %v9585_v55 = vld [vmem:[%s14452_s16 + $0x80] sm:$0xff]  }
 0x707   : > { %v5511_v49 = vpack.c.bf16 %v5501_v22, %v5499_v31  ;;  %v5503_v5 = vsel %vm5423_vm7, %v12706_v9, %v8979_v38  ;;  %v9902_v9 = vld [vmem:[%s10314_s24 + $0x8] ss:$16 sps:$4 sm:$0xff]   ;;  %v9583_v60 = vld [vmem:[%s14452_s16 + $0x70] sm:$0xff]  }
 0x708   : > { %v5505_v16 = vsel %vm5425_vm8, %v5409_v24, %v8981_v51  ;;  %v9912_v24 = vld [vmem:[%s10314_s24 + $0xa8] ss:$16 sps:$4 sm:$0xff]   ;;  %v9587_v31 = vld [vmem:[%s14452_s16 + $0x90] sm:$0xff]   ;;  %v9589_v51 = vld [vmem:[%s14452_s16 + $0xa0] sm:$0xff]  }
 0x709   : > { %5939 = vmatprep.subr.bf16.mxu0 %v5511_v49  ;;  %v5513_v1 = vpack.c.bf16 %v5505_v16, %v5503_v5  ;;  %v9578_v39 = vld [vmem:[%s14452_s16 + $0x48] sm:$0xff]   ;;  %v9580_v2 = vld [vmem:[%s14452_s16 + $0x58] sm:$0xff]   ;;  %v9591_v49 = vld [vmem:[%s14452_s16 + $0xb0] sm:$0xff]  }
 0x70a   : > { %5940 = vmatpush1.bf16.msra.mxu0 %v5510_v23  ;;  %v9929_v23 = vld [vmem:[%s10314_s24 + $0x1cc] ss:$16 sps:$4 sm:$0xff]   ;;  %v9593_v16 = vld [vmem:[%s14452_s16 + $0xc0] sm:$0xff]  }
 0x70b   : > { %5941 = vmatprep.subr.bf16.mxu0 %v5513_v1  ;;  %v9582_v7 = vld [vmem:[%s14452_s16 + $0x68] sm:$0xff]   ;;  %v9584_v38 = vld [vmem:[%s14452_s16 + $0x78] sm:$0xff]  }
 0x70c   : > { %v9586_v13 = vld [vmem:[%s14452_s16 + $0x88] sm:$0xff]   ;;  %v9588_v22 = vld [vmem:[%s14452_s16 + $0x98] sm:$0xff]  }
 0x70d   : > { %v9592_v5 = vld [vmem:[%s14452_s16 + $0xb8] sm:$0xff]   ;;  %v9594_v1 = vld [vmem:[%s14452_s16 + $0xc8] sm:$0xff]  }
 0x70e   : > { %5942 = vmatpush1.bf16.msra.mxu0 %v5512_v28  ;;  %v9590_v28 = vld [vmem:[%s14452_s16 + $0xa8] sm:$0xff]  }
 0x70f   : > { %6745 = vmatprep.subr.bf16.mxu0 %v9901_v42 }
 0x711   : > { %9018 = vmatmul.mubr.msk.bf16.vlgmr.msra.gmra.mrb[216].mxu0 %vm5826_vm9, %v9569_v32  ;;  %v9595_v32 = vld [vmem:[%s14452_s16 + $0xd0] sm:$0xff]  }
 0x712   : > { %6746 = vmatpush1.bf16.msra.mxu0 %v9902_v9  ;;  %5977 = vmatprep.mubr.bf16.mxu0 %v14536_v27 }
 0x713   : > { %6747 = vmatprep.subr.bf16.mxu0 %v9903_v40  ;;  %v9596_v40 = vld [vmem:[%s14452_s16 + $0xd8] sm:$0xff]  }
 0x716   : > { %6748 = vmatpush1.bf16.msra.mxu0 %v9904_v21 }
 0x717   : > { %6749 = vmatprep.subr.bf16.mxu0 %v9905_v12 }
 0x719   : > { %9019 = vmatmul.mubr.msk.bf16.gmra.mrb[220].mxu0 %vm5826_vm9, %v9570_v46 }
 0x71a   : > { %5987 = vmatprep.mubr.bf16.mxu0 %v14536_v27  ;;  %6750 = vmatpush1.bf16.msra.mxu0 %v9906_v44 }
 0x71b   : > { %6751 = vmatprep.subr.bf16.mxu0 %v9907_v47 }
 0x71e   : > { %6752 = vmatpush1.bf16.msra.mxu0 %v9908_v15 }
 0x71f   : > { %6753 = vmatprep.subr.bf16.mxu0 %v9909_v30  ;;  %v9597_v30 = vld [vmem:[%s14452_s16 + $0xe0] sm:$0xff]  }
 0x721   : > { %9020 = vmatmul.mubr.msk.bf16.gmra.mrb[224].mxu0 %vm5826_vm9, %v9571_v43  ;;  %v9933_v43 = vld [vmem:[%s10280_s8] ss:$8 sps:$4 sm:$0xff]  }
 0x722   : > { %5997 = vmatprep.mubr.bf16.mxu0 %v14536_v27  ;;  %6754 = vmatpush1.bf16.msra.mxu0 %v9910_v3  ;;  %v9934_v3 = vld [vmem:[%s10280_s8 + $0x14] ss:$8 sps:$4 sm:$0xff]  }
 0x723   : > { %6755 = vmatprep.subr.bf16.mxu0 %v9911_v10 }
 0x726   : > { %6756 = vmatpush1.bf16.msra.mxu0 %v9912_v24 }
 0x727   : > { %6757 = vmatprep.subr.bf16.mxu0 %v9913_v20 }
 0x729   : > { %9021 = vmatmul.mubr.msk.bf16.gmra.mrb[228].mxu0 %vm5826_vm9, %v9572_v53 }
 0x72a   : > { %6007 = vmatprep.mubr.bf16.mxu0 %v14536_v27  ;;  %6758 = vmatpush1.bf16.msra.mxu0 %v9914_v14  ;;  %v9935_v14 = vld [vmem:[%s10280_s8 + $0x10] ss:$8 sps:$4 sm:$0xff]  }
 0x72b   : > { %6759 = vmatprep.subr.bf16.mxu0 %v9915_v25  ;;  %v9936_v25 = vld [vmem:[%s10280_s8 + $0x24] ss:$8 sps:$4 sm:$0xff]  }
 0x72e   : > { %6760 = vmatpush1.bf16.msra.mxu0 %v9916_v41  ;;  %v9937_v41 = vld [vmem:[%s10280_s8 + $0x20] ss:$8 sps:$4 sm:$0xff]  }
 0x72f   : > { %6761 = vmatprep.subr.bf16.mxu0 %v9917_v36 }
 0x731   : > { %9022 = vmatmul.mubr.msk.bf16.gmra.mrb[232].mxu0 %vm5826_vm9, %v9573_v52 }
 0x732   : > { %6017 = vmatprep.mubr.bf16.mxu0 %v14536_v27  ;;  %6762 = vmatpush1.bf16.msra.mxu0 %v9918_v59  ;;  %v9598_v59 = vld [vmem:[%s14452_s16 + $0xe8] sm:$0xff]  }
 0x733   : > { %6763 = vmatprep.subr.bf16.mxu0 %v9919_v62  ;;  %v9938_v62 = vld [vmem:[%s10280_s8 + $0x34] ss:$8 sps:$4 sm:$0xff]  }
 0x736   : > { %6764 = vmatpush1.bf16.msra.mxu0 %v9920_v26 }
 0x737   : > { %6765 = vmatprep.subr.bf16.mxu0 %v9921_v63 }
 0x739   : > { %9023 = vmatmul.mubr.msk.bf16.gmra.mrb[236].mxu0 %vm5826_vm9, %v9574_v11 }
 0x73a   : > { %6027 = vmatprep.mubr.bf16.mxu0 %v14536_v27  ;;  %6766 = vmatpush1.bf16.msra.mxu0 %v9922_v18 }
 0x73b   : > { %6767 = vmatprep.subr.bf16.mxu0 %v9923_v35  ;;  %v9939_v35 = vld [vmem:[%s10280_s8 + $0x30] ss:$8 sps:$4 sm:$0xff]  }
 0x73e   : > { %6768 = vmatpush1.bf16.msra.mxu0 %v9924_v56 }
 0x73f   : > { %6769 = vmatprep.subr.bf16.mxu0 %v9925_v8  ;;  %v9941_v8 = vld [vmem:[%s10280_s8 + $0x40] ss:$8 sps:$4 sm:$0xff]  }
 0x741   : > { %9024 = vmatmul.mubr.msk.bf16.gmra.mrb[240].mxu0 %vm5826_vm9, %v9575_v34  ;;  %v9940_v34 = vld [vmem:[%s10280_s8 + $0x44] ss:$8 sps:$4 sm:$0xff]  }
 0x742   : > { %6037 = vmatprep.mubr.bf16.mxu0 %v14536_v27  ;;  %6770 = vmatpush1.bf16.msra.mxu0 %v9926_v19 }
 0x743   : > { %6771 = vmatprep.subr.bf16.mxu0 %v9927_v54  ;;  %v9599_v54 = vld [vmem:[%s14452_s16 + $0xf0] sm:$0xff]  }
 0x746   : > { %6772 = vmatpush1.bf16.msra.mxu0 %v9928_v58 }
 0x747   : > { %6773 = vmatprep.subr.bf16.mxu0 %v9929_v23 }
 0x749   : > { %9025 = vmatmul.mubr.msk.bf16.gmra.mrb[244].mxu0 %vm5826_vm9, %v9576_v45  ;;  %v9942_v45 = vld [vmem:[%s10280_s8 + $0x54] ss:$8 sps:$4 sm:$0xff]  }
 0x74a   : > { %6047 = vmatprep.mubr.bf16.mxu0 %v14536_v27  ;;  %6774 = vmatpush1.bf16.msra.mxu0 %v9930_v0 }
 0x74b   : > { %6775 = vmatprep.subr.bf16.mxu0 %v9931_v6 }
 0x74e   : > { %6776 = vmatpush1.bf16.msra.mxu0 %v9932_v33  ;;  %v9944_v33 = vld [vmem:[%s10280_s8 + $0x64] ss:$8 sps:$4 sm:$0xff]  }
 0x751   : > { %9026 = vmatmul.mubr.msk.bf16.gmra.mrb[248].mxu0 %vm5826_vm9, %v9577_v29  ;;  %v9943_v29 = vld [vmem:[%s10280_s8 + $0x50] ss:$8 sps:$4 sm:$0xff]  }
 0x752   : > { %6057 = vmatprep.mubr.bf16.mxu0 %v14536_v27 }
 0x759   : > { %9027 = vmatmul.mubr.msk.bf16.gmra.mrb[252].mxu0 %vm5826_vm9, %v9578_v39 }
 0x75a   : > { %6067 = vmatprep.mubr.bf16.mxu0 %v14536_v27 }
 0x761   : > { %9028 = vmatmul.mubr.msk.bf16.gmra.mrb[0].mxu0 %vm5826_vm9, %v9579_v57  ;;  %v9945_v57 = vld [vmem:[%s10280_s8 + $0x60] ss:$8 sps:$4 sm:$0xff]  }
 0x762   : > { %6077 = vmatprep.mubr.bf16.mxu0 %v14536_v27 }
 0x769   : > { %9029 = vmatmul.mubr.msk.bf16.gmra.mrb[4].mxu0 %vm5826_vm9, %v9580_v2 }
 0x76a   : > { %6087 = vmatprep.mubr.bf16.mxu0 %v14536_v27 }
 0x771   : > { %9030 = vmatmul.mubr.msk.bf16.gmra.mrb[8].mxu0 %vm5826_vm9, %v9581_v37  ;;  %v9600_v37 = vld [vmem:[%s14452_s16 + $0xf8] sm:$0xff]  }
 0x772   : > { %6097 = vmatprep.mubr.bf16.mxu0 %v14536_v27 }
 0x779   : > { %9031 = vmatmul.mubr.msk.bf16.gmra.mrb[12].mxu0 %vm5826_vm9, %v9582_v7  ;;  %v9946_v7 = vld [vmem:[%s10280_s8 + $0x74] ss:$8 sps:$4 sm:$0xff]  }
 0x77a   : > { %6107 = vmatprep.mubr.bf16.mxu0 %v14536_v27 }
 0x781   : > { %9032 = vmatmul.mubr.msk.bf16.gmra.mrb[16].mxu0 %vm5826_vm9, %v9583_v60 }
 0x782   : > { %6117 = vmatprep.mubr.bf16.mxu0 %v14536_v27 }
 0x789   : > { %9033 = vmatmul.mubr.msk.bf16.gmra.mrb[20].mxu0 %vm5826_vm9, %v9584_v38 }
 0x78a   : > { %6127 = vmatprep.mubr.bf16.mxu0 %v14536_v27 }
 0x791   : > { %9034 = vmatmul.mubr.msk.bf16.gmra.mrb[24].mxu0 %vm5826_vm9, %v9585_v55 }
 0x792   : > { %6137 = vmatprep.mubr.bf16.mxu0 %v14536_v27 }
 0x799   : > { %9035 = vmatmul.mubr.msk.bf16.gmra.mrb[28].mxu0 %vm5826_vm9, %v9586_v13 }
 0x79a   : > { %6147 = vmatprep.mubr.bf16.mxu0 %v14536_v27 }
 0x7a1   : > { %9036 = vmatmul.mubr.msk.bf16.gmra.mrb[32].mxu0 %vm5826_vm9, %v9587_v31  ;;  %v9947_v31 = vld [vmem:[%s10280_s8 + $0x70] ss:$8 sps:$4 sm:$0xff]  }
 0x7a2   : > { %6157 = vmatprep.mubr.bf16.mxu0 %v14536_v27 }
 0x7a9   : > { %9037 = vmatmul.mubr.msk.bf16.gmra.mrb[36].mxu0 %vm5826_vm9, %v9588_v22  ;;  %v9948_v22 = vld [vmem:[%s10280_s8 + $0x84] ss:$8 sps:$4 sm:$0xff]  }
 0x7aa   : > { %6167 = vmatprep.mubr.bf16.mxu0 %v14536_v27 }
 0x7b1   : > { %9038 = vmatmul.mubr.msk.bf16.gmra.mrb[40].mxu0 %vm5826_vm9, %v9589_v51 }
 0x7b2   : > { %6177 = vmatprep.mubr.bf16.mxu0 %v14536_v27 }
 0x7b9   : > { %9039 = vmatmul.mubr.msk.bf16.gmra.mrb[44].mxu0 %vm5826_vm9, %v9590_v28  ;;  %v9949_v28 = vld [vmem:[%s10280_s8 + $0x80] ss:$8 sps:$4 sm:$0xff]  }
 0x7ba   : > { %6187 = vmatprep.mubr.bf16.mxu0 %v14536_v27 }
 0x7c1   : > { %9040 = vmatmul.mubr.msk.bf16.gmra.mrb[48].mxu0 %vm5826_vm9, %v9591_v49 }
 0x7c2   : > { %6197 = vmatprep.mubr.bf16.mxu0 %v14536_v27 }
 0x7c9   : > { %9041 = vmatmul.mubr.msk.bf16.gmra.mrb[52].mxu0 %vm5826_vm9, %v9592_v5  ;;  %v9601_v5 = vld [vmem:[%s14452_s16 + $0x100] sm:$0xff]  }
 0x7ca   : > { %6207 = vmatprep.mubr.bf16.mxu0 %v14536_v27 }
 0x7d1   : > { %9042 = vmatmul.mubr.msk.bf16.gmra.mrb[56].mxu0 %vm5826_vm9, %v9593_v16  ;;  %v9950_v16 = vld [vmem:[%s10280_s8 + $0x94] ss:$8 sps:$4 sm:$0xff]  }
 0x7d2   : > { %6217 = vmatprep.mubr.bf16.mxu0 %v14536_v27 }
 0x7d9   : > { %9043 = vmatmul.mubr.msk.bf16.gmra.mrb[60].mxu0 %vm5826_vm9, %v9594_v1 }
 0x7da   : > { %6227 = vmatprep.mubr.bf16.mxu0 %v14536_v27 }
 0x7e1   : > { %9044 = vmatmul.mubr.msk.bf16.gmra.mrb[64].mxu0 %vm5826_vm9, %v9595_v32 }
 0x7e2   : > { %6237 = vmatprep.mubr.bf16.mxu0 %v14536_v27 }
 0x7e4   : > { %v5969_v42 = vpop.f32.mrb[216].mxu0 }
 0x7e5   : > { %v5971_v9 = vpop.f32.mrb[217].mxu0 }
 0x7e6   : > { %v5973_v46 = vpop.f32.mrb[218].mxu0 }
 0x7e7   : > { %v12910_v21 = vpack.c.bf16 %v5973_v46, %v5969_v42  ;;  %v5975_v12 = vpop.f32.mrb[219].mxu0  ;;  %v9952_v46 = vld [vmem:[%s10280_s8 + $0xa4] ss:$8 sps:$4 sm:$0xff]  }
 0x7e8   : > { %v12912_v44 = vpack.c.bf16 %v5975_v12, %v5971_v9 }
 0x7e9   : > { %9045 = vmatmul.mubr.msk.bf16.gmra.mrb[68].mxu0 %vm5826_vm9, %v9596_v40  ;;  %v9951_v40 = vld [vmem:[%s10280_s8 + $0x90] ss:$8 sps:$4 sm:$0xff]  }
 0x7ea   : > { %6424 = vmatprep.mubr.bf16.mxu1 %v12912_v44  ;;  %6247 = vmatprep.mubr.bf16.mxu0 %v14536_v27 }
 0x7eb   : > { %6425 = vmatmul.mubr.bf16.vlgmr.msra.gmra.mrb[88].mxu1 %v12910_v21 }
 0x7ec   : > { %v5979_v47 = vpop.f32.mrb[220].mxu0  ;;  %7619 = vmatpush1.bf16.msra.mxu1 %v9933_v43 }
 0x7ed   : > { %v5981_v15 = vpop.f32.mrb[221].mxu0  ;;  %7620 = vmatprep.subr.bf16.mxu1 %v9934_v3 }
 0x7ee   : > { %v5983_v10 = vpop.f32.mrb[222].mxu0 }
 0x7ef   : > { %v12923_v53 = vpack.c.bf16 %v5983_v10, %v5979_v47  ;;  %v5985_v24 = vpop.f32.mrb[223].mxu0  ;;  %v9953_v47 = vld [vmem:[%s10280_s8 + $0xa0] ss:$8 sps:$4 sm:$0xff]  }
 0x7f0   : > { %v12925_v20 = vpack.c.bf16 %v5985_v24, %v5981_v15  ;;  %7621 = vmatpush1.bf16.msra.mxu1 %v9935_v14  ;;  %v9602_v15 = vld [vmem:[%s14452_s16 + $0x108] sm:$0xff]  }
 0x7f1   : > { %9046 = vmatmul.mubr.msk.bf16.gmra.mrb[72].mxu0 %vm5826_vm9, %v9597_v30  ;;  %7622 = vmatprep.subr.bf16.mxu1 %v9936_v25  ;;  %v9954_v30 = vld [vmem:[%s10280_s8 + $0xb4] ss:$8 sps:$4 sm:$0xff]   ;;  %v9955_v25 = vld [vmem:[%s10280_s8 + $0xb0] ss:$8 sps:$4 sm:$0xff]  }
 0x7f2   : > { %6434 = vmatprep.mubr.bf16.mxu1 %v12925_v20  ;;  %6257 = vmatprep.mubr.bf16.mxu0 %v14536_v27 }
 0x7f3   : > { %6435 = vmatmul.mubr.bf16.gmra.mrb[92].mxu1 %v12923_v53 }
 0x7f4   : > { %v5989_v52 = vpop.f32.mrb[224].mxu0  ;;  %7623 = vmatpush1.bf16.msra.mxu1 %v9937_v41 }
 0x7f5   : > { %v5991_v36 = vpop.f32.mrb[225].mxu0  ;;  %7624 = vmatprep.subr.bf16.mxu1 %v9938_v62  ;;  %v9603_v62 = vld [vmem:[%s14452_s16 + $0x110] sm:$0xff]  }
 0x7f6   : > { %v5993_v11 = vpop.f32.mrb[226].mxu0 }
 0x7f7   : > { %v12938_v26 = vpack.c.bf16 %v5993_v11, %v5989_v52  ;;  %v5995_v63 = vpop.f32.mrb[227].mxu0  ;;  %v9956_v52 = vld [vmem:[%s10280_s8 + $0xc4] ss:$8 sps:$4 sm:$0xff]   ;;  %v9958_v11 = vld [vmem:[%s10280_s8 + $0xd4] ss:$8 sps:$4 sm:$0xff]  }
 0x7f8   : > { %v12940_v18 = vpack.c.bf16 %v5995_v63, %v5991_v36  ;;  %7625 = vmatpush1.bf16.msra.mxu1 %v9939_v35  ;;  %v9957_v36 = vld [vmem:[%s10280_s8 + $0xc0] ss:$8 sps:$4 sm:$0xff]  }
 0x7f9   : > { %9047 = vmatmul.mubr.msk.bf16.gmra.mrb[76].mxu0 %vm5826_vm9, %v9598_v59  ;;  %7626 = vmatprep.subr.bf16.mxu1 %v9940_v34 }
 0x7fa   : > { %6444 = vmatprep.mubr.bf16.mxu1 %v12940_v18  ;;  %6267 = vmatprep.mubr.bf16.mxu0 %v14536_v27 }
 0x7fb   : > { %6445 = vmatmul.mubr.bf16.gmra.mrb[96].mxu1 %v12938_v26 }
 0x7fc   : > { %v5999_v56 = vpop.f32.mrb[228].mxu0  ;;  %7627 = vmatpush1.bf16.msra.mxu1 %v9941_v8  ;;  %v9959_v8 = vld [vmem:[%s10280_s8 + $0xd0] ss:$8 sps:$4 sm:$0xff]  }
 0x7fd   : > { %v6001_v19 = vpop.f32.mrb[229].mxu0  ;;  %7628 = vmatprep.subr.bf16.mxu1 %v9942_v45  ;;  %v9961_v45 = vld [vmem:[%s10280_s8 + $0xe0] ss:$8 sps:$4 sm:$0xff]  }
 0x7fe   : > { %v6003_v58 = vpop.f32.mrb[230].mxu0 }
 0x7ff   : > { %v12953_v23 = vpack.c.bf16 %v6003_v58, %v5999_v56  ;;  %v6005_v0 = vpop.f32.mrb[231].mxu0 }
 0x800   : > { %v12955_v6 = vpack.c.bf16 %v6005_v0, %v6001_v19  ;;  %7629 = vmatpush1.bf16.msra.mxu1 %v9943_v29  ;;  %v9960_v19 = vld [vmem:[%s10280_s8 + $0xe4] ss:$8 sps:$4 sm:$0xff]   ;;  %v9604_v0 = vld [vmem:[%s14452_s16 + $0x118] sm:$0xff]  }
 0x801   : > { %9048 = vmatmul.mubr.msk.bf16.gmra.mrb[80].mxu0 %vm5826_vm9, %v9599_v54  ;;  %7630 = vmatprep.subr.bf16.mxu1 %v9944_v33  ;;  %v9962_v29 = vld [vmem:[%s10280_s8 + $0xf4] ss:$8 sps:$4 sm:$0xff]  }
 0x802   : > { %6454 = vmatprep.mubr.bf16.mxu1 %v12955_v6  ;;  %6277 = vmatprep.mubr.bf16.mxu0 %v14536_v27 }
 0x803   : > { %6455 = vmatmul.mubr.bf16.gmra.mrb[100].mxu1 %v12953_v23 }
 0x804   : > { %v6009_v39 = vpop.f32.mrb[232].mxu0  ;;  %7631 = vmatpush1.bf16.msra.mxu1 %v9945_v57 }
 0x805   : > { %v6011_v2 = vpop.f32.mrb[233].mxu0  ;;  %7632 = vmatprep.subr.bf16.mxu1 %v9946_v7 }
 0x806   : > { %v6013_v60 = vpop.f32.mrb[234].mxu0 }
 0x807   : > { %v12968_v38 = vpack.c.bf16 %v6013_v60, %v6009_v39  ;;  %v6015_v55 = vpop.f32.mrb[235].mxu0 }
 0x808   : > { %v12970_v13 = vpack.c.bf16 %v6015_v55, %v6011_v2  ;;  %7633 = vmatpush1.bf16.msra.mxu1 %v9947_v31 }
 0x809   : > { %9049 = vmatmul.mubr.msk.bf16.gmra.mrb[84].mxu0 %vm5826_vm9, %v9600_v37  ;;  %7634 = vmatprep.subr.bf16.mxu1 %v9948_v22  ;;  %v9964_v37 = vld [vmem:[%s10280_s8 + $0x104] ss:$8 sps:$4 sm:$0xff]  }
 0x80a   : > { %6464 = vmatprep.mubr.bf16.mxu1 %v12970_v13  ;;  %6287 = vmatprep.mubr.bf16.mxu0 %v14536_v27 }
 0x80b   : > { %6465 = vmatmul.mubr.bf16.gmra.mrb[104].mxu1 %v12968_v38 }
 0x80c   : > { %v6019_v51 = vpop.f32.mrb[236].mxu0  ;;  %7635 = vmatpush1.bf16.msra.mxu1 %v9949_v28 }
 0x80d   : > { %v6021_v49 = vpop.f32.mrb[237].mxu0  ;;  %7636 = vmatprep.subr.bf16.mxu1 %v9950_v16 }
 0x80e   : > { %v6023_v1 = vpop.f32.mrb[238].mxu0 }
 0x80f   : > { %v12983_v32 = vpack.c.bf16 %v6023_v1, %v6019_v51  ;;  %v6025_v42 = vpop.f32.mrb[239].mxu0 }
 0x810   : > { %v12985_v9 = vpack.c.bf16 %v6025_v42, %v6021_v49  ;;  %7637 = vmatpush1.bf16.msra.mxu1 %v9951_v40 }
 0x811   : > { %9050 = vmatmul.mubr.msk.bf16.gmra.mrb[88].mxu0 %vm5826_vm9, %v9601_v5  ;;  %7638 = vmatprep.subr.bf16.mxu1 %v9952_v46 }
 0x812   : > { %6474 = vmatprep.mubr.bf16.mxu1 %v12985_v9  ;;  %6297 = vmatprep.mubr.bf16.mxu0 %v14536_v27 }
 0x813   : > { %6475 = vmatmul.mubr.bf16.gmra.mrb[108].mxu1 %v12983_v32 }
 0x814   : > { %v6029_v12 = vpop.f32.mrb[240].mxu0  ;;  %7639 = vmatpush1.bf16.msra.mxu1 %v9953_v47 }
 0x815   : > { %v6031_v43 = vpop.f32.mrb[241].mxu0  ;;  %7640 = vmatprep.subr.bf16.mxu1 %v9954_v30 }
 0x816   : > { %v6033_v3 = vpop.f32.mrb[242].mxu0 }
 0x817   : > { %v12998_v10 = vpack.c.bf16 %v6033_v3, %v6029_v12  ;;  %v6035_v24 = vpop.f32.mrb[243].mxu0 }
 0x818   : > { %v13000_v14 = vpack.c.bf16 %v6035_v24, %v6031_v43  ;;  %7641 = vmatpush1.bf16.msra.mxu1 %v9955_v25 }
 0x819   : > { %9051 = vmatmul.mubr.msk.bf16.gmra.mrb[92].mxu0 %vm5826_vm9, %v9602_v15  ;;  %7642 = vmatprep.subr.bf16.mxu1 %v9956_v52 }
 0x81a   : > { %6484 = vmatprep.mubr.bf16.mxu1 %v13000_v14  ;;  %6307 = vmatprep.mubr.bf16.mxu0 %v14536_v27 }
 0x81b   : > { %6485 = vmatmul.mubr.bf16.gmra.mrb[112].mxu1 %v12998_v10 }
 0x81c   : > { %v6039_v41 = vpop.f32.mrb[244].mxu0  ;;  %7643 = vmatpush1.bf16.msra.mxu1 %v9957_v36 }
 0x81d   : > { %v6041_v59 = vpop.f32.mrb[245].mxu0  ;;  %7644 = vmatprep.subr.bf16.mxu1 %v9958_v11 }
 0x81e   : > { %v6043_v63 = vpop.f32.mrb[246].mxu0 }
 0x81f   : > { %v13013_v35 = vpack.c.bf16 %v6043_v63, %v6039_v41  ;;  %v6045_v34 = vpop.f32.mrb[247].mxu0 }
 0x820   : > { %v13015_v56 = vpack.c.bf16 %v6045_v34, %v6041_v59  ;;  %7645 = vmatpush1.bf16.msra.mxu1 %v9959_v8 }
 0x821   : > { %9052 = vmatmul.mubr.msk.bf16.gmra.mrb[96].mxu0 %vm5826_vm9, %v9603_v62  ;;  %7646 = vmatprep.subr.bf16.mxu1 %v9960_v19 }
 0x822   : > { %6494 = vmatprep.mubr.bf16.mxu1 %v13015_v56  ;;  %6317 = vmatprep.mubr.bf16.mxu0 %v14536_v27  ;;  %v9963_v27 = vld [vmem:[%s10280_s8 + $0xf0] ss:$8 sps:$4 sm:$0xff]  }
 0x823   : > { %6495 = vmatmul.mubr.bf16.gmra.mrb[116].mxu1 %v13013_v35 }
 0x824   : > { %v6049_v54 = vpop.f32.mrb[248].mxu0  ;;  %7647 = vmatpush1.bf16.msra.mxu1 %v9961_v45 }
 0x825   : > { %v6051_v58 = vpop.f32.mrb[249].mxu0  ;;  %7648 = vmatprep.subr.bf16.mxu1 %v9962_v29 }
 0x826   : > { %v6053_v33 = vpop.f32.mrb[250].mxu0 }
 0x827   : > { %v13028_v39 = vpack.c.bf16 %v6053_v33, %v6049_v54  ;;  %v6055_v57 = vpop.f32.mrb[251].mxu0 }
 0x828   : > { %v13030_v2 = vpack.c.bf16 %v6055_v57, %v6051_v58  ;;  %7649 = vmatpush1.bf16.msra.mxu1 %v9963_v27 }
 0x829   : > { %9053 = vmatmul.mubr.msk.bf16.gmra.mrb[100].mxu0 %vm5826_vm9, %v9604_v0  ;;  %7691 = vmatprep.subr.bf16.mxu1 %v9964_v37 }
 0x82a   : > { %6504 = vmatprep.mubr.bf16.mxu1 %v13030_v2  ;;  %6777 = vmatprep.mubr.bf16.mxu0 %v12912_v44 }
 0x82b   : > { %6505 = vmatmul.mubr.bf16.gmra.mrb[120].mxu1 %v13028_v39 }
 0x82c   : > { %v6059_v7 = vpop.f32.mrb[252].mxu0 }
 0x82d   : > { %v6061_v60 = vpop.f32.mrb[253].mxu0 }
 0x82e   : > { %v6063_v55 = vpop.f32.mrb[254].mxu0 }
 0x82f   : > { %v13038_v31 = vpack.c.bf16 %v6063_v55, %v6059_v7  ;;  %v6065_v22 = vpop.f32.mrb[255].mxu0 }
 0x830   : > { %v13040_v51 = vpack.c.bf16 %v6065_v22, %v6061_v60 }
 0x831   : > { %6778 = vmatmul.mubr.bf16.vlgmr.msra.gmra.mrb[104].mxu0 %v12910_v21 }
 0x832   : > { %6514 = vmatprep.mubr.bf16.mxu1 %v13040_v51  ;;  %6787 = vmatprep.mubr.bf16.mxu0 %v12925_v20 }
 0x833   : > { %6515 = vmatmul.mubr.bf16.gmra.mrb[124].mxu1 %v13038_v31 }
 0x834   : > { %v6069_v28 = vpop.f32.mrb[0].mxu0 }
 0x835   : > { %v6071_v44 = vpop.f32.mrb[1].mxu0 }
 0x836   : > { %v6073_v49 = vpop.f32.mrb[2].mxu0 }
 0x837   : > { %v13046_v5 = vpack.c.bf16 %v6073_v49, %v6069_v28  ;;  %v6075_v16 = vpop.f32.mrb[3].mxu0 }
 0x838   : > { %v13048_v1 = vpack.c.bf16 %v6075_v16, %v6071_v44 }
 0x839   : > { %6788 = vmatmul.mubr.bf16.gmra.mrb[108].mxu0 %v12923_v53 }
 0x83a   : > { %6524 = vmatprep.mubr.bf16.mxu1 %v13048_v1  ;;  %6797 = vmatprep.mubr.bf16.mxu0 %v12940_v18 }
 0x83b   : > { %6525 = vmatmul.mubr.bf16.gmra.mrb[128].mxu1 %v13046_v5 }
 0x83c   : > { %v6079_v21 = vpop.f32.mrb[4].mxu0 }
 0x83d   : > { %v6081_v20 = vpop.f32.mrb[5].mxu0 }
 0x83e   : > { %v6083_v42 = vpop.f32.mrb[6].mxu0 }
 0x83f   : > { %v13054_v40 = vpack.c.bf16 %v6083_v42, %v6079_v21  ;;  %v6085_v46 = vpop.f32.mrb[7].mxu0 }
 0x840   : > { %v13056_v12 = vpack.c.bf16 %v6085_v46, %v6081_v20 }
 0x841   : > { %6798 = vmatmul.mubr.bf16.gmra.mrb[112].mxu0 %v12938_v26 }
 0x842   : > { %6534 = vmatprep.mubr.bf16.mxu1 %v13056_v12  ;;  %6807 = vmatprep.mubr.bf16.mxu0 %v12955_v6 }
 0x843   : > { %6535 = vmatmul.mubr.bf16.gmra.mrb[132].mxu1 %v13054_v40 }
 0x844   : > { %v6089_v53 = vpop.f32.mrb[8].mxu0 }
 0x845   : > { %v6091_v18 = vpop.f32.mrb[9].mxu0 }
 0x846   : > { %v6093_v47 = vpop.f32.mrb[10].mxu0 }
 0x847   : > { %v13062_v43 = vpack.c.bf16 %v6093_v47, %v6089_v53  ;;  %v6095_v15 = vpop.f32.mrb[11].mxu0 }
 0x848   : > { %v13064_v30 = vpack.c.bf16 %v6095_v15, %v6091_v18 }
 0x849   : > { %6808 = vmatmul.mubr.bf16.gmra.mrb[116].mxu0 %v12953_v23 }
 0x84a   : > { %6544 = vmatprep.mubr.bf16.mxu1 %v13064_v30  ;;  %6817 = vmatprep.mubr.bf16.mxu0 %v12970_v13 }
 0x84b   : > { %6545 = vmatmul.mubr.bf16.gmra.mrb[136].mxu1 %v13062_v43 }
 0x84c   : > { %v6099_v26 = vpop.f32.mrb[12].mxu0 }
 0x84d   : > { %v6101_v6 = vpop.f32.mrb[13].mxu0 }
 0x84e   : > { %v6103_v3 = vpop.f32.mrb[14].mxu0 }
 0x84f   : > { %v13070_v24 = vpack.c.bf16 %v6103_v3, %v6099_v26  ;;  %v6105_v25 = vpop.f32.mrb[15].mxu0 }
 0x850   : > { %v13072_v52 = vpack.c.bf16 %v6105_v25, %v6101_v6 }
 0x851   : > { %6818 = vmatmul.mubr.bf16.gmra.mrb[120].mxu0 %v12968_v38 }
 0x852   : > { %6554 = vmatprep.mubr.bf16.mxu1 %v13072_v52  ;;  %6827 = vmatprep.mubr.bf16.mxu0 %v12985_v9 }
 0x853   : > { %6555 = vmatmul.mubr.bf16.gmra.mrb[140].mxu1 %v13070_v24 }
 0x854   : > { %v6109_v23 = vpop.f32.mrb[16].mxu0 }
 0x855   : > { %v6111_v13 = vpop.f32.mrb[17].mxu0 }
 0x856   : > { %v6113_v41 = vpop.f32.mrb[18].mxu0 }
 0x857   : > { %v13078_v36 = vpack.c.bf16 %v6113_v41, %v6109_v23  ;;  %v6115_v59 = vpop.f32.mrb[19].mxu0 }
 0x858   : > { %v13080_v62 = vpack.c.bf16 %v6115_v59, %v6111_v13 }
 0x859   : > { %6828 = vmatmul.mubr.bf16.gmra.mrb[124].mxu0 %v12983_v32 }
 0x85a   : > { %6564 = vmatprep.mubr.bf16.mxu1 %v13080_v62  ;;  %6837 = vmatprep.mubr.bf16.mxu0 %v13000_v14 }
 0x85b   : > { %6565 = vmatmul.mubr.bf16.gmra.mrb[144].mxu1 %v13078_v36 }
 0x85c   : > { %v6119_v38 = vpop.f32.mrb[20].mxu0 }
 0x85d   : > { %v6121_v9 = vpop.f32.mrb[21].mxu0 }
 0x85e   : > { %v6123_v11 = vpop.f32.mrb[22].mxu0 }
 0x85f   : > { %v13086_v63 = vpack.c.bf16 %v6123_v11, %v6119_v38  ;;  %v6125_v34 = vpop.f32.mrb[23].mxu0 }
 0x860   : > { %v13088_v8 = vpack.c.bf16 %v6125_v34, %v6121_v9  ;;  %v14630_v9 = vld [vmem:[#allocation26_spill] sm:$0xff] }
 0x861   : > { %6838 = vmatmul.mubr.bf16.gmra.mrb[128].mxu0 %v12998_v10  ;;  %v5562_v11 = vmul.f32 1.442695, %v14630_v9 }
 0x862   : > { %6574 = vmatprep.mubr.bf16.mxu1 %v13088_v8  ;;  %6847 = vmatprep.mubr.bf16.mxu0 %v13015_v56 }
 0x863   : > { %6575 = vmatmul.mubr.bf16.gmra.mrb[148].mxu1 %v13086_v63  ;;  %9694 = vpow2.f32 %v5562_v11 }
 0x864   : > { %v6129_v32 = vpop.f32.mrb[24].mxu0 }
 0x865   : > { %v6131_v14 = vpop.f32.mrb[25].mxu0 }
 0x866   : > { %v6133_v19 = vpop.f32.mrb[26].mxu0 }
 0x867   : > { %v13094_v54 = vpack.c.bf16 %v6133_v19, %v6129_v32  ;;  %v6135_v45 = vpop.f32.mrb[27].mxu0  ;;  %v14631_v32 = vld [vmem:[#allocation27_spill] sm:$0xff] }
 0x868   : > { %v13096_v58 = vpack.c.bf16 %v6135_v45, %v6131_v14  ;;  %v5564_v14 = vmul.f32 1.442695, %v14631_v32 }
 0x869   : > { %6848 = vmatmul.mubr.bf16.gmra.mrb[132].mxu0 %v13013_v35 }
 0x86a   : > { %6584 = vmatprep.mubr.bf16.mxu1 %v13096_v58  ;;  %6857 = vmatprep.mubr.bf16.mxu0 %v13030_v2  ;;  %9696 = vpow2.f32 %v5564_v14 }
 0x86b   : > { %6585 = vmatmul.mubr.bf16.gmra.mrb[152].mxu1 %v13094_v54 }
 0x86c   : > { %v6139_v10 = vpop.f32.mrb[28].mxu0 }
 0x86d   : > { %v6141_v56 = vpop.f32.mrb[29].mxu0 }
 0x86e   : > { %v6143_v0 = vpop.f32.mrb[30].mxu0 }
 0x86f   : > { %v13102_v29 = vpack.c.bf16 %v6143_v0, %v6139_v10  ;;  %v6145_v33 = vpop.f32.mrb[31].mxu0  ;;  %v9695_v0 = vpop.eup %9694 }
 0x870   : > { %v13104_v57 = vpack.c.bf16 %v6145_v33, %v6141_v56 }
 0x871   : > { %6858 = vmatmul.mubr.bf16.gmra.mrb[136].mxu0 %v13028_v39 }
 0x872   : > { %6594 = vmatprep.mubr.bf16.mxu1 %v13104_v57  ;;  %6867 = vmatprep.mubr.bf16.mxu0 %v13040_v51 }
 0x873   : > { %6595 = vmatmul.mubr.bf16.gmra.mrb[156].mxu1 %v13102_v29 }
 0x874   : > { %v6149_v35 = vpop.f32.mrb[32].mxu0 }
 0x875   : > { %v6151_v2 = vpop.f32.mrb[33].mxu0 }
 0x876   : > { %v6153_v27 = vpop.f32.mrb[34].mxu0 }
 0x877   : > { %v13110_v37 = vpack.c.bf16 %v6153_v27, %v6149_v35  ;;  %v6155_v7 = vpop.f32.mrb[35].mxu0  ;;  %v9697_v35 = vpop.eup %9696 }
 0x878   : > { %v13112_v60 = vpack.c.bf16 %v6155_v7, %v6151_v2 }
 0x879   : > { %6868 = vmatmul.mubr.bf16.gmra.mrb[140].mxu0 %v13038_v31 }
 0x87a   : > { %6604 = vmatprep.mubr.bf16.mxu1 %v13112_v60  ;;  %6877 = vmatprep.mubr.bf16.mxu0 %v13048_v1 }
 0x87b   : > { %6605 = vmatmul.mubr.bf16.gmra.mrb[160].mxu1 %v13110_v37 }
 0x87c   : > { %v6159_v39 = vpop.f32.mrb[36].mxu0 }
 0x87d   : > { %v6161_v55 = vpop.f32.mrb[37].mxu0 }
 0x87e   : > { %v6163_v22 = vpop.f32.mrb[38].mxu0 }
 0x87f   : > { %v13118_v51 = vpack.c.bf16 %v6163_v22, %v6159_v39  ;;  %v6165_v28 = vpop.f32.mrb[39].mxu0  ;;  %v13180_v39 = vpack.c.bf16 %v9695_v0, %v9695_v0 }
 0x880   : > { %v13120_v44 = vpack.c.bf16 %v6165_v28, %v6161_v55 }
 0x881   : > { %6878 = vmatmul.mubr.bf16.gmra.mrb[144].mxu0 %v13046_v5  ;;  %v13190_v55 = vpack.i.b16 %v13180_v39, %v13180_v39 }
 0x882   : > { %6614 = vmatprep.mubr.bf16.mxu1 %v13120_v44  ;;  %6887 = vmatprep.mubr.bf16.mxu0 %v13056_v12 }
 0x883   : > { %6615 = vmatmul.mubr.bf16.gmra.mrb[164].mxu1 %v13118_v51 }
 0x884   : > { %v6169_v31 = vpop.f32.mrb[40].mxu0 }
 0x885   : > { %v6171_v49 = vpop.f32.mrb[41].mxu0 }
 0x886   : > { %v6173_v16 = vpop.f32.mrb[42].mxu0 }
 0x887   : > { %v13126_v1 = vpack.c.bf16 %v6173_v16, %v6169_v31  ;;  %v6175_v21 = vpop.f32.mrb[43].mxu0 }
 0x888   : > { %v13128_v20 = vpack.c.bf16 %v6175_v21, %v6171_v49 }
 0x889   : > { %6888 = vmatmul.mubr.bf16.gmra.mrb[148].mxu0 %v13054_v40 }
 0x88a   : > { %6624 = vmatprep.mubr.bf16.mxu1 %v13128_v20  ;;  %6897 = vmatprep.mubr.bf16.mxu0 %v13064_v30 }
 0x88b   : > { %6625 = vmatmul.mubr.bf16.gmra.mrb[168].mxu1 %v13126_v1 }
 0x88c   : > { %v6179_v5 = vpop.f32.mrb[44].mxu0 }
 0x88d   : > { %v6181_v42 = vpop.f32.mrb[45].mxu0 }
 0x88e   : > { %v6183_v46 = vpop.f32.mrb[46].mxu0 }
 0x88f   : > { %v13134_v12 = vpack.c.bf16 %v6183_v46, %v6179_v5  ;;  %v6185_v53 = vpop.f32.mrb[47].mxu0  ;;  %v14632_v46 = vld [vmem:[#allocation8_spill] sm:$0xff] }
 0x890   : > { %v13136_v18 = vpack.c.bf16 %v6185_v53, %v6181_v42  ;;  %v13202_v53 = vrot.slane %v13190_v55, %v14632_v46 }
 0x891   : > { %6898 = vmatmul.mubr.bf16.gmra.mrb[152].mxu0 %v13062_v43 }
 0x892   : > { %6634 = vmatprep.mubr.bf16.mxu1 %v13136_v18  ;;  %6907 = vmatprep.mubr.bf16.mxu0 %v13072_v52 }
 0x893   : > { %6635 = vmatmul.mubr.bf16.gmra.mrb[172].mxu1 %v13134_v12 }
 0x894   : > { %v6189_v40 = vpop.f32.mrb[48].mxu0 }
 0x895   : > { %v6191_v47 = vpop.f32.mrb[49].mxu0 }
 0x896   : > { %v6193_v15 = vpop.f32.mrb[50].mxu0 }
 0x897   : > { %v13142_v30 = vpack.c.bf16 %v6193_v15, %v6189_v40  ;;  %v6195_v26 = vpop.f32.mrb[51].mxu0 }
 0x898   : > { %v13144_v6 = vpack.c.bf16 %v6195_v26, %v6191_v47 }
 0x899   : > { %6908 = vmatmul.mubr.bf16.gmra.mrb[156].mxu0 %v13070_v24 }
 0x89a   : > { %6644 = vmatprep.mubr.bf16.mxu1 %v13144_v6  ;;  %6917 = vmatprep.mubr.bf16.mxu0 %v13080_v62 }
 0x89b   : > { %6645 = vmatmul.mubr.bf16.gmra.mrb[176].mxu1 %v13142_v30 }
 0x89c   : > { %v6199_v43 = vpop.f32.mrb[52].mxu0 }
 0x89d   : > { %v6201_v3 = vpop.f32.mrb[53].mxu0 }
 0x89e   : > { %v6203_v25 = vpop.f32.mrb[54].mxu0 }
 0x89f   : > { %v13150_v52 = vpack.c.bf16 %v6203_v25, %v6199_v43  ;;  %v6205_v23 = vpop.f32.mrb[55].mxu0 }
 0x8a0   : > { %v13152_v13 = vpack.c.bf16 %v6205_v23, %v6201_v3 }
 0x8a1   : > { %6918 = vmatmul.mubr.bf16.gmra.mrb[160].mxu0 %v13078_v36 }
 0x8a2   : > { %6654 = vmatprep.mubr.bf16.mxu1 %v13152_v13  ;;  %6927 = vmatprep.mubr.bf16.mxu0 %v13088_v8 }
 0x8a3   : > { %6655 = vmatmul.mubr.bf16.gmra.mrb[180].mxu1 %v13150_v52 }
 0x8a4   : > { %v6209_v24 = vpop.f32.mrb[56].mxu0 }
 0x8a5   : > { %v6211_v41 = vpop.f32.mrb[57].mxu0 }
 0x8a6   : > { %v6213_v59 = vpop.f32.mrb[58].mxu0 }
 0x8a7   : > { %v13158_v62 = vpack.c.bf16 %v6213_v59, %v6209_v24  ;;  %v6215_v38 = vpop.f32.mrb[59].mxu0 }
 0x8a8   : > { %v13161_v34 = vpack.c.bf16 %v6215_v38, %v6211_v41 }
 0x8a9   : > { %6928 = vmatmul.mubr.bf16.gmra.mrb[164].mxu0 %v13086_v63 }
 0x8aa   : > { %6664 = vmatprep.mubr.bf16.mxu1 %v13161_v34  ;;  %6937 = vmatprep.mubr.bf16.mxu0 %v13096_v58 }
 0x8ab   : > { %6665 = vmatmul.mubr.bf16.gmra.mrb[184].mxu1 %v13158_v62 }
 0x8ac   : > { %v6219_v36 = vpop.f32.mrb[60].mxu0 }
 0x8ad   : > { %v6221_v8 = vpop.f32.mrb[61].mxu0 }
 0x8ae   : > { %v6223_v19 = vpop.f32.mrb[62].mxu0 }
 0x8af   : > { %v13168_v45 = vpack.c.bf16 %v6223_v19, %v6219_v36  ;;  %v6225_v10 = vpop.f32.mrb[63].mxu0 }
 0x8b0   : > { %v13170_v56 = vpack.c.bf16 %v6225_v10, %v6221_v8 }
 0x8b1   : > { %6938 = vmatmul.mubr.bf16.gmra.mrb[168].mxu0 %v13094_v54  ;;  %v13183_v54 = vpack.c.bf16 %v9697_v35, %v9697_v35 }
 0x8b2   : > { %6674 = vmatprep.mubr.bf16.mxu1 %v13170_v56  ;;  %6947 = vmatprep.mubr.bf16.mxu0 %v13104_v57 }
 0x8b3   : > { %6675 = vmatmul.mubr.bf16.gmra.mrb[188].mxu1 %v13168_v45  ;;  %v13194_v28 = vpack.i.b16 %v13183_v54, %v13183_v54 }
 0x8b4   : > { %v6229_v63 = vpop.f32.mrb[64].mxu0 }
 0x8b5   : > { %v6231_v58 = vpop.f32.mrb[65].mxu0  ;;  %v7239_v15 = vrot.slane %v13194_v28, %v14632_v46 }
 0x8b6   : > { %v6233_v33 = vpop.f32.mrb[66].mxu0 }
 0x8b7   : > { %v13176_v2 = vpack.c.bf16 %v6233_v33, %v6229_v63  ;;  %v6235_v27 = vpop.f32.mrb[67].mxu0 }
 0x8b8   : > { %v13178_v7 = vpack.c.bf16 %v6235_v27, %v6231_v58 }
 0x8b9   : > { %6948 = vmatmul.mubr.bf16.gmra.mrb[172].mxu0 %v13102_v29 }
 0x8ba   : > { %6684 = vmatprep.mubr.bf16.mxu1 %v13178_v7  ;;  %6957 = vmatprep.mubr.bf16.mxu0 %v13112_v60 }
 0x8bb   : > { %6685 = vmatmul.mubr.bf16.gmra.mrb[192].mxu1 %v13176_v2 }
 0x8bc   : > { %v6239_v57 = vpop.f32.mrb[68].mxu0 }
 0x8bd   : > { %v6241_v22 = vpop.f32.mrb[69].mxu0 }
 0x8be   : > { %v6243_v31 = vpop.f32.mrb[70].mxu0  ;;  %v6426_v29 = vpop.f32.mrb[88].mxu1 }
 0x8bf   : > { %v13196_v49 = vpack.c.bf16 %v6243_v31, %v6239_v57  ;;  %v6245_v16 = vpop.f32.mrb[71].mxu0  ;;  %v6428_v21 = vpop.f32.mrb[89].mxu1 }
 0x8c0   : > { %v13198_v5 = vpack.c.bf16 %v6245_v16, %v6241_v22  ;;  %v6430_v60 = vpop.f32.mrb[90].mxu1 }
 0x8c1   : > { %v7098_v42 = vpack.c.bf16 %v6430_v60, %v6426_v29  ;;  %v6432_v40 = vpop.f32.mrb[91].mxu1  ;;  %6958 = vmatmul.mubr.bf16.gmra.mrb[176].mxu0 %v13110_v37 }
 0x8c2   : > { %v7099_v47 = vpack.c.bf16 %v6432_v40, %v6428_v21  ;;  %6694 = vmatprep.mubr.bf16.mxu1 %v13198_v5  ;;  %6967 = vmatprep.mubr.bf16.mxu0 %v13120_v44 }
 0x8c3   : > { %v13210_v26 = vmul.bf16 %v13202_v53, %v7098_v42  ;;  %6695 = vmatmul.mubr.bf16.gmra.mrb[196].mxu1 %v13196_v49 }
 0x8c4   : > { %v13213_v43 = vmul.bf16 %v7239_v15, %v7099_v47  ;;  %v6249_v3 = vpop.f32.mrb[72].mxu0 }
 0x8c5   : > { %v6251_v25 = vpop.f32.mrb[73].mxu0 }
 0x8c6   : > { %v6253_v23 = vpop.f32.mrb[74].mxu0  ;;  %v6436_v24 = vpop.f32.mrb[92].mxu1 }
 0x8c7   : > { %v13215_v37 = vpack.c.bf16 %v6253_v23, %v6249_v3  ;;  %v6255_v41 = vpop.f32.mrb[75].mxu0  ;;  %v6438_v59 = vpop.f32.mrb[93].mxu1 }
 0x8c8   : > { %v13217_v38 = vpack.c.bf16 %v6255_v41, %v6251_v25  ;;  %v6440_v9 = vpop.f32.mrb[94].mxu1 }
 0x8c9   : > { %v7102_v11 = vpack.c.bf16 %v6440_v9, %v6436_v24  ;;  %v6442_v44 = vpop.f32.mrb[95].mxu1  ;;  %6968 = vmatmul.mubr.bf16.gmra.mrb[180].mxu0 %v13118_v51  ;;  %v7277_v24 = vshrl.u32 %v13183_v54, 16 }
 0x8ca   : > { %v7103_v32 = vpack.c.bf16 %v6442_v44, %v6438_v59  ;;  %6704 = vmatprep.mubr.bf16.mxu1 %v13217_v38  ;;  %6977 = vmatprep.mubr.bf16.mxu0 %v13128_v20 }
 0x8cb   : > { %v13223_v14 = vmul.bf16 %v13202_v53, %v7102_v11  ;;  %6705 = vmatmul.mubr.bf16.gmra.mrb[200].mxu1 %v13215_v37 }
 0x8cc   : > { %v13226_v36 = vmul.bf16 %v7239_v15, %v7103_v32  ;;  %v6259_v8 = vpop.f32.mrb[76].mxu0  ;;  %v13258_v32 = vpack.i.b16 %v7277_v24, %v7277_v24 }
 0x8cd   : > { %v6261_v19 = vpop.f32.mrb[77].mxu0 }
 0x8ce   : > { %v6263_v10 = vpop.f32.mrb[78].mxu0  ;;  %v6446_v63 = vpop.f32.mrb[96].mxu1 }
 0x8cf   : > { %v13228_v58 = vpack.c.bf16 %v6263_v10, %v6259_v8  ;;  %v6265_v0 = vpop.f32.mrb[79].mxu0  ;;  %v6448_v51 = vpop.f32.mrb[97].mxu1 }
 0x8d0   : > { %v13230_v33 = vpack.c.bf16 %v6265_v0, %v6261_v19  ;;  %v6450_v35 = vpop.f32.mrb[98].mxu1 }
 0x8d1   : > { %v7106_v27 = vpack.c.bf16 %v6450_v35, %v6446_v63  ;;  %v6452_v20 = vpop.f32.mrb[99].mxu1  ;;  %6978 = vmatmul.mubr.bf16.gmra.mrb[184].mxu0 %v13126_v1  ;;  %v7283_v35 = vrot.slane %v13258_v32, %v14632_v46 }
 0x8d2   : > { %v7107_v57 = vpack.c.bf16 %v6452_v20, %v6448_v51  ;;  %6714 = vmatprep.mubr.bf16.mxu1 %v13230_v33  ;;  %6987 = vmatprep.mubr.bf16.mxu0 %v13136_v18  ;;  %v7270_v18 = vshrl.u32 %v13180_v39, 16 }
 0x8d3   : > { %v13236_v22 = vmul.bf16 %v13202_v53, %v7106_v27  ;;  %6715 = vmatmul.mubr.bf16.gmra.mrb[204].mxu1 %v13228_v58 }
 0x8d4   : > { %v13239_v31 = vmul.bf16 %v7239_v15, %v7107_v57  ;;  %v6269_v29 = vpop.f32.mrb[80].mxu0  ;;  %v13256_v39 = vpack.i.b16 %v7270_v18, %v7270_v18 }
 0x8d5   : > { %v6271_v16 = vpop.f32.mrb[81].mxu0 }
 0x8d6   : > { %v6273_v21 = vpop.f32.mrb[82].mxu0  ;;  %v6456_v60 = vpop.f32.mrb[100].mxu1 }
 0x8d7   : > { %v13241_v42 = vpack.c.bf16 %v6273_v21, %v6269_v29  ;;  %v6275_v40 = vpop.f32.mrb[83].mxu0  ;;  %v6458_v1 = vpop.f32.mrb[101].mxu1 }
 0x8d8   : > { %v13243_v47 = vpack.c.bf16 %v6275_v40, %v6271_v16  ;;  %v6460_v3 = vpop.f32.mrb[102].mxu1 }
 0x8d9   : > { %v7110_v25 = vpack.c.bf16 %v6460_v3, %v6456_v60  ;;  %v6462_v23 = vpop.f32.mrb[103].mxu1  ;;  %6988 = vmatmul.mubr.bf16.gmra.mrb[188].mxu0 %v13134_v12 }
 0x8da   : > { %v7111_v41 = vpack.c.bf16 %v6462_v23, %v6458_v1  ;;  %6724 = vmatprep.mubr.bf16.mxu1 %v13243_v47  ;;  %6997 = vmatprep.mubr.bf16.mxu0 %v13144_v6 }
 0x8db   : > { %v13251_v59 = vmul.bf16 %v13202_v53, %v7110_v25  ;;  %6725 = vmatmul.mubr.bf16.gmra.mrb[208].mxu1 %v13241_v42 }
 0x8dc   : > { %v13254_v9 = vmul.bf16 %v7239_v15, %v7111_v41  ;;  %v6279_v11 = vpop.f32.mrb[84].mxu0  ;;  %v7276_v15 = vrot.slane %v13256_v39, %v14632_v46 }
 0x8dd   : > { %v6281_v44 = vpop.f32.mrb[85].mxu0 }
 0x8de   : > { %v6283_v12 = vpop.f32.mrb[86].mxu0  ;;  %v6466_v54 = vpop.f32.mrb[104].mxu1 }
 0x8df   : > { %v13260_v8 = vpack.c.bf16 %v6283_v12, %v6279_v11  ;;  %v6285_v19 = vpop.f32.mrb[87].mxu0  ;;  %v6468_v10 = vpop.f32.mrb[105].mxu1  ;;  %v14639_v12 = vld [vmem:[#allocation28_spill] sm:$0xff] }
 0x8e0   : > { %v13262_v6 = vpack.c.bf16 %v6285_v19, %v6281_v44  ;;  %v6470_v53 = vpop.f32.mrb[106].mxu1 }
 0x8e1   : > { %v7114_v63 = vpack.c.bf16 %v6470_v53, %v6466_v54  ;;  %v6472_v0 = vpop.f32.mrb[107].mxu1  ;;  %6998 = vmatmul.mubr.bf16.gmra.mrb[192].mxu0 %v13142_v30  ;;  %v5566_v54 = vmul.f32 1.442695, %v14639_v12 }
 0x8e2   : > { %v7115_v51 = vpack.c.bf16 %v6472_v0, %v6468_v10  ;;  %6734 = vmatprep.mubr.bf16.mxu1 %v13262_v6  ;;  %7007 = vmatprep.mubr.bf16.mxu0 %v13152_v13 }
 0x8e3   : > { %v13271_v27 = vmul.bf16 %v7276_v15, %v7114_v63  ;;  %6735 = vmatmul.mubr.bf16.gmra.mrb[212].mxu1 %v13260_v8  ;;  %9698 = vpow2.f32 %v5566_v54 }
 0x8e4   : > { %v13274_v20 = vmul.bf16 %v7283_v35, %v7115_v51  ;;  %v13276_v57 = vpop.f32.mrb[88].mxu0 }
 0x8e5   : > { %14633 = vst [vmem:[#allocation9_spill] sm:$0xff] %v13276_v57  ;;  %v13280_v30 = vpop.f32.mrb[89].mxu0  ;;  %v13887_v57 = vld [vmem:[%s14675_s4 + $0x20] sm:$0xff]  }
 0x8e6   : > { %14634 = vst [vmem:[#allocation10_spill] sm:$0xff] %v13280_v30  ;;  %v6476_v21 = vpop.f32.mrb[108].mxu1  ;;  %v13284_v60 = vpop.f32.mrb[90].mxu0 }
 0x8e7   : > { %14635 = vst [vmem:[#allocation11_spill] sm:$0xff] %v13284_v60  ;;  %v6478_v13 = vpop.f32.mrb[109].mxu1  ;;  %v13286_v40 = vpop.f32.mrb[91].mxu0 }
 0x8e8   : > { %14636 = vst [vmem:[#allocation12_spill] sm:$0xff] %v13286_v40  ;;  %v6480_v1 = vpop.f32.mrb[110].mxu1 }
 0x8e9   : > { %v7118_v3 = vpack.c.bf16 %v6480_v1, %v6476_v21  ;;  %v6482_v18 = vpop.f32.mrb[111].mxu1  ;;  %7008 = vmatmul.mubr.bf16.gmra.mrb[196].mxu0 %v13150_v52 }
 0x8ea   : > { %v7119_v25 = vpack.c.bf16 %v6482_v18, %v6478_v13  ;;  %7017 = vmatprep.mubr.bf16.mxu0 %v13161_v34  ;;  %v14641_v34 = vld [vmem:[#allocation29_spill] sm:$0xff] }
 0x8eb   : > { %v13290_v23 = vmul.bf16 %v7276_v15, %v7118_v3  ;;  %v5568_v53 = vmul.f32 1.442695, %v14641_v34 }
 0x8ec   : > { %v13292_v24 = vmul.bf16 %v7283_v35, %v7119_v25  ;;  %v13294_v41 = vpop.f32.mrb[92].mxu0 }
 0x8ed   : > { %14637 = vst [vmem:[#allocation13_spill] sm:$0xff] %v13294_v41  ;;  %v13298_v44 = vpop.f32.mrb[93].mxu0  ;;  %9700 = vpow2.f32 %v5568_v53  ;;  %v9699_v12 = vpop.eup %9698 }
 0x8ee   : > { %14638 = vst [vmem:[#allocation14_spill] sm:$0xff] %v13298_v44  ;;  %v6486_v52 = vpop.f32.mrb[112].mxu1  ;;  %v13303_v10 = vpop.f32.mrb[94].mxu0 }
 0x8ef   : > { %14640 = vst [vmem:[#allocation30_spill] sm:$0xff] %v13303_v10  ;;  %v6488_v63 = vpop.f32.mrb[113].mxu1  ;;  %v13306_v0 = vpop.f32.mrb[95].mxu0 }
 0x8f0   : > { %14642 = vst [vmem:[#allocation31_spill] sm:$0xff] %v13306_v0  ;;  %v6490_v51 = vpop.f32.mrb[114].mxu1 }
 0x8f1   : > { %v7122_v21 = vpack.c.bf16 %v6490_v51, %v6486_v52  ;;  %v6492_v13 = vpop.f32.mrb[115].mxu1  ;;  %7018 = vmatmul.mubr.bf16.gmra.mrb[200].mxu0 %v13158_v62 }
 0x8f2   : > { %v7123_v1 = vpack.c.bf16 %v6492_v13, %v6488_v63  ;;  %7027 = vmatprep.mubr.bf16.mxu0 %v13170_v56 }
 0x8f3   : > { %v13310_v3 = vmul.bf16 %v7276_v15, %v7122_v21 }
 0x8f4   : > { %v13312_v18 = vmul.bf16 %v7283_v35, %v7123_v1  ;;  %v13314_v25 = vpop.f32.mrb[96].mxu0 }
 0x8f5   : > { %14643 = vst [vmem:[#allocation17_spill] sm:$0xff] %v13314_v25  ;;  %v13318_v34 = vpop.f32.mrb[97].mxu0 }
 0x8f6   : > { %14644 = vst [vmem:[#allocation32_spill] sm:$0xff] %v13318_v34  ;;  %v6496_v62 = vpop.f32.mrb[116].mxu1  ;;  %v13322_v54 = vpop.f32.mrb[98].mxu0 }
 0x8f7   : > { %14645 = vst [vmem:[#allocation15_spill] sm:$0xff] %v13322_v54  ;;  %v6498_v63 = vpop.f32.mrb[117].mxu1  ;;  %v13324_v56 = vpop.f32.mrb[99].mxu0 }
 0x8f8   : > { %14646 = vst [vmem:[#allocation16_spill] sm:$0xff] %v13324_v56  ;;  %v6500_v53 = vpop.f32.mrb[118].mxu1  ;;  %v9701_v11 = vpop.eup %9700 }
 0x8f9   : > { %v7126_v51 = vpack.c.bf16 %v6500_v53, %v6496_v62  ;;  %v6502_v21 = vpop.f32.mrb[119].mxu1  ;;  %7028 = vmatmul.mubr.bf16.gmra.mrb[204].mxu0 %v13168_v45 }
 0x8fa   : > { %v7127_v13 = vpack.c.bf16 %v6502_v21, %v6498_v63  ;;  %7037 = vmatprep.mubr.bf16.mxu0 %v13178_v7  ;;  %v13342_v7 = vpack.c.bf16 %v9699_v12, %v9699_v12 }
 0x8fb   : > { %v13328_v1 = vmul.bf16 %v7276_v15, %v7126_v51 }
 0x8fc   : > { %v13330_v19 = vmul.bf16 %v7283_v35, %v7127_v13  ;;  %v13332_v52 = vpop.f32.mrb[100].mxu0  ;;  %v13346_v35 = vpack.c.bf16 %v9701_v11, %v9701_v11  ;;  %v13350_v13 = vrot.slane %v13190_v55, %v14567_v4  ;;  %v13360_v11 = vpack.i.b16 %v13342_v7, %v13342_v7 }
 0x8fd   : > { %14647 = vst [vmem:[#allocation18_spill] sm:$0xff] %v13332_v52  ;;  %v13336_v29 = vpop.f32.mrb[101].mxu0 }
 0x8fe   : > { %14648 = vst [vmem:[#allocation19_spill] sm:$0xff] %v13336_v29  ;;  %v6506_v45 = vpop.f32.mrb[120].mxu1  ;;  %v13340_v63 = vpop.f32.mrb[102].mxu0  ;;  %v13380_v54 = vrot.slane %v13360_v11, %v14632_v46 }
 0x8ff   : > { %14649 = vst [vmem:[#allocation22_spill] sm:$0xff] %v13340_v63  ;;  %v6508_v15 = vpop.f32.mrb[121].mxu1  ;;  %v13344_v53 = vpop.f32.mrb[103].mxu0  ;;  %v13355_v63 = vrot.slane %v13194_v28, %v14567_v4 }
 0x900   : > { %14650 = vst [vmem:[#allocation20_spill] sm:$0xff] %v13344_v53  ;;  %v6510_v51 = vpop.f32.mrb[122].mxu1 }
 0x901   : > { %v7130_v21 = vpack.c.bf16 %v6510_v51, %v6506_v45  ;;  %v6512_v16 = vpop.f32.mrb[123].mxu1  ;;  %7038 = vmatmul.mubr.bf16.gmra.mrb[208].mxu0 %v13176_v2  ;;  %v13365_v45 = vpack.i.b16 %v13346_v35, %v13346_v35 }
 0x902   : > { %v7131_v62 = vpack.c.bf16 %v6512_v16, %v6508_v15  ;;  %7047 = vmatprep.mubr.bf16.mxu0 %v13198_v5  ;;  %v14651_v16 = vadd.bf16 %v13271_v27, %v13210_v26  ;;  %v14652_v5 = vadd.bf16 %v13274_v20, %v13213_v43 }
 0x903   : > { %v7346_v12 = vmul.bf16 %v13350_v13, %v7130_v21  ;;  %v13384_v26 = vrot.slane %v13365_v45, %v14632_v46 }
 0x904   : > { %v7347_v51 = vmul.bf16 %v13355_v63, %v7131_v62  ;;  %v6779_v2 = vpop.f32.mrb[104].mxu0 }
 0x905   : > { %v13371_v15 = vadd.bf16 %v7346_v12, %v14651_v16  ;;  %v6781_v53 = vpop.f32.mrb[105].mxu0 }
 0x906   : > { %v13376_v29 = vadd.bf16 %v7347_v51, %v14652_v5  ;;  %v6516_v52 = vpop.f32.mrb[124].mxu1  ;;  %v6783_v21 = vpop.f32.mrb[106].mxu0  ;;  %v14653_v5 = vadd.bf16 %v13290_v23, %v13223_v14 }
 0x907   : > { %v7100_v56 = vpack.c.bf16 %v6783_v21, %v6779_v2  ;;  %v6518_v62 = vpop.f32.mrb[125].mxu1  ;;  %v6785_v34 = vpop.f32.mrb[107].mxu0 }
 0x908   : > { %v7101_v25 = vpack.c.bf16 %v6785_v34, %v6781_v53  ;;  %v6520_v27 = vpop.f32.mrb[126].mxu1 }
 0x909   : > { %v13387_v12 = vmul.bf16 %v13380_v54, %v7100_v56  ;;  %v7134_v43 = vpack.c.bf16 %v6520_v27, %v6516_v52  ;;  %v6522_v20 = vpop.f32.mrb[127].mxu1  ;;  %7048 = vmatmul.mubr.bf16.gmra.mrb[212].mxu0 %v13196_v49  ;;  %v14654_v49 = vadd.bf16 %v13292_v24, %v13226_v36 }
 0x90a   : > { %v13391_v51 = vmul.bf16 %v13384_v26, %v7101_v25  ;;  %v7135_v2 = vpack.c.bf16 %v6522_v20, %v6518_v62  ;;  %7057 = vmatprep.mubr.bf16.mxu0 %v13217_v38 }
 0x90b   : > { %v7350_v34 = vmul.bf16 %v13350_v13, %v7134_v43 }
 0x90c   : > { %v7351_v53 = vmul.bf16 %v13355_v63, %v7135_v2  ;;  %v6789_v16 = vpop.f32.mrb[108].mxu0 }
 0x90d   : > { %v13399_v56 = vadd.bf16 %v7350_v34, %v14653_v5  ;;  %v6791_v52 = vpop.f32.mrb[109].mxu0 }
 0x90e   : > { %v13404_v21 = vadd.bf16 %v7351_v53, %v14654_v49  ;;  %v6526_v25 = vpop.f32.mrb[128].mxu1  ;;  %v6793_v62 = vpop.f32.mrb[110].mxu0 }
 0x90f   : > { %v7104_v27 = vpack.c.bf16 %v6793_v62, %v6789_v16  ;;  %v6528_v38 = vpop.f32.mrb[129].mxu1  ;;  %v6795_v20 = vpop.f32.mrb[111].mxu0  ;;  %v14655_v16 = vadd.bf16 %v13310_v3, %v13236_v22 }
 0x910   : > { %v7105_v43 = vpack.c.bf16 %v6795_v20, %v6791_v52  ;;  %v6530_v0 = vpop.f32.mrb[130].mxu1 }
 0x911   : > { %v13407_v2 = vmul.bf16 %v13380_v54, %v7104_v27  ;;  %v7138_v10 = vpack.c.bf16 %v6530_v0, %v6526_v25  ;;  %v6532_v14 = vpop.f32.mrb[131].mxu1  ;;  %7058 = vmatmul.mubr.bf16.gmra.mrb[216].mxu0 %v13215_v37  ;;  %v14656_v37 = vadd.bf16 %v13312_v18, %v13239_v31 }
 0x912   : > { %v13411_v23 = vmul.bf16 %v13384_v26, %v7105_v43  ;;  %v7139_v36 = vpack.c.bf16 %v6532_v14, %v6528_v38  ;;  %7067 = vmatprep.mubr.bf16.mxu0 %v13230_v33 }
 0x913   : > { %v7354_v24 = vmul.bf16 %v13350_v13, %v7138_v10 }
 0x914   : > { %v7355_v34 = vmul.bf16 %v13355_v63, %v7139_v36  ;;  %v6799_v53 = vpop.f32.mrb[112].mxu0 }
 0x915   : > { %v13419_v5 = vadd.bf16 %v7354_v24, %v14655_v16  ;;  %v6801_v0 = vpop.f32.mrb[113].mxu0  ;;  %v14657_v24 = vadd.bf16 %v13328_v1, %v13251_v59 }
 0x916   : > { %v13424_v52 = vadd.bf16 %v7355_v34, %v14656_v37  ;;  %v6536_v49 = vpop.f32.mrb[132].mxu1  ;;  %v6803_v25 = vpop.f32.mrb[114].mxu0 }
 0x917   : > { %v7108_v62 = vpack.c.bf16 %v6803_v25, %v6799_v53  ;;  %v6538_v33 = vpop.f32.mrb[133].mxu1  ;;  %v6805_v27 = vpop.f32.mrb[115].mxu0 }
 0x918   : > { %v7109_v10 = vpack.c.bf16 %v6805_v27, %v6801_v0  ;;  %v6540_v38 = vpop.f32.mrb[134].mxu1 }
 0x919   : > { %v13427_v20 = vmul.bf16 %v13380_v54, %v7108_v62  ;;  %v7142_v43 = vpack.c.bf16 %v6540_v38, %v6536_v49  ;;  %v6542_v22 = vpop.f32.mrb[135].mxu1  ;;  %7068 = vmatmul.mubr.bf16.gmra.mrb[220].mxu0 %v13228_v58  ;;  %v14658_v58 = vadd.bf16 %v13330_v19, %v13254_v9  ;;  %v13453_v9 = vrot.slane %v13256_v39, %v14567_v4 }
 0x91a   : > { %v13431_v3 = vmul.bf16 %v13384_v26, %v7109_v10  ;;  %v7143_v31 = vpack.c.bf16 %v6542_v22, %v6538_v33  ;;  %7077 = vmatprep.mubr.bf16.mxu0 %v13243_v47  ;;  %v7284_v47 = vshrl.u32 %v13342_v7, 16 }
 0x91b   : > { %v7358_v18 = vmul.bf16 %v13350_v13, %v7142_v43 }
 0x91c   : > { %v7359_v14 = vmul.bf16 %v13355_v63, %v7143_v31  ;;  %v6809_v36 = vpop.f32.mrb[116].mxu0  ;;  %v7291_v63 = vshrl.u32 %v13346_v35, 16  ;;  %v13461_v35 = vrot.slane %v13258_v32, %v14567_v4 }
 0x91d   : > { %v13439_v34 = vadd.bf16 %v7358_v18, %v14657_v24  ;;  %v6811_v53 = vpop.f32.mrb[117].mxu0 }
 0x91e   : > { %v13444_v16 = vadd.bf16 %v7359_v14, %v14658_v58  ;;  %v6546_v0 = vpop.f32.mrb[136].mxu1  ;;  %v6813_v37 = vpop.f32.mrb[118].mxu0  ;;  %v13469_v38 = vpack.i.b16 %v7291_v63, %v7291_v63 }
 0x91f   : > { %v7112_v49 = vpack.c.bf16 %v6813_v37, %v6809_v36  ;;  %v6548_v13 = vpop.f32.mrb[137].mxu1  ;;  %v6815_v25 = vpop.f32.mrb[119].mxu0 }
 0x920   : > { %v7113_v62 = vpack.c.bf16 %v6815_v25, %v6811_v53  ;;  %v6550_v33 = vpop.f32.mrb[138].mxu1 }
 0x921   : > { %v13449_v59 = vmul.bf16 %v13380_v54, %v7112_v49  ;;  %v7146_v1 = vpack.c.bf16 %v6550_v33, %v6546_v0  ;;  %v6552_v19 = vpop.f32.mrb[139].mxu1  ;;  %7078 = vmatmul.mubr.bf16.gmra.mrb[224].mxu0 %v13241_v42  ;;  %v13464_v54 = vpack.i.b16 %v7284_v47, %v7284_v47  ;;  %v13484_v0 = vrot.slane %v13469_v38, %v14632_v46 }
 0x922   : > { %v13457_v7 = vmul.bf16 %v13384_v26, %v7113_v62  ;;  %v7147_v27 = vpack.c.bf16 %v6552_v19, %v6548_v13  ;;  %7087 = vmatprep.mubr.bf16.mxu0 %v13262_v6 }
 0x923   : > { %v13467_v10 = vmul.bf16 %v13453_v9, %v7146_v1  ;;  %v13480_v36 = vrot.slane %v13464_v54, %v14632_v46 }
 0x924   : > { %v13472_v43 = vmul.bf16 %v13461_v35, %v7147_v27  ;;  %v6819_v42 = vpop.f32.mrb[120].mxu0 }
 0x925   : > { %v6821_v22 = vpop.f32.mrb[121].mxu0 }
 0x926   : > { %v6556_v18 = vpop.f32.mrb[140].mxu1  ;;  %v6823_v6 = vpop.f32.mrb[122].mxu0 }
 0x927   : > { %v7116_v14 = vpack.c.bf16 %v6823_v6, %v6819_v42  ;;  %v6558_v24 = vpop.f32.mrb[141].mxu1  ;;  %v6825_v53 = vpop.f32.mrb[123].mxu0 }
 0x928   : > { %v7117_v58 = vpack.c.bf16 %v6825_v53, %v6821_v22  ;;  %v6560_v37 = vpop.f32.mrb[142].mxu1 }
 0x929   : > { %v13487_v47 = vmul.bf16 %v13480_v36, %v7116_v14  ;;  %v7150_v49 = vpack.c.bf16 %v6560_v37, %v6556_v18  ;;  %v6562_v13 = vpop.f32.mrb[143].mxu1  ;;  %7088 = vmatmul.mubr.bf16.gmra.mrb[228].mxu0 %v13260_v8 }
 0x92a   : > { %v13491_v25 = vmul.bf16 %v13484_v0, %v7117_v58  ;;  %v7151_v63 = vpack.c.bf16 %v6562_v13, %v6558_v24 }
 0x92b   : > { %v13496_v33 = vmul.bf16 %v13453_v9, %v7150_v49 }
 0x92c   : > { %v13501_v1 = vmul.bf16 %v13461_v35, %v7151_v63  ;;  %v6829_v19 = vpop.f32.mrb[124].mxu0 }
 0x92d   : > { %v6831_v27 = vpop.f32.mrb[125].mxu0 }
 0x92e   : > { %v6566_v22 = vpop.f32.mrb[144].mxu1  ;;  %v6833_v18 = vpop.f32.mrb[126].mxu0 }
 0x92f   : > { %v7120_v6 = vpack.c.bf16 %v6833_v18, %v6829_v19  ;;  %v6568_v14 = vpop.f32.mrb[145].mxu1  ;;  %v6835_v24 = vpop.f32.mrb[127].mxu0 }
 0x930   : > { %v7121_v53 = vpack.c.bf16 %v6835_v24, %v6831_v27  ;;  %v6570_v58 = vpop.f32.mrb[146].mxu1 }
 0x931   : > { %v13508_v37 = vmul.bf16 %v13480_v36, %v7120_v6  ;;  %v7154_v49 = vpack.c.bf16 %v6570_v58, %v6566_v22  ;;  %v6572_v13 = vpop.f32.mrb[147].mxu1 }
 0x932   : > { %v13511_v63 = vmul.bf16 %v13484_v0, %v7121_v53  ;;  %v7155_v8 = vpack.c.bf16 %v6572_v13, %v6568_v14 }
 0x933   : > { %v13516_v42 = vmul.bf16 %v13453_v9, %v7154_v49 }
 0x934   : > { %v13521_v27 = vmul.bf16 %v13461_v35, %v7155_v8  ;;  %v6839_v18 = vpop.f32.mrb[128].mxu0 }
 0x935   : > { %v6841_v6 = vpop.f32.mrb[129].mxu0 }
 0x936   : > { %v6576_v24 = vpop.f32.mrb[148].mxu1  ;;  %v6843_v53 = vpop.f32.mrb[130].mxu0 }
 0x937   : > { %v7124_v58 = vpack.c.bf16 %v6843_v53, %v6839_v18  ;;  %v6578_v13 = vpop.f32.mrb[149].mxu1  ;;  %v6845_v49 = vpop.f32.mrb[131].mxu0 }
 0x938   : > { %v7125_v46 = vpack.c.bf16 %v6845_v49, %v6841_v6  ;;  %v6580_v62 = vpop.f32.mrb[150].mxu1 }
 0x939   : > { %v13528_v19 = vmul.bf16 %v13480_v36, %v7124_v58  ;;  %v7158_v8 = vpack.c.bf16 %v6580_v62, %v6576_v24  ;;  %v6582_v31 = vpop.f32.mrb[151].mxu1 }
 0x93a   : > { %v13531_v26 = vmul.bf16 %v13484_v0, %v7125_v46  ;;  %v7159_v22 = vpack.c.bf16 %v6582_v31, %v6578_v13 }
 0x93b   : > { %v13536_v14 = vmul.bf16 %v13453_v9, %v7158_v8 }
 0x93c   : > { %v13541_v6 = vmul.bf16 %v13461_v35, %v7159_v22  ;;  %v6849_v53 = vpop.f32.mrb[132].mxu0  ;;  %v13552_v22 = vrot.slane %v13190_v55, %v14576_v61 }
 0x93d   : > { %v6851_v24 = vpop.f32.mrb[133].mxu0 }
 0x93e   : > { %v6586_v46 = vpop.f32.mrb[152].mxu1  ;;  %v6853_v58 = vpop.f32.mrb[134].mxu0 }
 0x93f   : > { %v7128_v13 = vpack.c.bf16 %v6853_v58, %v6849_v53  ;;  %v6588_v49 = vpop.f32.mrb[153].mxu1  ;;  %v6855_v9 = vpop.f32.mrb[135].mxu0  ;;  %v13559_v53 = vrot.slane %v13194_v28, %v14576_v61 }
 0x940   : > { %v7129_v8 = vpack.c.bf16 %v6855_v9, %v6851_v24  ;;  %v6590_v44 = vpop.f32.mrb[154].mxu1 }
 0x941   : > { %v13548_v18 = vmul.bf16 %v13480_v36, %v7128_v13  ;;  %v7162_v35 = vpack.c.bf16 %v6590_v44, %v6586_v46  ;;  %v6592_v62 = vpop.f32.mrb[155].mxu1  ;;  %v13579_v44 = vrot.slane %v13360_v11, %v14567_v4 }
 0x942   : > { %v13555_v41 = vmul.bf16 %v13484_v0, %v7129_v8  ;;  %v7163_v31 = vpack.c.bf16 %v6592_v62, %v6588_v49  ;;  %v14659_v0 = vadd.bf16 %v13467_v10, %v13371_v15  ;;  %v14660_v49 = vadd.bf16 %v13472_v43, %v13376_v29 }
 0x943   : > { %v7442_v36 = vmul.bf16 %v13552_v22, %v7162_v35  ;;  %v13583_v15 = vrot.slane %v13365_v45, %v14567_v4 }
 0x944   : > { %v7443_v46 = vmul.bf16 %v13559_v53, %v7163_v31  ;;  %v6859_v58 = vpop.f32.mrb[136].mxu0 }
 0x945   : > { %v13570_v13 = vadd.bf16 %v7442_v36, %v14659_v0  ;;  %v6861_v62 = vpop.f32.mrb[137].mxu0 }
 0x946   : > { %v13575_v9 = vadd.bf16 %v7443_v46, %v14660_v49  ;;  %v6596_v8 = vpop.f32.mrb[156].mxu1  ;;  %v6863_v24 = vpop.f32.mrb[138].mxu0 }
 0x947   : > { %v7132_v35 = vpack.c.bf16 %v6863_v24, %v6859_v58  ;;  %v6598_v31 = vpop.f32.mrb[157].mxu1  ;;  %v6865_v40 = vpop.f32.mrb[139].mxu0  ;;  %v14661_v24 = vadd.bf16 %v13487_v47, %v13387_v12  ;;  %v14664_v12 = vadd.bf16 %v13501_v1, %v13404_v21  ;;  %v14666_v1 = vadd.bf16 %v13511_v63, %v13411_v23 }
 0x948   : > { %v7133_v60 = vpack.c.bf16 %v6865_v40, %v6861_v62  ;;  %v6600_v10 = vpop.f32.mrb[158].mxu1  ;;  %v14662_v40 = vadd.bf16 %v13491_v25, %v13391_v51 }
 0x949   : > { %v7348_v36 = vmul.bf16 %v13579_v44, %v7132_v35  ;;  %v7166_v29 = vpack.c.bf16 %v6600_v10, %v6596_v8  ;;  %v6602_v43 = vpop.f32.mrb[159].mxu1  ;;  %v14663_v8 = vadd.bf16 %v13496_v33, %v13399_v56 }
 0x94a   : > { %v7349_v46 = vmul.bf16 %v13583_v15, %v7133_v60  ;;  %v7167_v0 = vpack.c.bf16 %v6602_v43, %v6598_v31 }
 0x94b   : > { %v13590_v58 = vadd.bf16 %v7348_v36, %v14661_v24  ;;  %v7446_v49 = vmul.bf16 %v13552_v22, %v7166_v29 }
 0x94c   : > { %v13596_v62 = vadd.bf16 %v7349_v46, %v14662_v40  ;;  %v7447_v30 = vmul.bf16 %v13559_v53, %v7167_v0  ;;  %v6869_v35 = vpop.f32.mrb[140].mxu0 }
 0x94d   : > { %v13602_v60 = vadd.bf16 %v7446_v49, %v14663_v8  ;;  %v6871_v31 = vpop.f32.mrb[141].mxu0  ;;  %v14665_v49 = vadd.bf16 %v13508_v37, %v13407_v2  ;;  %v14668_v2 = vadd.bf16 %v13521_v27, %v13424_v52 }
 0x94e   : > { %v13607_v47 = vadd.bf16 %v7447_v30, %v14664_v12  ;;  %v6606_v10 = vpop.f32.mrb[160].mxu1  ;;  %v6873_v36 = vpop.f32.mrb[142].mxu0  ;;  %v14667_v12 = vadd.bf16 %v13516_v42, %v13419_v5 }
 0x94f   : > { %v7136_v29 = vpack.c.bf16 %v6873_v36, %v6869_v35  ;;  %v6608_v51 = vpop.f32.mrb[161].mxu1  ;;  %v6875_v25 = vpop.f32.mrb[143].mxu0 }
 0x950   : > { %v7137_v43 = vpack.c.bf16 %v6875_v25, %v6871_v31  ;;  %v6610_v46 = vpop.f32.mrb[162].mxu1 }
 0x951   : > { %v7352_v0 = vmul.bf16 %v13579_v44, %v7136_v29  ;;  %v7170_v24 = vpack.c.bf16 %v6610_v46, %v6606_v10  ;;  %v6612_v40 = vpop.f32.mrb[163].mxu1 }
 0x952   : > { %v7353_v56 = vmul.bf16 %v13583_v15, %v7137_v43  ;;  %v7171_v33 = vpack.c.bf16 %v6612_v40, %v6608_v51 }
 0x953   : > { %v13614_v21 = vadd.bf16 %v7352_v0, %v14665_v49  ;;  %v7450_v30 = vmul.bf16 %v13552_v22, %v7170_v24 }
 0x954   : > { %v13620_v35 = vadd.bf16 %v7353_v56, %v14666_v1  ;;  %v7451_v8 = vmul.bf16 %v13559_v53, %v7171_v33  ;;  %v6879_v31 = vpop.f32.mrb[144].mxu0  ;;  %v14669_v56 = vadd.bf16 %v13528_v19, %v13427_v20  ;;  %v14670_v33 = vadd.bf16 %v13531_v26, %v13431_v3 }
 0x955   : > { %v13626_v10 = vadd.bf16 %v7450_v30, %v14667_v12  ;;  %v6881_v36 = vpop.f32.mrb[145].mxu0  ;;  %v14672_v20 = vadd.bf16 %v13541_v6, %v13444_v16  ;;  %v13665_v6 = vrot.slane %v13258_v32, %v14576_v61 }
 0x956   : > { %v13631_v37 = vadd.bf16 %v7451_v8, %v14668_v2  ;;  %v6616_v29 = vpop.f32.mrb[164].mxu1  ;;  %v6883_v51 = vpop.f32.mrb[146].mxu0  ;;  %v14671_v8 = vadd.bf16 %v13536_v14, %v13439_v34  ;;  %v13660_v34 = vrot.slane %v13256_v39, %v14576_v61 }
 0x957   : > { %v7140_v25 = vpack.c.bf16 %v6883_v51, %v6879_v31  ;;  %v6618_v23 = vpop.f32.mrb[165].mxu1  ;;  %v6885_v63 = vpop.f32.mrb[147].mxu0 }
 0x958   : > { %v7141_v43 = vpack.c.bf16 %v6885_v63, %v6881_v36  ;;  %v6620_v46 = vpop.f32.mrb[166].mxu1  ;;  %v14673_v63 = vadd.bf16 %v13548_v18, %v13449_v59 }
 0x959   : > { %v7356_v0 = vmul.bf16 %v13579_v44, %v7140_v25  ;;  %v7174_v24 = vpack.c.bf16 %v6620_v46, %v6616_v29  ;;  %v6622_v40 = vpop.f32.mrb[167].mxu1  ;;  %v14674_v46 = vadd.bf16 %v13555_v41, %v13457_v7 }
 0x95a   : > { %v7357_v5 = vmul.bf16 %v13583_v15, %v7141_v43  ;;  %v7175_v42 = vpack.c.bf16 %v6622_v40, %v6618_v23 }
 0x95b   : > { %v13638_v52 = vadd.bf16 %v7356_v0, %v14669_v56  ;;  %v7454_v27 = vmul.bf16 %v13552_v22, %v7174_v24 }
 0x95c   : > { %v13644_v49 = vadd.bf16 %v7357_v5, %v14670_v33  ;;  %v7455_v30 = vmul.bf16 %v13559_v53, %v7175_v42  ;;  %v6889_v1 = vpop.f32.mrb[148].mxu0 }
 0x95d   : > { %v13650_v31 = vadd.bf16 %v7454_v27, %v14671_v8  ;;  %v6891_v12 = vpop.f32.mrb[149].mxu0  ;;  %v13689_v27 = vrot.slane %v13464_v54, %v14567_v4 }
 0x95e   : > { %v13655_v19 = vadd.bf16 %v7455_v30, %v14672_v20  ;;  %v6626_v22 = vpop.f32.mrb[168].mxu1  ;;  %v6893_v36 = vpop.f32.mrb[150].mxu0  ;;  %v13693_v30 = vrot.slane %v13469_v38, %v14567_v4 }
 0x95f   : > { %v7144_v2 = vpack.c.bf16 %v6893_v36, %v6889_v1  ;;  %v6628_v3 = vpop.f32.mrb[169].mxu1  ;;  %v6895_v26 = vpop.f32.mrb[151].mxu0 }
 0x960   : > { %v7145_v29 = vpack.c.bf16 %v6895_v26, %v6891_v12  ;;  %v6630_v51 = vpop.f32.mrb[170].mxu1 }
 0x961   : > { %v7360_v53 = vmul.bf16 %v13579_v44, %v7144_v2  ;;  %v7178_v25 = vpack.c.bf16 %v6630_v51, %v6626_v22  ;;  %v6632_v14 = vpop.f32.mrb[171].mxu1 }
 0x962   : > { %v7361_v23 = vmul.bf16 %v13583_v15, %v7145_v29  ;;  %v7179_v16 = vpack.c.bf16 %v6632_v14, %v6628_v3 }
 0x963   : > { %v13670_v43 = vadd.bf16 %v7360_v53, %v14673_v63  ;;  %v13673_v44 = vmul.bf16 %v13660_v34, %v7178_v25  ;;  %v13716_v25 = vld [vmem:[%s14675_s4 + $0x40] sm:$0xff]  }
 0x964   : > { %v13678_v0 = vadd.bf16 %v7361_v23, %v14674_v46  ;;  %v13681_v15 = vmul.bf16 %v13665_v6, %v7179_v16  ;;  %v6899_v24 = vpop.f32.mrb[152].mxu0  ;;  %9127 = vmatprep.subr.bf16.mxu0 %v13716_v25 }
 0x965   : > { %v7506_v40 = vadd.bf16 %v13673_v44, %v13570_v13  ;;  %v6901_v5 = vpop.f32.mrb[153].mxu0  ;;  %v13804_v13 = vld [vmem:[%s14675_s4 + $0x48] sm:$0xff]  }
 0x966   : > { %v7507_v59 = vadd.bf16 %v13681_v15, %v13575_v9  ;;  %v6636_v18 = vpop.f32.mrb[172].mxu1  ;;  %v6903_v42 = vpop.f32.mrb[154].mxu0  ;;  %v13809_v9 = vld [vmem:[%s14675_s4 + $0x8] sm:$0xff]  }
 0x967   : > { %v7148_v56 = vpack.c.bf16 %v6903_v42, %v6899_v24  ;;  %v6638_v41 = vpop.f32.mrb[173].mxu1  ;;  %v6905_v7 = vpop.f32.mrb[155].mxu0  ;;  %v7797_v44 = vld [vmem:[%s14455_s19 + $0x8] sm:$0xff] }
 0x968   : > { %v7149_v33 = vpack.c.bf16 %v6905_v7, %v6901_v5  ;;  %v6640_v1 = vpop.f32.mrb[174].mxu1  ;;  %7811 = vperm.xlu1 %9340, %v7797_v44   ;;  %v13833_v44 = vld [vmem:[%s14675_s4 + $0x10] sm:$0xff]  }
 0x969   : > { %v13696_v8 = vmul.bf16 %v13689_v27, %v7148_v56  ;;  %v7182_v12 = vpack.c.bf16 %v6640_v1, %v6636_v18  ;;  %v6642_v20 = vpop.f32.mrb[175].mxu1 }
 0x96a   : > { %v13699_v22 = vmul.bf16 %v13693_v30, %v7149_v33  ;;  %v7183_v36 = vpack.c.bf16 %v6642_v20, %v6638_v41  ;;  %v13735_v20 = vld [vmem:[%s14675_s4] sm:$0xff]  }
 0x96b   : > { %v13704_v3 = vmul.bf16 %v13660_v34, %v7182_v12  ;;  %9128 = vmatpush3.bf16.msra.mxu0 %v13735_v20 }
 0x96c   : > { %v13709_v26 = vmul.bf16 %v13665_v6, %v7183_v36  ;;  %v6909_v29 = vpop.f32.mrb[156].mxu0  ;;  %9129 = vmatprep.subr.bf16.mxu0 %v13804_v13 }
 0x96d   : > { %v6911_v53 = vpop.f32.mrb[157].mxu0 }
 0x96e   : > { %v6646_v23 = vpop.f32.mrb[176].mxu1  ;;  %v6913_v16 = vpop.f32.mrb[158].mxu0 }
 0x96f   : > { %v7152_v63 = vpack.c.bf16 %v6913_v16, %v6909_v29  ;;  %v6648_v46 = vpop.f32.mrb[177].mxu1  ;;  %v6915_v24 = vpop.f32.mrb[159].mxu0  ;;  %9130 = vmatpush3.bf16.msra.mxu0 %v13809_v9 }
 0x970   : > { %v7153_v5 = vpack.c.bf16 %v6915_v24, %v6911_v53  ;;  %v6650_v18 = vpop.f32.mrb[178].mxu1 }
 0x971   : > { %v13722_v42 = vmul.bf16 %v13689_v27, %v7152_v63  ;;  %v7186_v56 = vpack.c.bf16 %v6650_v18, %v6646_v23  ;;  %v6652_v41 = vpop.f32.mrb[179].mxu1 }
 0x972   : > { %v13725_v7 = vmul.bf16 %v13693_v30, %v7153_v5  ;;  %v7187_v33 = vpack.c.bf16 %v6652_v41, %v6648_v46 }
 0x973   : > { %v13730_v12 = vmul.bf16 %v13660_v34, %v7186_v56 }
 0x974   : > { %v13740_v29 = vmul.bf16 %v13665_v6, %v7187_v33  ;;  %v6919_v53 = vpop.f32.mrb[160].mxu0 }
 0x975   : > { %v6921_v16 = vpop.f32.mrb[161].mxu0 }
 0x976   : > { %v6656_v46 = vpop.f32.mrb[180].mxu1  ;;  %v6923_v24 = vpop.f32.mrb[162].mxu0 }
 0x977   : > { %v7156_v5 = vpack.c.bf16 %v6923_v24, %v6919_v53  ;;  %v6658_v18 = vpop.f32.mrb[181].mxu1  ;;  %v6925_v56 = vpop.f32.mrb[163].mxu0 }
 0x978   : > { %v7157_v41 = vpack.c.bf16 %v6925_v56, %v6921_v16  ;;  %v6660_v36 = vpop.f32.mrb[182].mxu1 }
 0x979   : > { %v13748_v33 = vmul.bf16 %v13689_v27, %v7156_v5  ;;  %v7190_v1 = vpack.c.bf16 %v6660_v36, %v6656_v46  ;;  %v6662_v14 = vpop.f32.mrb[183].mxu1 }
 0x97a   : > { %v13751_v23 = vmul.bf16 %v13693_v30, %v7157_v41  ;;  %v7191_v51 = vpack.c.bf16 %v6662_v14, %v6658_v18 }
 0x97b   : > { %v13756_v63 = vmul.bf16 %v13660_v34, %v7190_v1 }
 0x97c   : > { %v13761_v16 = vmul.bf16 %v13665_v6, %v7191_v51  ;;  %v6929_v24 = vpop.f32.mrb[164].mxu0  ;;  %v13772_v51 = vrot.slane %v13190_v55, %v14593_v48 }
 0x97d   : > { %v6931_v46 = vpop.f32.mrb[165].mxu0 }
 0x97e   : > { %v6666_v5 = vpop.f32.mrb[184].mxu1  ;;  %v6933_v18 = vpop.f32.mrb[166].mxu0 }
 0x97f   : > { %v7160_v56 = vpack.c.bf16 %v6933_v18, %v6929_v24  ;;  %v6668_v41 = vpop.f32.mrb[185].mxu1  ;;  %v6935_v34 = vpop.f32.mrb[167].mxu0  ;;  %v13779_v24 = vrot.slane %v13194_v28, %v14593_v48 }
 0x980   : > { %v7161_v1 = vpack.c.bf16 %v6935_v34, %v6931_v46  ;;  %v6670_v4 = vpop.f32.mrb[186].mxu1  ;;  %v13799_v34 = vrot.slane %v13360_v11, %v14576_v61 }
 0x981   : > { %v13768_v53 = vmul.bf16 %v13689_v27, %v7160_v56  ;;  %v7194_v6 = vpack.c.bf16 %v6670_v4, %v6666_v5  ;;  %v6672_v36 = vpop.f32.mrb[187].mxu1 }
 0x982   : > { %v13775_v2 = vmul.bf16 %v13693_v30, %v7161_v1  ;;  %v7195_v14 = vpack.c.bf16 %v6672_v36, %v6668_v41 }
 0x983   : > { %v7538_v27 = vmul.bf16 %v13772_v51, %v7194_v6  ;;  %v13821_v6 = vld [vmem:[%s14675_s4 + $0x50] sm:$0xff]  }
 0x984   : > { %v7539_v55 = vmul.bf16 %v13779_v24, %v7195_v14  ;;  %v6939_v5 = vpop.f32.mrb[168].mxu0  ;;  %9131 = vmatprep.subr.bf16.mxu0 %v13821_v6 }
 0x985   : > { %v13790_v30 = vadd.bf16 %v7538_v27, %v7506_v40  ;;  %v6941_v36 = vpop.f32.mrb[169].mxu0  ;;  %v13816_v40 = vrot.slane %v13365_v45, %v14576_v61  ;;  %9132 = vmatpush3.bf16.msra.mxu0 %v13833_v44 }
 0x986   : > { %v13795_v28 = vadd.bf16 %v7539_v55, %v7507_v59  ;;  %v6676_v18 = vpop.f32.mrb[188].mxu1  ;;  %v6943_v56 = vpop.f32.mrb[170].mxu0 }
 0x987   : > { %v7164_v41 = vpack.c.bf16 %v6943_v56, %v6939_v5  ;;  %v6678_v14 = vpop.f32.mrb[189].mxu1  ;;  %v6945_v1 = vpop.f32.mrb[171].mxu0 }
 0x988   : > { %v7165_v15 = vpack.c.bf16 %v6945_v1, %v6941_v36  ;;  %v6680_v59 = vpop.f32.mrb[190].mxu1  ;;  %v7799_v36 = vld [vmem:[%s14455_s19 + $0x18] sm:$0xff] }
 0x989   : > { %v7444_v27 = vmul.bf16 %v13799_v34, %v7164_v41  ;;  %v7198_v55 = vpack.c.bf16 %v6680_v59, %v6676_v18  ;;  %v6682_v5 = vpop.f32.mrb[191].mxu1  ;;  %v14676_v18 = vadd.bf16 %v13696_v8, %v13590_v58  ;;  %7821 = vperm.xlu1 %9340, %v7799_v36   ;;  %v14678_v58 = vadd.bf16 %v13704_v3, %v13602_v60  ;;  %v13870_v60 = vld [vmem:[%s14675_s4 + $0x18] sm:$0xff]  }
 0x98a   : > { %v7445_v56 = vmul.bf16 %v13816_v40, %v7165_v15  ;;  %v7199_v1 = vpack.c.bf16 %v6682_v5, %v6678_v14  ;;  %v13845_v14 = vld [vmem:[%s14675_s4 + $0x58] sm:$0xff]   ;;  %v14677_v15 = vadd.bf16 %v13699_v22, %v13596_v62 }
 0x98b   : > { %v13838_v41 = vadd.bf16 %v7444_v27, %v14676_v18  ;;  %v7542_v59 = vmul.bf16 %v13772_v51, %v7198_v55  ;;  %v7801_v55 = vld [vmem:[%s14455_s19 + $0x28] sm:$0xff]  ;;  %v14679_v18 = vadd.bf16 %v13709_v26, %v13607_v47  ;;  %9133 = vmatprep.subr.bf16.mxu0 %v13845_v14  ;;  %v13876_v47 = vld [vmem:[%s14675_s4 + $0x60] sm:$0xff]  }
 0x98c   : > { %v13850_v5 = vadd.bf16 %v7445_v56, %v14677_v15  ;;  %v7543_v4 = vmul.bf16 %v13779_v24, %v7199_v1  ;;  %v6949_v46 = vpop.f32.mrb[172].mxu0  ;;  %9134 = vmatpush3.bf16.msra.mxu0 %v13870_v60 }
 0x98d   : > { %v13856_v8 = vadd.bf16 %v7542_v59, %v14678_v58  ;;  %v6951_v27 = vpop.f32.mrb[173].mxu0  ;;  %7831 = vperm.xlu1 %9340, %v7801_v55   ;;  %9135 = vmatprep.subr.bf16.mxu0 %v13876_v47 }
 0x98e   : > { %v13864_v62 = vadd.bf16 %v7543_v4, %v14679_v18  ;;  %v6686_v22 = vpop.f32.mrb[192].mxu1  ;;  %v6953_v56 = vpop.f32.mrb[174].mxu0 }
 0x98f   : > { %v7168_v3 = vpack.c.bf16 %v6953_v56, %v6949_v46  ;;  %v6688_v36 = vpop.f32.mrb[193].mxu1  ;;  %v6955_v1 = vpop.f32.mrb[175].mxu0  ;;  %v7803_v46 = vld [vmem:[%s14455_s19 + $0x38] sm:$0xff] }
 0x990   : > { %v7169_v26 = vpack.c.bf16 %v6955_v1, %v6951_v27  ;;  %v6690_v4 = vpop.f32.mrb[194].mxu1  ;;  %v14680_v27 = vadd.bf16 %v13722_v42, %v13614_v21  ;;  %v14682_v21 = vadd.bf16 %v13730_v12, %v13626_v10  ;;  %9136 = vmatpush3.bf16.msra.mxu0 %v13887_v57  ;;  %v13924_v10 = vld [vmem:[%s14675_s4 + $0x28] sm:$0xff]  }
 0x991   : > { %v7448_v59 = vmul.bf16 %v13799_v34, %v7168_v3  ;;  %v7202_v15 = vpack.c.bf16 %v6690_v4, %v6686_v22  ;;  %v6692_v58 = vpop.f32.mrb[195].mxu1  ;;  %v13899_v3 = vld [vmem:[%s14675_s4 + $0x68] sm:$0xff]   ;;  %7841 = vperm.xlu1 %9340, %v7803_v46  }
 0x992   : > { %v7449_v18 = vmul.bf16 %v13816_v40, %v7169_v26  ;;  %v7203_v56 = vpack.c.bf16 %v6692_v58, %v6688_v36  ;;  %v14681_v36 = vadd.bf16 %v13725_v7, %v13620_v35  ;;  %v14683_v58 = vadd.bf16 %v13740_v29, %v13631_v37  ;;  %9137 = vmatprep.subr.bf16.mxu0 %v13899_v3  ;;  %v13930_v37 = vld [vmem:[%s14675_s4 + $0x70] sm:$0xff]  }
 0x993   : > { %v13892_v55 = vadd.bf16 %v7448_v59, %v14680_v27  ;;  %v7546_v22 = vmul.bf16 %v13772_v51, %v7202_v15  ;;  %v8160_v15 = vld [vmem:[%s14457_s21 + $0x8] sm:$0xff] }
 0x994   : > { %v13904_v1 = vadd.bf16 %v7449_v18, %v14681_v36  ;;  %v7547_v26 = vmul.bf16 %v13779_v24, %v7203_v56  ;;  %v6959_v4 = vpop.f32.mrb[176].mxu0  ;;  %9138 = vmatpush3.bf16.msra.mxu0 %v13924_v10 }
 0x995   : > { %v13910_v42 = vadd.bf16 %v7546_v22, %v14682_v21  ;;  %v6961_v59 = vpop.f32.mrb[177].mxu0  ;;  %8182 = vperm.xlu1 %9340, %v8160_v15   ;;  %9139 = vmatprep.subr.bf16.mxu0 %v13930_v37 }
 0x996   : > { %v13918_v35 = vadd.bf16 %v7547_v26, %v14683_v58  ;;  %v6696_v7 = vpop.f32.mrb[196].mxu1  ;;  %v6963_v18 = vpop.f32.mrb[178].mxu0 }
 0x997   : > { %v7172_v12 = vpack.c.bf16 %v6963_v18, %v6959_v4  ;;  %v6698_v46 = vpop.f32.mrb[197].mxu1  ;;  %v6965_v56 = vpop.f32.mrb[179].mxu0  ;;  %v8162_v4 = vld [vmem:[%s14457_s21 + $0x18] sm:$0xff]  ;;  %v13941_v18 = vld [vmem:[%s14675_s4 + $0x30] sm:$0xff]  }
 0x998   : > { %v7173_v29 = vpack.c.bf16 %v6965_v56, %v6961_v59  ;;  %v6700_v27 = vpop.f32.mrb[198].mxu1  ;;  %v14684_v59 = vadd.bf16 %v13748_v33, %v13638_v52  ;;  %v8164_v33 = vld [vmem:[%s14457_s21 + $0x28] sm:$0xff]  ;;  %9140 = vmatpush3.bf16.msra.mxu0 %v13941_v18 }
 0x999   : > { %v7452_v22 = vmul.bf16 %v13799_v34, %v7172_v12  ;;  %v7206_v36 = vpack.c.bf16 %v6700_v27, %v6696_v7  ;;  %v6702_v26 = vpop.f32.mrb[199].mxu1  ;;  %v14685_v12 = vadd.bf16 %v13751_v23, %v13644_v49  ;;  %8192 = vperm.xlu1 %9340, %v8162_v4   ;;  %v14686_v27 = vadd.bf16 %v13756_v63, %v13650_v31 }
 0x99a   : > { %v7453_v21 = vmul.bf16 %v13816_v40, %v7173_v29  ;;  %v7207_v58 = vpack.c.bf16 %v6702_v26, %v6698_v46 }
 0x99b   : > { %v13946_v15 = vadd.bf16 %v7452_v22, %v14684_v59  ;;  %v7550_v7 = vmul.bf16 %v13772_v51, %v7206_v36  ;;  %v14687_v51 = vadd.bf16 %v13761_v16, %v13655_v19  ;;  %v13973_v59 = vrot.slane %v13256_v39, %v14593_v48  ;;  %v8166_v16 = vld [vmem:[%s14457_s21 + $0x38] sm:$0xff] }
 0x99c   : > { %v13953_v46 = vadd.bf16 %v7453_v21, %v14685_v12  ;;  %v7551_v56 = vmul.bf16 %v13779_v24, %v7207_v58  ;;  %v6969_v29 = vpop.f32.mrb[180].mxu0 }
 0x99d   : > { %v13959_v26 = vadd.bf16 %v7550_v7, %v14686_v27  ;;  %v6971_v52 = vpop.f32.mrb[181].mxu0  ;;  %8202 = vperm.xlu1 %9340, %v8164_v33   ;;  %v14689_v27 = vadd.bf16 %v13775_v2, %v13678_v0  ;;  %v14002_v0 = vrot.slane %v13464_v54, %v14576_v61 }
 0x99e   : > { %v13967_v49 = vadd.bf16 %v7551_v56, %v14687_v51  ;;  %v6706_v23 = vpop.f32.mrb[200].mxu1  ;;  %v6973_v22 = vpop.f32.mrb[182].mxu0  ;;  %v13981_v56 = vrot.slane %v13258_v32, %v14593_v48 }
 0x99f   : > { %v7176_v24 = vpack.c.bf16 %v6973_v22, %v6969_v29  ;;  %v6708_v36 = vpop.f32.mrb[201].mxu1  ;;  %v6975_v4 = vpop.f32.mrb[183].mxu0 }
 0x9a0   : > { %v7177_v31 = vpack.c.bf16 %v6975_v4, %v6971_v52  ;;  %v6710_v63 = vpop.f32.mrb[202].mxu1 }
 0x9a1   : > { %v7456_v21 = vmul.bf16 %v13799_v34, %v7176_v24  ;;  %v7210_v58 = vpack.c.bf16 %v6710_v63, %v6706_v23  ;;  %v6712_v19 = vpop.f32.mrb[203].mxu1  ;;  %v14688_v34 = vadd.bf16 %v13768_v53, %v13670_v43  ;;  %8212 = vperm.xlu1 %9340, %v8166_v16   ;;  %v8168_v43 = vld [vmem:[%s14457_s21 + $0x48] sm:$0xff] }
 0x9a2   : > { %v7457_v7 = vmul.bf16 %v13816_v40, %v7177_v31  ;;  %v7211_v12 = vpack.c.bf16 %v6712_v19, %v6708_v36 }
 0x9a3   : > { %v13986_v29 = vadd.bf16 %v7456_v21, %v14688_v34  ;;  %v7586_v39 = vmul.bf16 %v13973_v59, %v7210_v58  ;;  %v8170_v58 = vld [vmem:[%s14457_s21 + $0x58] sm:$0xff] }
 0x9a4   : > { %v13992_v52 = vadd.bf16 %v7457_v7, %v14689_v27  ;;  %v7587_v33 = vmul.bf16 %v13981_v56, %v7211_v12  ;;  %v6979_v40 = vpop.f32.mrb[184].mxu0  ;;  %v9965_v7 = vld [vmem:[%s10280_s8 + $0x100] ss:$8 sps:$4 sm:$0xff]   ;;  %v9966_v34 = vld [vmem:[%s10280_s8 + $0x114] ss:$8 sps:$4 sm:$0xff]  }
 0x9a5   : > { %v7602_v51 = vadd.bf16 %v7586_v39, %v13790_v30  ;;  %v6981_v32 = vpop.f32.mrb[185].mxu0  ;;  %v14006_v30 = vrot.slane %v13469_v38, %v14576_v61  ;;  %8222 = vperm.xlu1 %9340, %v8168_v43  }
 0x9a6   : > { %v6716_v53 = vpop.f32.mrb[204].mxu1  ;;  %v6983_v23 = vpop.f32.mrb[186].mxu0  ;;  %v7603_v22 = vadd.bf16 %v7587_v33, %v13795_v28 }
 0x9a7   : > { %v7180_v24 = vpack.c.bf16 %v6983_v23, %v6979_v40  ;;  %v6718_v2 = vpop.f32.mrb[205].mxu1  ;;  %v6985_v36 = vpop.f32.mrb[187].mxu0 }
 0x9a8   : > { %v7181_v4 = vpack.c.bf16 %v6985_v36, %v6981_v32  ;;  %v6720_v31 = vpop.f32.mrb[206].mxu1  ;;  %7650 = vmatprep.mubr.bf16.mxu1 %v7603_v22  ;;  %v8172_v32 = vld [vmem:[%s14457_s21 + $0x68] sm:$0xff]  ;;  %v9967_v22 = vld [vmem:[%s10280_s8 + $0x110] ss:$8 sps:$4 sm:$0xff]  }
 0x9a9   : > { %v14009_v63 = vmul.bf16 %v14002_v0, %v7180_v24  ;;  %v7214_v28 = vpack.c.bf16 %v6720_v31, %v6716_v53  ;;  %v6722_v21 = vpop.f32.mrb[207].mxu1  ;;  %7651 = vmatmul.mubr.bf16.vlgmr.msra.gmra.mrb[216].mxu1 %v7602_v51  ;;  %8232 = vperm.xlu1 %9340, %v8170_v58  }
 0x9aa   : > { %v14015_v19 = vmul.bf16 %v14006_v30, %v7181_v4  ;;  %v7215_v16 = vpack.c.bf16 %v6722_v21, %v6718_v2  ;;  %7692 = vmatpush1.bf16.msra.mxu1 %v9965_v7  ;;  %v9968_v4 = vld [vmem:[%s10280_s8 + $0x124] ss:$8 sps:$4 sm:$0xff]  }
 0x9ab   : > { %v7508_v61 = vadd.bf16 %v14009_v63, %v13838_v41  ;;  %v7590_v12 = vmul.bf16 %v13973_v59, %v7214_v28  ;;  %7693 = vmatprep.subr.bf16.mxu1 %v9966_v34  ;;  %v9984_v41 = vld [vmem:[%s10280_s8 + $0x1a4] ss:$8 sps:$4 sm:$0xff]  }
 0x9ac   : > { %v7509_v39 = vadd.bf16 %v14015_v19, %v13850_v5  ;;  %v7591_v27 = vmul.bf16 %v13981_v56, %v7215_v16  ;;  %v6989_v33 = vpop.f32.mrb[188].mxu0  ;;  %v9986_v19 = vld [vmem:[%s10280_s8 + $0x1b4] ss:$8 sps:$4 sm:$0xff]  }
 0x9ad   : > { %v7606_v40 = vadd.bf16 %v7590_v12, %v13856_v8  ;;  %v6991_v51 = vpop.f32.mrb[189].mxu0  ;;  %8242 = vperm.xlu1 %9340, %v8172_v32   ;;  %v9969_v12 = vld [vmem:[%s10280_s8 + $0x120] ss:$8 sps:$4 sm:$0xff]  }
 0x9ae   : > { %v6726_v43 = vpop.f32.mrb[208].mxu1  ;;  %v6993_v53 = vpop.f32.mrb[190].mxu0  ;;  %v7607_v23 = vadd.bf16 %v7591_v27, %v13864_v62  ;;  %7694 = vmatpush1.bf16.msra.mxu1 %v9967_v22  ;;  %v8174_v62 = vld [vmem:[%s14457_s21 + $0x78] sm:$0xff] }
 0x9af   : > { %v7184_v24 = vpack.c.bf16 %v6993_v53, %v6989_v33  ;;  %v6728_v2 = vpop.f32.mrb[209].mxu1  ;;  %v6995_v36 = vpop.f32.mrb[191].mxu0  ;;  %7695 = vmatprep.subr.bf16.mxu1 %v9968_v4  ;;  %v9970_v33 = vld [vmem:[%s10280_s8 + $0x134] ss:$8 sps:$4 sm:$0xff]  }
 0x9b0   : > { %v7185_v31 = vpack.c.bf16 %v6995_v36, %v6991_v51  ;;  %v6730_v8 = vpop.f32.mrb[210].mxu1  ;;  %7660 = vmatprep.mubr.bf16.mxu1 %v7607_v23  ;;  %v8523_v23 = vld [vmem:[%s14459_s23 + $0x8] sm:$0x3]  ;;  %v9971_v36 = vld [vmem:[%s10280_s8 + $0x130] ss:$8 sps:$4 sm:$0xff]  }
 0x9b1   : > { %v14033_v28 = vmul.bf16 %v14002_v0, %v7184_v24  ;;  %v7218_v21 = vpack.c.bf16 %v6730_v8, %v6726_v43  ;;  %v6732_v58 = vpop.f32.mrb[211].mxu1  ;;  %7661 = vmatmul.mubr.bf16.gmra.mrb[220].mxu1 %v7606_v40  ;;  %8252 = vperm.xlu1 %9340, %v8174_v62  }
 0x9b2   : > { %v14039_v16 = vmul.bf16 %v14006_v30, %v7185_v31  ;;  %v7219_v7 = vpack.c.bf16 %v6732_v58, %v6728_v2  ;;  %7696 = vmatpush1.bf16.msra.mxu1 %v9969_v12 }
 0x9b3   : > { %v7512_v34 = vadd.bf16 %v14033_v28, %v13892_v55  ;;  %v7594_v27 = vmul.bf16 %v13973_v59, %v7218_v21  ;;  %7697 = vmatprep.subr.bf16.mxu1 %v9970_v33  ;;  %v9972_v21 = vld [vmem:[%s10280_s8 + $0x144] ss:$8 sps:$4 sm:$0xff]   ;;  %v9973_v33 = vld [vmem:[%s10280_s8 + $0x140] ss:$8 sps:$4 sm:$0xff]  }
 0x9b4   : > { %v7513_v40 = vadd.bf16 %v14039_v16, %v13904_v1  ;;  %v7595_v51 = vmul.bf16 %v13981_v56, %v7219_v7  ;;  %v6999_v32 = vpop.f32.mrb[192].mxu0  ;;  %v9988_v55 = vld [vmem:[%s10280_s8 + $0x1c4] ss:$8 sps:$4 sm:$0xff]   ;;  %v9990_v16 = vld [vmem:[%s10280_s8 + $0x1d4] ss:$8 sps:$4 sm:$0xff]  }
 0x9b5   : > { %v7610_v43 = vadd.bf16 %v7594_v27, %v13910_v42  ;;  %v7001_v53 = vpop.f32.mrb[193].mxu0  ;;  %8531 = vperm.xlu1 %9340, %v8523_v23  }
 0x9b6   : > { %v6736_v22 = vpop.f32.mrb[212].mxu1  ;;  %v7003_v24 = vpop.f32.mrb[194].mxu0  ;;  %v7611_v2 = vadd.bf16 %v7595_v51, %v13918_v35  ;;  %7698 = vmatpush1.bf16.msra.mxu1 %v9971_v36 }
 0x9b7   : > { %v7188_v4 = vpack.c.bf16 %v7003_v24, %v6999_v32  ;;  %v6738_v31 = vpop.f32.mrb[213].mxu1  ;;  %v7005_v8 = vpop.f32.mrb[195].mxu0  ;;  %7699 = vmatprep.subr.bf16.mxu1 %v9972_v21  ;;  %v9976_v21 = vld [vmem:[%s10280_s8 + $0x164] ss:$8 sps:$4 sm:$0xff]  }
 0x9b8   : > { %v7189_v58 = vpack.c.bf16 %v7005_v8, %v7001_v53  ;;  %v6740_v42 = vpop.f32.mrb[214].mxu1  ;;  %7670 = vmatprep.mubr.bf16.mxu1 %v7611_v2  ;;  %v9974_v53 = vld [vmem:[%s10280_s8 + $0x154] ss:$8 sps:$4 sm:$0xff]  }
 0x9b9   : > { %v14057_v62 = vmul.bf16 %v14002_v0, %v7188_v4  ;;  %v7222_v7 = vpack.c.bf16 %v6740_v42, %v6736_v22  ;;  %v6742_v12 = vpop.f32.mrb[215].mxu1  ;;  %7671 = vmatmul.mubr.bf16.gmra.mrb[224].mxu1 %v7610_v43  ;;  %v9977_v42 = vld [vmem:[%s10280_s8 + $0x160] ss:$8 sps:$4 sm:$0xff]  }
 0x9ba   : > { %v14060_v35 = vmul.bf16 %v14006_v30, %v7189_v58  ;;  %v7223_v27 = vpack.c.bf16 %v6742_v12, %v6738_v31  ;;  %7700 = vmatpush1.bf16.msra.mxu1 %v9973_v33  ;;  %v9975_v31 = vld [vmem:[%s10280_s8 + $0x150] ss:$8 sps:$4 sm:$0xff]  }
 0x9bb   : > { %v7516_v51 = vadd.bf16 %v14057_v62, %v13946_v15  ;;  %v7598_v32 = vmul.bf16 %v13973_v59, %v7222_v7  ;;  %7701 = vmatprep.subr.bf16.mxu1 %v9974_v53  ;;  %v9978_v7 = vld [vmem:[%s10280_s8 + $0x174] ss:$8 sps:$4 sm:$0xff]   ;;  %v9992_v15 = vld [vmem:[%s10280_s8 + $0x1e4] ss:$8 sps:$4 sm:$0xff]  }
 0x9bc   : > { %v7517_v23 = vadd.bf16 %v14060_v35, %v13953_v46  ;;  %v7599_v43 = vmul.bf16 %v13981_v56, %v7223_v27  ;;  %v7009_v22 = vpop.f32.mrb[196].mxu0  ;;  %v9994_v35 = vld [vmem:[%s10280_s8 + $0x1f4] ss:$8 sps:$4 sm:$0xff]  }
 0x9bd   : > { %v7614_v24 = vadd.bf16 %v7598_v32, %v13959_v26  ;;  %v7011_v2 = vpop.f32.mrb[197].mxu0  ;;  %v9979_v32 = vld [vmem:[%s10280_s8 + $0x170] ss:$8 sps:$4 sm:$0xff]  }
 0x9be   : > { %v7013_v36 = vpop.f32.mrb[198].mxu0  ;;  %v7615_v4 = vadd.bf16 %v7599_v43, %v13967_v49  ;;  %7702 = vmatpush1.bf16.msra.mxu1 %v9975_v31  ;;  %v9981_v31 = vld [vmem:[%s10280_s8 + $0x180] ss:$8 sps:$4 sm:$0xff]  }
 0x9bf   : > { %v7192_v8 = vpack.c.bf16 %v7013_v36, %v7009_v22  ;;  %v7015_v59 = vpop.f32.mrb[199].mxu0  ;;  %7703 = vmatprep.subr.bf16.mxu1 %v9976_v21  ;;  %v9980_v22 = vld [vmem:[%s10280_s8 + $0x184] ss:$8 sps:$4 sm:$0xff]  }
 0x9c0   : > { %v7193_v58 = vpack.c.bf16 %v7015_v59, %v7011_v2  ;;  %7680 = vmatprep.mubr.bf16.mxu1 %v7615_v4  ;;  %v7537_v2 = vrot.slane %v13365_v45, %v14593_v48 }
 0x9c1   : > { %v14075_v56 = vmul.bf16 %v14002_v0, %v7192_v8  ;;  %7681 = vmatmul.mubr.bf16.gmra.mrb[228].mxu1 %v7614_v24 }
 0x9c2   : > { %v14078_v26 = vmul.bf16 %v14006_v30, %v7193_v58  ;;  %7704 = vmatpush1.bf16.msra.mxu1 %v9977_v42  ;;  %v7533_v30 = vrot.slane %v13360_v11, %v14593_v48  ;;  %v9982_v11 = vld [vmem:[%s10280_s8 + $0x194] ss:$8 sps:$4 sm:$0xff]   ;;  %v9983_v42 = vld [vmem:[%s10280_s8 + $0x190] ss:$8 sps:$4 sm:$0xff]  }
 0x9c3   : > { %v7520_v49 = vadd.bf16 %v14075_v56, %v13986_v29  ;;  %7705 = vmatprep.subr.bf16.mxu1 %v9978_v7  ;;  %v7585_v56 = vrot.slane %v13469_v38, %v14593_v48 }
 0x9c4   : > { %v7521_v12 = vadd.bf16 %v14078_v26, %v13992_v52  ;;  %v7019_v27 = vpop.f32.mrb[200].mxu0 }
 0x9c5   : > { %v7021_v33 = vpop.f32.mrb[201].mxu0 }
 0x9c6   : > { %v7023_v0 = vpop.f32.mrb[202].mxu0  ;;  %7706 = vmatpush1.bf16.msra.mxu1 %v9979_v32 }
 0x9c7   : > { %v7196_v53 = vpack.c.bf16 %v7023_v0, %v7019_v27  ;;  %v7025_v43 = vpop.f32.mrb[203].mxu0  ;;  %7707 = vmatprep.subr.bf16.mxu1 %v9980_v22  ;;  %v9985_v0 = vld [vmem:[%s10280_s8 + $0x1a0] ss:$8 sps:$4 sm:$0xff]   ;;  %v9987_v22 = vld [vmem:[%s10280_s8 + $0x1b0] ss:$8 sps:$4 sm:$0xff]  }
 0x9c8   : > { %v7197_v24 = vpack.c.bf16 %v7025_v43, %v7021_v33 }
 0x9c9   : > { %v7540_v36 = vmul.bf16 %v7533_v30, %v7196_v53 }
 0x9ca   : > { %v7541_v4 = vmul.bf16 %v7537_v2, %v7197_v24  ;;  %7708 = vmatpush1.bf16.msra.mxu1 %v9981_v31  ;;  %v9989_v31 = vld [vmem:[%s10280_s8 + $0x1c0] ss:$8 sps:$4 sm:$0xff]  }
 0x9cb   : > { %v14096_v8 = vadd.bf16 %v7540_v36, %v7508_v61  ;;  %7709 = vmatprep.subr.bf16.mxu1 %v9982_v11 }
 0x9cc   : > { %v14102_v59 = vadd.bf16 %v7541_v4, %v7509_v39  ;;  %v7029_v45 = vpop.f32.mrb[204].mxu0 }
 0x9cd   : > { %v7031_v21 = vpop.f32.mrb[205].mxu0 }
 0x9ce   : > { %v7033_v58 = vpop.f32.mrb[206].mxu0  ;;  %7710 = vmatpush1.bf16.msra.mxu1 %v9983_v42 }
 0x9cf   : > { %v7200_v7 = vpack.c.bf16 %v7033_v58, %v7029_v45  ;;  %v7035_v27 = vpop.f32.mrb[207].mxu0  ;;  %7711 = vmatprep.subr.bf16.mxu1 %v9984_v41  ;;  %v9991_v58 = vld [vmem:[%s10280_s8 + $0x1d0] ss:$8 sps:$4 sm:$0xff]   ;;  %v9993_v41 = vld [vmem:[%s10280_s8 + $0x1e0] ss:$8 sps:$4 sm:$0xff]  }
 0x9d0   : > { %v7201_v63 = vpack.c.bf16 %v7035_v27, %v7031_v21 }
 0x9d1   : > { %v7544_v61 = vmul.bf16 %v7533_v30, %v7200_v7 }
 0x9d2   : > { %v7545_v33 = vmul.bf16 %v7537_v2, %v7201_v63  ;;  %7712 = vmatpush1.bf16.msra.mxu1 %v9985_v0  ;;  %v9995_v0 = vld [vmem:[%s10280_s8 + $0x1f0] ss:$8 sps:$4 sm:$0xff]  }
 0x9d3   : > { %v14110_v5 = vadd.bf16 %v7544_v61, %v7512_v34  ;;  %7713 = vmatprep.subr.bf16.mxu1 %v9986_v19 }
 0x9d4   : > { %v14116_v39 = vadd.bf16 %v7545_v33, %v7513_v40  ;;  %v7039_v32 = vpop.f32.mrb[208].mxu0 }
 0x9d5   : > { %v7041_v53 = vpop.f32.mrb[209].mxu0 }
 0x9d6   : > { %v7043_v43 = vpop.f32.mrb[210].mxu0  ;;  %7714 = vmatpush1.bf16.msra.mxu1 %v9987_v22 }
 0x9d7   : > { %v7204_v24 = vpack.c.bf16 %v7043_v43, %v7039_v32  ;;  %v7045_v36 = vpop.f32.mrb[211].mxu0  ;;  %7715 = vmatprep.subr.bf16.mxu1 %v9988_v55 }
 0x9d8   : > { %v7205_v28 = vpack.c.bf16 %v7045_v36, %v7041_v53 }
 0x9d9   : > { %v7548_v34 = vmul.bf16 %v7533_v30, %v7204_v24 }
 0x9da   : > { %v7549_v4 = vmul.bf16 %v7537_v2, %v7205_v28  ;;  %7716 = vmatpush1.bf16.msra.mxu1 %v9989_v31 }
 0x9db   : > { %v14124_v1 = vadd.bf16 %v7548_v34, %v7516_v51  ;;  %7717 = vmatprep.subr.bf16.mxu1 %v9990_v16 }
 0x9dc   : > { %v14130_v40 = vadd.bf16 %v7549_v4, %v7517_v23  ;;  %v7049_v11 = vpop.f32.mrb[212].mxu0 }
 0x9dd   : > { %v7051_v45 = vpop.f32.mrb[213].mxu0 }
 0x9de   : > { %v7053_v21 = vpop.f32.mrb[214].mxu0  ;;  %7718 = vmatpush1.bf16.msra.mxu1 %v9991_v58 }
 0x9df   : > { %v7208_v42 = vpack.c.bf16 %v7053_v21, %v7049_v11  ;;  %v7055_v7 = vpop.f32.mrb[215].mxu0  ;;  %7719 = vmatprep.subr.bf16.mxu1 %v9992_v15  ;;  %v7807_v15 = vpop.permute.xlu0 %7806 }
 0x9e0   : > { %v7209_v62 = vpack.c.bf16 %v7055_v7, %v7051_v45 }
 0x9e1   : > { %v7552_v51 = vmul.bf16 %v7533_v30, %v7208_v42 }
 0x9e2   : > { %v7553_v27 = vmul.bf16 %v7537_v2, %v7209_v62  ;;  %7720 = vmatpush1.bf16.msra.mxu1 %v9993_v41  ;;  %v7581_v2 = vrot.slane %v13464_v54, %v14593_v48  ;;  %v14691_v62 = vld [vmem:[#allocation10_spill] sm:$0xff] }
 0x9e3   : > { %v14138_v46 = vadd.bf16 %v7552_v51, %v7520_v49  ;;  %7721 = vmatprep.subr.bf16.mxu1 %v9994_v35 }
 0x9e4   : > { %v14144_v23 = vadd.bf16 %v7553_v27, %v7521_v12  ;;  %v7059_v63 = vpop.f32.mrb[216].mxu0 }
 0x9e5   : > { %v7061_v61 = vpop.f32.mrb[217].mxu0 }
 0x9e6   : > { %v7063_v33 = vpop.f32.mrb[218].mxu0  ;;  %7722 = vmatpush1.bf16.msra.mxu1 %v9995_v0 }
 0x9e7   : > { %v7212_v30 = vpack.c.bf16 %v7063_v33, %v7059_v63  ;;  %v7065_v19 = vpop.f32.mrb[219].mxu0  ;;  %9232 = vmatprep.subr.bf16.mxu1 %v13716_v25 }
 0x9e8   : > { %v7213_v29 = vpack.c.bf16 %v7065_v19, %v7061_v61  ;;  %v14693_v61 = vld [vmem:[#allocation12_spill] sm:$0xff] }
 0x9e9   : > { %v7588_v49 = vmul.bf16 %v7581_v2, %v7212_v30 }
 0x9ea   : > { %v7589_v52 = vmul.bf16 %v7585_v56, %v7213_v29 }
 0x9eb   : > { %v7604_v26 = vadd.bf16 %v7588_v49, %v14096_v8 }
 0x9ec   : > { %v7069_v12 = vpop.f32.mrb[220].mxu0  ;;  %v7605_v32 = vadd.bf16 %v7589_v52, %v14102_v59 }
 0x9ed   : > { %v7071_v53 = vpop.f32.mrb[221].mxu0 }
 0x9ee   : > { %v7073_v43 = vpop.f32.mrb[222].mxu0  ;;  %7723 = vmatprep.mubr.bf16.mxu1 %v7605_v32 }
 0x9ef   : > { %v7216_v22 = vpack.c.bf16 %v7073_v43, %v7069_v12  ;;  %v7075_v24 = vpop.f32.mrb[223].mxu0  ;;  %7724 = vmatmul.mubr.bf16.vlgmr.msra.gmra.mrb[216].mxu1 %v7604_v26 }
 0x9f0   : > { %v7217_v54 = vpack.c.bf16 %v7075_v24, %v7071_v53  ;;  %9240 = vmatpush3.bf16.msra.mxu1 %v13735_v20  ;;  %v14694_v24 = vld [vmem:[#allocation13_spill] sm:$0xff] }
 0x9f1   : > { %v7592_v25 = vmul.bf16 %v7581_v2, %v7216_v22  ;;  %9233 = vmatprep.subr.bf16.mxu1 %v13804_v13 }
 0x9f2   : > { %v7593_v48 = vmul.bf16 %v7585_v56, %v7217_v54 }
 0x9f3   : > { %v7608_v38 = vadd.bf16 %v7592_v25, %v14110_v5 }
 0x9f4   : > { %v7079_v36 = vpop.f32.mrb[224].mxu0  ;;  %v7609_v8 = vadd.bf16 %v7593_v48, %v14116_v39  ;;  %9241 = vmatpush3.bf16.msra.mxu1 %v13809_v9 }
 0x9f5   : > { %v7081_v59 = vpop.f32.mrb[225].mxu0  ;;  %9234 = vmatprep.subr.bf16.mxu1 %v13821_v6 }
 0x9f6   : > { %v7083_v55 = vpop.f32.mrb[226].mxu0  ;;  %7733 = vmatprep.mubr.bf16.mxu1 %v7609_v8  ;;  %v14695_v8 = vld [vmem:[#allocation14_spill] sm:$0xff] }
 0x9f7   : > { %v7220_v28 = vpack.c.bf16 %v7083_v55, %v7079_v36  ;;  %v7085_v34 = vpop.f32.mrb[227].mxu0  ;;  %7734 = vmatmul.mubr.bf16.gmra.mrb[220].mxu1 %v7608_v38  ;;  %v7817_v38 = vpop.permute.xlu0 %7816 }
 0x9f8   : > { %v7221_v20 = vpack.c.bf16 %v7085_v34, %v7081_v59  ;;  %9242 = vmatpush3.bf16.msra.mxu1 %v13833_v44  ;;  %v14696_v34 = vld [vmem:[#allocation30_spill] sm:$0xff] }
 0x9f9   : > { %v7596_v13 = vmul.bf16 %v7581_v2, %v7220_v28  ;;  %9235 = vmatprep.subr.bf16.mxu1 %v13845_v14 }
 0x9fa   : > { %v7597_v5 = vmul.bf16 %v7585_v56, %v7221_v20 }
 0x9fb   : > { %v7612_v4 = vadd.bf16 %v7596_v13, %v14124_v1 }
 0x9fc   : > { %v7089_v39 = vpop.f32.mrb[228].mxu0  ;;  %v7613_v9 = vadd.bf16 %v7597_v5, %v14130_v40  ;;  %9243 = vmatpush3.bf16.msra.mxu1 %v13870_v60  ;;  %v9620_v60 = vld [vmem:[%s14675_s4 + $0x38] sm:$0xff]  }
 0x9fd   : > { %v7091_v6 = vpop.f32.mrb[229].mxu0  ;;  %9236 = vmatprep.subr.bf16.mxu1 %v13876_v47 }
 0x9fe   : > { %v7093_v31 = vpop.f32.mrb[230].mxu0  ;;  %7743 = vmatprep.mubr.bf16.mxu1 %v7613_v9 }
 0x9ff   : > { %v7224_v16 = vpack.c.bf16 %v7093_v31, %v7089_v39  ;;  %v7095_v11 = vpop.f32.mrb[231].mxu0  ;;  %7744 = vmatmul.mubr.bf16.gmra.mrb[224].mxu1 %v7612_v4  ;;  %v14697_v4 = vld [vmem:[#allocation31_spill] sm:$0xff] }
 0xa00   : > { %v7225_v44 = vpack.c.bf16 %v7095_v11, %v7091_v6  ;;  %9244 = vmatpush3.bf16.msra.mxu1 %v13887_v57  ;;  %v9619_v57 = vld [vmem:[%s14675_s4 + $0x78] sm:$0xff]  }
 0xa01   : > { %v7600_v14 = vmul.bf16 %v7581_v2, %v7224_v16  ;;  %9237 = vmatprep.subr.bf16.mxu1 %v13899_v3  ;;  %9141 = vmatprep.subr.bf16.mxu0 %v9619_v57 }
 0xa02   : > { %v7601_v1 = vmul.bf16 %v7585_v56, %v7225_v44  ;;  %9142 = vmatpush3.bf16.msra.mxu0 %v9620_v60 }
 0xa03   : > { %v7616_v45 = vadd.bf16 %v7600_v14, %v14138_v46  ;;  %v14692_v46 = vld [vmem:[#allocation11_spill] sm:$0xff] }
 0xa04   : > { %v7617_v40 = vadd.bf16 %v7601_v1, %v14144_v23  ;;  %9245 = vmatpush3.bf16.msra.mxu1 %v13924_v10  ;;  %v7812_v23 = vpop.permute.xlu1 %7811 }
 0xa05   : > { %9238 = vmatprep.subr.bf16.mxu1 %v13930_v37 }
 0xa06   : > { %7753 = vmatprep.mubr.bf16.mxu1 %v7617_v40 }
 0xa07   : > { %7754 = vmatmul.mubr.bf16.gmra.mrb[228].mxu1 %v7616_v45 }
 0xa08   : > { %9246 = vmatpush3.bf16.msra.mxu1 %v13941_v18  ;;  %v14690_v18 = vld [vmem:[#allocation9_spill] sm:$0xff]  ;;  %v7822_v13 = vpop.permute.xlu1 %7821 }
 0xa09   : > { %9239 = vmatprep.subr.bf16.mxu1 %v9619_v57 }
 0xa0c   : > { %9247 = vmatpush3.bf16.msra.mxu1 %v9620_v60 }
 0xac2   : > { %v7725_v47 = vpop.f32.mrb[216].mxu1 }
 0xac3   : > { %v7764_v3 = vmul.f32 %v7725_v47, %v11238_v50  ;;  %v7727_v10 = vpop.f32.mrb[217].mxu1 }
 0xac4   : > { %v7765_v37 = vmul.f32 %v7727_v10, %v11241_v17  ;;  %v7729_v21 = vpop.f32.mrb[218].mxu1  ;;  %v14698_v10 = vld [vmem:[#allocation17_spill] sm:$0xff] }
 0xac5   : > { %v7780_v58 = vadd.f32 %v7764_v3, %v14690_v18  ;;  %v7766_v42 = vmul.f32 %v7729_v21, %v11238_v50  ;;  %v7731_v7 = vpop.f32.mrb[219].mxu1 }
 0xac6   : > { %v7781_v51 = vadd.f32 %v7765_v37, %v14691_v62  ;;  %v7767_v27 = vmul.f32 %v7731_v7, %v11241_v17  ;;  %v14699_v7 = vld [vmem:[#allocation32_spill] sm:$0xff] }
 0xac7   : > { %v14185_v41 = vadd.f32 %v7807_v15, %v7780_v58  ;;  %v7782_v35 = vadd.f32 %v7766_v42, %v14692_v46  ;;  %v7827_v58 = vpop.permute.xlu0 %7826  ;;  %v14700_v46 = vld [vmem:[#allocation15_spill] sm:$0xff] }
 0xac8   : > { %v14188_v63 = vadd.f32 %v7807_v15, %v7781_v51  ;;  %v7783_v33 = vadd.f32 %v7767_v27, %v14693_v61  ;;  %v7832_v61 = vpop.permute.xlu1 %7831 }
 0xac9   : > { %v7876_v0 = vmin.f32 %v14185_v41, 0.0  ;;  %v14192_v30 = vadd.f32 %v7812_v23, %v7782_v35  ;;  %vm7860_vm10 = vcmp.gt.f32.partialorder %v14185_v41, 0.0 }
 0xaca   : > { %v7877_v2 = vmin.f32 %v14188_v63, 0.0  ;;  %v14195_v19 = vadd.f32 %v7812_v23, %v7783_v33  ;;  %v7735_v29 = vpop.f32.mrb[220].mxu1  ;;  %vm7861_vm12 = vcmp.gt.f32.partialorder %v14188_v63, 0.0 }
 0xacb   : > { %v7892_v56 = vmul.f32 1.442695, %v7876_v0  ;;  %v7878_v49 = vmin.f32 %v14192_v30, 0.0  ;;  %v7768_v52 = vmul.f32 %v7735_v29, %v11238_v50  ;;  %v7737_v26 = vpop.f32.mrb[221].mxu1  ;;  %vm7862_vm11 = vcmp.gt.f32.partialorder %v14192_v30, 0.0 }
 0xacc   : > { %v7894_v12 = vmul.f32 1.442695, %v7877_v2  ;;  %v7879_v32 = vmin.f32 %v14195_v19, 0.0  ;;  %v7769_v53 = vmul.f32 %v7737_v26, %v11241_v17  ;;  %v7739_v43 = vpop.f32.mrb[222].mxu1  ;;  %v14701_v2 = vld [vmem:[#allocation16_spill] sm:$0xff]  ;;  %vm7863_vm13 = vcmp.gt.f32.partialorder %v14195_v19, 0.0 }
 0xacd   : > { %9702 = vpow2.f32 %v7892_v56  ;;  %v7896_v22 = vmul.f32 1.442695, %v7878_v49  ;;  %v7784_v54 = vadd.f32 %v7768_v52, %v14694_v24  ;;  %v7770_v25 = vmul.f32 %v7739_v43, %v11238_v50  ;;  %v7741_v48 = vpop.f32.mrb[223].mxu1 }
 0xace   : > { %9704 = vpow2.f32 %v7894_v12  ;;  %v7898_v36 = vmul.f32 1.442695, %v7879_v32  ;;  %v7785_v59 = vadd.f32 %v7769_v53, %v14695_v8  ;;  %v7771_v55 = vmul.f32 %v7741_v48, %v11241_v17 }
 0xacf   : > { %9706 = vpow2.f32 %v7896_v22  ;;  %v14205_v28 = vadd.f32 %v7817_v38, %v7784_v54  ;;  %v7786_v20 = vadd.f32 %v7770_v25, %v14696_v34 }
 0xad0   : > { %v14208_v5 = vadd.f32 %v7817_v38, %v7785_v59  ;;  %v7787_v39 = vadd.f32 %v7771_v55, %v14697_v4  ;;  %9708 = vpow2.f32 %v7898_v36 }
 0xad1   : > { %v7880_v9 = vmin.f32 %v14205_v28, 0.0  ;;  %v14212_v6 = vadd.f32 %v7822_v13, %v7786_v20  ;;  %vm7864_vm14 = vcmp.gt.f32.partialorder %v14205_v28, 0.0 }
 0xad2   : > { %v7881_v31 = vmin.f32 %v14208_v5, 0.0  ;;  %v14215_v16 = vadd.f32 %v7822_v13, %v7787_v39  ;;  %v7745_v11 = vpop.f32.mrb[224].mxu1  ;;  %v14702_v13 = vld [vmem:[#allocation18_spill] sm:$0xff]  ;;  %vm7865_vm0 = vcmp.gt.f32.partialorder %v14208_v5, 0.0 }
 0xad3   : > { %v7900_v44 = vmul.f32 1.442695, %v7880_v9  ;;  %v7882_v14 = vmin.f32 %v14212_v6, 0.0  ;;  %v7772_v1 = vmul.f32 %v7745_v11, %v11238_v50  ;;  %v7747_v45 = vpop.f32.mrb[225].mxu1  ;;  %v7837_v9 = vpop.permute.xlu0 %7836  ;;  %v14703_v11 = vld [vmem:[#allocation19_spill] sm:$0xff]  ;;  %vm7866_vm15 = vcmp.gt.f32.partialorder %v14212_v6, 0.0 }
 0xad4   : > { %v7902_v40 = vmul.f32 1.442695, %v7881_v31  ;;  %v7883_v57 = vmin.f32 %v14215_v16, 0.0  ;;  %v7773_v60 = vmul.f32 %v7747_v45, %v11241_v17  ;;  %v7749_v47 = vpop.f32.mrb[226].mxu1  ;;  %vm7867_vm1 = vcmp.gt.f32.partialorder %v14215_v16, 0.0 }
 0xad5   : > { %9710 = vpow2.f32 %v7900_v44  ;;  %v7904_v3 = vmul.f32 1.442695, %v7882_v14  ;;  %v7788_v37 = vadd.f32 %v7772_v1, %v14698_v10  ;;  %v7774_v21 = vmul.f32 %v7749_v47, %v11238_v50  ;;  %v7751_v18 = vpop.f32.mrb[227].mxu1 }
 0xad6   : > { %9712 = vpow2.f32 %v7902_v40  ;;  %v7906_v42 = vmul.f32 1.442695, %v7883_v57  ;;  %v7789_v15 = vadd.f32 %v7773_v60, %v14699_v7  ;;  %v7775_v62 = vmul.f32 %v7751_v18, %v11241_v17  ;;  %v14705_v18 = vld [vmem:[#allocation20_spill] sm:$0xff] }
 0xad7   : > { %v9703_v51 = vpop.eup %9702  ;;  %9714 = vpow2.f32 %v7904_v3  ;;  %v14225_v27 = vadd.f32 %v7827_v58, %v7788_v37  ;;  %v7790_v35 = vadd.f32 %v7774_v21, %v14700_v46  ;;  %v14704_v3 = vld [vmem:[#allocation22_spill] sm:$0xff]  ;;  %v7842_v21 = vpop.permute.xlu1 %7841 }
 0xad8   : > { %v9705_v23 = vpop.eup %9704  ;;  %v9054_v33 = vadd.f32 -1.0, %v9703_v51  ;;  %v14229_v0 = vadd.f32 %v7827_v58, %v7789_v15  ;;  %v7791_v29 = vadd.f32 %v7775_v62, %v14701_v2  ;;  %9716 = vpow2.f32 %v7906_v42 }
 0xad9   : > { %v9707_v56 = vpop.eup %9706  ;;  %v7884_v49 = vmin.f32 %v14225_v27, 0.0  ;;  %v14234_v52 = vadd.f32 %v7832_v61, %v7790_v35  ;;  %v9055_v43 = vadd.f32 -1.0, %v9705_v23  ;;  %vm7868_vm2 = vcmp.gt.f32.partialorder %v14225_v27, 0.0 }
 0xada   : > { %v9056_v26 = vadd.f32 -1.0, %v9707_v56  ;;  %v7885_v12 = vmin.f32 %v14229_v0, 0.0  ;;  %v14238_v32 = vadd.f32 %v7832_v61, %v7791_v29  ;;  %v7755_v53 = vpop.f32.mrb[228].mxu1  ;;  %v14244_v22 = vsel %vm7860_vm10, %v14185_v41, %v9054_v33  ;;  %v9709_v38 = vpop.eup %9708 }
 0xadb   : > { %v7908_v24 = vmul.f32 1.442695, %v7884_v49  ;;  %v7886_v54 = vmin.f32 %v14234_v52, 0.0  ;;  %v7776_v25 = vmul.f32 %v7755_v53, %v11238_v50  ;;  %v7757_v48 = vpop.f32.mrb[229].mxu1  ;;  %v9057_v40 = vadd.f32 -1.0, %v9709_v38 }
 0xadc   : > { %v7942_v36 = vsel %vm7862_vm11, %v14192_v30, %v9056_v26  ;;  %v7910_v8 = vmul.f32 1.442695, %v7885_v12  ;;  %v7887_v59 = vmin.f32 %v14238_v32, 0.0  ;;  %v7777_v55 = vmul.f32 %v7757_v48, %v11241_v17  ;;  %v7759_v34 = vpop.f32.mrb[230].mxu1 }
 0xadd   : > { %v7956_v41 = vpack.c.bf16 %v7942_v36, %v14244_v22  ;;  %9718 = vpow2.f32 %v7908_v24  ;;  %v7912_v20 = vmul.f32 1.442695, %v7886_v54  ;;  %v7792_v4 = vadd.f32 %v7776_v25, %v14702_v13  ;;  %v7761_v39 = vpop.f32.mrb[231].mxu1 }
 0xade   : > { %9720 = vpow2.f32 %v7910_v8  ;;  %v7914_v31 = vmul.f32 1.442695, %v7887_v59  ;;  %v7793_v44 = vadd.f32 %v7777_v55, %v14703_v11  ;;  %v7778_v30 = vmul.f32 %v7759_v34, %v11238_v50 }
 0xadf   : > { %v9711_v14 = vpop.eup %9710  ;;  %9722 = vpow2.f32 %v7912_v20  ;;  %v14257_v1 = vadd.f32 %v7837_v9, %v7792_v4  ;;  %v7779_v45 = vmul.f32 %v7761_v39, %v11241_v17  ;;  %v7941_v15 = vsel %vm7861_vm12, %v14188_v63, %v9055_v43 }
 0xae0   : > { %v9713_v57 = vpop.eup %9712  ;;  %v9058_v60 = vadd.f32 -1.0, %v9711_v14  ;;  %9724 = vpow2.f32 %v7914_v31  ;;  %v14260_v47 = vadd.f32 %v7837_v9, %v7793_v44  ;;  %v7794_v10 = vadd.f32 %v7778_v30, %v14704_v3  ;;  %v9621_v14 = vld [vmem:[%s14456_s20] sm:$0xff]  }
 0xae1   : > { %v9715_v37 = vpop.eup %9714  ;;  %v7888_v50 = vmin.f32 %v14257_v1, 0.0  ;;  %v7795_v58 = vadd.f32 %v7779_v45, %v14705_v18  ;;  %v7943_v23 = vsel %vm7863_vm13, %v14195_v19, %v9057_v40  ;;  %v9059_v29 = vadd.f32 -1.0, %v9713_v57 }
 0xae2   : > { %v9060_v42 = vadd.f32 -1.0, %v9715_v37  ;;  %v7889_v17 = vmin.f32 %v14260_v47, 0.0  ;;  %v7858_v7 = vadd.f32 %v7842_v21, %v7794_v10  ;;  %v9717_v62 = vpop.eup %9716  ;;  %v7944_v51 = vsel %vm7864_vm14, %v14205_v28, %v9058_v60  ;;  %v9086_v60 = vld [vmem:[%s14706_s3] ss:$0 sm:$0xff] }
 0xae3   : > { %v7916_v46 = vmul.f32 1.442695, %v7888_v50  ;;  %v7859_v35 = vadd.f32 %v7842_v21, %v7795_v58  ;;  %v7957_v26 = vpack.c.bf16 %v7943_v23, %v7941_v15  ;;  %v9061_v12 = vadd.f32 -1.0, %v9717_v62 }
 0xae4   : > { %v7946_v61 = vsel %vm7866_vm15, %v14212_v6, %v9060_v42  ;;  %v7918_v33 = vmul.f32 1.442695, %v7889_v17  ;;  %v7890_v2 = vmin.f32 %v7858_v7, 0.0  ;;  %v7945_v6 = vsel %vm7865_vm0, %v14208_v5, %v9059_v29 }
 0xae5   : > { %v7958_v56 = vpack.c.bf16 %v7946_v61, %v7944_v51  ;;  %9726 = vpow2.f32 %v7916_v46  ;;  %v7891_v49 = vmin.f32 %v7859_v35, 0.0  ;;  %8092 = vmatprep.mubr.bf16.mxu0 %v7957_v26  ;;  %v7947_v22 = vsel %vm7867_vm1, %v14215_v16, %v9061_v12 }
 0xae6   : > { %9728 = vpow2.f32 %v7918_v33  ;;  %v7920_v63 = vmul.f32 1.442695, %v7890_v2  ;;  %8093 = vmatmul.mubr.bf16.vlgmr.msra.gmra.mrb[232].mxu0 %v7956_v41  ;;  %v7959_v54 = vpack.c.bf16 %v7947_v22, %v7945_v6  ;;  %vm7870_vm3 = vcmp.gt.f32.partialorder %v14234_v52, 0.0 }
 0xae7   : > { %v9719_v53 = vpop.eup %9718  ;;  %v7922_v28 = vmul.f32 1.442695, %v7891_v49  ;;  %vm7869_vm4 = vcmp.gt.f32.partialorder %v14229_v0, 0.0  ;;  %vm7871_vm5 = vcmp.gt.f32.partialorder %v14238_v32, 0.0  ;;  %vm7872_vm6 = vcmp.gt.f32.partialorder %v14257_v1, 0.0 }
 0xae8   : > { %v9721_v19 = vpop.eup %9720  ;;  %v9062_v43 = vadd.f32 -1.0, %v9719_v53  ;;  %9730 = vpow2.f32 %v7920_v63  ;;  %8100 = vmatprep.mubr.bf16.mxu0 %v7959_v54  ;;  %vm7874_vm7 = vcmp.gt.f32.partialorder %v7858_v7, 0.0  ;;  %vm7873_vm8 = vcmp.gt.f32.partialorder %v14260_v47, 0.0  ;;  %v9623_v54 = vld [vmem:[%s14456_s20 + $0x10] sm:$0xff]  }
 0xae9   : > { %v9723_v24 = vpop.eup %9722  ;;  %9732 = vpow2.f32 %v7922_v28  ;;  %v9063_v25 = vadd.f32 -1.0, %v9721_v19  ;;  %vm7875_vm10 = vcmp.gt.f32.partialorder %v7859_v35, 0.0  ;;  %vm10068_vm11 = vmmov 0  }
 0xaea   : > { %v9725_v48 = vpop.eup %9724  ;;  %v9064_v38 = vadd.f32 -1.0, %v9723_v24  ;;  %v7948_v8 = vsel %vm7868_vm2, %v14225_v27, %v9062_v43  ;;  %v9622_v24 = vld [vmem:[%s14456_s20 + $0x8] sm:$0xff]  }
 0xaeb   : > { %v9065_v36 = vadd.f32 -1.0, %v9725_v48  ;;  %v7949_v16 = vsel %vm7869_vm4, %v14229_v0, %v9063_v25  ;;  %v9624_v25 = vld [vmem:[%s14456_s20 + $0x18] sm:$0xff]   ;;  %v9625_v48 = vld [vmem:[%s14456_s20 + $0x20] sm:$0xff]  }
 0xaec   : > { %v7950_v59 = vsel %vm7870_vm3, %v14234_v52, %v9064_v38  ;;  %v9626_v38 = vld [vmem:[%s14456_s20 + $0x28] sm:$0xff]  }
 0xaed   : > { %v7960_v5 = vpack.c.bf16 %v7950_v59, %v7948_v8  ;;  %v7951_v55 = vsel %vm7871_vm5, %v14238_v32, %v9065_v36  ;;  %v9627_v36 = vld [vmem:[%s14456_s20 + $0x30] sm:$0xff]   ;;  %v9628_v8 = vld [vmem:[%s14456_s20 + $0x38] sm:$0xff]   ;;  %v10067_v59 = vmov 0.0  }
 0xaee   : > { %v7961_v34 = vpack.c.bf16 %v7951_v55, %v7949_v16  ;;  %8101 = vmatmul.mubr.bf16.gmra.mrb[236].mxu0 %v7958_v56  ;;  %v8183_v16 = vpop.permute.xlu1 %8182 }
 0xaef   : > { %v9727_v41 = vpop.eup %9726 }
 0xaf0   : > { %v9729_v20 = vpop.eup %9728  ;;  %8108 = vmatprep.mubr.bf16.mxu1 %v7961_v34  ;;  %v9066_v13 = vadd.f32 -1.0, %v9727_v41 }
 0xaf1   : > { %8109 = vmatmul.mubr.bf16.vlgmr.msra.gmra.mrb[232].mxu1 %v7960_v5  ;;  %v9067_v27 = vadd.f32 -1.0, %v9729_v20  ;;  %v8178_v5 = vpop.permute.xlu0 %8177 }
 0xaf2   : > { %v9731_v4 = vpop.eup %9730  ;;  %v7952_v31 = vsel %vm7872_vm6, %v14257_v1, %v9066_v13  ;;  %v8193_v34 = vpop.permute.xlu1 %8192 }
 0xaf3   : > { %v9733_v39 = vpop.eup %9732  ;;  %v9068_v52 = vadd.f32 -1.0, %v9731_v4  ;;  %v7953_v11 = vsel %vm7873_vm8, %v14260_v47, %v9067_v27 }
 0xaf4   : > { %v9069_v9 = vadd.f32 -1.0, %v9733_v39 }
 0xaf5   : > { %v7954_v0 = vsel %vm7874_vm7, %v7858_v7, %v9068_v52  ;;  %v8188_v55 = vpop.permute.xlu0 %8187 }
 0xaf6   : > { %v7962_v32 = vpack.c.bf16 %v7954_v0, %v7952_v31  ;;  %v7955_v44 = vsel %vm7875_vm10, %v7859_v35, %v9069_v9  ;;  %v8203_v20 = vpop.permute.xlu1 %8202 }
 0xaf7   : > { %v7963_v30 = vpack.c.bf16 %v7955_v44, %v7953_v11 }
 0xaf9   : > { %8116 = vmatprep.mubr.bf16.mxu1 %v7963_v30  ;;  %v8198_v41 = vpop.permute.xlu0 %8197 }
 0xafa   : > { %8117 = vmatmul.mubr.bf16.gmra.mrb[236].mxu1 %v7962_v32  ;;  %v8213_v30 = vpop.permute.xlu1 %8212 }
 0xafb   : > { %9196 = vmatprep.mubr.msk.bf16.mxu1 %vm5826_vm9, %v9621_v14 }
 0xafd   : > { %v8208_v13 = vpop.permute.xlu0 %8207 }
 0xbb9   : > { %v9143_v45 = vpop.f32.mrb[232].mxu0 }
 0xbba   : > { %v9144_v40 = vpop.f32.mrb[233].mxu0 }
 0xbbb   : > { %v9145_v1 = vadd.f32 %v9144_v40, %v9143_v45  ;;  %v9146_v57 = vpop.f32.mrb[234].mxu0  ;;  %v8218_v40 = vpop.permute.xlu0 %8217 }
 0xbbc   : > { %v9147_v3 = vpop.f32.mrb[235].mxu0 }
 0xbbd   : > { %v9148_v47 = vadd.f32 %v9147_v3, %v9146_v57  ;;  %v8131_v10 = vmul.f32 %v9145_v1, %v9086_v60 }
 0xbbf   : > { %v8132_v37 = vmul.f32 %v9148_v47, %v9086_v60 }
 0xbc1   : > { %v9149_v21 = vpop.f32.mrb[236].mxu0  ;;  %v8155_v50 = vpack.c.bf16 %v8132_v37, %v8131_v10 }
 0xbc2   : > { %v9150_v18 = vpop.f32.mrb[237].mxu0 }
 0xbc3   : > { %v9151_v42 = vadd.f32 %v9150_v18, %v9149_v21  ;;  %v9152_v17 = vpop.f32.mrb[238].mxu0  ;;  %9188 = vmatprep.subr.bf16.mxu1 %v8155_v50  ;;  %v8223_v18 = vpop.permute.xlu1 %8222 }
 0xbc4   : > { %v9155_v58 = vpop.f32.mrb[232].mxu1  ;;  %v9153_v15 = vpop.f32.mrb[239].mxu0  ;;  %9189 = vmatpush3.bf16.msra.mxu1 %v8155_v50 }
 0xbc5   : > { %v9156_v7 = vpop.f32.mrb[233].mxu1  ;;  %v9154_v46 = vadd.f32 %v9153_v15, %v9152_v17  ;;  %v8133_v61 = vmul.f32 %v9151_v42, %v9086_v60 }
 0xbc6   : > { %v9157_v62 = vadd.f32 %v9156_v7, %v9155_v58  ;;  %v9158_v51 = vpop.f32.mrb[234].mxu1  ;;  %v8228_v7 = vpop.permute.xlu0 %8227 }
 0xbc7   : > { %v9159_v35 = vpop.f32.mrb[235].mxu1  ;;  %v8134_v33 = vmul.f32 %v9154_v46, %v9086_v60 }
 0xbc8   : > { %v9160_v23 = vadd.f32 %v9159_v35, %v9158_v51  ;;  %v8135_v2 = vmul.f32 %v9157_v62, %v9086_v60 }
 0xbc9   : > { %v8156_v56 = vpack.c.bf16 %v8134_v33, %v8133_v61 }
 0xbca   : > { %v8136_v29 = vmul.f32 %v9160_v23, %v9086_v60 }
 0xbcb   : > { %9190 = vmatprep.subr.bf16.mxu1 %v8156_v56 }
 0xbcc   : > { %v8157_v49 = vpack.c.bf16 %v8136_v29, %v8135_v2  ;;  %9191 = vmatpush3.bf16.msra.mxu1 %v8156_v56  ;;  %v8233_v56 = vpop.permute.xlu1 %8232 }
 0xbcd   : > { %v9161_v26 = vpop.f32.mrb[236].mxu1 }
 0xbce   : > { %v9162_v63 = vpop.f32.mrb[237].mxu1  ;;  %9192 = vmatprep.subr.bf16.mxu1 %v8157_v49 }
 0xbcf   : > { %v9163_v12 = vadd.f32 %v9162_v63, %v9161_v26  ;;  %v9164_v53 = vpop.f32.mrb[238].mxu1 }
 0xbd0   : > { %v9165_v28 = vpop.f32.mrb[239].mxu1  ;;  %9193 = vmatpush3.bf16.msra.mxu1 %v8157_v49 }
 0xbd1   : > { %v9166_v19 = vadd.f32 %v9165_v28, %v9164_v53  ;;  %v8137_v43 = vmul.f32 %v9163_v12, %v9086_v60  ;;  %v8238_v12 = vpop.permute.xlu0 %8237 }
 0xbd3   : > { %v8138_v6 = vmul.f32 %v9166_v19, %v9086_v60 }
 0xbd5   : > { %v8158_v22 = vpack.c.bf16 %v8138_v6, %v8137_v43 }
 0xbd7   : > { %9194 = vmatprep.subr.bf16.mxu1 %v8158_v22 }
 0xbd8   : > { %9195 = vmatpush3.bf16.msra.mxu1 %v8158_v22 }
 0xbd9   : > { %9212 = vmatprep.subr.bf16.mxu1 %v10067_v59 }
 0xbdb   : > { %9197 = vmatmul.mubr.msk.bf16.vlgmr.msra.gmra.mrb[240].mxu1 %vm5826_vm9, %v9622_v24 }
 0xbdc   : > { %9200 = vmatprep.mubr.msk.bf16.mxu1 %vm5826_vm9, %v9623_v54 }
 0xbe3   : > { %9201 = vmatmul.mubr.msk.bf16.gmra.mrb[244].mxu1 %vm5826_vm9, %v9624_v25 }
 0xbe4   : > { %9204 = vmatprep.mubr.msk.bf16.mxu1 %vm5826_vm9, %v9625_v48 }
 0xbeb   : > { %9205 = vmatmul.mubr.msk.bf16.gmra.mrb[248].mxu1 %vm5826_vm9, %v9626_v38 }
 0xbec   : > { %9208 = vmatprep.mubr.msk.bf16.mxu1 %vm5826_vm9, %v9627_v36 }
 0xbf3   : > { %9209 = vmatmul.mubr.msk.bf16.gmra.mrb[252].mxu1 %vm5826_vm9, %v9628_v8 }
 0xbf4   : > { %9228 = vmatprep.mubr.msk.bf16.mxu1 %vm10068_vm11, %v10067_v59 }
 0xcae   : > { %v9198_v4 = vpop.f32.mrb[240].mxu1 }
 0xcaf   : > { %v14329_v27 = vadd.f32 %v9198_v4, %v8188_v55  ;;  %v8353_v39 = vpop.f32.mrb[241].mxu1 }
 0xcb0   : > { %v14331_v52 = vadd.f32 %v8353_v39, %v8178_v5  ;;  %v9199_v9 = vpop.f32.mrb[242].mxu1 }
 0xcb1   : > { %v8434_v31 = vmin.f32 %v14329_v27, 0.0  ;;  %v14334_v0 = vadd.f32 %v9199_v9, %v8193_v34  ;;  %v8356_v32 = vpop.f32.mrb[243].mxu1  ;;  %vm8418_vm9 = vcmp.gt.f32.partialorder %v14329_v27, 0.0  ;;  %v8248_v9 = vpop.permute.xlu0 %8247 }
 0xcb2   : > { %v8432_v11 = vmin.f32 %v14331_v52, 0.0  ;;  %v14337_v44 = vadd.f32 %v8356_v32, %v8183_v16  ;;  %vm8416_vm12 = vcmp.gt.f32.partialorder %v14331_v52, 0.0 }
 0xcb3   : > { %v8452_v14 = vmul.f32 1.442695, %v8434_v31  ;;  %v8435_v45 = vmin.f32 %v14334_v0, 0.0  ;;  %vm8419_vm13 = vcmp.gt.f32.partialorder %v14334_v0, 0.0 }
 0xcb4   : > { %v8448_v1 = vmul.f32 1.442695, %v8432_v11  ;;  %v8433_v57 = vmin.f32 %v14337_v44, 0.0  ;;  %vm8417_vm14 = vcmp.gt.f32.partialorder %v14337_v44, 0.0 }
 0xcb5   : > { %9734 = vpow2.f32 %v8452_v14  ;;  %v8454_v60 = vmul.f32 1.442695, %v8435_v45 }
 0xcb6   : > { %9736 = vpow2.f32 %v8448_v1  ;;  %v8450_v3 = vmul.f32 1.442695, %v8433_v57  ;;  %v9202_v47 = vpop.f32.mrb[244].mxu1 }
 0xcb7   : > { %9738 = vpow2.f32 %v8454_v60  ;;  %v14341_v10 = vadd.f32 %v9202_v47, %v8208_v13  ;;  %v8369_v37 = vpop.f32.mrb[245].mxu1 }
 0xcb8   : > { %9740 = vpow2.f32 %v8450_v3  ;;  %v14343_v21 = vadd.f32 %v8369_v37, %v8198_v41  ;;  %v9203_v50 = vpop.f32.mrb[246].mxu1 }
 0xcb9   : > { %v8438_v58 = vmin.f32 %v14341_v10, 0.0  ;;  %v14346_v42 = vadd.f32 %v9203_v50, %v8213_v30  ;;  %v8372_v17 = vpop.f32.mrb[247].mxu1  ;;  %vm8422_vm15 = vcmp.gt.f32.partialorder %v14341_v10, 0.0 }
 0xcba   : > { %v8436_v15 = vmin.f32 %v14343_v21, 0.0  ;;  %v14349_v62 = vadd.f32 %v8372_v17, %v8203_v20  ;;  %v8243_v20 = vpop.permute.xlu1 %8242  ;;  %vm8420_vm0 = vcmp.gt.f32.partialorder %v14343_v21, 0.0 }
 0xcbb   : > { %v8460_v51 = vmul.f32 1.442695, %v8438_v58  ;;  %v8439_v46 = vmin.f32 %v14346_v42, 0.0  ;;  %vm8423_vm1 = vcmp.gt.f32.partialorder %v14346_v42, 0.0 }
 0xcbc   : > { %v8456_v35 = vmul.f32 1.442695, %v8436_v15  ;;  %v8437_v23 = vmin.f32 %v14349_v62, 0.0  ;;  %vm8421_vm2 = vcmp.gt.f32.partialorder %v14349_v62, 0.0 }
 0xcbd   : > { %9742 = vpow2.f32 %v8460_v51  ;;  %v8462_v61 = vmul.f32 1.442695, %v8439_v46 }
 0xcbe   : > { %9744 = vpow2.f32 %v8456_v35  ;;  %v8458_v33 = vmul.f32 1.442695, %v8437_v23  ;;  %v9206_v2 = vpop.f32.mrb[248].mxu1  ;;  %v8253_v58 = vpop.permute.xlu1 %8252 }
 0xcbf   : > { %v9735_v29 = vpop.eup %9734  ;;  %9746 = vpow2.f32 %v8462_v61  ;;  %v14353_v49 = vadd.f32 %v9206_v2, %v8228_v7  ;;  %v8385_v26 = vpop.f32.mrb[249].mxu1 }
 0xcc0   : > { %v9737_v63 = vpop.eup %9736  ;;  %v9105_v53 = vadd.f32 -1.0, %v9735_v29  ;;  %9748 = vpow2.f32 %v8458_v33  ;;  %v14355_v28 = vadd.f32 %v8385_v26, %v8218_v40  ;;  %v9207_v19 = vpop.f32.mrb[250].mxu1 }
 0xcc1   : > { %v9739_v43 = vpop.eup %9738  ;;  %v9103_v6 = vadd.f32 -1.0, %v9737_v63  ;;  %v8442_v22 = vmin.f32 %v14353_v49, 0.0  ;;  %v14359_v24 = vadd.f32 %v9207_v19, %v8233_v56  ;;  %v8388_v54 = vpop.f32.mrb[251].mxu1  ;;  %vm8426_vm3 = vcmp.gt.f32.partialorder %v14353_v49, 0.0 }
 0xcc2   : > { %v9741_v25 = vpop.eup %9740  ;;  %v9106_v48 = vadd.f32 -1.0, %v9739_v43  ;;  %v8440_v38 = vmin.f32 %v14355_v28, 0.0  ;;  %v8498_v36 = vsel %vm8418_vm9, %v14329_v27, %v9105_v53  ;;  %v14368_v41 = vadd.f32 %v8388_v54, %v8223_v18 }
 0xcc3   : > { %v9104_v8 = vadd.f32 -1.0, %v9741_v25  ;;  %v8468_v5 = vmul.f32 1.442695, %v8442_v22  ;;  %v8443_v34 = vmin.f32 %v14359_v24, 0.0  ;;  %v8496_v13 = vsel %vm8416_vm12, %v14331_v52, %v9103_v6 }
 0xcc4   : > { %v8499_v16 = vsel %vm8419_vm13, %v14334_v0, %v9106_v48  ;;  %v8464_v55 = vmul.f32 1.442695, %v8440_v38  ;;  %v8441_v0 = vmin.f32 %v14368_v41, 0.0  ;;  %vm8427_vm4 = vcmp.gt.f32.partialorder %v14359_v24, 0.0 }
 0xcc5   : > { %v8515_v4 = vpack.c.bf16 %v8499_v16, %v8498_v36  ;;  %v8497_v39 = vsel %vm8417_vm14, %v14337_v44, %v9104_v8  ;;  %9750 = vpow2.f32 %v8468_v5  ;;  %v8470_v31 = vmul.f32 1.442695, %v8443_v34 }
 0xcc6   : > { %v8514_v27 = vpack.c.bf16 %v8497_v39, %v8496_v13  ;;  %v9210_v32 = vpop.f32.mrb[252].mxu1  ;;  %9752 = vpow2.f32 %v8464_v55  ;;  %v8466_v60 = vmul.f32 1.442695, %v8441_v0  ;;  %vm8424_vm5 = vcmp.gt.f32.partialorder %v14355_v28, 0.0 }
 0xcc7   : > { %v9743_v11 = vpop.eup %9742  ;;  %v14373_v30 = vadd.f32 %v9210_v32, %v8248_v9  ;;  %v8401_v14 = vpop.f32.mrb[253].mxu1  ;;  %9754 = vpow2.f32 %v8470_v31  ;;  %vm8425_vm6 = vcmp.gt.f32.partialorder %v14368_v41, 0.0  ;;  %vm8581_vm9 = vcmask 64512  }
 0xcc8   : > { %v9745_v45 = vpop.eup %9744  ;;  %v9109_v40 = vadd.f32 -1.0, %v9743_v11  ;;  %v14376_v52 = vadd.f32 %v8401_v14, %v8238_v12  ;;  %v9211_v44 = vpop.f32.mrb[254].mxu1  ;;  %9213 = vmatpush3.bf16.msra.mxu1 %v8514_v27  ;;  %9756 = vpow2.f32 %v8466_v60  ;;  %v9629_v27 = vld [vmem:[%s14458_s22] sm:$0x1f]   ;;  %vm8583_vm12 = vcmask 58368  }
 0xcc9   : > { %v9747_v1 = vpop.eup %9746  ;;  %v9107_v57 = vadd.f32 -1.0, %v9745_v45  ;;  %v8446_v3 = vmin.f32 %v14373_v30, 0.0  ;;  %v8404_v47 = vpop.f32.mrb[255].mxu1  ;;  %9214 = vmatprep.subr.bf16.mxu1 %v10067_v59  ;;  %v8413_v35 = vadd.f32 %v9211_v44, %v8253_v58  ;;  %vm8430_vm7 = vcmp.gt.f32.partialorder %v14373_v30, 0.0 }
 0xcca   : > { %v9749_v37 = vpop.eup %9748  ;;  %v9110_v50 = vadd.f32 -1.0, %v9747_v1  ;;  %v8444_v18 = vmin.f32 %v14376_v52, 0.0  ;;  %v8502_v17 = vsel %vm8422_vm15, %v14341_v10, %v9109_v40  ;;  %v8405_v23 = vadd.f32 %v8404_v47, %v8243_v20  ;;  %v8527_v31 = vpop.permute.xlu0 %8526 }
 0xccb   : > { %v9108_v7 = vadd.f32 -1.0, %v9749_v37  ;;  %v8476_v15 = vmul.f32 1.442695, %v8446_v3  ;;  %v8500_v61 = vsel %vm8420_vm0, %v14343_v21, %v9107_v57  ;;  %v8447_v10 = vmin.f32 %v8413_v35, 0.0 }
 0xccc   : > { %v8503_v51 = vsel %vm8423_vm1, %v14346_v42, %v9110_v50  ;;  %v8472_v46 = vmul.f32 1.442695, %v8444_v18  ;;  %9215 = vmatpush3.bf16.msra.mxu1 %v8515_v4  ;;  %v8445_v26 = vmin.f32 %v8405_v23, 0.0  ;;  %vm8431_vm8 = vcmp.gt.f32.partialorder %v8413_v35, 0.0 }
 0xccd   : > { %v8517_v33 = vpack.c.bf16 %v8503_v51, %v8502_v17  ;;  %v8501_v2 = vsel %vm8421_vm2, %v14349_v62, %v9108_v7  ;;  %9216 = vmatprep.subr.bf16.mxu1 %v10067_v59  ;;  %9758 = vpow2.f32 %v8476_v15  ;;  %v8478_v42 = vmul.f32 1.442695, %v8447_v10 }
 0xcce   : > { %v8516_v29 = vpack.c.bf16 %v8501_v2, %v8500_v61  ;;  %9760 = vpow2.f32 %v8472_v46  ;;  %v8474_v53 = vmul.f32 1.442695, %v8445_v26  ;;  %vm8428_vm10 = vcmp.gt.f32.partialorder %v14376_v52, 0.0 }
 0xccf   : > { %v9751_v56 = vpop.eup %9750  ;;  %9762 = vpow2.f32 %v8478_v42  ;;  %vm8429_vm11 = vcmp.gt.f32.partialorder %v8405_v23, 0.0 }
 0xcd0   : > { %9217 = vmatpush3.bf16.msra.mxu1 %v8516_v29  ;;  %v9753_v63 = vpop.eup %9752  ;;  %v9113_v12 = vadd.f32 -1.0, %v9751_v56  ;;  %9764 = vpow2.f32 %v8474_v53 }
 0xcd1   : > { %9218 = vmatprep.subr.bf16.mxu1 %v10067_v59  ;;  %v9755_v19 = vpop.eup %9754  ;;  %v9111_v62 = vadd.f32 -1.0, %v9753_v63 }
 0xcd2   : > { %v9114_v21 = vadd.f32 -1.0, %v9755_v19  ;;  %v9757_v43 = vpop.eup %9756  ;;  %v8506_v6 = vsel %vm8426_vm3, %v14353_v49, %v9113_v12 }
 0xcd3   : > { %v9112_v25 = vadd.f32 -1.0, %v9757_v43  ;;  %v8504_v38 = vsel %vm8424_vm5, %v14355_v28, %v9111_v62 }
 0xcd4   : > { %9219 = vmatpush3.bf16.msra.mxu1 %v8517_v33  ;;  %v8507_v22 = vsel %vm8427_vm4, %v14359_v24, %v9114_v21 }
 0xcd5   : > { %9220 = vmatprep.subr.bf16.mxu1 %v10067_v59  ;;  %v8519_v54 = vpack.c.bf16 %v8507_v22, %v8506_v6  ;;  %v8505_v36 = vsel %vm8425_vm6, %v14368_v41, %v9112_v25 }
 0xcd6   : > { %v8518_v5 = vpack.c.bf16 %v8505_v36, %v8504_v38 }
 0xcd7   : > { %v9759_v48 = vpop.eup %9758 }
 0xcd8   : > { %v9761_v8 = vpop.eup %9760  ;;  %v9117_v16 = vadd.f32 -1.0, %v9759_v48  ;;  %9221 = vmatpush3.bf16.msra.mxu1 %v8518_v5 }
 0xcd9   : > { %v9763_v49 = vpop.eup %9762  ;;  %v9115_v55 = vadd.f32 -1.0, %v9761_v8  ;;  %9222 = vmatprep.subr.bf16.mxu1 %v10067_v59 }
 0xcda   : > { %v9765_v24 = vpop.eup %9764  ;;  %v9118_v34 = vadd.f32 -1.0, %v9763_v49  ;;  %v8510_v13 = vsel %vm8430_vm7, %v14373_v30, %v9117_v16  ;;  %v8532_v30 = vpop.permute.xlu1 %8531 }
 0xcdb   : > { %v9116_v20 = vadd.f32 -1.0, %v9765_v24  ;;  %v8508_v41 = vsel %vm8428_vm10, %v14376_v52, %v9115_v55 }
 0xcdc   : > { %v8511_v28 = vsel %vm8431_vm8, %v8413_v35, %v9118_v34  ;;  %9223 = vmatpush3.bf16.msra.mxu1 %v8519_v54 }
 0xcdd   : > { %v8521_v4 = vpack.c.bf16 %v8511_v28, %v8510_v13  ;;  %v8509_v39 = vsel %vm8429_vm11, %v8405_v23, %v9116_v20  ;;  %9224 = vmatprep.subr.bf16.mxu1 %v10067_v59 }
 0xcde   : > { %v8520_v9 = vpack.c.bf16 %v8509_v39, %v8508_v41 }
 0xce0   : > { %9225 = vmatpush3.bf16.msra.mxu1 %v8520_v9 }
 0xce1   : > { %9226 = vmatprep.subr.bf16.mxu1 %v10067_v59 }
 0xce4   : > { %9227 = vmatpush3.bf16.msra.mxu1 %v8521_v4 }
 0xce7   : > { %9229 = vmatmul.mubr.bf16.vlgmr.msra.gmra.mrb[0].mxu1 %v9629_v27 }
 0xdba   : > { %v8574_v32 = vpop.f32.mrb[0].mxu1 }
 0xdbb   : > { %v8575_v11 = vadd.f32 %v8574_v32, %v8527_v31  ;;  %v9230_v0 = vpop.f32.mrb[1].mxu1 }
 0xdbc   : > { %v8577_v14 = vpop.f32.mrb[2].mxu1 }
 0xdbd   : > { %v8578_v45 = vadd.f32 %v8577_v14, %v8532_v30  ;;  %v9231_v40 = vpop.f32.mrb[3].mxu1  ;;  %v8582_v52 = vsel %vm8581_vm9, %v8575_v11, -inf }
 0xdbf   : > { %v8584_v59 = vsel %vm8583_vm12, %v8578_v45, -inf }
 0xdc0   : > { %v8585_v44 = vmax.f32 %v8582_v52, %v8584_v59 }
 0xdc2   : > { %v8586_v1 = vrot.slane %v8585_v44, 4 }
 0xdc4   : > { %v8587_v57 = vmax.f32 %v8585_v44, %v8586_v1 }
 0xdc6   : > { %v8588_v60 = vrot.slane %v8587_v57, 2 }
 0xdc8   : > { %v8589_v3 = vmax.f32 %v8587_v57, %v8588_v60 }
 0xdca   : > { %v8590_v47 = vrot.slane %v8589_v3, 1 }
 0xdcc   : > { %v8591_v37 = vmax.f32 %v8589_v3, %v8590_v47 }
 0xdce   : > { %v8592_v50 = vsub.f32 %v8575_v11, %v8591_v37  ;;  %v8593_v18 = vsub.f32 %v8578_v45, %v8591_v37 }
 0xdd0   : > { %v8594_v58 = vmul.f32 1.442695, %v8592_v50  ;;  %v8596_v17 = vmul.f32 1.442695, %v8593_v18 }
 0xdd2   : > { %9766 = vpow2.f32 %v8594_v58 }
 0xdd3   : > { %9768 = vpow2.f32 %v8596_v17 }
 0xddc   : > { %v9767_v7 = vpop.eup %9766 }
 0xddd   : > { %v9769_v15 = vpop.eup %9768  ;;  %v8598_v51 = vsel %vm8581_vm9, %v9767_v7, 0.0 }
 0xdde   : > { %v8599_v46 = vsel %vm8583_vm12, %v9769_v15, 0.0 }
 0xddf   : > { %v8600_v35 = vadd.f32 %v8599_v46, %v8598_v51 }
 0xde1   : > { %v8601_v23 = vrot.slane %v8600_v35, 4 }
 0xde3   : > { %v8602_v61 = vadd.f32 %v8601_v23, %v8600_v35 }
 0xde5   : > { %v8603_v33 = vrot.slane %v8602_v61, 2 }
 0xde7   : > { %v8604_v2 = vadd.f32 %v8603_v33, %v8602_v61 }
 0xde9   : > { %v8605_v29 = vrot.slane %v8604_v2, 1 }
 0xdeb   : > { %v8606_v10 = vadd.f32 %v8605_v29, %v8604_v2 }
 0xded   : > { %9770 = vlog2.f32 %v8606_v10 }
 0xdf7   : > { %v9771_v56 = vpop.eup %9770 }
 0xdf8   : > { %v8608_v26 = vmul.f32 0.6931472, %v9771_v56 }
 0xdfa   : > { %v8609_v42 = vsub.f32 %v8592_v50, %v8608_v26  ;;  %v8610_v63 = vsub.f32 %v8593_v18, %v8608_v26 }
 0xdfc   : > { %8611 = vst.msk [vmem:[%s851_s25] sm:$0xff] %vm8581_vm9, %v8609_v42 }
 0xdfd   : > { %8612 = vst.msk [vmem:[%s851_s25 + $0x8] sm:$0x3] %vm8583_vm12, %v8610_v63 }
 0xdfe PF: > { %s14708_s28 = sld [smem:[#allocation6_spill]]  ;;  %s14709_s1 = sld [smem:[#allocation5_spill]] }
 0xdff   : > { %s14710_s27 = sld [smem:[#allocation7_spill]]  ;;  %s14711_s5 = smov %s10052_s26 }
 0xe04   : > { %p34_p7 = scmp.ge.s32.totalorder %s14708_s28, 4   ;;  %s14712_s26 = smov %s14709_s1 }
 0xe06   :  { %36 = sbr.rel (!%p34_p7) target bundleno = 14 (0xe), region = 171 }
 0xe0d   :  { %8634 = vsyncpa [#allocation3], 1 }
 0xe0e   :  { %8636 = vsyncpa [#allocation3 + $0x1], 1 }

</bundles_post_ra>
